<compile_context>
chip_gen: v6e
topology: v6e:2x2x1
jax: 0.10.0
libtpu: 0.0.40
codegen_flags: <defaults>
</compile_context>

<pallas_src>
import functools

import jax
import jax.numpy as jnp
from jax.experimental import pallas as pl
from jax.experimental.pallas import tpu as pltpu


_SLOT = 128   # lane-aligned im2col slot width per 3x3 tap (MXU lane width)
_CMID = 64    # DnCNN hidden channel count


def _dncnn_kernel(x_ref, w1_ref, w2_ref, w3_ref, scale_ref, shift_ref,
                  o_ref, padx_ref, padh_ref, col_ref, *, H, W, Cin, Cout):
    """Fused conv1+ReLU -> conv2+BN+ReLU -> conv3 for one image (NHWC)."""
    HW = H * W

    # Zero the padded slabs (the 1-pixel borders must read as zero) and the
    # im2col buffer (lanes [cin:128) of each tap slot multiply zero weight
    # rows, but must hold finite values, so keep them zero).
    padx_ref[...] = jnp.zeros(padx_ref.shape, padx_ref.dtype)
    padh_ref[...] = jnp.zeros(padh_ref.shape, padh_ref.dtype)
    col_ref[...] = jnp.zeros(col_ref.shape, col_ref.dtype)

    # In-kernel zero padding of the input (no wrapper-side jnp.pad).
    padx_ref[1:H + 1, 1:W + 1, :] = x_ref[0]

    def conv3x3(src_ref, cin, w_ref):
        # Assemble im2col: tap (dy, dx) goes into the 128-lane-aligned slot
        # [tap*128, tap*128 + cin).  The (H, W, cin) -> (H*W, cin) reshape
        # only merges leading dims; stores are aligned masked lane stores.
        for tap in range(9):
            dy, dx = divmod(tap, 3)
            patch = src_ref[dy:dy + H, dx:dx + W, :]            # (H, W, cin) f32
            col_ref[:, tap * _SLOT:tap * _SLOT + cin] = (
                patch.reshape(HW, cin).astype(jnp.bfloat16))
        # Single deep-K bf16 MXU matmul per layer, f32 accumulation.
        return jnp.dot(col_ref[...], w_ref[...],
                       preferred_element_type=jnp.float32)       # (H*W, cout)

    # ---- layer 1: conv(Cin -> 64) + ReLU ---------------------------------
    y1 = jnp.maximum(conv3x3(padx_ref, Cin, w1_ref), 0.0)
    padh_ref[1:H + 1, 1:W + 1, :] = y1.reshape(H, W, _CMID)

    # ---- layer 2: conv(64 -> 64) + BN (folded affine) + ReLU -------------
    y2 = conv3x3(padh_ref, _CMID, w2_ref)
    y2 = jnp.maximum(y2 * scale_ref[...] + shift_ref[...], 0.0)
    padh_ref[1:H + 1, 1:W + 1, :] = y2.reshape(H, W, _CMID)

    # ---- layer 3: conv(64 -> Cout), no activation ------------------------
    y3 = conv3x3(padh_ref, _CMID, w3_ref)
    o_ref[0] = y3.reshape(H, W, Cout).astype(o_ref.dtype)


def _pack_conv_weight(w):
    """(3,3,cin,cout) f32 HWIO -> (9*_SLOT, cout) bf16.

    Each 3x3 tap occupies one zero-padded 128-row slot, matching the
    in-kernel im2col layout (zero rows line up with the zero lanes of col).
    """
    _, _, cin, cout = w.shape
    w9 = w.reshape(9, cin, cout)
    wp = jnp.zeros((9, _SLOT, cout), w.dtype).at[:, :cin, :].set(w9)
    return wp.reshape(9 * _SLOT, cout).astype(jnp.bfloat16)


def dncnn_forward(params, x_nchw, eps=1e-5):
    """Full DnCNN forward.  Input/output in NCHW to match PyTorch semantics."""
    N, C, H, W = x_nchw.shape
    x = jnp.transpose(x_nchw, (0, 2, 3, 1))                     # NCHW -> NHWC

    w1 = _pack_conv_weight(params["conv1_w"])                   # (1152, 64) bf16
    w2 = _pack_conv_weight(params["conv2_w"])                   # (1152, 64) bf16
    w3 = _pack_conv_weight(params["conv3_w"])                   # (1152, C)  bf16

    # Eval-mode BatchNorm folded into a per-channel affine (f32).
    bn_scale = params["bn2_gamma"] / jnp.sqrt(params["bn2_var"] + eps)
    bn_shift = params["bn2_beta"] - params["bn2_mean"] * bn_scale
    scale = bn_scale.reshape(1, _CMID).astype(jnp.float32)
    shift = bn_shift.reshape(1, _CMID).astype(jnp.float32)

    kernel = functools.partial(_dncnn_kernel, H=H, W=W, Cin=C, Cout=C)

    flops = 2 * N * H * W * 9 * (C * _CMID + _CMID * _CMID + _CMID * C)
    w_bytes = 2 * 9 * _SLOT * (2 * _CMID + C)                    # bf16 weights
    bytes_accessed = 2 * N * H * W * C * 4 + w_bytes + 2 * _CMID * 4

    out_nhwc = pl.pallas_call(
        kernel,
        out_shape=jax.ShapeDtypeStruct((N, H, W, C), jnp.float32),
        grid_spec=pltpu.PrefetchScalarGridSpec(
            num_scalar_prefetch=0,
            grid=(N,),
            in_specs=[
                pl.BlockSpec((1, H, W, C), lambda n: (n, 0, 0, 0)),
                pl.BlockSpec((9 * _SLOT, _CMID), lambda n: (0, 0)),
                pl.BlockSpec((9 * _SLOT, _CMID), lambda n: (0, 0)),
                pl.BlockSpec((9 * _SLOT, C), lambda n: (0, 0)),
                pl.BlockSpec((1, _CMID), lambda n: (0, 0)),
                pl.BlockSpec((1, _CMID), lambda n: (0, 0)),
            ],
            out_specs=pl.BlockSpec((1, H, W, C), lambda n: (n, 0, 0, 0)),
            scratch_shapes=[
                pltpu.VMEM((H + 2, W + 2, C), jnp.float32),       # padded input
                pltpu.VMEM((H + 2, W + 2, _CMID), jnp.float32),   # padded hidden act
                pltpu.VMEM((H * W, 9 * _SLOT), jnp.bfloat16),     # im2col buffer
            ]),
        compiler_params=pltpu.CompilerParams(
            dimension_semantics=("parallel",),
            vmem_limit_bytes=48 * 1024 * 1024),
        cost_estimate=pl.CostEstimate(flops=flops, transcendentals=0,
                                      bytes_accessed=bytes_accessed),
    )(x, w1, w2, w3, scale, shift)

    return jnp.transpose(out_nhwc, (0, 3, 1, 2))                 # NHWC -> NCHW


def init_params(key, c):
    """Deterministic parameter init matching Dncnn(__init__) shapes (HWIO)."""
    k1, k2, k3, k4, k5 = jax.random.split(key, 5)
    params = {
        "conv1_w": 0.1 * jax.random.normal(k1, (3, 3, c, 64), jnp.float32),
        "conv2_w": 0.1 * jax.random.normal(k2, (3, 3, 64, 64), jnp.float32),
        "conv3_w": 0.1 * jax.random.normal(k3, (3, 3, 64, c), jnp.float32),
        # BatchNorm2d(64): eval-mode semantics with deterministic params.
        "bn2_gamma": 1.0 + 0.05 * jax.random.normal(k4, (64,), jnp.float32),
        "bn2_beta": 0.05 * jax.random.normal(k5, (64,), jnp.float32),
        "bn2_mean": jnp.zeros((64,), jnp.float32),
        "bn2_var": jnp.ones((64,), jnp.float32),
    }
    return params


def _reference_forward(params, x_nchw, eps=1e-5):
    """Pure-JAX f32 reference (lax.conv) for correctness checking."""
    def conv(x, w):  # x NHWC, w HWIO
        return jax.lax.conv_general_dilated(
            x, w, window_strides=(1, 1), padding="SAME",
            dimension_numbers=("NHWC", "HWIO", "NHWC"))

    x = jnp.transpose(x_nchw, (0, 2, 3, 1))
    h = jax.nn.relu(conv(x, params["conv1_w"]))
    bn_scale = params["bn2_gamma"] / jnp.sqrt(params["bn2_var"] + eps)
    bn_shift = params["bn2_beta"] - params["bn2_mean"] * bn_scale
    h = jax.nn.relu(conv(h, params["conv2_w"]) * bn_scale + bn_shift)
    y = conv(h, params["conv3_w"])
    return jnp.transpose(y, (0, 3, 1, 2))


if __name__ == "__main__":
    key = jax.random.PRNGKey(0)
    kx, kp = jax.random.split(key)

    N, C, H, W = 2, 4, 16, 16
    x = jax.random.normal(kx, (N, C, H, W), jnp.float32)
    params = init_params(kp, C)

    out = jax.block_until_ready(dncnn_forward(params, x))
    assert out.shape == (N, C, H, W), out.shape

    ref = jax.block_until_ready(_reference_forward(params, x))
    # Kernel uses bf16 MXU operands with f32 accumulation; reference is pure
    # f32, so compare with a normalized max-error tolerance.
    err = float(jnp.max(jnp.abs(out - ref)))
    scale = float(jnp.max(jnp.abs(ref))) + 1e-6
    assert err / scale < 5e-2, (err, scale)

    print("KERNEL_OK")
</pallas_src>

<mosaic_0001>
module attributes {stable_mosaic.version = 11 : i64} {
  func.func @_dncnn_kernel(%arg0: i32, %arg1: memref<1x16x16x4xf32, #tpu.memory_space<vmem>>, %arg2: memref<1152x64xbf16, #tpu.memory_space<vmem>>, %arg3: memref<1152x64xbf16, #tpu.memory_space<vmem>>, %arg4: memref<1152x4xbf16, #tpu.memory_space<vmem>>, %arg5: memref<1x64xf32, #tpu.memory_space<vmem>>, %arg6: memref<1x64xf32, #tpu.memory_space<vmem>>, %arg7: memref<1x16x16x4xf32, #tpu.memory_space<vmem>>, %arg8: memref<18x18x4xf32, #tpu.memory_space<vmem>>, %arg9: memref<18x18x64xf32, #tpu.memory_space<vmem>>, %arg10: memref<256x1152xbf16, #tpu.memory_space<vmem>>) attributes {dimension_semantics = [#tpu.dimension_semantics<parallel>], iteration_bounds = array<i64: 2>, scalar_prefetch = 0 : i64, scratch_operands = 3 : i64, tpu.core_type = #tpu.core_type<tc>, window_params = [{transform_indices = @transform_0, window_bounds = array<i64: 1, 16, 16, 4>}, {pipeline_mode = #tpu.pipeline_mode<synchronous>, transform_indices = @transform_1, window_bounds = array<i64: 1152, 64>}, {pipeline_mode = #tpu.pipeline_mode<synchronous>, transform_indices = @transform_2, window_bounds = array<i64: 1152, 64>}, {pipeline_mode = #tpu.pipeline_mode<synchronous>, transform_indices = @transform_3, window_bounds = array<i64: 1152, 4>}, {pipeline_mode = #tpu.pipeline_mode<synchronous>, transform_indices = @transform_4, window_bounds = array<i64: 1, 64>}, {pipeline_mode = #tpu.pipeline_mode<synchronous>, transform_indices = @transform_5, window_bounds = array<i64: 1, 64>}, {transform_indices = @transform_6, window_bounds = array<i64: 1, 16, 16, 4>}]} {
    %cst = arith.constant 0.000000e+00 : f32
    %0 = vector.broadcast %cst : f32 to vector<18x18x4xf32>
    %c0 = arith.constant 0 : index
    %c0_0 = arith.constant 0 : index
    %c0_1 = arith.constant 0 : index
    %1 = vector.load %arg8[%c0, %c0_0, %c0_1] : memref<18x18x4xf32, #tpu.memory_space<vmem>>, vector<18x18x4xf32>
    tpu.vector_store %arg8[%c0, %c0_0, %c0_1], %0 {strides = array<i32>} : memref<18x18x4xf32, #tpu.memory_space<vmem>>, vector<18x18x4xf32>,
    %cst_2 = arith.constant 0.000000e+00 : f32
    %2 = vector.broadcast %cst_2 : f32 to vector<18x18x64xf32>
    %c0_3 = arith.constant 0 : index
    %c0_4 = arith.constant 0 : index
    %c0_5 = arith.constant 0 : index
    %3 = vector.load %arg9[%c0_3, %c0_4, %c0_5] : memref<18x18x64xf32, #tpu.memory_space<vmem>>, vector<18x18x64xf32>
    tpu.vector_store %arg9[%c0_3, %c0_4, %c0_5], %2 {strides = array<i32>} : memref<18x18x64xf32, #tpu.memory_space<vmem>>, vector<18x18x64xf32>,
    %cst_6 = arith.constant 0.000000e+00 : bf16
    %4 = vector.broadcast %cst_6 : bf16 to vector<256x1152xbf16>
    %c0_7 = arith.constant 0 : index
    %c0_8 = arith.constant 0 : index
    %5 = vector.load %arg10[%c0_7, %c0_8] : memref<256x1152xbf16, #tpu.memory_space<vmem>>, vector<256x1152xbf16>
    tpu.vector_store %arg10[%c0_7, %c0_8], %4 {strides = array<i32>} : memref<256x1152xbf16, #tpu.memory_space<vmem>>, vector<256x1152xbf16>,
    %c0_9 = arith.constant 0 : index
    %c0_10 = arith.constant 0 : index
    %c0_11 = arith.constant 0 : index
    %c0_12 = arith.constant 0 : index
    %6 = vector.load %arg1[%c0_9, %c0_10, %c0_11, %c0_12] : memref<1x16x16x4xf32, #tpu.memory_space<vmem>>, vector<1x16x16x4xf32>
    %7 = vector.shape_cast %6 : vector<1x16x16x4xf32> to vector<16x16x4xf32>
    %c1 = arith.constant 1 : index
    %c1_13 = arith.constant 1 : index
    %c0_14 = arith.constant 0 : index
    %8 = vector.load %arg8[%c1, %c1_13, %c0_14] : memref<18x18x4xf32, #tpu.memory_space<vmem>>, vector<16x16x4xf32>
    tpu.vector_store %arg8[%c1, %c1_13, %c0_14], %7 {strides = array<i32>} : memref<18x18x4xf32, #tpu.memory_space<vmem>>, vector<16x16x4xf32>,
    %c0_15 = arith.constant 0 : index
    %c0_16 = arith.constant 0 : index
    %c0_17 = arith.constant 0 : index
    %9 = vector.load %arg8[%c0_15, %c0_16, %c0_17] : memref<18x18x4xf32, #tpu.memory_space<vmem>>, vector<16x16x4xf32>
    %10 = vector.shape_cast %9 : vector<16x16x4xf32> to vector<256x4xf32>
    %11 = arith.truncf %10 : vector<256x4xf32> to vector<256x4xbf16>
    %c0_18 = arith.constant 0 : index
    %c0_19 = arith.constant 0 : index
    %12 = vector.load %arg10[%c0_18, %c0_19] : memref<256x1152xbf16, #tpu.memory_space<vmem>>, vector<256x4xbf16>
    tpu.vector_store %arg10[%c0_18, %c0_19], %11 {strides = array<i32>} : memref<256x1152xbf16, #tpu.memory_space<vmem>>, vector<256x4xbf16>,
    %c0_20 = arith.constant 0 : index
    %c1_21 = arith.constant 1 : index
    %c0_22 = arith.constant 0 : index
    %13 = vector.load %arg8[%c0_20, %c1_21, %c0_22] : memref<18x18x4xf32, #tpu.memory_space<vmem>>, vector<16x16x4xf32>
    %14 = vector.shape_cast %13 : vector<16x16x4xf32> to vector<256x4xf32>
    %15 = arith.truncf %14 : vector<256x4xf32> to vector<256x4xbf16>
    %c0_23 = arith.constant 0 : index
    %c128 = arith.constant 128 : index
    %16 = vector.load %arg10[%c0_23, %c128] : memref<256x1152xbf16, #tpu.memory_space<vmem>>, vector<256x4xbf16>
    tpu.vector_store %arg10[%c0_23, %c128], %15 {strides = array<i32>} : memref<256x1152xbf16, #tpu.memory_space<vmem>>, vector<256x4xbf16>,
    %c0_24 = arith.constant 0 : index
    %c2 = arith.constant 2 : index
    %c0_25 = arith.constant 0 : index
    %17 = vector.load %arg8[%c0_24, %c2, %c0_25] : memref<18x18x4xf32, #tpu.memory_space<vmem>>, vector<16x16x4xf32>
    %18 = vector.shape_cast %17 : vector<16x16x4xf32> to vector<256x4xf32>
    %19 = arith.truncf %18 : vector<256x4xf32> to vector<256x4xbf16>
    %c0_26 = arith.constant 0 : index
    %c256 = arith.constant 256 : index
    %20 = vector.load %arg10[%c0_26, %c256] : memref<256x1152xbf16, #tpu.memory_space<vmem>>, vector<256x4xbf16>
    tpu.vector_store %arg10[%c0_26, %c256], %19 {strides = array<i32>} : memref<256x1152xbf16, #tpu.memory_space<vmem>>, vector<256x4xbf16>,
    %c1_27 = arith.constant 1 : index
    %c0_28 = arith.constant 0 : index
    %c0_29 = arith.constant 0 : index
    %21 = vector.load %arg8[%c1_27, %c0_28, %c0_29] : memref<18x18x4xf32, #tpu.memory_space<vmem>>, vector<16x16x4xf32>
    %22 = vector.shape_cast %21 : vector<16x16x4xf32> to vector<256x4xf32>
    %23 = arith.truncf %22 : vector<256x4xf32> to vector<256x4xbf16>
    %c0_30 = arith.constant 0 : index
    %c384 = arith.constant 384 : index
    %24 = vector.load %arg10[%c0_30, %c384] : memref<256x1152xbf16, #tpu.memory_space<vmem>>, vector<256x4xbf16>
    tpu.vector_store %arg10[%c0_30, %c384], %23 {strides = array<i32>} : memref<256x1152xbf16, #tpu.memory_space<vmem>>, vector<256x4xbf16>,
    %c1_31 = arith.constant 1 : index
    %c1_32 = arith.constant 1 : index
    %c0_33 = arith.constant 0 : index
    %25 = vector.load %arg8[%c1_31, %c1_32, %c0_33] : memref<18x18x4xf32, #tpu.memory_space<vmem>>, vector<16x16x4xf32>
    %26 = vector.shape_cast %25 : vector<16x16x4xf32> to vector<256x4xf32>
    %27 = arith.truncf %26 : vector<256x4xf32> to vector<256x4xbf16>
    %c0_34 = arith.constant 0 : index
    %c512 = arith.constant 512 : index
    %28 = vector.load %arg10[%c0_34, %c512] : memref<256x1152xbf16, #tpu.memory_space<vmem>>, vector<256x4xbf16>
    tpu.vector_store %arg10[%c0_34, %c512], %27 {strides = array<i32>} : memref<256x1152xbf16, #tpu.memory_space<vmem>>, vector<256x4xbf16>,
    %c1_35 = arith.constant 1 : index
    %c2_36 = arith.constant 2 : index
    %c0_37 = arith.constant 0 : index
    %29 = vector.load %arg8[%c1_35, %c2_36, %c0_37] : memref<18x18x4xf32, #tpu.memory_space<vmem>>, vector<16x16x4xf32>
    %30 = vector.shape_cast %29 : vector<16x16x4xf32> to vector<256x4xf32>
    %31 = arith.truncf %30 : vector<256x4xf32> to vector<256x4xbf16>
    %c0_38 = arith.constant 0 : index
    %c640 = arith.constant 640 : index
    %32 = vector.load %arg10[%c0_38, %c640] : memref<256x1152xbf16, #tpu.memory_space<vmem>>, vector<256x4xbf16>
    tpu.vector_store %arg10[%c0_38, %c640], %31 {strides = array<i32>} : memref<256x1152xbf16, #tpu.memory_space<vmem>>, vector<256x4xbf16>,
    %c2_39 = arith.constant 2 : index
    %c0_40 = arith.constant 0 : index
    %c0_41 = arith.constant 0 : index
    %33 = vector.load %arg8[%c2_39, %c0_40, %c0_41] : memref<18x18x4xf32, #tpu.memory_space<vmem>>, vector<16x16x4xf32>
    %34 = vector.shape_cast %33 : vector<16x16x4xf32> to vector<256x4xf32>
    %35 = arith.truncf %34 : vector<256x4xf32> to vector<256x4xbf16>
    %c0_42 = arith.constant 0 : index
    %c768 = arith.constant 768 : index
    %36 = vector.load %arg10[%c0_42, %c768] : memref<256x1152xbf16, #tpu.memory_space<vmem>>, vector<256x4xbf16>
    tpu.vector_store %arg10[%c0_42, %c768], %35 {strides = array<i32>} : memref<256x1152xbf16, #tpu.memory_space<vmem>>, vector<256x4xbf16>,
    %c2_43 = arith.constant 2 : index
    %c1_44 = arith.constant 1 : index
    %c0_45 = arith.constant 0 : index
    %37 = vector.load %arg8[%c2_43, %c1_44, %c0_45] : memref<18x18x4xf32, #tpu.memory_space<vmem>>, vector<16x16x4xf32>
    %38 = vector.shape_cast %37 : vector<16x16x4xf32> to vector<256x4xf32>
    %39 = arith.truncf %38 : vector<256x4xf32> to vector<256x4xbf16>
    %c0_46 = arith.constant 0 : index
    %c896 = arith.constant 896 : index
    %40 = vector.load %arg10[%c0_46, %c896] : memref<256x1152xbf16, #tpu.memory_space<vmem>>, vector<256x4xbf16>
    tpu.vector_store %arg10[%c0_46, %c896], %39 {strides = array<i32>} : memref<256x1152xbf16, #tpu.memory_space<vmem>>, vector<256x4xbf16>,
    %c2_47 = arith.constant 2 : index
    %c2_48 = arith.constant 2 : index
    %c0_49 = arith.constant 0 : index
    %41 = vector.load %arg8[%c2_47, %c2_48, %c0_49] : memref<18x18x4xf32, #tpu.memory_space<vmem>>, vector<16x16x4xf32>
    %42 = vector.shape_cast %41 : vector<16x16x4xf32> to vector<256x4xf32>
    %43 = arith.truncf %42 : vector<256x4xf32> to vector<256x4xbf16>
    %c0_50 = arith.constant 0 : index
    %c1024 = arith.constant 1024 : index
    %44 = vector.load %arg10[%c0_50, %c1024] : memref<256x1152xbf16, #tpu.memory_space<vmem>>, vector<256x4xbf16>
    tpu.vector_store %arg10[%c0_50, %c1024], %43 {strides = array<i32>} : memref<256x1152xbf16, #tpu.memory_space<vmem>>, vector<256x4xbf16>,
    %c0_51 = arith.constant 0 : index
    %c0_52 = arith.constant 0 : index
    %45 = vector.load %arg10[%c0_51, %c0_52] : memref<256x1152xbf16, #tpu.memory_space<vmem>>, vector<256x1152xbf16>
    %c0_53 = arith.constant 0 : index
    %c0_54 = arith.constant 0 : index
    %46 = vector.load %arg2[%c0_53, %c0_54] : memref<1152x64xbf16, #tpu.memory_space<vmem>>, vector<1152x64xbf16>
    %cst_55 = arith.constant dense<0.000000e+00> : vector<256x64xf32>
    %47 = tpu.matmul %45, %46, %cst_55 {dimension_numbers = #tpu.dot_dimension_numbers<[1], [0], [0], [1], [0, 0, 1, 1], [], []>} : vector<256x1152xbf16>, vector<1152x64xbf16>, vector<256x64xf32> -> vector<256x64xf32>
    %cst_56 = arith.constant 0.000000e+00 : f32
    %48 = vector.broadcast %cst_56 : f32 to vector<256x64xf32>
    %49 = arith.maximumf %47, %48 : vector<256x64xf32>
    %50 = vector.shape_cast %49 : vector<256x64xf32> to vector<16x16x64xf32>
    %c1_57 = arith.constant 1 : index
    %c1_58 = arith.constant 1 : index
    %c0_59 = arith.constant 0 : index
    %51 = vector.load %arg9[%c1_57, %c1_58, %c0_59] : memref<18x18x64xf32, #tpu.memory_space<vmem>>, vector<16x16x64xf32>
    tpu.vector_store %arg9[%c1_57, %c1_58, %c0_59], %50 {strides = array<i32>} : memref<18x18x64xf32, #tpu.memory_space<vmem>>, vector<16x16x64xf32>,
    %c0_60 = arith.constant 0 : index
    %c0_61 = arith.constant 0 : index
    %c0_62 = arith.constant 0 : index
    %52 = vector.load %arg9[%c0_60, %c0_61, %c0_62] : memref<18x18x64xf32, #tpu.memory_space<vmem>>, vector<16x16x64xf32>
    %53 = vector.shape_cast %52 : vector<16x16x64xf32> to vector<256x64xf32>
    %54 = arith.truncf %53 : vector<256x64xf32> to vector<256x64xbf16>
    %c0_63 = arith.constant 0 : index
    %c0_64 = arith.constant 0 : index
    %55 = vector.load %arg10[%c0_63, %c0_64] : memref<256x1152xbf16, #tpu.memory_space<vmem>>, vector<256x64xbf16>
    tpu.vector_store %arg10[%c0_63, %c0_64], %54 {strides = array<i32>} : memref<256x1152xbf16, #tpu.memory_space<vmem>>, vector<256x64xbf16>,
    %c0_65 = arith.constant 0 : index
    %c1_66 = arith.constant 1 : index
    %c0_67 = arith.constant 0 : index
    %56 = vector.load %arg9[%c0_65, %c1_66, %c0_67] : memref<18x18x64xf32, #tpu.memory_space<vmem>>, vector<16x16x64xf32>
    %57 = vector.shape_cast %56 : vector<16x16x64xf32> to vector<256x64xf32>
    %58 = arith.truncf %57 : vector<256x64xf32> to vector<256x64xbf16>
    %c0_68 = arith.constant 0 : index
    %c128_69 = arith.constant 128 : index
    %59 = vector.load %arg10[%c0_68, %c128_69] : memref<256x1152xbf16, #tpu.memory_space<vmem>>, vector<256x64xbf16>
    tpu.vector_store %arg10[%c0_68, %c128_69], %58 {strides = array<i32>} : memref<256x1152xbf16, #tpu.memory_space<vmem>>, vector<256x64xbf16>,
    %c0_70 = arith.constant 0 : index
    %c2_71 = arith.constant 2 : index
    %c0_72 = arith.constant 0 : index
    %60 = vector.load %arg9[%c0_70, %c2_71, %c0_72] : memref<18x18x64xf32, #tpu.memory_space<vmem>>, vector<16x16x64xf32>
    %61 = vector.shape_cast %60 : vector<16x16x64xf32> to vector<256x64xf32>
    %62 = arith.truncf %61 : vector<256x64xf32> to vector<256x64xbf16>
    %c0_73 = arith.constant 0 : index
    %c256_74 = arith.constant 256 : index
    %63 = vector.load %arg10[%c0_73, %c256_74] : memref<256x1152xbf16, #tpu.memory_space<vmem>>, vector<256x64xbf16>
    tpu.vector_store %arg10[%c0_73, %c256_74], %62 {strides = array<i32>} : memref<256x1152xbf16, #tpu.memory_space<vmem>>, vector<256x64xbf16>,
    %c1_75 = arith.constant 1 : index
    %c0_76 = arith.constant 0 : index
    %c0_77 = arith.constant 0 : index
    %64 = vector.load %arg9[%c1_75, %c0_76, %c0_77] : memref<18x18x64xf32, #tpu.memory_space<vmem>>, vector<16x16x64xf32>
    %65 = vector.shape_cast %64 : vector<16x16x64xf32> to vector<256x64xf32>
    %66 = arith.truncf %65 : vector<256x64xf32> to vector<256x64xbf16>
    %c0_78 = arith.constant 0 : index
    %c384_79 = arith.constant 384 : index
    %67 = vector.load %arg10[%c0_78, %c384_79] : memref<256x1152xbf16, #tpu.memory_space<vmem>>, vector<256x64xbf16>
    tpu.vector_store %arg10[%c0_78, %c384_79], %66 {strides = array<i32>} : memref<256x1152xbf16, #tpu.memory_space<vmem>>, vector<256x64xbf16>,
    %c1_80 = arith.constant 1 : index
    %c1_81 = arith.constant 1 : index
    %c0_82 = arith.constant 0 : index
    %68 = vector.load %arg9[%c1_80, %c1_81, %c0_82] : memref<18x18x64xf32, #tpu.memory_space<vmem>>, vector<16x16x64xf32>
    %69 = vector.shape_cast %68 : vector<16x16x64xf32> to vector<256x64xf32>
    %70 = arith.truncf %69 : vector<256x64xf32> to vector<256x64xbf16>
    %c0_83 = arith.constant 0 : index
    %c512_84 = arith.constant 512 : index
    %71 = vector.load %arg10[%c0_83, %c512_84] : memref<256x1152xbf16, #tpu.memory_space<vmem>>, vector<256x64xbf16>
    tpu.vector_store %arg10[%c0_83, %c512_84], %70 {strides = array<i32>} : memref<256x1152xbf16, #tpu.memory_space<vmem>>, vector<256x64xbf16>,
    %c1_85 = arith.constant 1 : index
    %c2_86 = arith.constant 2 : index
    %c0_87 = arith.constant 0 : index
    %72 = vector.load %arg9[%c1_85, %c2_86, %c0_87] : memref<18x18x64xf32, #tpu.memory_space<vmem>>, vector<16x16x64xf32>
    %73 = vector.shape_cast %72 : vector<16x16x64xf32> to vector<256x64xf32>
    %74 = arith.truncf %73 : vector<256x64xf32> to vector<256x64xbf16>
    %c0_88 = arith.constant 0 : index
    %c640_89 = arith.constant 640 : index
    %75 = vector.load %arg10[%c0_88, %c640_89] : memref<256x1152xbf16, #tpu.memory_space<vmem>>, vector<256x64xbf16>
    tpu.vector_store %arg10[%c0_88, %c640_89], %74 {strides = array<i32>} : memref<256x1152xbf16, #tpu.memory_space<vmem>>, vector<256x64xbf16>,
    %c2_90 = arith.constant 2 : index
    %c0_91 = arith.constant 0 : index
    %c0_92 = arith.constant 0 : index
    %76 = vector.load %arg9[%c2_90, %c0_91, %c0_92] : memref<18x18x64xf32, #tpu.memory_space<vmem>>, vector<16x16x64xf32>
    %77 = vector.shape_cast %76 : vector<16x16x64xf32> to vector<256x64xf32>
    %78 = arith.truncf %77 : vector<256x64xf32> to vector<256x64xbf16>
    %c0_93 = arith.constant 0 : index
    %c768_94 = arith.constant 768 : index
    %79 = vector.load %arg10[%c0_93, %c768_94] : memref<256x1152xbf16, #tpu.memory_space<vmem>>, vector<256x64xbf16>
    tpu.vector_store %arg10[%c0_93, %c768_94], %78 {strides = array<i32>} : memref<256x1152xbf16, #tpu.memory_space<vmem>>, vector<256x64xbf16>,
    %c2_95 = arith.constant 2 : index
    %c1_96 = arith.constant 1 : index
    %c0_97 = arith.constant 0 : index
    %80 = vector.load %arg9[%c2_95, %c1_96, %c0_97] : memref<18x18x64xf32, #tpu.memory_space<vmem>>, vector<16x16x64xf32>
    %81 = vector.shape_cast %80 : vector<16x16x64xf32> to vector<256x64xf32>
    %82 = arith.truncf %81 : vector<256x64xf32> to vector<256x64xbf16>
    %c0_98 = arith.constant 0 : index
    %c896_99 = arith.constant 896 : index
    %83 = vector.load %arg10[%c0_98, %c896_99] : memref<256x1152xbf16, #tpu.memory_space<vmem>>, vector<256x64xbf16>
    tpu.vector_store %arg10[%c0_98, %c896_99], %82 {strides = array<i32>} : memref<256x1152xbf16, #tpu.memory_space<vmem>>, vector<256x64xbf16>,
    %c2_100 = arith.constant 2 : index
    %c2_101 = arith.constant 2 : index
    %c0_102 = arith.constant 0 : index
    %84 = vector.load %arg9[%c2_100, %c2_101, %c0_102] : memref<18x18x64xf32, #tpu.memory_space<vmem>>, vector<16x16x64xf32>
    %85 = vector.shape_cast %84 : vector<16x16x64xf32> to vector<256x64xf32>
    %86 = arith.truncf %85 : vector<256x64xf32> to vector<256x64xbf16>
    %c0_103 = arith.constant 0 : index
    %c1024_104 = arith.constant 1024 : index
    %87 = vector.load %arg10[%c0_103, %c1024_104] : memref<256x1152xbf16, #tpu.memory_space<vmem>>, vector<256x64xbf16>
    tpu.vector_store %arg10[%c0_103, %c1024_104], %86 {strides = array<i32>} : memref<256x1152xbf16, #tpu.memory_space<vmem>>, vector<256x64xbf16>,
    %c0_105 = arith.constant 0 : index
    %c0_106 = arith.constant 0 : index
    %88 = vector.load %arg10[%c0_105, %c0_106] : memref<256x1152xbf16, #tpu.memory_space<vmem>>, vector<256x1152xbf16>
    %c0_107 = arith.constant 0 : index
    %c0_108 = arith.constant 0 : index
    %89 = vector.load %arg3[%c0_107, %c0_108] : memref<1152x64xbf16, #tpu.memory_space<vmem>>, vector<1152x64xbf16>
    %cst_109 = arith.constant dense<0.000000e+00> : vector<256x64xf32>
    %90 = tpu.matmul %88, %89, %cst_109 {dimension_numbers = #tpu.dot_dimension_numbers<[1], [0], [0], [1], [0, 0, 1, 1], [], []>} : vector<256x1152xbf16>, vector<1152x64xbf16>, vector<256x64xf32> -> vector<256x64xf32>
    %c0_110 = arith.constant 0 : index
    %c0_111 = arith.constant 0 : index
    %91 = vector.load %arg5[%c0_110, %c0_111] : memref<1x64xf32, #tpu.memory_space<vmem>>, vector<1x64xf32>
    %92 = vector.broadcast %91 : vector<1x64xf32> to vector<256x64xf32>
    %93 = arith.mulf %90, %92 : vector<256x64xf32>
    %c0_112 = arith.constant 0 : index
    %c0_113 = arith.constant 0 : index
    %94 = vector.load %arg6[%c0_112, %c0_113] : memref<1x64xf32, #tpu.memory_space<vmem>>, vector<1x64xf32>
    %95 = vector.broadcast %94 : vector<1x64xf32> to vector<256x64xf32>
    %96 = arith.addf %93, %95 : vector<256x64xf32>
    %cst_114 = arith.constant 0.000000e+00 : f32
    %97 = vector.broadcast %cst_114 : f32 to vector<256x64xf32>
    %98 = arith.maximumf %96, %97 : vector<256x64xf32>
    %99 = vector.shape_cast %98 : vector<256x64xf32> to vector<16x16x64xf32>
    %c1_115 = arith.constant 1 : index
    %c1_116 = arith.constant 1 : index
    %c0_117 = arith.constant 0 : index
    %100 = vector.load %arg9[%c1_115, %c1_116, %c0_117] : memref<18x18x64xf32, #tpu.memory_space<vmem>>, vector<16x16x64xf32>
    tpu.vector_store %arg9[%c1_115, %c1_116, %c0_117], %99 {strides = array<i32>} : memref<18x18x64xf32, #tpu.memory_space<vmem>>, vector<16x16x64xf32>,
    %c0_118 = arith.constant 0 : index
    %c0_119 = arith.constant 0 : index
    %c0_120 = arith.constant 0 : index
    %101 = vector.load %arg9[%c0_118, %c0_119, %c0_120] : memref<18x18x64xf32, #tpu.memory_space<vmem>>, vector<16x16x64xf32>
    %102 = vector.shape_cast %101 : vector<16x16x64xf32> to vector<256x64xf32>
    %103 = arith.truncf %102 : vector<256x64xf32> to vector<256x64xbf16>
    %c0_121 = arith.constant 0 : index
    %c0_122 = arith.constant 0 : index
    %104 = vector.load %arg10[%c0_121, %c0_122] : memref<256x1152xbf16, #tpu.memory_space<vmem>>, vector<256x64xbf16>
    tpu.vector_store %arg10[%c0_121, %c0_122], %103 {strides = array<i32>} : memref<256x1152xbf16, #tpu.memory_space<vmem>>, vector<256x64xbf16>,
    %c0_123 = arith.constant 0 : index
    %c1_124 = arith.constant 1 : index
    %c0_125 = arith.constant 0 : index
    %105 = vector.load %arg9[%c0_123, %c1_124, %c0_125] : memref<18x18x64xf32, #tpu.memory_space<vmem>>, vector<16x16x64xf32>
    %106 = vector.shape_cast %105 : vector<16x16x64xf32> to vector<256x64xf32>
    %107 = arith.truncf %106 : vector<256x64xf32> to vector<256x64xbf16>
    %c0_126 = arith.constant 0 : index
    %c128_127 = arith.constant 128 : index
    %108 = vector.load %arg10[%c0_126, %c128_127] : memref<256x1152xbf16, #tpu.memory_space<vmem>>, vector<256x64xbf16>
    tpu.vector_store %arg10[%c0_126, %c128_127], %107 {strides = array<i32>} : memref<256x1152xbf16, #tpu.memory_space<vmem>>, vector<256x64xbf16>,
    %c0_128 = arith.constant 0 : index
    %c2_129 = arith.constant 2 : index
    %c0_130 = arith.constant 0 : index
    %109 = vector.load %arg9[%c0_128, %c2_129, %c0_130] : memref<18x18x64xf32, #tpu.memory_space<vmem>>, vector<16x16x64xf32>
    %110 = vector.shape_cast %109 : vector<16x16x64xf32> to vector<256x64xf32>
    %111 = arith.truncf %110 : vector<256x64xf32> to vector<256x64xbf16>
    %c0_131 = arith.constant 0 : index
    %c256_132 = arith.constant 256 : index
    %112 = vector.load %arg10[%c0_131, %c256_132] : memref<256x1152xbf16, #tpu.memory_space<vmem>>, vector<256x64xbf16>
    tpu.vector_store %arg10[%c0_131, %c256_132], %111 {strides = array<i32>} : memref<256x1152xbf16, #tpu.memory_space<vmem>>, vector<256x64xbf16>,
    %c1_133 = arith.constant 1 : index
    %c0_134 = arith.constant 0 : index
    %c0_135 = arith.constant 0 : index
    %113 = vector.load %arg9[%c1_133, %c0_134, %c0_135] : memref<18x18x64xf32, #tpu.memory_space<vmem>>, vector<16x16x64xf32>
    %114 = vector.shape_cast %113 : vector<16x16x64xf32> to vector<256x64xf32>
    %115 = arith.truncf %114 : vector<256x64xf32> to vector<256x64xbf16>
    %c0_136 = arith.constant 0 : index
    %c384_137 = arith.constant 384 : index
    %116 = vector.load %arg10[%c0_136, %c384_137] : memref<256x1152xbf16, #tpu.memory_space<vmem>>, vector<256x64xbf16>
    tpu.vector_store %arg10[%c0_136, %c384_137], %115 {strides = array<i32>} : memref<256x1152xbf16, #tpu.memory_space<vmem>>, vector<256x64xbf16>,
    %c1_138 = arith.constant 1 : index
    %c1_139 = arith.constant 1 : index
    %c0_140 = arith.constant 0 : index
    %117 = vector.load %arg9[%c1_138, %c1_139, %c0_140] : memref<18x18x64xf32, #tpu.memory_space<vmem>>, vector<16x16x64xf32>
    %118 = vector.shape_cast %117 : vector<16x16x64xf32> to vector<256x64xf32>
    %119 = arith.truncf %118 : vector<256x64xf32> to vector<256x64xbf16>
    %c0_141 = arith.constant 0 : index
    %c512_142 = arith.constant 512 : index
    %120 = vector.load %arg10[%c0_141, %c512_142] : memref<256x1152xbf16, #tpu.memory_space<vmem>>, vector<256x64xbf16>
    tpu.vector_store %arg10[%c0_141, %c512_142], %119 {strides = array<i32>} : memref<256x1152xbf16, #tpu.memory_space<vmem>>, vector<256x64xbf16>,
    %c1_143 = arith.constant 1 : index
    %c2_144 = arith.constant 2 : index
    %c0_145 = arith.constant 0 : index
    %121 = vector.load %arg9[%c1_143, %c2_144, %c0_145] : memref<18x18x64xf32, #tpu.memory_space<vmem>>, vector<16x16x64xf32>
    %122 = vector.shape_cast %121 : vector<16x16x64xf32> to vector<256x64xf32>
    %123 = arith.truncf %122 : vector<256x64xf32> to vector<256x64xbf16>
    %c0_146 = arith.constant 0 : index
    %c640_147 = arith.constant 640 : index
    %124 = vector.load %arg10[%c0_146, %c640_147] : memref<256x1152xbf16, #tpu.memory_space<vmem>>, vector<256x64xbf16>
    tpu.vector_store %arg10[%c0_146, %c640_147], %123 {strides = array<i32>} : memref<256x1152xbf16, #tpu.memory_space<vmem>>, vector<256x64xbf16>,
    %c2_148 = arith.constant 2 : index
    %c0_149 = arith.constant 0 : index
    %c0_150 = arith.constant 0 : index
    %125 = vector.load %arg9[%c2_148, %c0_149, %c0_150] : memref<18x18x64xf32, #tpu.memory_space<vmem>>, vector<16x16x64xf32>
    %126 = vector.shape_cast %125 : vector<16x16x64xf32> to vector<256x64xf32>
    %127 = arith.truncf %126 : vector<256x64xf32> to vector<256x64xbf16>
    %c0_151 = arith.constant 0 : index
    %c768_152 = arith.constant 768 : index
    %128 = vector.load %arg10[%c0_151, %c768_152] : memref<256x1152xbf16, #tpu.memory_space<vmem>>, vector<256x64xbf16>
    tpu.vector_store %arg10[%c0_151, %c768_152], %127 {strides = array<i32>} : memref<256x1152xbf16, #tpu.memory_space<vmem>>, vector<256x64xbf16>,
    %c2_153 = arith.constant 2 : index
    %c1_154 = arith.constant 1 : index
    %c0_155 = arith.constant 0 : index
    %129 = vector.load %arg9[%c2_153, %c1_154, %c0_155] : memref<18x18x64xf32, #tpu.memory_space<vmem>>, vector<16x16x64xf32>
    %130 = vector.shape_cast %129 : vector<16x16x64xf32> to vector<256x64xf32>
    %131 = arith.truncf %130 : vector<256x64xf32> to vector<256x64xbf16>
    %c0_156 = arith.constant 0 : index
    %c896_157 = arith.constant 896 : index
    %132 = vector.load %arg10[%c0_156, %c896_157] : memref<256x1152xbf16, #tpu.memory_space<vmem>>, vector<256x64xbf16>
    tpu.vector_store %arg10[%c0_156, %c896_157], %131 {strides = array<i32>} : memref<256x1152xbf16, #tpu.memory_space<vmem>>, vector<256x64xbf16>,
    %c2_158 = arith.constant 2 : index
    %c2_159 = arith.constant 2 : index
    %c0_160 = arith.constant 0 : index
    %133 = vector.load %arg9[%c2_158, %c2_159, %c0_160] : memref<18x18x64xf32, #tpu.memory_space<vmem>>, vector<16x16x64xf32>
    %134 = vector.shape_cast %133 : vector<16x16x64xf32> to vector<256x64xf32>
    %135 = arith.truncf %134 : vector<256x64xf32> to vector<256x64xbf16>
    %c0_161 = arith.constant 0 : index
    %c1024_162 = arith.constant 1024 : index
    %136 = vector.load %arg10[%c0_161, %c1024_162] : memref<256x1152xbf16, #tpu.memory_space<vmem>>, vector<256x64xbf16>
    tpu.vector_store %arg10[%c0_161, %c1024_162], %135 {strides = array<i32>} : memref<256x1152xbf16, #tpu.memory_space<vmem>>, vector<256x64xbf16>,
    %c0_163 = arith.constant 0 : index
    %c0_164 = arith.constant 0 : index
    %137 = vector.load %arg10[%c0_163, %c0_164] : memref<256x1152xbf16, #tpu.memory_space<vmem>>, vector<256x1152xbf16>
    %c0_165 = arith.constant 0 : index
    %c0_166 = arith.constant 0 : index
    %138 = vector.load %arg4[%c0_165, %c0_166] : memref<1152x4xbf16, #tpu.memory_space<vmem>>, vector<1152x4xbf16>
    %cst_167 = arith.constant dense<0.000000e+00> : vector<256x4xf32>
    %139 = tpu.matmul %137, %138, %cst_167 {dimension_numbers = #tpu.dot_dimension_numbers<[1], [0], [0], [1], [0, 0, 1, 1], [], []>} : vector<256x1152xbf16>, vector<1152x4xbf16>, vector<256x4xf32> -> vector<256x4xf32>
    %140 = vector.shape_cast %139 : vector<256x4xf32> to vector<16x16x4xf32>
    %c0_168 = arith.constant 0 : index
    %c0_169 = arith.constant 0 : index
    %c0_170 = arith.constant 0 : index
    %c0_171 = arith.constant 0 : index
    %141 = vector.load %arg7[%c0_168, %c0_169, %c0_170, %c0_171] : memref<1x16x16x4xf32, #tpu.memory_space<vmem>>, vector<1x16x16x4xf32>
    %142 = vector.shape_cast %141 : vector<1x16x16x4xf32> to vector<16x16x4xf32>
    %143 = vector.shape_cast %140 : vector<16x16x4xf32> to vector<1x16x16x4xf32>
    tpu.vector_store %arg7[%c0_168, %c0_169, %c0_170, %c0_171], %143 {strides = array<i32>} : memref<1x16x16x4xf32, #tpu.memory_space<vmem>>, vector<1x16x16x4xf32>,
    return
  }
  func.func @transform_0(%arg0: i32) -> (i32, i32, i32, i32) {
    %c0_i32 = arith.constant 0 : i32
    %c0_i32_0 = arith.constant 0 : i32
    %c0_i32_1 = arith.constant 0 : i32
    %c0_i32_2 = arith.constant 0 : i32
    return %arg0, %c0_i32, %c0_i32_0, %c0_i32_1 : i32, i32, i32, i32
  }
  func.func @transform_1(%arg0: i32) -> (i32, i32) {
    %c0_i32 = arith.constant 0 : i32
    %c0_i32_0 = arith.constant 0 : i32
    %c0_i32_1 = arith.constant 0 : i32
    return %c0_i32, %c0_i32_0 : i32, i32
  }
  func.func @transform_2(%arg0: i32) -> (i32, i32) {
    %c0_i32 = arith.constant 0 : i32
    %c0_i32_0 = arith.constant 0 : i32
    %c0_i32_1 = arith.constant 0 : i32
    return %c0_i32, %c0_i32_0 : i32, i32
  }
  func.func @transform_3(%arg0: i32) -> (i32, i32) {
    %c0_i32 = arith.constant 0 : i32
    %c0_i32_0 = arith.constant 0 : i32
    %c0_i32_1 = arith.constant 0 : i32
    return %c0_i32, %c0_i32_0 : i32, i32
  }
  func.func @transform_4(%arg0: i32) -> (i32, i32) {
    %c0_i32 = arith.constant 0 : i32
    %c0_i32_0 = arith.constant 0 : i32
    %c0_i32_1 = arith.constant 0 : i32
    return %c0_i32, %c0_i32_0 : i32, i32
  }
  func.func @transform_5(%arg0: i32) -> (i32, i32) {
    %c0_i32 = arith.constant 0 : i32
    %c0_i32_0 = arith.constant 0 : i32
    %c0_i32_1 = arith.constant 0 : i32
    return %c0_i32, %c0_i32_0 : i32, i32
  }
  func.func @transform_6(%arg0: i32) -> (i32, i32, i32, i32) {
    %c0_i32 = arith.constant 0 : i32
    %c0_i32_0 = arith.constant 0 : i32
    %c0_i32_1 = arith.constant 0 : i32
    %c0_i32_2 = arith.constant 0 : i32
    return %arg0, %c0_i32, %c0_i32_0, %c0_i32_1 : i32, i32, i32, i32
  }
}

</mosaic_0001>

<bundles_post_ra>
// kernel: tpu_custom_call.1
= control target key start
LH: loop header
LB: loop body
LE: loop exit
PB: predicated region body
PF: predicated region fallthrough
CT: control target
= control target key end

     0   :  { %s17720_s21 = smov 0   ;;  %s21348_s0 = inlined_call_operand.vmem [shape: f32[2,16,16,4], index: 0, kind: input, shape index: {}]   ;;  %s21349_s1 = inlined_call_operand.vmem [shape: bf16[1152,64], index: 1, kind: input, shape index: {}]   ;;  %s21350_s2 = inlined_call_operand.vmem [shape: bf16[1152,64], index: 2, kind: input, shape index: {}]   ;;  %s21351_s3 = inlined_call_operand.vmem [shape: bf16[1152,4], index: 3, kind: input, shape index: {}]   ;;  %s21352_s4 = inlined_call_operand.vmem [shape: f32[1,64], index: 4, kind: input, shape index: {}]   ;;  %s21353_s5 = inlined_call_operand.vmem [shape: f32[1,64], index: 5, kind: input, shape index: {}]   ;;  %s21354_s6 = inlined_call_operand.vmem [shape: f32[2,16,16,4], index: 6, kind: output, shape index: {}]  }
   0x1 LB: > { %s12903_s22 = sadd.s32 4294967295, %s17681_s21   ;;  %p12907_p0 = scmp.ge.s32.totalorder %s17681_s21, 1  ;;  %s17681_s21 = sphi %s17720_s21, %s16_s21  }
   0x2   : > { %p212_p1 = scmp.lt.s32.totalorder %s17681_s21, 3 }
   0x4   : > { %p213_p2 = pnand %p12907_p0, %p212_p1 }
   0x6   : > { %216 = sbr.rel (%p213_p2) target bundleno = 1670 (0x686), region = 44 }
   0xb   : > { %v16880_v0 = vld [vmem:[%s21349_s1 + $0x78] sm:$0xff]   ;;  %vm253_vm0 = vcmask 31744   ;;  %v16882_v2 = vld [vmem:[%s21349_s1 + $0x70] sm:$0xff]   ;;  %v17683_v3 = vmov 0.0   ;;  %vm256_vm1 = vcmask 25600   ;;  %vm309_vm2 = vcmask 523264  }
   0xc   : > { %v16881_v1 = vld [vmem:[%s21349_s1 + $0x38] sm:$0xff]   ;;  %15294 = vmatprep.subr.bf16.mxu0 %v16880_v0  ;;  %16854 = vmatprep.subr.bf16.mxu1 %v16880_v0  ;;  %254 = vst.msk [vmem:[#allocation2] sm:$0xff] %vm253_vm0, %v17683_v3  ;;  %255 = vst.msk [vmem:[#allocation2 + $0x8] sm:$0xff] %vm253_vm0, %v17683_v3  ;;  %v17812_v4 = vld [vmem:[%s21349_s1 + $0x30] sm:$0xff]   ;;  %vm312_vm3 = vcmask 517120   ;;  %v17684_v6 = vmov 0  }
   0xd   : > { %258 = vst.msk [vmem:[#allocation2 + $0x18] sm:$0xff] %vm253_vm0, %v17683_v3  ;;  %259 = vst.msk [vmem:[#allocation2 + $0x20] sm:$0xff] %vm253_vm0, %v17683_v3  ;;  %15295 = vmatpush3.bf16.msra.mxu0 %v16881_v1  ;;  %16862 = vmatpush3.bf16.msra.mxu1 %v16881_v1  ;;  %v17853_v5 = vld [vmem:[%s21349_s1 + $0x68] sm:$0xff]   ;;  %v16886_v8 = vld [vmem:[%s21349_s1 + $0x60] sm:$0xff]   ;;  %p242_p3 = scmp.lt.s32.totalorder %s12903_s22, 1  ;;  %vm750_vm4 = vcmask 27648  }
   0xe   : > { %261 = vst.msk [vmem:[#allocation2 + $0x30] sm:$0xff] %vm253_vm0, %v17683_v3  ;;  %262 = vst.msk [vmem:[#allocation2 + $0x38] sm:$0xff] %vm253_vm0, %v17683_v3  ;;  %15296 = vmatprep.subr.bf16.mxu0 %v16882_v2  ;;  %16855 = vmatprep.subr.bf16.mxu1 %v16882_v2  ;;  %v16885_v7 = vld [vmem:[%s21349_s1 + $0x28] sm:$0xff]   ;;  %v16887_v9 = vld [vmem:[%s21349_s1 + $0x20] sm:$0xff]   ;;  %vm4822_vm5 = vcmask 519168  }
   0xf   : > { %264 = vst.msk [vmem:[#allocation2 + $0x48] sm:$0xff] %vm253_vm0, %v17683_v3  ;;  %265 = vst.msk [vmem:[#allocation2 + $0x50] sm:$0xff] %vm253_vm0, %v17683_v3  ;;  %s21492_s22 = smov (!%p242_p3, %s12903_s22), 1  ;;  %v16888_v10 = vld [vmem:[%s21349_s1 + $0x58] sm:$0xff]   ;;  %v16890_v12 = vld [vmem:[%s21349_s1 + $0x50] sm:$0xff]  }
  0x10   : > { %267 = vst.msk [vmem:[#allocation2 + $0x60] sm:$0xff] %vm253_vm0, %v17683_v3  ;;  %268 = vst.msk [vmem:[#allocation2 + $0x68] sm:$0xff] %vm253_vm0, %v17683_v3  ;;  %s14428_s17 = sshll.u32 %s21492_s22, 8  ;;  %v16889_v11 = vld [vmem:[%s21349_s1 + $0x18] sm:$0xff]   ;;  %v16891_v16 = vld [vmem:[%s21349_s1 + $0x10] sm:$0xff]  }
  0x11   : > { %270 = vst.msk [vmem:[#allocation2 + $0x78] sm:$0xff] %vm253_vm0, %v17683_v3  ;;  %271 = vst.msk [vmem:[#allocation2 + $0x80] sm:$0xff] %vm253_vm0, %v17683_v3  ;;  %15297 = vmatpush3.bf16.msra.mxu0 %v17812_v4  ;;  %16863 = vmatpush3.bf16.msra.mxu1 %v17812_v4  ;;  %s18157_s26 = scalar_lea.vmem %s21348_s0, %s14428_s17  ;;  %v16892_v21 = vld [vmem:[%s21349_s1 + $0x48] sm:$0xff]   ;;  %v16894_v31 = vld [vmem:[%s21349_s1 + $0x40] sm:$0xff]   ;;  %s21177_s8 = scalar_lea.vmem %s21354_s6, %s14428_s17 }
  0x12   : > { %273 = vst.msk [vmem:[#allocation2 + $0x90] sm:$0xff] %vm253_vm0, %v17683_v3  ;;  %274 = vst.msk [vmem:[#allocation2 + $0x98] sm:$0xff] %vm253_vm0, %v17683_v3  ;;  %15298 = vmatprep.subr.bf16.mxu0 %v17853_v5  ;;  %16856 = vmatprep.subr.bf16.mxu1 %v17853_v5  ;;  %v547_v24 = vld [vmem:[%s18157_s26 + $0xb0] sm:$0xff]  ;;  %v548_v26 = vld [vmem:[%s18157_s26 + $0xb8] sm:$0xff] }
  0x13   : > { %276 = vst.msk [vmem:[#allocation2 + $0xa8] sm:$0xff] %vm253_vm0, %v17683_v3  ;;  %277 = vst.msk [vmem:[#allocation2 + $0xb0] sm:$0xff] %vm253_vm0, %v17683_v3  ;;  %v590_v13 = vld [vmem:[#allocation2] sm:$0xff]  ;;  %v591_v14 = vld [vmem:[#allocation2 + $0x8] sm:$0xff] }
  0x14   : > { %279 = vst.msk [vmem:[#allocation2 + $0xc0] sm:$0xff] %vm253_vm0, %v17683_v3  ;;  %280 = vst.msk [vmem:[#allocation2 + $0xc8] sm:$0xff] %vm253_vm0, %v17683_v3  ;;  %v783_v15 = vld [vmem:[#allocation2 + $0x1] sm:$0xff]  ;;  %v14430_v17 = vpack.c.bf16 %v590_v13, %v590_v13  ;;  %v14431_v18 = vpack.c.bf16 %v591_v14, %v591_v14  ;;  %v16901_v41 = vld [vmem:[%s21349_s1 + $0xf8] sm:$0xff]  }
  0x15   : > { %282 = vst.msk [vmem:[#allocation2 + $0xd8] sm:$0xff] %vm253_vm0, %v17683_v3  ;;  %283 = vst.msk [vmem:[#allocation2 + $0xe0] sm:$0xff] %vm253_vm0, %v17683_v3  ;;  %15299 = vmatpush3.bf16.msra.mxu0 %v16885_v7  ;;  %16864 = vmatpush3.bf16.msra.mxu1 %v16885_v7  ;;  %v14462_v20 = vpack.c.bf16 %v783_v15, %v783_v15  ;;  %v16893_v29 = vld [vmem:[%s21349_s1 + $0x8] sm:$0xff]   ;;  %v16895_v35 = vld [vmem:[%s21349_s1] sm:$0xff]  }
  0x16   : > { %285 = vst.msk [vmem:[#allocation2 + $0xf0] sm:$0xff] %vm253_vm0, %v17683_v3  ;;  %286 = vst.msk [vmem:[#allocation2 + $0xf8] sm:$0xff] %vm253_vm0, %v17683_v3  ;;  %15300 = vmatprep.subr.bf16.mxu0 %v16886_v8  ;;  %16857 = vmatprep.subr.bf16.mxu1 %v16886_v8  ;;  %v525_v36 = vld [vmem:[%s18157_s26] sm:$0xff]  ;;  %v526_v37 = vld [vmem:[%s18157_s26 + $0x8] sm:$0xff] }
  0x17   : > { %288 = vst.msk [vmem:[#allocation2 + $0x108] sm:$0xff] %vm253_vm0, %v17683_v3  ;;  %289 = vst.msk [vmem:[#allocation2 + $0x110] sm:$0xff] %vm253_vm0, %v17683_v3  ;;  %v16902_v42 = vld [vmem:[%s21349_s1 + $0x178] sm:$0xff]   ;;  %v549_v50 = vld [vmem:[%s18157_s26 + $0xc0] sm:$0xff] }
  0x18   : > { %291 = vst.msk [vmem:[#allocation2 + $0x120] sm:$0xff] %vm253_vm0, %v17683_v3  ;;  %292 = vst.msk [vmem:[#allocation2 + $0x128] sm:$0xff] %vm253_vm0, %v17683_v3  ;;  %v550_v51 = vld [vmem:[%s18157_s26 + $0xc8] sm:$0xff]  ;;  %v16904_v54 = vld [vmem:[%s21349_s1 + $0x138] sm:$0xff]  }
  0x19   : > { %294 = vst.msk [vmem:[#allocation2 + $0x138] sm:$0xff] %vm253_vm0, %v17683_v3  ;;  %295 = vst.msk [vmem:[#allocation2 + $0x140] sm:$0xff] %vm253_vm0, %v17683_v3  ;;  %15301 = vmatpush3.bf16.msra.mxu0 %v16887_v9  ;;  %16865 = vmatpush3.bf16.msra.mxu1 %v16887_v9  ;;  %v16915_v55 = vld [vmem:[%s21349_s1 + $0x170] sm:$0xff]   ;;  %v16903_v0 = vld [vmem:[%s21349_s1 + $0xb8] sm:$0xff]  }
  0x1a   : > { %297 = vst.msk [vmem:[#allocation2 + $0x150] sm:$0xff] %vm253_vm0, %v17683_v3  ;;  %298 = vst.msk [vmem:[#allocation2 + $0x158] sm:$0xff] %vm253_vm0, %v17683_v3  ;;  %15302 = vmatprep.subr.bf16.mxu0 %v16888_v10  ;;  %16858 = vmatprep.subr.bf16.mxu1 %v16888_v10  ;;  %v16917_v8 = vld [vmem:[%s21349_s1 + $0x130] sm:$0xff]   ;;  %v528_v14 = vld [vmem:[%s18157_s26 + $0x18] sm:$0xff] }
  0x1b   : > { %300 = vst.msk [vmem:[#allocation2 + $0x168] sm:$0xff] %vm253_vm0, %v17683_v3  ;;  %301 = vst.msk [vmem:[#allocation2 + $0x170] sm:$0xff] %vm253_vm0, %v17683_v3  ;;  %v527_v13 = vld [vmem:[%s18157_s26 + $0x10] sm:$0xff] }
  0x1c   : > { %303 = vst.msk [vmem:[#allocation2 + $0x180] sm:$0xff] %vm253_vm0, %v17683_v3  ;;  %304 = vst.msk [vmem:[#allocation2 + $0x188] sm:$0xff] %vm253_vm0, %v17683_v3  ;;  %v551_v15 = vld [vmem:[%s18157_s26 + $0xd0] sm:$0xff] }
  0x1d   : > { %306 = vst.msk [vmem:[#allocation2 + $0x198] sm:$0xff] %vm253_vm0, %v17683_v3  ;;  %307 = vst.msk [vmem:[#allocation2 + $0x1a0] sm:$0xff] %vm253_vm0, %v17683_v3  ;;  %15303 = vmatpush3.bf16.msra.mxu0 %v16889_v11  ;;  %16866 = vmatpush3.bf16.msra.mxu1 %v16889_v11 }
  0x1e   : > { %257 = vst.msk [vmem:[#allocation2 + $0x10] sm:$0x3] %vm256_vm1, %v17683_v3  ;;  %260 = vst.msk [vmem:[#allocation2 + $0x28] sm:$0x3] %vm256_vm1, %v17683_v3  ;;  %15304 = vmatprep.subr.bf16.mxu0 %v16890_v12  ;;  %16859 = vmatprep.subr.bf16.mxu1 %v16890_v12 }
  0x1f   : > { %263 = vst.msk [vmem:[#allocation2 + $0x40] sm:$0x3] %vm256_vm1, %v17683_v3  ;;  %266 = vst.msk [vmem:[#allocation2 + $0x58] sm:$0x3] %vm256_vm1, %v17683_v3 }
  0x20   : > { %269 = vst.msk [vmem:[#allocation2 + $0x70] sm:$0x3] %vm256_vm1, %v17683_v3  ;;  %272 = vst.msk [vmem:[#allocation2 + $0x88] sm:$0x3] %vm256_vm1, %v17683_v3 }
  0x21   : > { %275 = vst.msk [vmem:[#allocation2 + $0xa0] sm:$0x3] %vm256_vm1, %v17683_v3  ;;  %278 = vst.msk [vmem:[#allocation2 + $0xb8] sm:$0x3] %vm256_vm1, %v17683_v3  ;;  %15305 = vmatpush3.bf16.msra.mxu0 %v16891_v16  ;;  %16867 = vmatpush3.bf16.msra.mxu1 %v16891_v16  ;;  %v552_v16 = vld [vmem:[%s18157_s26 + $0xd8] sm:$0xff] }
  0x22   : > { %281 = vst.msk [vmem:[#allocation2 + $0xd0] sm:$0x3] %vm256_vm1, %v17683_v3  ;;  %284 = vst.msk [vmem:[#allocation2 + $0xe8] sm:$0x3] %vm256_vm1, %v17683_v3  ;;  %15306 = vmatprep.subr.bf16.mxu0 %v16892_v21  ;;  %16860 = vmatprep.subr.bf16.mxu1 %v16892_v21 }
  0x23   : > { %287 = vst.msk [vmem:[#allocation2 + $0x100] sm:$0x3] %vm256_vm1, %v17683_v3  ;;  %290 = vst.msk [vmem:[#allocation2 + $0x118] sm:$0x3] %vm256_vm1, %v17683_v3 }
  0x24   : > { %293 = vst.msk [vmem:[#allocation2 + $0x130] sm:$0x3] %vm256_vm1, %v17683_v3  ;;  %296 = vst.msk [vmem:[#allocation2 + $0x148] sm:$0x3] %vm256_vm1, %v17683_v3 }
  0x25   : > { %299 = vst.msk [vmem:[#allocation2 + $0x160] sm:$0x3] %vm256_vm1, %v17683_v3  ;;  %302 = vst.msk [vmem:[#allocation2 + $0x178] sm:$0x3] %vm256_vm1, %v17683_v3  ;;  %v784_v19 = vld [vmem:[#allocation2 + $0x9] sm:$0xff]  ;;  %15307 = vmatpush3.bf16.msra.mxu0 %v16893_v29  ;;  %16868 = vmatpush3.bf16.msra.mxu1 %v16893_v29 }
  0x26   : > { %305 = vst.msk [vmem:[#allocation2 + $0x190] sm:$0x3] %vm256_vm1, %v17683_v3  ;;  %308 = vst.msk [vmem:[#allocation2 + $0x1a8] sm:$0x3] %vm256_vm1, %v17683_v3  ;;  %v14463_v22 = vpack.c.bf16 %v784_v19, %v784_v19  ;;  %15308 = vmatprep.subr.bf16.mxu0 %v16894_v31  ;;  %16861 = vmatprep.subr.bf16.mxu1 %v16894_v31  ;;  %v16912_v19 = vld [vmem:[%s21349_s1 + $0xe8] sm:$0xff]  }
  0x27   : > { %310 = vst.msk [vmem:[#allocation3] sm:$0xff] %vm309_vm2, %v17683_v3  ;;  %311 = vst.msk [vmem:[#allocation3 + $0x8] sm:$0xff] %vm309_vm2, %v17683_v3 }
  0x28   : > { %314 = vst.msk [vmem:[#allocation3 + $0x18] sm:$0xff] %vm309_vm2, %v17683_v3  ;;  %315 = vst.msk [vmem:[#allocation3 + $0x20] sm:$0xff] %vm309_vm2, %v17683_v3 }
  0x29   : > { %317 = vst.msk [vmem:[#allocation3 + $0x30] sm:$0xff] %vm309_vm2, %v17683_v3  ;;  %318 = vst.msk [vmem:[#allocation3 + $0x38] sm:$0xff] %vm309_vm2, %v17683_v3  ;;  %15309 = vmatpush3.bf16.msra.mxu0 %v16895_v35  ;;  %16869 = vmatpush3.bf16.msra.mxu1 %v16895_v35 }
  0x2a   : > { %320 = vst.msk [vmem:[#allocation3 + $0x48] sm:$0xff] %vm309_vm2, %v17683_v3  ;;  %321 = vst.msk [vmem:[#allocation3 + $0x50] sm:$0xff] %vm309_vm2, %v17683_v3  ;;  %15406 = vmatprep.subr.bf16.mxu1 %v16901_v41  ;;  %15518 = vmatprep.subr.bf16.mxu0 %v16902_v42 }
  0x2b   : > { %323 = vst.msk [vmem:[#allocation3 + $0x60] sm:$0xff] %vm309_vm2, %v17683_v3  ;;  %324 = vst.msk [vmem:[#allocation3 + $0x68] sm:$0xff] %vm309_vm2, %v17683_v3 }
  0x2c   : > { %326 = vst.msk [vmem:[#allocation3 + $0x78] sm:$0xff] %vm309_vm2, %v17683_v3  ;;  %327 = vst.msk [vmem:[#allocation3 + $0x80] sm:$0xff] %vm309_vm2, %v17683_v3 }
  0x2d   : > { %329 = vst.msk [vmem:[#allocation3 + $0x90] sm:$0xff] %vm309_vm2, %v17683_v3  ;;  %330 = vst.msk [vmem:[#allocation3 + $0x98] sm:$0xff] %vm309_vm2, %v17683_v3 }
  0x2e   : > { %332 = vst.msk [vmem:[#allocation3 + $0xa8] sm:$0xff] %vm309_vm2, %v17683_v3  ;;  %333 = vst.msk [vmem:[#allocation3 + $0xb0] sm:$0xff] %vm309_vm2, %v17683_v3  ;;  %v4662_v23 = vld [vmem:[#allocation3] sm:$0xff]  ;;  %v4663_v25 = vld [vmem:[#allocation3 + $0x8] sm:$0xff] }
  0x2f   : > { %335 = vst.msk [vmem:[#allocation3 + $0xc0] sm:$0xff] %vm309_vm2, %v17683_v3  ;;  %336 = vst.msk [vmem:[#allocation3 + $0xc8] sm:$0xff] %vm309_vm2, %v17683_v3  ;;  %v4855_v27 = vld [vmem:[#allocation3 + $0x1] sm:$0xff]  ;;  %v14718_v30 = vpack.c.bf16 %v4662_v23, %v4662_v23  ;;  %v14719_v32 = vpack.c.bf16 %v4663_v25, %v4663_v25  ;;  %v16913_v23 = vld [vmem:[%s21349_s1 + $0xa8] sm:$0xff]  }
  0x30   : > { %338 = vst.msk [vmem:[#allocation3 + $0xd8] sm:$0xff] %vm309_vm2, %v17683_v3  ;;  %339 = vst.msk [vmem:[#allocation3 + $0xe0] sm:$0xff] %vm309_vm2, %v17683_v3  ;;  %v14750_v33 = vpack.c.bf16 %v4855_v27, %v4855_v27  ;;  %v530_v25 = vld [vmem:[%s18157_s26 + $0x28] sm:$0xff]  ;;  %v553_v27 = vld [vmem:[%s18157_s26 + $0xe0] sm:$0xff] }
  0x31   : > { %341 = vst.msk [vmem:[#allocation3 + $0xf0] sm:$0xff] %vm309_vm2, %v17683_v3  ;;  %342 = vst.msk [vmem:[#allocation3 + $0xf8] sm:$0xff] %vm309_vm2, %v17683_v3 }
  0x32   : > { %344 = vst.msk [vmem:[#allocation3 + $0x108] sm:$0xff] %vm309_vm2, %v17683_v3  ;;  %345 = vst.msk [vmem:[#allocation3 + $0x110] sm:$0xff] %vm309_vm2, %v17683_v3 }
  0x33   : > { %347 = vst.msk [vmem:[#allocation3 + $0x120] sm:$0xff] %vm309_vm2, %v17683_v3  ;;  %348 = vst.msk [vmem:[#allocation3 + $0x128] sm:$0xff] %vm309_vm2, %v17683_v3 }
  0x34   : > { %350 = vst.msk [vmem:[#allocation3 + $0x138] sm:$0xff] %vm309_vm2, %v17683_v3  ;;  %351 = vst.msk [vmem:[#allocation3 + $0x140] sm:$0xff] %vm309_vm2, %v17683_v3 }
  0x35   : > { %353 = vst.msk [vmem:[#allocation3 + $0x150] sm:$0xff] %vm309_vm2, %v17683_v3  ;;  %354 = vst.msk [vmem:[#allocation3 + $0x158] sm:$0xff] %vm309_vm2, %v17683_v3 }
  0x36   : > { %356 = vst.msk [vmem:[#allocation3 + $0x168] sm:$0xff] %vm309_vm2, %v17683_v3  ;;  %357 = vst.msk [vmem:[#allocation3 + $0x170] sm:$0xff] %vm309_vm2, %v17683_v3 }
  0x37   : > { %359 = vst.msk [vmem:[#allocation3 + $0x180] sm:$0xff] %vm309_vm2, %v17683_v3  ;;  %360 = vst.msk [vmem:[#allocation3 + $0x188] sm:$0xff] %vm309_vm2, %v17683_v3 }
  0x38   : > { %362 = vst.msk [vmem:[#allocation3 + $0x198] sm:$0xff] %vm309_vm2, %v17683_v3  ;;  %363 = vst.msk [vmem:[#allocation3 + $0x1a0] sm:$0xff] %vm309_vm2, %v17683_v3 }
  0x39   : > { %313 = vst.msk [vmem:[#allocation3 + $0x10] sm:$0x3] %vm312_vm3, %v17683_v3  ;;  %316 = vst.msk [vmem:[#allocation3 + $0x28] sm:$0x3] %vm312_vm3, %v17683_v3 }
  0x3a   : > { %319 = vst.msk [vmem:[#allocation3 + $0x40] sm:$0x3] %vm312_vm3, %v17683_v3  ;;  %322 = vst.msk [vmem:[#allocation3 + $0x58] sm:$0x3] %vm312_vm3, %v17683_v3 }
  0x3b   : > { %325 = vst.msk [vmem:[#allocation3 + $0x70] sm:$0x3] %vm312_vm3, %v17683_v3  ;;  %328 = vst.msk [vmem:[#allocation3 + $0x88] sm:$0x3] %vm312_vm3, %v17683_v3 }
  0x3c   : > { %331 = vst.msk [vmem:[#allocation3 + $0xa0] sm:$0x3] %vm312_vm3, %v17683_v3  ;;  %334 = vst.msk [vmem:[#allocation3 + $0xb8] sm:$0x3] %vm312_vm3, %v17683_v3 }
  0x3d   : > { %337 = vst.msk [vmem:[#allocation3 + $0xd0] sm:$0x3] %vm312_vm3, %v17683_v3  ;;  %340 = vst.msk [vmem:[#allocation3 + $0xe8] sm:$0x3] %vm312_vm3, %v17683_v3 }
  0x3e   : > { %343 = vst.msk [vmem:[#allocation3 + $0x100] sm:$0x3] %vm312_vm3, %v17683_v3  ;;  %346 = vst.msk [vmem:[#allocation3 + $0x118] sm:$0x3] %vm312_vm3, %v17683_v3 }
  0x3f   : > { %349 = vst.msk [vmem:[#allocation3 + $0x130] sm:$0x3] %vm312_vm3, %v17683_v3  ;;  %352 = vst.msk [vmem:[#allocation3 + $0x148] sm:$0x3] %vm312_vm3, %v17683_v3 }
  0x40   : > { %355 = vst.msk [vmem:[#allocation3 + $0x160] sm:$0x3] %vm312_vm3, %v17683_v3  ;;  %358 = vst.msk [vmem:[#allocation3 + $0x178] sm:$0x3] %vm312_vm3, %v17683_v3  ;;  %v4856_v28 = vld [vmem:[#allocation3 + $0x9] sm:$0xff] }
  0x41   : > { %361 = vst.msk [vmem:[#allocation3 + $0x190] sm:$0x3] %vm312_vm3, %v17683_v3  ;;  %364 = vst.msk [vmem:[#allocation3 + $0x1a8] sm:$0x3] %vm312_vm3, %v17683_v3  ;;  %v14751_v34 = vpack.c.bf16 %v4856_v28, %v4856_v28  ;;  %v16905_v3 = vld [vmem:[%s21349_s1 + $0xf0] sm:$0xff]   ;;  %v554_v28 = vld [vmem:[%s18157_s26 + $0xe8] sm:$0xff] }
  0x42   : > { %365 = vst [vmem:[#allocation4] sm:$0xff] %v17684_v6  ;;  %370 = vst [vmem:[#allocation4 + $0x24] sm:$0xff] %v17684_v6 }
  0x43   : > { %366 = vst [vmem:[#allocation4 + $0x8] sm:$0xff] %v17684_v6  ;;  %367 = vst [vmem:[#allocation4 + $0x10] sm:$0xff] %v17684_v6 }
  0x44   : > { %368 = vst [vmem:[#allocation4 + $0x18] sm:$0xff] %v17684_v6  ;;  %369 = vst [vmem:[#allocation4 + $0x20] sm:$0xf] %v17684_v6 }
  0x45   : > { %371 = vst [vmem:[#allocation4 + $0x2c] sm:$0xff] %v17684_v6  ;;  %372 = vst [vmem:[#allocation4 + $0x34] sm:$0xff] %v17684_v6 }
  0x46   : > { %373 = vst [vmem:[#allocation4 + $0x3c] sm:$0xff] %v17684_v6  ;;  %374 = vst [vmem:[#allocation4 + $0x44] sm:$0xf] %v17684_v6 }
  0x47   : > { %375 = vst [vmem:[#allocation4 + $0x48] sm:$0xff] %v17684_v6  ;;  %376 = vst [vmem:[#allocation4 + $0x50] sm:$0xff] %v17684_v6 }
  0x48   : > { %377 = vst [vmem:[#allocation4 + $0x58] sm:$0xff] %v17684_v6  ;;  %378 = vst [vmem:[#allocation4 + $0x60] sm:$0xff] %v17684_v6 }
  0x49   : > { %379 = vst [vmem:[#allocation4 + $0x68] sm:$0xf] %v17684_v6  ;;  %380 = vst [vmem:[#allocation4 + $0x6c] sm:$0xff] %v17684_v6 }
  0x4a   : > { %381 = vst [vmem:[#allocation4 + $0x74] sm:$0xff] %v17684_v6  ;;  %382 = vst [vmem:[#allocation4 + $0x7c] sm:$0xff] %v17684_v6 }
  0x4b   : > { %383 = vst [vmem:[#allocation4 + $0x84] sm:$0xff] %v17684_v6  ;;  %384 = vst [vmem:[#allocation4 + $0x8c] sm:$0xf] %v17684_v6 }
  0x4c   : > { %385 = vst [vmem:[#allocation4 + $0x90] sm:$0xff] %v17684_v6  ;;  %386 = vst [vmem:[#allocation4 + $0x98] sm:$0xff] %v17684_v6 }
  0x4d   : > { %387 = vst [vmem:[#allocation4 + $0xa0] sm:$0xff] %v17684_v6  ;;  %388 = vst [vmem:[#allocation4 + $0xa8] sm:$0xff] %v17684_v6 }
  0x4e   : > { %389 = vst [vmem:[#allocation4 + $0xb0] sm:$0xf] %v17684_v6  ;;  %390 = vst [vmem:[#allocation4 + $0xb4] sm:$0xff] %v17684_v6 }
  0x4f   : > { %391 = vst [vmem:[#allocation4 + $0xbc] sm:$0xff] %v17684_v6  ;;  %392 = vst [vmem:[#allocation4 + $0xc4] sm:$0xff] %v17684_v6 }
  0x50   : > { %393 = vst [vmem:[#allocation4 + $0xcc] sm:$0xff] %v17684_v6  ;;  %394 = vst [vmem:[#allocation4 + $0xd4] sm:$0xf] %v17684_v6 }
  0x51   : > { %395 = vst [vmem:[#allocation4 + $0xd8] sm:$0xff] %v17684_v6  ;;  %396 = vst [vmem:[#allocation4 + $0xe0] sm:$0xff] %v17684_v6 }
  0x52   : > { %397 = vst [vmem:[#allocation4 + $0xe8] sm:$0xff] %v17684_v6  ;;  %398 = vst [vmem:[#allocation4 + $0xf0] sm:$0xff] %v17684_v6 }
  0x53   : > { %399 = vst [vmem:[#allocation4 + $0xf8] sm:$0xf] %v17684_v6  ;;  %400 = vst [vmem:[#allocation4 + $0xfc] sm:$0xff] %v17684_v6 }
  0x54   : > { %401 = vst [vmem:[#allocation4 + $0x104] sm:$0xff] %v17684_v6  ;;  %402 = vst [vmem:[#allocation4 + $0x10c] sm:$0xff] %v17684_v6 }
  0x55   : > { %403 = vst [vmem:[#allocation4 + $0x114] sm:$0xff] %v17684_v6  ;;  %404 = vst [vmem:[#allocation4 + $0x11c] sm:$0xf] %v17684_v6 }
  0x56   : > { %405 = vst [vmem:[#allocation4 + $0x120] sm:$0xff] %v17684_v6  ;;  %406 = vst [vmem:[#allocation4 + $0x128] sm:$0xff] %v17684_v6 }
  0x57   : > { %407 = vst [vmem:[#allocation4 + $0x130] sm:$0xff] %v17684_v6  ;;  %408 = vst [vmem:[#allocation4 + $0x138] sm:$0xff] %v17684_v6 }
  0x58   : > { %409 = vst [vmem:[#allocation4 + $0x140] sm:$0xf] %v17684_v6  ;;  %410 = vst [vmem:[#allocation4 + $0x144] sm:$0xff] %v17684_v6 }
  0x59   : > { %411 = vst [vmem:[#allocation4 + $0x14c] sm:$0xff] %v17684_v6  ;;  %412 = vst [vmem:[#allocation4 + $0x154] sm:$0xff] %v17684_v6 }
  0x5a   : > { %413 = vst [vmem:[#allocation4 + $0x15c] sm:$0xff] %v17684_v6  ;;  %414 = vst [vmem:[#allocation4 + $0x164] sm:$0xf] %v17684_v6 }
  0x5b   : > { %415 = vst [vmem:[#allocation4 + $0x168] sm:$0xff] %v17684_v6  ;;  %416 = vst [vmem:[#allocation4 + $0x170] sm:$0xff] %v17684_v6 }
  0x5c   : > { %417 = vst [vmem:[#allocation4 + $0x178] sm:$0xff] %v17684_v6  ;;  %418 = vst [vmem:[#allocation4 + $0x180] sm:$0xff] %v17684_v6 }
  0x5d   : > { %419 = vst [vmem:[#allocation4 + $0x188] sm:$0xf] %v17684_v6  ;;  %420 = vst [vmem:[#allocation4 + $0x18c] sm:$0xff] %v17684_v6 }
  0x5e   : > { %421 = vst [vmem:[#allocation4 + $0x194] sm:$0xff] %v17684_v6  ;;  %422 = vst [vmem:[#allocation4 + $0x19c] sm:$0xff] %v17684_v6 }
  0x5f   : > { %423 = vst [vmem:[#allocation4 + $0x1a4] sm:$0xff] %v17684_v6  ;;  %424 = vst [vmem:[#allocation4 + $0x1ac] sm:$0xf] %v17684_v6 }
  0x60   : > { %425 = vst [vmem:[#allocation4 + $0x1b0] sm:$0xff] %v17684_v6  ;;  %426 = vst [vmem:[#allocation4 + $0x1b8] sm:$0xff] %v17684_v6 }
  0x61   : > { %427 = vst [vmem:[#allocation4 + $0x1c0] sm:$0xff] %v17684_v6  ;;  %428 = vst [vmem:[#allocation4 + $0x1c8] sm:$0xff] %v17684_v6 }
  0x62   : > { %429 = vst [vmem:[#allocation4 + $0x1d0] sm:$0xf] %v17684_v6  ;;  %430 = vst [vmem:[#allocation4 + $0x1d4] sm:$0xff] %v17684_v6 }
  0x63   : > { %431 = vst [vmem:[#allocation4 + $0x1dc] sm:$0xff] %v17684_v6  ;;  %432 = vst [vmem:[#allocation4 + $0x1e4] sm:$0xff] %v17684_v6 }
  0x64   : > { %433 = vst [vmem:[#allocation4 + $0x1ec] sm:$0xff] %v17684_v6  ;;  %434 = vst [vmem:[#allocation4 + $0x1f4] sm:$0xf] %v17684_v6 }
  0x65   : > { %435 = vst [vmem:[#allocation4 + $0x1f8] sm:$0xff] %v17684_v6  ;;  %436 = vst [vmem:[#allocation4 + $0x200] sm:$0xff] %v17684_v6 }
  0x66   : > { %437 = vst [vmem:[#allocation4 + $0x208] sm:$0xff] %v17684_v6  ;;  %438 = vst [vmem:[#allocation4 + $0x210] sm:$0xff] %v17684_v6 }
  0x67   : > { %439 = vst [vmem:[#allocation4 + $0x218] sm:$0xf] %v17684_v6  ;;  %440 = vst [vmem:[#allocation4 + $0x21c] sm:$0xff] %v17684_v6 }
  0x68   : > { %441 = vst [vmem:[#allocation4 + $0x224] sm:$0xff] %v17684_v6  ;;  %442 = vst [vmem:[#allocation4 + $0x22c] sm:$0xff] %v17684_v6 }
  0x69   : > { %443 = vst [vmem:[#allocation4 + $0x234] sm:$0xff] %v17684_v6  ;;  %444 = vst [vmem:[#allocation4 + $0x23c] sm:$0xf] %v17684_v6 }
  0x6a   : > { %445 = vst [vmem:[#allocation4 + $0x240] sm:$0xff] %v17684_v6  ;;  %446 = vst [vmem:[#allocation4 + $0x248] sm:$0xff] %v17684_v6 }
  0x6b   : > { %447 = vst [vmem:[#allocation4 + $0x250] sm:$0xff] %v17684_v6  ;;  %448 = vst [vmem:[#allocation4 + $0x258] sm:$0xff] %v17684_v6 }
  0x6c   : > { %449 = vst [vmem:[#allocation4 + $0x260] sm:$0xf] %v17684_v6  ;;  %450 = vst [vmem:[#allocation4 + $0x264] sm:$0xff] %v17684_v6 }
  0x6d   : > { %451 = vst [vmem:[#allocation4 + $0x26c] sm:$0xff] %v17684_v6  ;;  %452 = vst [vmem:[#allocation4 + $0x274] sm:$0xff] %v17684_v6 }
  0x6e   : > { %453 = vst [vmem:[#allocation4 + $0x27c] sm:$0xff] %v17684_v6  ;;  %454 = vst [vmem:[#allocation4 + $0x284] sm:$0xf] %v17684_v6 }
  0x6f   : > { %455 = vst [vmem:[#allocation4 + $0x288] sm:$0xff] %v17684_v6  ;;  %456 = vst [vmem:[#allocation4 + $0x290] sm:$0xff] %v17684_v6 }
  0x70   : > { %457 = vst [vmem:[#allocation4 + $0x298] sm:$0xff] %v17684_v6  ;;  %458 = vst [vmem:[#allocation4 + $0x2a0] sm:$0xff] %v17684_v6 }
  0x71   : > { %459 = vst [vmem:[#allocation4 + $0x2a8] sm:$0xf] %v17684_v6  ;;  %460 = vst [vmem:[#allocation4 + $0x2ac] sm:$0xff] %v17684_v6 }
  0x72   : > { %461 = vst [vmem:[#allocation4 + $0x2b4] sm:$0xff] %v17684_v6  ;;  %462 = vst [vmem:[#allocation4 + $0x2bc] sm:$0xff] %v17684_v6 }
  0x73   : > { %463 = vst [vmem:[#allocation4 + $0x2c4] sm:$0xff] %v17684_v6  ;;  %464 = vst [vmem:[#allocation4 + $0x2cc] sm:$0xf] %v17684_v6 }
  0x74   : > { %465 = vst [vmem:[#allocation4 + $0x2d0] sm:$0xff] %v17684_v6  ;;  %466 = vst [vmem:[#allocation4 + $0x2d8] sm:$0xff] %v17684_v6 }
  0x75   : > { %467 = vst [vmem:[#allocation4 + $0x2e0] sm:$0xff] %v17684_v6  ;;  %468 = vst [vmem:[#allocation4 + $0x2e8] sm:$0xff] %v17684_v6 }
  0x76   : > { %469 = vst [vmem:[#allocation4 + $0x2f0] sm:$0xf] %v17684_v6  ;;  %470 = vst [vmem:[#allocation4 + $0x2f4] sm:$0xff] %v17684_v6 }
  0x77   : > { %471 = vst [vmem:[#allocation4 + $0x2fc] sm:$0xff] %v17684_v6  ;;  %472 = vst [vmem:[#allocation4 + $0x304] sm:$0xff] %v17684_v6 }
  0x78   : > { %473 = vst [vmem:[#allocation4 + $0x30c] sm:$0xff] %v17684_v6  ;;  %474 = vst [vmem:[#allocation4 + $0x314] sm:$0xf] %v17684_v6 }
  0x79   : > { %475 = vst [vmem:[#allocation4 + $0x318] sm:$0xff] %v17684_v6  ;;  %476 = vst [vmem:[#allocation4 + $0x320] sm:$0xff] %v17684_v6 }
  0x7a   : > { %477 = vst [vmem:[#allocation4 + $0x328] sm:$0xff] %v17684_v6  ;;  %478 = vst [vmem:[#allocation4 + $0x330] sm:$0xff] %v17684_v6 }
  0x7b   : > { %479 = vst [vmem:[#allocation4 + $0x338] sm:$0xf] %v17684_v6  ;;  %480 = vst [vmem:[#allocation4 + $0x33c] sm:$0xff] %v17684_v6 }
  0x7c   : > { %481 = vst [vmem:[#allocation4 + $0x344] sm:$0xff] %v17684_v6  ;;  %482 = vst [vmem:[#allocation4 + $0x34c] sm:$0xff] %v17684_v6 }
  0x7d   : > { %483 = vst [vmem:[#allocation4 + $0x354] sm:$0xff] %v17684_v6  ;;  %484 = vst [vmem:[#allocation4 + $0x35c] sm:$0xf] %v17684_v6 }
  0x7e   : > { %485 = vst [vmem:[#allocation4 + $0x360] sm:$0xff] %v17684_v6  ;;  %486 = vst [vmem:[#allocation4 + $0x368] sm:$0xff] %v17684_v6 }
  0x7f   : > { %487 = vst [vmem:[#allocation4 + $0x370] sm:$0xff] %v17684_v6  ;;  %488 = vst [vmem:[#allocation4 + $0x378] sm:$0xff] %v17684_v6 }
  0x80   : > { %489 = vst [vmem:[#allocation4 + $0x380] sm:$0xf] %v17684_v6  ;;  %490 = vst [vmem:[#allocation4 + $0x384] sm:$0xff] %v17684_v6 }
  0x81   : > { %491 = vst [vmem:[#allocation4 + $0x38c] sm:$0xff] %v17684_v6  ;;  %492 = vst [vmem:[#allocation4 + $0x394] sm:$0xff] %v17684_v6 }
  0x82   : > { %493 = vst [vmem:[#allocation4 + $0x39c] sm:$0xff] %v17684_v6  ;;  %494 = vst [vmem:[#allocation4 + $0x3a4] sm:$0xf] %v17684_v6 }
  0x83   : > { %495 = vst [vmem:[#allocation4 + $0x3a8] sm:$0xff] %v17684_v6  ;;  %496 = vst [vmem:[#allocation4 + $0x3b0] sm:$0xff] %v17684_v6 }
  0x84   : > { %497 = vst [vmem:[#allocation4 + $0x3b8] sm:$0xff] %v17684_v6  ;;  %498 = vst [vmem:[#allocation4 + $0x3c0] sm:$0xff] %v17684_v6 }
  0x85   : > { %499 = vst [vmem:[#allocation4 + $0x3c8] sm:$0xf] %v17684_v6  ;;  %500 = vst [vmem:[#allocation4 + $0x3cc] sm:$0xff] %v17684_v6 }
  0x86   : > { %501 = vst [vmem:[#allocation4 + $0x3d4] sm:$0xff] %v17684_v6  ;;  %502 = vst [vmem:[#allocation4 + $0x3dc] sm:$0xff] %v17684_v6 }
  0x87   : > { %503 = vst [vmem:[#allocation4 + $0x3e4] sm:$0xff] %v17684_v6  ;;  %504 = vst [vmem:[#allocation4 + $0x3ec] sm:$0xf] %v17684_v6 }
  0x88   : > { %505 = vst [vmem:[#allocation4 + $0x3f0] sm:$0xff] %v17684_v6  ;;  %506 = vst [vmem:[#allocation4 + $0x3f8] sm:$0xff] %v17684_v6 }
  0x89   : > { %507 = vst [vmem:[#allocation4 + $0x400] sm:$0xff] %v17684_v6  ;;  %508 = vst [vmem:[#allocation4 + $0x408] sm:$0xff] %v17684_v6 }
  0x8a   : > { %509 = vst [vmem:[#allocation4 + $0x410] sm:$0xf] %v17684_v6  ;;  %510 = vst [vmem:[#allocation4 + $0x414] sm:$0xff] %v17684_v6 }
  0x8b   : > { %511 = vst [vmem:[#allocation4 + $0x41c] sm:$0xff] %v17684_v6  ;;  %512 = vst [vmem:[#allocation4 + $0x424] sm:$0xff] %v17684_v6 }
  0x8c   : > { %513 = vst [vmem:[#allocation4 + $0x42c] sm:$0xff] %v17684_v6  ;;  %514 = vst [vmem:[#allocation4 + $0x434] sm:$0xf] %v17684_v6 }
  0x8d   : > { %515 = vst [vmem:[#allocation4 + $0x438] sm:$0xff] %v17684_v6  ;;  %516 = vst [vmem:[#allocation4 + $0x440] sm:$0xff] %v17684_v6 }
  0x8e   : > { %517 = vst [vmem:[#allocation4 + $0x448] sm:$0xff] %v17684_v6  ;;  %518 = vst [vmem:[#allocation4 + $0x450] sm:$0xff] %v17684_v6 }
  0x8f   : > { %519 = vst [vmem:[#allocation4 + $0x458] sm:$0xf] %v17684_v6  ;;  %520 = vst [vmem:[#allocation4 + $0x45c] sm:$0xff] %v17684_v6 }
  0x90   : > { %521 = vst [vmem:[#allocation4 + $0x464] sm:$0xff] %v17684_v6  ;;  %522 = vst [vmem:[#allocation4 + $0x46c] sm:$0xff] %v17684_v6 }
  0x91   : > { %523 = vst [vmem:[#allocation4 + $0x474] sm:$0xff] %v17684_v6  ;;  %524 = vst [vmem:[#allocation4 + $0x47c] sm:$0xf] %v17684_v6 }
  0x92   : > { %751 = vst.msk [vmem:[#allocation4] sm:$0xf] %vm750_vm4, %v14430_v17  ;;  %752 = vst.msk [vmem:[#allocation4 + $0x24] sm:$0xf] %vm750_vm4, %v14431_v18  ;;  %v16906_v17 = vld [vmem:[%s21349_s1 + $0xb0] sm:$0xff]  }
  0x93   : > { %943 = vst.msk [vmem:[#allocation4 + $0x4] sm:$0xf] %vm750_vm4, %v14462_v20  ;;  %944 = vst.msk [vmem:[#allocation4 + $0x28] sm:$0xf] %vm750_vm4, %v14463_v22 }
  0x94   : > { %580 = vst.msk [vmem:[#allocation2 + $0x121] sm:$0xff] %vm253_vm0, %v547_v24  ;;  %581 = vst.msk [vmem:[#allocation2 + $0x129] sm:$0xff] %vm253_vm0, %v548_v26  ;;  %v529_v24 = vld [vmem:[%s18157_s26 + $0x20] sm:$0xff] }
  0x95   : > { %558 = vst.msk [vmem:[#allocation2 + $0x19] sm:$0xff] %vm253_vm0, %v525_v36  ;;  %559 = vst.msk [vmem:[#allocation2 + $0x21] sm:$0xff] %vm253_vm0, %v526_v37  ;;  %v16914_v26 = vld [vmem:[%s21349_s1 + $0xe0] sm:$0xff]  }
  0x96   : > { %582 = vst.msk [vmem:[#allocation2 + $0x139] sm:$0xff] %vm253_vm0, %v549_v50  ;;  %583 = vst.msk [vmem:[#allocation2 + $0x141] sm:$0xff] %vm253_vm0, %v550_v51  ;;  %v16924_v50 = vld [vmem:[%s21349_s1 + $0x98] sm:$0xff]  }
  0x97   : > { %560 = vst.msk [vmem:[#allocation2 + $0x31] sm:$0xff] %vm253_vm0, %v527_v13  ;;  %561 = vst.msk [vmem:[#allocation2 + $0x39] sm:$0xff] %vm253_vm0, %v528_v14  ;;  %v531_v13 = vld [vmem:[%s18157_s26 + $0x30] sm:$0xff]  ;;  %v16934_v14 = vld [vmem:[%s21349_s1 + $0x88] sm:$0xff]  }
  0x98   : > { %584 = vst.msk [vmem:[#allocation2 + $0x151] sm:$0xff] %vm253_vm0, %v551_v15  ;;  %585 = vst.msk [vmem:[#allocation2 + $0x159] sm:$0xff] %vm253_vm0, %v552_v16  ;;  %v532_v15 = vld [vmem:[%s18157_s26 + $0x38] sm:$0xff]  ;;  %v975_v16 = vld [vmem:[#allocation2 + $0x2] sm:$0xff] }
  0x99   : > { %562 = vst.msk [vmem:[#allocation2 + $0x49] sm:$0xff] %vm253_vm0, %v529_v24  ;;  %563 = vst.msk [vmem:[#allocation2 + $0x51] sm:$0xff] %vm253_vm0, %v530_v25  ;;  %v16943_v24 = vld [vmem:[%s21349_s1 + $0x160] sm:$0xff]  }
  0x9a   : > { %v2320_v38 = vld [vmem:[#allocation4] sm:$0xff]  ;;  %586 = vst.msk [vmem:[#allocation2 + $0x169] sm:$0xff] %vm253_vm0, %v553_v27  ;;  %587 = vst.msk [vmem:[#allocation2 + $0x171] sm:$0xff] %vm253_vm0, %v554_v28 }
  0x9b   : > { %v614_v39 = vld [vmem:[#allocation2 + $0x120] sm:$0xff]  ;;  %v615_v45 = vld [vmem:[#allocation2 + $0x128] sm:$0xff]  ;;  %4823 = vst.msk [vmem:[#allocation4] sm:$0xf] %vm4822_vm5, %v14718_v30 }
  0x9c   : > { %v807_v40 = vld [vmem:[#allocation2 + $0x121] sm:$0xff]  ;;  %v14454_v46 = vpack.c.bf16 %v614_v39, %v614_v39  ;;  %v14455_v48 = vpack.c.bf16 %v615_v45, %v615_v45  ;;  %v808_v49 = vld [vmem:[#allocation2 + $0x129] sm:$0xff]  ;;  %v592_v56 = vld [vmem:[#allocation2 + $0x18] sm:$0xff]  ;;  %564 = vst.msk [vmem:[#allocation2 + $0x61] sm:$0xff] %vm253_vm0, %v531_v13 }
  0x9d   : > { %v2325_v43 = vld [vmem:[#allocation4 + $0x24] sm:$0xff]  ;;  %v14486_v47 = vpack.c.bf16 %v807_v40, %v807_v40  ;;  %v14487_v52 = vpack.c.bf16 %v808_v49, %v808_v49  ;;  %v785_v58 = vld [vmem:[#allocation2 + $0x19] sm:$0xff]  ;;  %v14432_v59 = vpack.c.bf16 %v592_v56, %v592_v56  ;;  %565 = vst.msk [vmem:[#allocation2 + $0x69] sm:$0xff] %vm253_vm0, %v532_v15 }
  0x9e   : > { %v16896_v44 = vld [vmem:[#allocation4 + $0x4] ss:$36 sps:$4 sm:$0xff]   ;;  %4824 = vst.msk [vmem:[#allocation4 + $0x24] sm:$0xf] %vm4822_vm5, %v14719_v32  ;;  %v13200_v53 = vcombine.low %v2320_v38, %v2325_v43  ;;  %v14464_v62 = vpack.c.bf16 %v785_v58, %v785_v58  ;;  %v616_v1 = vld [vmem:[#allocation2 + $0x138] sm:$0xff]  ;;  %v594_v31 = vld [vmem:[#allocation2 + $0x30] sm:$0xff] }
  0x9f   : > { %5015 = vst.msk [vmem:[#allocation4 + $0x4] sm:$0xf] %vm4822_vm5, %v14750_v33  ;;  %5016 = vst.msk [vmem:[#allocation4 + $0x28] sm:$0xf] %vm4822_vm5, %v14751_v34  ;;  %3824 = vmatprep.mubr.bf16.mxu0 %v16896_v44  ;;  %v593_v57 = vld [vmem:[#allocation2 + $0x20] sm:$0xff]  ;;  %v14456_v4 = vpack.c.bf16 %v616_v1, %v616_v1  ;;  %v595_v32 = vld [vmem:[#allocation2 + $0x38] sm:$0xff]  ;;  %v14434_v34 = vpack.c.bf16 %v594_v31, %v594_v31 }
  0xa0   : > { %775 = vst.msk [vmem:[#allocation4 + $0x360] sm:$0xf] %vm750_vm4, %v14454_v46  ;;  %967 = vst.msk [vmem:[#allocation4 + $0x364] sm:$0xf] %vm750_vm4, %v14486_v47  ;;  %3825 = vmatmul.mubr.bf16.vlgmr.msra.gmra.mxu0 %v13200_v53  ;;  %v14433_v60 = vpack.c.bf16 %v593_v57, %v593_v57  ;;  %v786_v61 = vld [vmem:[#allocation2 + $0x21] sm:$0xff]  ;;  %v809_v6 = vld [vmem:[#allocation2 + $0x139] sm:$0xff]  ;;  %v14435_v35 = vpack.c.bf16 %v595_v32, %v595_v32 }
  0xa1   : > { %776 = vst.msk [vmem:[#allocation4 + $0x384] sm:$0xf] %vm750_vm4, %v14455_v48  ;;  %968 = vst.msk [vmem:[#allocation4 + $0x388] sm:$0xf] %vm750_vm4, %v14487_v52  ;;  %15519 = vmatpush3.bf16.msra.mxu0 %v16904_v54  ;;  %v14465_v63 = vpack.c.bf16 %v786_v61, %v786_v61  ;;  %v617_v2 = vld [vmem:[#allocation2 + $0x140] sm:$0xff]  ;;  %v14488_v11 = vpack.c.bf16 %v809_v6, %v809_v6  ;;  %v787_v36 = vld [vmem:[#allocation2 + $0x31] sm:$0xff] }
  0xa2   : > { %753 = vst.msk [vmem:[#allocation4 + $0x48] sm:$0xf] %vm750_vm4, %v14432_v59  ;;  %754 = vst.msk [vmem:[#allocation4 + $0x6c] sm:$0xf] %vm750_vm4, %v14433_v60  ;;  %15520 = vmatprep.subr.bf16.mxu0 %v16915_v55  ;;  %v14457_v5 = vpack.c.bf16 %v617_v2, %v617_v2  ;;  %v810_v7 = vld [vmem:[#allocation2 + $0x141] sm:$0xff]  ;;  %v788_v37 = vld [vmem:[#allocation2 + $0x39] sm:$0xff]  ;;  %v14466_v39 = vpack.c.bf16 %v787_v36, %v787_v36 }
  0xa3   : > { %945 = vst.msk [vmem:[#allocation4 + $0x4c] sm:$0xf] %vm750_vm4, %v14464_v62  ;;  %1327 = vst.msk [vmem:[#allocation4 + $0xc] sm:$0xf] %vm750_vm4, %v14432_v59  ;;  %v14489_v12 = vpack.c.bf16 %v810_v7, %v810_v7  ;;  %v16916_v33 = vld [vmem:[%s21349_s1 + $0xa0] sm:$0xff]   ;;  %v618_v38 = vld [vmem:[#allocation2 + $0x150] sm:$0xff]  ;;  %v14467_v40 = vpack.c.bf16 %v788_v37, %v788_v37 }
  0xa4   : > { %1328 = vst.msk [vmem:[#allocation4 + $0x30] sm:$0xf] %vm750_vm4, %v14433_v60  ;;  %946 = vst.msk [vmem:[#allocation4 + $0x70] sm:$0xf] %vm750_vm4, %v14465_v63  ;;  %v619_v41 = vld [vmem:[#allocation2 + $0x158] sm:$0xff]  ;;  %v14458_v42 = vpack.c.bf16 %v618_v38, %v618_v38  ;;  %v16933_v49 = vld [vmem:[%s21349_s1 + $0x168] sm:$0xff]  }
  0xa5   : > { %777 = vst.msk [vmem:[#allocation4 + $0x3a8] sm:$0xf] %vm750_vm4, %v14456_v4  ;;  %778 = vst.msk [vmem:[#allocation4 + $0x3cc] sm:$0xf] %vm750_vm4, %v14457_v5  ;;  %15521 = vmatpush3.bf16.msra.mxu0 %v16917_v8  ;;  %v811_v43 = vld [vmem:[#allocation2 + $0x151] sm:$0xff]  ;;  %v812_v44 = vld [vmem:[#allocation2 + $0x159] sm:$0xff]  ;;  %v14459_v45 = vpack.c.bf16 %v619_v41, %v619_v41 }
  0xa6   : > { %969 = vst.msk [vmem:[#allocation4 + $0x3ac] sm:$0xf] %vm750_vm4, %v14488_v11  ;;  %970 = vst.msk [vmem:[#allocation4 + $0x3d0] sm:$0xf] %vm750_vm4, %v14489_v12  ;;  %v14490_v46 = vpack.c.bf16 %v811_v43, %v811_v43  ;;  %v14491_v47 = vpack.c.bf16 %v812_v44, %v812_v44  ;;  %v16923_v48 = vld [vmem:[%s21349_s1 + $0xd8] sm:$0xff]   ;;  %v596_v51 = vld [vmem:[#allocation2 + $0x48] sm:$0xff]  ;;  %15522 = vmatprep.subr.bf16.mxu0 %v16933_v49 }
  0xa7   : > { %755 = vst.msk [vmem:[#allocation4 + $0x90] sm:$0xf] %vm750_vm4, %v14434_v34  ;;  %756 = vst.msk [vmem:[#allocation4 + $0xb4] sm:$0xf] %vm750_vm4, %v14435_v35  ;;  %v597_v52 = vld [vmem:[#allocation2 + $0x50] sm:$0xff]  ;;  %v14436_v54 = vpack.c.bf16 %v596_v51, %v596_v51  ;;  %v620_v58 = vld [vmem:[#allocation2 + $0x168] sm:$0xff] }
  0xa8   : > { %v16898_v9 = vld [vmem:[#allocation4 + $0x364] ss:$36 sps:$4 sm:$0xff]   ;;  %1329 = vst.msk [vmem:[#allocation4 + $0x54] sm:$0xf] %vm750_vm4, %v14434_v34  ;;  %1330 = vst.msk [vmem:[#allocation4 + $0x78] sm:$0xf] %vm750_vm4, %v14435_v35  ;;  %v14437_v55 = vpack.c.bf16 %v597_v52, %v597_v52  ;;  %v14460_v61 = vpack.c.bf16 %v620_v58, %v620_v58 }
  0xa9   : > { %v16900_v10 = vld [vmem:[#allocation4 + $0x360] ss:$36 sps:$4 sm:$0xff]   ;;  %3920 = vmatprep.mubr.bf16.mxu1 %v16898_v9  ;;  %947 = vst.msk [vmem:[#allocation4 + $0x94] sm:$0xf] %vm750_vm4, %v14466_v39  ;;  %948 = vst.msk [vmem:[#allocation4 + $0xb8] sm:$0xf] %vm750_vm4, %v14467_v40 }
  0xaa   : > { %3921 = vmatmul.mubr.bf16.vlgmr.msra.gmra.mxu1 %v16900_v10  ;;  %v2330_v18 = vld [vmem:[#allocation4 + $0x48] sm:$0xff]  ;;  %779 = vst.msk [vmem:[#allocation4 + $0x3f0] sm:$0xf] %vm750_vm4, %v14458_v42  ;;  %780 = vst.msk [vmem:[#allocation4 + $0x414] sm:$0xf] %vm750_vm4, %v14459_v45  ;;  %v790_v56 = vld [vmem:[#allocation2 + $0x51] sm:$0xff] }
  0xab   : > { %15407 = vmatpush3.bf16.msra.mxu1 %v16903_v0  ;;  %v2335_v20 = vld [vmem:[#allocation4 + $0x6c] sm:$0xff]  ;;  %971 = vst.msk [vmem:[#allocation4 + $0x3f4] sm:$0xf] %vm750_vm4, %v14490_v46  ;;  %972 = vst.msk [vmem:[#allocation4 + $0x418] sm:$0xf] %vm750_vm4, %v14491_v47  ;;  %v14469_v60 = vpack.c.bf16 %v790_v56, %v790_v56  ;;  %v16937_v28 = vld [vmem:[%s21349_s1 + $0x80] sm:$0xff]  }
  0xac   : > { %15408 = vmatprep.subr.bf16.mxu1 %v16905_v3  ;;  %v16907_v21 = vld [vmem:[#allocation4 + $0x4c] ss:$36 sps:$4 sm:$0xff]   ;;  %v13209_v22 = vcombine.low %v2330_v18, %v2335_v20  ;;  %757 = vst.msk [vmem:[#allocation4 + $0xd8] sm:$0xf] %vm750_vm4, %v14436_v54  ;;  %758 = vst.msk [vmem:[#allocation4 + $0xfc] sm:$0xf] %vm750_vm4, %v14437_v55  ;;  %v14494_v20 = vpack.c.bf16 %v975_v16, %v975_v16 }
  0xad   : > { %3832 = vmatprep.mubr.bf16.mxu0 %v16907_v21  ;;  %v16909_v29 = vld [vmem:[#allocation4 + $0x3ac] ss:$36 sps:$4 sm:$0xff]   ;;  %1331 = vst.msk [vmem:[#allocation4 + $0x9c] sm:$0xf] %vm750_vm4, %v14436_v54  ;;  %1332 = vst.msk [vmem:[#allocation4 + $0xc0] sm:$0xf] %vm750_vm4, %v14437_v55 }
  0xae   : > { %3833 = vmatmul.mubr.bf16.gmra.mxu0 %v13209_v22  ;;  %v16911_v30 = vld [vmem:[#allocation4 + $0x3a8] ss:$36 sps:$4 sm:$0xff]   ;;  %3928 = vmatprep.mubr.bf16.mxu1 %v16909_v29  ;;  %v621_v59 = vld [vmem:[#allocation2 + $0x170] sm:$0xff]  ;;  %950 = vst.msk [vmem:[#allocation4 + $0x100] sm:$0xf] %vm750_vm4, %v14469_v60  ;;  %v16944_v29 = vld [vmem:[%s21349_s1 + $0x120] sm:$0xff]  }
  0xaf   : > { %15409 = vmatpush3.bf16.msra.mxu1 %v16906_v17  ;;  %v789_v53 = vld [vmem:[#allocation2 + $0x49] sm:$0xff]  ;;  %v14461_v62 = vpack.c.bf16 %v621_v59, %v621_v59  ;;  %v814_v0 = vld [vmem:[#allocation2 + $0x171] sm:$0xff]  ;;  %781 = vst.msk [vmem:[#allocation4 + $0x438] sm:$0xf] %vm750_vm4, %v14460_v61  ;;  %1135 = vst.msk [vmem:[#allocation4 + $0x8] sm:$0xf] %vm750_vm4, %v14494_v20 }
  0xb0   : > { %15410 = vmatprep.subr.bf16.mxu1 %v16912_v19  ;;  %v14468_v57 = vpack.c.bf16 %v789_v53, %v789_v53  ;;  %v813_v63 = vld [vmem:[#allocation2 + $0x169] sm:$0xff]  ;;  %v14493_v3 = vpack.c.bf16 %v814_v0, %v814_v0  ;;  %v2345_v7 = vld [vmem:[#allocation4 + $0xb4] sm:$0xff]  ;;  %v16936_v19 = vld [vmem:[%s21349_s1 + $0xc0] sm:$0xff]  }
  0xb1   : > { %v16925_v1 = vld [vmem:[%s21349_s1 + $0xd0] sm:$0xff]   ;;  %v14492_v2 = vpack.c.bf16 %v813_v63, %v813_v63  ;;  %782 = vst.msk [vmem:[#allocation4 + $0x45c] sm:$0xf] %vm750_vm4, %v14461_v62  ;;  %v16935_v4 = vld [vmem:[%s21349_s1 + $0x128] sm:$0xff]   ;;  %v977_v32 = vld [vmem:[#allocation2 + $0x1a] sm:$0xff] }
  0xb2   : > { %3929 = vmatmul.mubr.bf16.gmra.mxu1 %v16911_v30  ;;  %949 = vst.msk [vmem:[#allocation4 + $0xdc] sm:$0xf] %vm750_vm4, %v14468_v57  ;;  %v16926_v5 = vld [vmem:[%s21349_s1 + $0x90] sm:$0xff]   ;;  %974 = vst.msk [vmem:[#allocation4 + $0x460] sm:$0xf] %vm750_vm4, %v14493_v3  ;;  %15523 = vmatpush3.bf16.msra.mxu0 %v16935_v4  ;;  %v16932_v12 = vld [vmem:[%s21349_s1 + $0xc8] sm:$0xff]   ;;  %v14496_v37 = vpack.c.bf16 %v977_v32, %v977_v32 }
  0xb3   : > { %15411 = vmatpush3.bf16.msra.mxu1 %v16913_v23  ;;  %973 = vst.msk [vmem:[#allocation4 + $0x43c] sm:$0xf] %vm750_vm4, %v14492_v2  ;;  %v2340_v6 = vld [vmem:[#allocation4 + $0x90] sm:$0xff]  ;;  %15524 = vmatprep.subr.bf16.mxu0 %v16943_v24  ;;  %v533_v30 = vld [vmem:[%s18157_s26 + $0x40] sm:$0xff]  ;;  %v534_v31 = vld [vmem:[%s18157_s26 + $0x48] sm:$0xff] }
  0xb4   : > { %15412 = vmatprep.subr.bf16.mxu1 %v16914_v26  ;;  %v16918_v8 = vld [vmem:[#allocation4 + $0x94] ss:$36 sps:$4 sm:$0xff]   ;;  %v13218_v10 = vcombine.low %v2340_v6, %v2345_v7  ;;  %v976_v17 = vld [vmem:[#allocation2 + $0xa] sm:$0xff]  ;;  %566 = vst.msk [vmem:[#allocation2 + $0x79] sm:$0xff] %vm253_vm0, %v533_v30  ;;  %567 = vst.msk [vmem:[#allocation2 + $0x81] sm:$0xff] %vm253_vm0, %v534_v31 }
  0xb5   : > { %v16920_v9 = vld [vmem:[#allocation4 + $0x3f4] ss:$36 sps:$4 sm:$0xff]   ;;  %3840 = vmatprep.mubr.bf16.mxu0 %v16918_v8  ;;  %v14495_v21 = vpack.c.bf16 %v976_v17, %v976_v17  ;;  %v2355_v22 = vld [vmem:[#allocation4 + $0xfc] sm:$0xff]  ;;  %v599_v40 = vld [vmem:[#allocation2 + $0x68] sm:$0xff]  ;;  %1137 = vst.msk [vmem:[#allocation4 + $0x50] sm:$0xf] %vm750_vm4, %v14496_v37 }
  0xb6   : > { %v16922_v11 = vld [vmem:[#allocation4 + $0x3f0] ss:$36 sps:$4 sm:$0xff]   ;;  %3936 = vmatprep.mubr.bf16.mxu1 %v16920_v9  ;;  %3841 = vmatmul.mubr.bf16.gmra.mxu0 %v13218_v10  ;;  %v598_v35 = vld [vmem:[#allocation2 + $0x60] sm:$0xff]  ;;  %v536_v39 = vld [vmem:[%s18157_s26 + $0x58] sm:$0xff]  ;;  %v14439_v45 = vpack.c.bf16 %v599_v40, %v599_v40  ;;  %1711 = vst.msk [vmem:[#allocation4 + $0x14] sm:$0xf] %vm750_vm4, %v14496_v37 }
  0xb7   : > { %15413 = vmatpush3.bf16.msra.mxu1 %v16916_v33  ;;  %1136 = vst.msk [vmem:[#allocation4 + $0x2c] sm:$0xf] %vm750_vm4, %v14495_v21  ;;  %v978_v33 = vld [vmem:[#allocation2 + $0x22] sm:$0xff]  ;;  %v535_v34 = vld [vmem:[%s18157_s26 + $0x50] sm:$0xff]  ;;  %15525 = vmatpush3.bf16.msra.mxu0 %v16944_v29  ;;  %v14438_v41 = vpack.c.bf16 %v598_v35, %v598_v35  ;;  %v980_v47 = vld [vmem:[#allocation2 + $0x3a] sm:$0xff] }
  0xb8   : > { %15414 = vmatprep.subr.bf16.mxu1 %v16923_v48  ;;  %v16931_v27 = vld [vmem:[#allocation4 + $0x438] ss:$36 sps:$4 sm:$0xff]   ;;  %v791_v36 = vld [vmem:[#allocation2 + $0x61] sm:$0xff]  ;;  %v14497_v38 = vpack.c.bf16 %v978_v33, %v978_v33  ;;  %568 = vst.msk [vmem:[#allocation2 + $0x91] sm:$0xff] %vm253_vm0, %v535_v34  ;;  %v792_v42 = vld [vmem:[#allocation2 + $0x69] sm:$0xff] }
  0xb9   : > { %v2350_v18 = vld [vmem:[#allocation4 + $0xd8] sm:$0xff]  ;;  %v14470_v43 = vpack.c.bf16 %v791_v36, %v791_v36  ;;  %569 = vst.msk [vmem:[#allocation2 + $0x99] sm:$0xff] %vm253_vm0, %v536_v39  ;;  %v14471_v46 = vpack.c.bf16 %v792_v42, %v792_v42  ;;  %v16940_v49 = vld [vmem:[#allocation4 + $0xc] ss:$36 sps:$4 sm:$0xff]   ;;  %v537_v54 = vld [vmem:[%s18157_s26 + $0x60] sm:$0xff] }
  0xba   : > { %3937 = vmatmul.mubr.bf16.gmra.mxu1 %v16922_v11  ;;  %v16927_v23 = vld [vmem:[#allocation4 + $0xdc] ss:$36 sps:$4 sm:$0xff]   ;;  %v13227_v26 = vcombine.low %v2350_v18, %v2355_v22  ;;  %v979_v44 = vld [vmem:[#allocation2 + $0x32] sm:$0xff]  ;;  %1138 = vst.msk [vmem:[#allocation4 + $0x74] sm:$0xf] %vm750_vm4, %v14497_v38  ;;  %v981_v10 = vld [vmem:[#allocation2 + $0x4a] sm:$0xff] }
  0xbb   : > { %15415 = vmatpush3.bf16.msra.mxu1 %v16924_v50  ;;  %v16929_v25 = vld [vmem:[#allocation4 + $0x43c] ss:$36 sps:$4 sm:$0xff]   ;;  %3848 = vmatprep.mubr.bf16.mxu0 %v16927_v23  ;;  %v14498_v48 = vpack.c.bf16 %v979_v44, %v979_v44  ;;  %1712 = vst.msk [vmem:[#allocation4 + $0x38] sm:$0xf] %vm750_vm4, %v14497_v38  ;;  %759 = vst.msk [vmem:[#allocation4 + $0x120] sm:$0xf] %vm750_vm4, %v14438_v41  ;;  %v14499_v50 = vpack.c.bf16 %v980_v47, %v980_v47 }
  0xbc   : > { %15416 = vmatprep.subr.bf16.mxu1 %v16925_v1  ;;  %3944 = vmatprep.mubr.bf16.mxu1 %v16929_v25  ;;  %951 = vst.msk [vmem:[#allocation4 + $0x124] sm:$0xf] %vm750_vm4, %v14470_v43  ;;  %1333 = vst.msk [vmem:[#allocation4 + $0xe4] sm:$0xf] %vm750_vm4, %v14438_v41  ;;  %v16955_v52 = vld [vmem:[%s21349_s1 + $0x158] sm:$0xff]   ;;  %v601_v56 = vld [vmem:[#allocation2 + $0x80] sm:$0xff]  ;;  %v14500_v13 = vpack.c.bf16 %v981_v10, %v981_v10 }
  0xbd   : > { %1525 = vst.msk [vmem:[#allocation4 + $0xe8] sm:$0xf] %vm750_vm4, %v14470_v43  ;;  %760 = vst.msk [vmem:[#allocation4 + $0x144] sm:$0xf] %vm750_vm4, %v14439_v45  ;;  %v16956_v53 = vld [vmem:[%s21349_s1 + $0x118] sm:$0xff]   ;;  %15526 = vmatprep.subr.bf16.mxu0 %v16955_v52  ;;  %v14441_v59 = vpack.c.bf16 %v601_v56, %v601_v56  ;;  %v794_v60 = vld [vmem:[#allocation2 + $0x81] sm:$0xff] }
  0xbe   : > { %3849 = vmatmul.mubr.bf16.gmra.mxu0 %v13227_v26  ;;  %952 = vst.msk [vmem:[#allocation4 + $0x148] sm:$0xf] %vm750_vm4, %v14471_v46  ;;  %v16942_v51 = vld [vmem:[#allocation4 + $0x8] ss:$36 sps:$4 sm:$0xff]   ;;  %1139 = vst.msk [vmem:[#allocation4 + $0x98] sm:$0xf] %vm750_vm4, %v14498_v48  ;;  %v14473_v0 = vpack.c.bf16 %v794_v60, %v794_v60 }
  0xbf   : > { %15417 = vmatpush3.bf16.msra.mxu1 %v16926_v5  ;;  %1334 = vst.msk [vmem:[#allocation4 + $0x108] sm:$0xf] %vm750_vm4, %v14439_v45  ;;  %1713 = vst.msk [vmem:[#allocation4 + $0x5c] sm:$0xf] %vm750_vm4, %v14498_v48  ;;  %v600_v55 = vld [vmem:[#allocation2 + $0x78] sm:$0xff]  ;;  %v602_v62 = vld [vmem:[#allocation2 + $0x90] sm:$0xff]  ;;  %15527 = vmatpush3.bf16.msra.mxu0 %v16956_v53 }
  0xc0   : > { %15418 = vmatprep.subr.bf16.mxu1 %v16932_v12  ;;  %1526 = vst.msk [vmem:[#allocation4 + $0x10c] sm:$0xf] %vm750_vm4, %v14471_v46  ;;  %1140 = vst.msk [vmem:[#allocation4 + $0xbc] sm:$0xf] %vm750_vm4, %v14499_v50  ;;  %v793_v57 = vld [vmem:[#allocation2 + $0x79] sm:$0xff]  ;;  %v14440_v58 = vpack.c.bf16 %v600_v55, %v600_v55  ;;  %v795_v63 = vld [vmem:[#allocation2 + $0x91] sm:$0xff]  ;;  %v14442_v2 = vpack.c.bf16 %v602_v62, %v602_v62 }
  0xc1   : > { %1714 = vst.msk [vmem:[#allocation4 + $0x80] sm:$0xf] %vm750_vm4, %v14499_v50  ;;  %v14472_v61 = vpack.c.bf16 %v793_v57, %v793_v57  ;;  %v603_v1 = vld [vmem:[#allocation2 + $0x98] sm:$0xff]  ;;  %v14474_v4 = vpack.c.bf16 %v795_v63, %v795_v63  ;;  %v538_v5 = vld [vmem:[%s18157_s26 + $0x68] sm:$0xff]  ;;  %762 = vst.msk [vmem:[#allocation4 + $0x18c] sm:$0xf] %vm750_vm4, %v14441_v59 }
  0xc2   : > { %3945 = vmatmul.mubr.bf16.gmra.mxu1 %v16931_v27  ;;  %570 = vst.msk [vmem:[#allocation2 + $0xa9] sm:$0xff] %vm253_vm0, %v537_v54  ;;  %v796_v3 = vld [vmem:[#allocation2 + $0x99] sm:$0xff]  ;;  %v14443_v7 = vpack.c.bf16 %v603_v1, %v603_v1  ;;  %571 = vst.msk [vmem:[#allocation2 + $0xb1] sm:$0xff] %vm253_vm0, %v538_v5  ;;  %v16949_v15 = vld [vmem:[#allocation4 + $0x50] ss:$36 sps:$4 sm:$0xff]  }
  0xc3   : > { %15419 = vmatpush3.bf16.msra.mxu1 %v16934_v14  ;;  %3985 = vmatprep.mubr.bf16.mxu1 %v16940_v49  ;;  %761 = vst.msk [vmem:[#allocation4 + $0x168] sm:$0xf] %vm750_vm4, %v14440_v58  ;;  %953 = vst.msk [vmem:[#allocation4 + $0x16c] sm:$0xf] %vm750_vm4, %v14472_v61  ;;  %v16947_v6 = vld [vmem:[#allocation4 + $0x54] ss:$36 sps:$4 sm:$0xff]   ;;  %v14475_v8 = vpack.c.bf16 %v796_v3, %v796_v3 }
  0xc4   : > { %15420 = vmatprep.subr.bf16.mxu1 %v16936_v19  ;;  %1335 = vst.msk [vmem:[#allocation4 + $0x12c] sm:$0xf] %vm750_vm4, %v14440_v58  ;;  %1336 = vst.msk [vmem:[#allocation4 + $0x150] sm:$0xf] %vm750_vm4, %v14441_v59  ;;  %v2360_v9 = vld [vmem:[#allocation4 + $0x120] sm:$0xff]  ;;  %v982_v19 = vld [vmem:[#allocation2 + $0x52] sm:$0xff] }
  0xc5   : > { %1527 = vst.msk [vmem:[#allocation4 + $0x130] sm:$0xf] %vm750_vm4, %v14472_v61  ;;  %954 = vst.msk [vmem:[#allocation4 + $0x190] sm:$0xf] %vm750_vm4, %v14473_v0  ;;  %v2365_v11 = vld [vmem:[#allocation4 + $0x144] sm:$0xff]  ;;  %v14501_v22 = vpack.c.bf16 %v982_v19, %v982_v19  ;;  %v16962_v23 = vld [vmem:[%s21349_s1 + $0x150] sm:$0xff]  }
  0xc6   : > { %763 = vst.msk [vmem:[#allocation4 + $0x1b0] sm:$0xf] %vm750_vm4, %v14442_v2  ;;  %955 = vst.msk [vmem:[#allocation4 + $0x1b4] sm:$0xf] %vm750_vm4, %v14474_v4  ;;  %v16938_v12 = vld [vmem:[#allocation4 + $0x124] ss:$36 sps:$4 sm:$0xff]   ;;  %v13236_v14 = vcombine.low %v2360_v9, %v2365_v11  ;;  %15528 = vmatprep.subr.bf16.mxu0 %v16962_v23 }
  0xc7   : > { %15421 = vmatpush3.bf16.msra.mxu1 %v16937_v28  ;;  %1337 = vst.msk [vmem:[#allocation4 + $0x174] sm:$0xf] %vm750_vm4, %v14442_v2  ;;  %1528 = vst.msk [vmem:[#allocation4 + $0x154] sm:$0xf] %vm750_vm4, %v14473_v0  ;;  %3856 = vmatprep.mubr.bf16.mxu0 %v16938_v12  ;;  %v16952_v16 = vld [vmem:[#allocation4 + $0x9c] ss:$36 sps:$4 sm:$0xff]  }
  0xc8   : > { %1529 = vst.msk [vmem:[#allocation4 + $0x178] sm:$0xf] %vm750_vm4, %v14474_v4  ;;  %764 = vst.msk [vmem:[#allocation4 + $0x1d4] sm:$0xf] %vm750_vm4, %v14443_v7  ;;  %3857 = vmatmul.mubr.bf16.gmra.mxu0 %v13236_v14  ;;  %v16963_v24 = vld [vmem:[%s21349_s1 + $0x110] sm:$0xff]   ;;  %v540_v35 = vld [vmem:[%s18157_s26 + $0x78] sm:$0xff] }
  0xc9   : > { %956 = vst.msk [vmem:[#allocation4 + $0x1d8] sm:$0xf] %vm750_vm4, %v14475_v8  ;;  %1338 = vst.msk [vmem:[#allocation4 + $0x198] sm:$0xf] %vm750_vm4, %v14443_v7  ;;  %v604_v17 = vld [vmem:[#allocation2 + $0xa8] sm:$0xff]  ;;  %v605_v26 = vld [vmem:[#allocation2 + $0xb0] sm:$0xff]  ;;  %15529 = vmatpush3.bf16.msra.mxu0 %v16963_v24 }
  0xca   : > { %3986 = vmatmul.mubr.bf16.vlgmr.msra.gmra.mxu1 %v16942_v51  ;;  %1530 = vst.msk [vmem:[#allocation4 + $0x19c] sm:$0xf] %vm750_vm4, %v14475_v8  ;;  %v797_v18 = vld [vmem:[#allocation2 + $0xa9] sm:$0xff]  ;;  %1141 = vst.msk [vmem:[#allocation4 + $0xe0] sm:$0xf] %vm750_vm4, %v14500_v13  ;;  %v14444_v20 = vpack.c.bf16 %v604_v17, %v604_v17  ;;  %v798_v27 = vld [vmem:[#allocation2 + $0xb1] sm:$0xff]  ;;  %v14445_v30 = vpack.c.bf16 %v605_v26, %v605_v26 }
  0xcb   : > { %3993 = vmatprep.mubr.bf16.mxu1 %v16947_v6  ;;  %1715 = vst.msk [vmem:[#allocation4 + $0xa4] sm:$0xf] %vm750_vm4, %v14500_v13  ;;  %v14476_v21 = vpack.c.bf16 %v797_v18, %v797_v18  ;;  %v2370_v25 = vld [vmem:[#allocation4 + $0x168] sm:$0xff]  ;;  %1142 = vst.msk [vmem:[#allocation4 + $0x104] sm:$0xf] %vm750_vm4, %v14501_v22  ;;  %v14477_v31 = vpack.c.bf16 %v798_v27, %v798_v27  ;;  %v539_v34 = vld [vmem:[%s18157_s26 + $0x70] sm:$0xff] }
  0xcc   : > { %765 = vst.msk [vmem:[#allocation4 + $0x1f8] sm:$0xf] %vm750_vm4, %v14444_v20  ;;  %1339 = vst.msk [vmem:[#allocation4 + $0x1bc] sm:$0xf] %vm750_vm4, %v14444_v20  ;;  %v2375_v28 = vld [vmem:[#allocation4 + $0x18c] sm:$0xff]  ;;  %v983_v36 = vld [vmem:[#allocation2 + $0x62] sm:$0xff] }
  0xcd   : > { %957 = vst.msk [vmem:[#allocation4 + $0x1fc] sm:$0xf] %vm750_vm4, %v14476_v21  ;;  %1716 = vst.msk [vmem:[#allocation4 + $0xc8] sm:$0xf] %vm750_vm4, %v14501_v22  ;;  %v16945_v29 = vld [vmem:[#allocation4 + $0x16c] ss:$36 sps:$4 sm:$0xff]   ;;  %v13245_v32 = vcombine.low %v2370_v25, %v2375_v28  ;;  %v14502_v39 = vpack.c.bf16 %v983_v36, %v983_v36 }
  0xce   : > { %1531 = vst.msk [vmem:[#allocation4 + $0x1c0] sm:$0xf] %vm750_vm4, %v14476_v21  ;;  %3864 = vmatprep.mubr.bf16.mxu0 %v16945_v29  ;;  %766 = vst.msk [vmem:[#allocation4 + $0x21c] sm:$0xf] %vm750_vm4, %v14445_v30  ;;  %v984_v37 = vld [vmem:[#allocation2 + $0x6a] sm:$0xff]  ;;  %v541_v41 = vld [vmem:[%s18157_s26 + $0x80] sm:$0xff] }
  0xcf   : > { %958 = vst.msk [vmem:[#allocation4 + $0x220] sm:$0xf] %vm750_vm4, %v14477_v31  ;;  %1340 = vst.msk [vmem:[#allocation4 + $0x1e0] sm:$0xf] %vm750_vm4, %v14445_v30  ;;  %v16954_v38 = vld [vmem:[#allocation4 + $0x98] ss:$36 sps:$4 sm:$0xff]   ;;  %v14503_v40 = vpack.c.bf16 %v984_v37, %v984_v37 }
  0xd0   : > { %v16950_v33 = vld [vmem:[#allocation4 + $0x1b4] ss:$36 sps:$4 sm:$0xff]   ;;  %572 = vst.msk [vmem:[#allocation2 + $0xc1] sm:$0xff] %vm253_vm0, %v539_v34  ;;  %573 = vst.msk [vmem:[#allocation2 + $0xc9] sm:$0xff] %vm253_vm0, %v540_v35  ;;  %v542_v42 = vld [vmem:[%s18157_s26 + $0x88] sm:$0xff]  ;;  %3865 = vmatmul.mubr.bf16.gmra.mxu0 %v13245_v32 }
  0xd1   : > { %1532 = vst.msk [vmem:[#allocation4 + $0x1e4] sm:$0xf] %vm750_vm4, %v14477_v31  ;;  %v2380_v43 = vld [vmem:[#allocation4 + $0x1b0] sm:$0xff]  ;;  %v985_v44 = vld [vmem:[#allocation2 + $0x7a] sm:$0xff]  ;;  %v986_v45 = vld [vmem:[#allocation2 + $0x82] sm:$0xff]  ;;  %3872 = vmatprep.mubr.bf16.mxu0 %v16950_v33 }
  0xd2   : > { %3994 = vmatmul.mubr.bf16.gmra.mxu1 %v16949_v15  ;;  %574 = vst.msk [vmem:[#allocation2 + $0xd9] sm:$0xff] %vm253_vm0, %v541_v41  ;;  %575 = vst.msk [vmem:[#allocation2 + $0xe1] sm:$0xff] %vm253_vm0, %v542_v42  ;;  %v14504_v46 = vpack.c.bf16 %v985_v44, %v985_v44  ;;  %v14505_v47 = vpack.c.bf16 %v986_v45, %v986_v45  ;;  %v16974_v48 = vld [vmem:[%s21349_s1 + $0x148] sm:$0xff]   ;;  %v2385_v49 = vld [vmem:[#allocation4 + $0x1d4] sm:$0xff] }
  0xd3   : > { %4001 = vmatprep.mubr.bf16.mxu1 %v16952_v16  ;;  %1143 = vst.msk [vmem:[#allocation4 + $0x128] sm:$0xf] %vm750_vm4, %v14502_v39  ;;  %1144 = vst.msk [vmem:[#allocation4 + $0x14c] sm:$0xf] %vm750_vm4, %v14503_v40  ;;  %v16959_v50 = vld [vmem:[#allocation4 + $0xe4] ss:$36 sps:$4 sm:$0xff]   ;;  %15530 = vmatprep.subr.bf16.mxu0 %v16974_v48  ;;  %v13254_v55 = vcombine.low %v2380_v43, %v2385_v49 }
  0xd4   : > { %1717 = vst.msk [vmem:[#allocation4 + $0xec] sm:$0xf] %vm750_vm4, %v14502_v39  ;;  %1718 = vst.msk [vmem:[#allocation4 + $0x110] sm:$0xf] %vm750_vm4, %v14503_v40  ;;  %v16975_v51 = vld [vmem:[%s21349_s1 + $0x108] sm:$0xff]   ;;  %v543_v52 = vld [vmem:[%s18157_s26 + $0x90] sm:$0xff] }
  0xd5   : > { %1145 = vst.msk [vmem:[#allocation4 + $0x170] sm:$0xf] %vm750_vm4, %v14504_v46  ;;  %1146 = vst.msk [vmem:[#allocation4 + $0x194] sm:$0xf] %vm750_vm4, %v14505_v47  ;;  %v544_v53 = vld [vmem:[%s18157_s26 + $0x98] sm:$0xff]  ;;  %15531 = vmatpush3.bf16.msra.mxu0 %v16975_v51  ;;  %v16981_v24 = vld [vmem:[%s21349_s1 + $0x140] sm:$0xff]  }
  0xd6   : > { %1719 = vst.msk [vmem:[#allocation4 + $0x134] sm:$0xf] %vm750_vm4, %v14504_v46  ;;  %1720 = vst.msk [vmem:[#allocation4 + $0x158] sm:$0xf] %vm750_vm4, %v14505_v47  ;;  %v987_v54 = vld [vmem:[#allocation2 + $0x92] sm:$0xff]  ;;  %v2395_v10 = vld [vmem:[#allocation4 + $0x21c] sm:$0xff]  ;;  %15532 = vmatprep.subr.bf16.mxu0 %v16981_v24 }
  0xd7   : > { %v16957_v56 = vld [vmem:[#allocation4 + $0x1fc] ss:$36 sps:$4 sm:$0xff]   ;;  %576 = vst.msk [vmem:[#allocation2 + $0xf1] sm:$0xff] %vm253_vm0, %v543_v52  ;;  %577 = vst.msk [vmem:[#allocation2 + $0xf9] sm:$0xff] %vm253_vm0, %v544_v53  ;;  %v14506_v58 = vpack.c.bf16 %v987_v54, %v987_v54  ;;  %v607_v59 = vld [vmem:[#allocation2 + $0xc8] sm:$0xff] }
  0xd8   : > { %v606_v57 = vld [vmem:[#allocation2 + $0xc0] sm:$0xff]  ;;  %v800_v62 = vld [vmem:[#allocation2 + $0xc9] sm:$0xff]  ;;  %v14447_v63 = vpack.c.bf16 %v607_v59, %v607_v59  ;;  %v18418_v5 = vld [vmem:[#allocation4 + $0x1f8] sm:$0xff]  ;;  %3873 = vmatmul.mubr.bf16.gmra.mxu0 %v13254_v55 }
  0xd9   : > { %v14446_v60 = vpack.c.bf16 %v606_v57, %v606_v57  ;;  %v799_v61 = vld [vmem:[#allocation2 + $0xc1] sm:$0xff]  ;;  %v14479_v1 = vpack.c.bf16 %v800_v62, %v800_v62  ;;  %v608_v2 = vld [vmem:[#allocation2 + $0xd8] sm:$0xff]  ;;  %1147 = vst.msk [vmem:[#allocation4 + $0x1b8] sm:$0xf] %vm750_vm4, %v14506_v58  ;;  %1721 = vst.msk [vmem:[#allocation4 + $0x17c] sm:$0xf] %vm750_vm4, %v14506_v58  ;;  %3880 = vmatprep.mubr.bf16.mxu0 %v16957_v56  ;;  %v13263_v19 = vcombine.low %v18418_v5, %v2395_v10 }
  0xda   : > { %4002 = vmatmul.mubr.bf16.gmra.mxu1 %v16954_v38  ;;  %v14478_v0 = vpack.c.bf16 %v799_v61, %v799_v61  ;;  %v609_v3 = vld [vmem:[#allocation2 + $0xe0] sm:$0xff]  ;;  %v14448_v7 = vpack.c.bf16 %v608_v2, %v608_v2  ;;  %768 = vst.msk [vmem:[#allocation4 + $0x264] sm:$0xf] %vm750_vm4, %v14447_v63  ;;  %1342 = vst.msk [vmem:[#allocation4 + $0x228] sm:$0xf] %vm750_vm4, %v14447_v63  ;;  %v546_v29 = vld [vmem:[%s18157_s26 + $0xa8] sm:$0xff] }
  0xdb   : > { %4009 = vmatprep.mubr.bf16.mxu1 %v16959_v50  ;;  %v801_v4 = vld [vmem:[#allocation2 + $0xd9] sm:$0xff]  ;;  %767 = vst.msk [vmem:[#allocation4 + $0x240] sm:$0xf] %vm750_vm4, %v14446_v60  ;;  %v14449_v8 = vpack.c.bf16 %v609_v3, %v609_v3  ;;  %1341 = vst.msk [vmem:[#allocation4 + $0x204] sm:$0xf] %vm750_vm4, %v14446_v60  ;;  %v802_v11 = vld [vmem:[#allocation2 + $0xe1] sm:$0xff] }
  0xdc   : > { %v16961_v6 = vld [vmem:[#allocation4 + $0xe0] ss:$36 sps:$4 sm:$0xff]   ;;  %v14480_v9 = vpack.c.bf16 %v801_v4, %v801_v4  ;;  %959 = vst.msk [vmem:[#allocation4 + $0x244] sm:$0xf] %vm750_vm4, %v14478_v0  ;;  %960 = vst.msk [vmem:[#allocation4 + $0x268] sm:$0xf] %vm750_vm4, %v14479_v1  ;;  %v14481_v14 = vpack.c.bf16 %v802_v11, %v802_v11 }
  0xdd   : > { %v988_v12 = vld [vmem:[#allocation2 + $0x9a] sm:$0xff]  ;;  %1533 = vst.msk [vmem:[#allocation4 + $0x208] sm:$0xf] %vm750_vm4, %v14478_v0  ;;  %1534 = vst.msk [vmem:[#allocation4 + $0x22c] sm:$0xf] %vm750_vm4, %v14479_v1  ;;  %v989_v30 = vld [vmem:[#allocation2 + $0xaa] sm:$0xff] }
  0xde   : > { %v16966_v13 = vld [vmem:[#allocation4 + $0x12c] ss:$36 sps:$4 sm:$0xff]   ;;  %769 = vst.msk [vmem:[#allocation4 + $0x288] sm:$0xf] %vm750_vm4, %v14448_v7  ;;  %770 = vst.msk [vmem:[#allocation4 + $0x2ac] sm:$0xf] %vm750_vm4, %v14449_v8  ;;  %v14507_v15 = vpack.c.bf16 %v988_v12, %v988_v12  ;;  %v14508_v34 = vpack.c.bf16 %v989_v30, %v989_v30 }
  0xdf   : > { %961 = vst.msk [vmem:[#allocation4 + $0x28c] sm:$0xf] %vm750_vm4, %v14480_v9  ;;  %1343 = vst.msk [vmem:[#allocation4 + $0x24c] sm:$0xf] %vm750_vm4, %v14448_v7  ;;  %v610_v16 = vld [vmem:[#allocation2 + $0xf0] sm:$0xff]  ;;  %v611_v17 = vld [vmem:[#allocation2 + $0xf8] sm:$0xff] }
  0xe0   : > { %1344 = vst.msk [vmem:[#allocation4 + $0x270] sm:$0xf] %vm750_vm4, %v14449_v8  ;;  %1535 = vst.msk [vmem:[#allocation4 + $0x250] sm:$0xf] %vm750_vm4, %v14480_v9  ;;  %v803_v18 = vld [vmem:[#allocation2 + $0xf1] sm:$0xff]  ;;  %v14450_v20 = vpack.c.bf16 %v610_v16, %v610_v16  ;;  %v14451_v21 = vpack.c.bf16 %v611_v17, %v611_v17  ;;  %v804_v22 = vld [vmem:[#allocation2 + $0xf9] sm:$0xff]  ;;  %3881 = vmatmul.mubr.bf16.gmra.mxu0 %v13263_v19 }
  0xe1   : > { %962 = vst.msk [vmem:[#allocation4 + $0x2b0] sm:$0xf] %vm750_vm4, %v14481_v14  ;;  %1148 = vst.msk [vmem:[#allocation4 + $0x1dc] sm:$0xf] %vm750_vm4, %v14507_v15  ;;  %v14482_v23 = vpack.c.bf16 %v803_v18, %v803_v18  ;;  %v14483_v25 = vpack.c.bf16 %v804_v22, %v804_v22  ;;  %v16982_v26 = vld [vmem:[%s21349_s1 + $0x100] sm:$0xff]   ;;  %v990_v36 = vld [vmem:[#allocation2 + $0xb2] sm:$0xff] }
  0xe2   : > { %1722 = vst.msk [vmem:[#allocation4 + $0x1a0] sm:$0xf] %vm750_vm4, %v14507_v15  ;;  %1536 = vst.msk [vmem:[#allocation4 + $0x274] sm:$0xf] %vm750_vm4, %v14481_v14  ;;  %4010 = vmatmul.mubr.bf16.gmra.mxu1 %v16961_v6  ;;  %v16968_v27 = vld [vmem:[#allocation4 + $0x128] ss:$36 sps:$4 sm:$0xff]   ;;  %15533 = vmatpush3.bf16.msra.mxu0 %v16982_v26  ;;  %v14509_v37 = vpack.c.bf16 %v990_v36, %v990_v36 }
  0xe3   : > { %4017 = vmatprep.mubr.bf16.mxu1 %v16966_v13  ;;  %771 = vst.msk [vmem:[#allocation4 + $0x2d0] sm:$0xf] %vm750_vm4, %v14450_v20  ;;  %772 = vst.msk [vmem:[#allocation4 + $0x2f4] sm:$0xf] %vm750_vm4, %v14451_v21  ;;  %v545_v28 = vld [vmem:[%s18157_s26 + $0xa0] sm:$0xff]  ;;  %v16988_v38 = vld [vmem:[%s21349_s1 + $0x1f8] sm:$0xff]  }
  0xe4   : > { %963 = vst.msk [vmem:[#allocation4 + $0x2d4] sm:$0xf] %vm750_vm4, %v14482_v23  ;;  %1345 = vst.msk [vmem:[#allocation4 + $0x294] sm:$0xf] %vm750_vm4, %v14450_v20  ;;  %v2400_v31 = vld [vmem:[#allocation4 + $0x240] sm:$0xff]  ;;  %15630 = vmatprep.subr.bf16.mxu1 %v16988_v38  ;;  %v16989_v40 = vld [vmem:[%s21349_s1 + $0x1b8] sm:$0xff]  }
  0xe5   : > { %1346 = vst.msk [vmem:[#allocation4 + $0x2b8] sm:$0xf] %vm750_vm4, %v14451_v21  ;;  %1537 = vst.msk [vmem:[#allocation4 + $0x298] sm:$0xf] %vm750_vm4, %v14482_v23  ;;  %v16964_v32 = vld [vmem:[#allocation4 + $0x244] ss:$36 sps:$4 sm:$0xff]   ;;  %15631 = vmatpush3.bf16.msra.mxu1 %v16989_v40 }
  0xe6   : > { %v16971_v33 = vld [vmem:[#allocation4 + $0x174] ss:$36 sps:$4 sm:$0xff]   ;;  %964 = vst.msk [vmem:[#allocation4 + $0x2f8] sm:$0xf] %vm750_vm4, %v14483_v25  ;;  %1538 = vst.msk [vmem:[#allocation4 + $0x2bc] sm:$0xf] %vm750_vm4, %v14483_v25  ;;  %3888 = vmatprep.mubr.bf16.mxu0 %v16964_v32 }
  0xe7   : > { %578 = vst.msk [vmem:[#allocation2 + $0x109] sm:$0xff] %vm253_vm0, %v545_v28  ;;  %579 = vst.msk [vmem:[#allocation2 + $0x111] sm:$0xff] %vm253_vm0, %v546_v29  ;;  %v2405_v35 = vld [vmem:[#allocation4 + $0x264] sm:$0xff]  ;;  %v1359_v46 = vld [vmem:[#allocation2 + $0x19] sm:$0xff] }
  0xe8   : > { %1149 = vst.msk [vmem:[#allocation4 + $0x200] sm:$0xf] %vm750_vm4, %v14508_v34  ;;  %1723 = vst.msk [vmem:[#allocation4 + $0x1c4] sm:$0xf] %vm750_vm4, %v14508_v34  ;;  %v13272_v39 = vcombine.low %v2400_v31, %v2405_v35  ;;  %v991_v41 = vld [vmem:[#allocation2 + $0xc2] sm:$0xff]  ;;  %v992_v42 = vld [vmem:[#allocation2 + $0xca] sm:$0xff]  ;;  %v14558_v50 = vpack.c.bf16 %v1359_v46, %v1359_v46 }
  0xe9   : > { %1150 = vst.msk [vmem:[#allocation4 + $0x224] sm:$0xf] %vm750_vm4, %v14509_v37  ;;  %1724 = vst.msk [vmem:[#allocation4 + $0x1e8] sm:$0xf] %vm750_vm4, %v14509_v37  ;;  %v16969_v43 = vld [vmem:[#allocation4 + $0x28c] ss:$36 sps:$4 sm:$0xff]   ;;  %v14510_v44 = vpack.c.bf16 %v991_v41, %v991_v41  ;;  %v14511_v45 = vpack.c.bf16 %v992_v42, %v992_v42 }
  0xea   : > { %4018 = vmatmul.mubr.bf16.gmra.mxu1 %v16968_v27  ;;  %v1360_v47 = vld [vmem:[#allocation2 + $0x21] sm:$0xff]  ;;  %v16973_v48 = vld [vmem:[#allocation4 + $0x170] ss:$36 sps:$4 sm:$0xff]   ;;  %3889 = vmatmul.mubr.bf16.gmra.mxu0 %v13272_v39  ;;  %1519 = vst.msk [vmem:[#allocation4 + $0x10] sm:$0xf] %vm750_vm4, %v14558_v50  ;;  %v18477_v62 = vld [vmem:[%s21349_s1 + $0x238] sm:$0xff]  }
  0xeb   : > { %4025 = vmatprep.mubr.bf16.mxu1 %v16971_v33  ;;  %v14559_v51 = vpack.c.bf16 %v1360_v47, %v1360_v47  ;;  %v2410_v52 = vld [vmem:[#allocation4 + $0x288] sm:$0xff]  ;;  %v16978_v54 = vld [vmem:[#allocation4 + $0x1bc] ss:$36 sps:$4 sm:$0xff]   ;;  %1151 = vst.msk [vmem:[#allocation4 + $0x248] sm:$0xf] %vm750_vm4, %v14510_v44  ;;  %3896 = vmatprep.mubr.bf16.mxu0 %v16969_v43  ;;  %v1361_v4 = vld [vmem:[#allocation2 + $0x31] sm:$0xff] }
  0xec   : > { %v2415_v53 = vld [vmem:[#allocation4 + $0x2ac] sm:$0xff]  ;;  %1152 = vst.msk [vmem:[#allocation4 + $0x26c] sm:$0xf] %vm750_vm4, %v14511_v45  ;;  %1725 = vst.msk [vmem:[#allocation4 + $0x20c] sm:$0xf] %vm750_vm4, %v14510_v44  ;;  %v993_v63 = vld [vmem:[#allocation2 + $0xda] sm:$0xff]  ;;  %16710 = vmatprep.subr.bf16.mxu0 %v18477_v62  ;;  %v14560_v7 = vpack.c.bf16 %v1361_v4, %v1361_v4 }
  0xed   : > { %1726 = vst.msk [vmem:[#allocation4 + $0x230] sm:$0xf] %vm750_vm4, %v14511_v45  ;;  %1520 = vst.msk [vmem:[#allocation4 + $0x34] sm:$0xf] %vm750_vm4, %v14559_v51  ;;  %v994_v0 = vld [vmem:[#allocation2 + $0xe2] sm:$0xff]  ;;  %v14512_v1 = vpack.c.bf16 %v993_v63, %v993_v63  ;;  %v1362_v5 = vld [vmem:[#allocation2 + $0x39] sm:$0xff]  ;;  %v13281_v6 = vcombine.low %v2410_v52, %v2415_v53 }
  0xee   : > { %v612_v49 = vld [vmem:[#allocation2 + $0x108] sm:$0xff]  ;;  %v613_v55 = vld [vmem:[#allocation2 + $0x110] sm:$0xff]  ;;  %v14513_v2 = vpack.c.bf16 %v994_v0, %v994_v0  ;;  %v14561_v8 = vpack.c.bf16 %v1362_v5, %v1362_v5  ;;  %1521 = vst.msk [vmem:[#allocation4 + $0x58] sm:$0xf] %vm750_vm4, %v14560_v7  ;;  %2096 = vst.msk [vmem:[#allocation4 + $0x1c] sm:$0xf] %vm750_vm4, %v14560_v7 }
  0xef   : > { %v14452_v56 = vpack.c.bf16 %v612_v49, %v612_v49  ;;  %v805_v57 = vld [vmem:[#allocation2 + $0x109] sm:$0xff]  ;;  %v806_v58 = vld [vmem:[#allocation2 + $0x111] sm:$0xff]  ;;  %v14453_v59 = vpack.c.bf16 %v613_v55, %v613_v55  ;;  %1153 = vst.msk [vmem:[#allocation4 + $0x290] sm:$0xf] %vm750_vm4, %v14512_v1  ;;  %1727 = vst.msk [vmem:[#allocation4 + $0x254] sm:$0xf] %vm750_vm4, %v14512_v1 }
  0xf0   : > { %v14484_v60 = vpack.c.bf16 %v805_v57, %v805_v57  ;;  %v14485_v61 = vpack.c.bf16 %v806_v58, %v806_v58  ;;  %v16976_v3 = vld [vmem:[#allocation4 + $0x2d4] ss:$36 sps:$4 sm:$0xff]   ;;  %1154 = vst.msk [vmem:[#allocation4 + $0x2b4] sm:$0xf] %vm750_vm4, %v14513_v2  ;;  %1728 = vst.msk [vmem:[#allocation4 + $0x278] sm:$0xf] %vm750_vm4, %v14513_v2 }
  0xf1   : > { %773 = vst.msk [vmem:[#allocation4 + $0x318] sm:$0xf] %vm750_vm4, %v14452_v56  ;;  %1347 = vst.msk [vmem:[#allocation4 + $0x2dc] sm:$0xf] %vm750_vm4, %v14452_v56  ;;  %v17001_v9 = vld [vmem:[%s21349_s1 + $0x1f0] sm:$0xff]   ;;  %v996_v14 = vld [vmem:[#allocation2 + $0xfa] sm:$0xff] }
  0xf2   : > { %774 = vst.msk [vmem:[#allocation4 + $0x33c] sm:$0xf] %vm750_vm4, %v14453_v59  ;;  %965 = vst.msk [vmem:[#allocation4 + $0x31c] sm:$0xf] %vm750_vm4, %v14484_v60  ;;  %4026 = vmatmul.mubr.bf16.gmra.mxu1 %v16973_v48  ;;  %v17002_v10 = vld [vmem:[%s21349_s1 + $0x1b0] sm:$0xff]   ;;  %15632 = vmatprep.subr.bf16.mxu1 %v17001_v9  ;;  %v14515_v19 = vpack.c.bf16 %v996_v14, %v996_v14  ;;  %v1189_v30 = vld [vmem:[#allocation2 + $0x120] sm:$0xff] }
  0xf3   : > { %966 = vst.msk [vmem:[#allocation4 + $0x340] sm:$0xf] %vm750_vm4, %v14485_v61  ;;  %1348 = vst.msk [vmem:[#allocation4 + $0x300] sm:$0xf] %vm750_vm4, %v14453_v59  ;;  %4033 = vmatprep.mubr.bf16.mxu1 %v16978_v54  ;;  %v995_v11 = vld [vmem:[#allocation2 + $0xf2] sm:$0xff]  ;;  %15633 = vmatpush3.bf16.msra.mxu1 %v17002_v10  ;;  %v1363_v15 = vld [vmem:[#allocation2 + $0x49] sm:$0xff]  ;;  %v14548_v33 = vpack.c.bf16 %v1189_v30, %v1189_v30 }
  0xf4   : > { %1539 = vst.msk [vmem:[#allocation4 + $0x2e0] sm:$0xf] %vm750_vm4, %v14484_v60  ;;  %1540 = vst.msk [vmem:[#allocation4 + $0x304] sm:$0xf] %vm750_vm4, %v14485_v61  ;;  %v14514_v12 = vpack.c.bf16 %v995_v11, %v995_v11  ;;  %3897 = vmatmul.mubr.bf16.gmra.mxu0 %v13281_v6  ;;  %v16980_v13 = vld [vmem:[#allocation4 + $0x1b8] ss:$36 sps:$4 sm:$0xff]   ;;  %v14562_v20 = vpack.c.bf16 %v1363_v15, %v1363_v15 }
  0xf5   : > { %1522 = vst.msk [vmem:[#allocation4 + $0x7c] sm:$0xf] %vm750_vm4, %v14561_v8  ;;  %2097 = vst.msk [vmem:[#allocation4 + $0x40] sm:$0xf] %vm750_vm4, %v14561_v8  ;;  %v2420_v16 = vld [vmem:[#allocation4 + $0x2d0] sm:$0xff]  ;;  %3904 = vmatprep.mubr.bf16.mxu0 %v16976_v3  ;;  %v1190_v31 = vld [vmem:[#allocation2 + $0x128] sm:$0xff] }
  0xf6   : > { %1155 = vst.msk [vmem:[#allocation4 + $0x2d8] sm:$0xf] %vm750_vm4, %v14514_v12  ;;  %1729 = vst.msk [vmem:[#allocation4 + $0x29c] sm:$0xf] %vm750_vm4, %v14514_v12  ;;  %v2425_v17 = vld [vmem:[#allocation4 + $0x2f4] sm:$0xff]  ;;  %v997_v24 = vld [vmem:[#allocation2 + $0x10a] sm:$0xff]  ;;  %v14549_v34 = vpack.c.bf16 %v1190_v31, %v1190_v31 }
  0xf7   : > { %v16985_v18 = vld [vmem:[#allocation4 + $0x204] ss:$36 sps:$4 sm:$0xff]   ;;  %v1364_v21 = vld [vmem:[#allocation2 + $0x51] sm:$0xff]  ;;  %1156 = vst.msk [vmem:[#allocation4 + $0x2fc] sm:$0xf] %vm750_vm4, %v14515_v19  ;;  %v13290_v23 = vcombine.low %v2420_v16, %v2425_v17  ;;  %v14516_v27 = vpack.c.bf16 %v997_v24, %v997_v24  ;;  %v1001_v53 = vld [vmem:[#allocation2 + $0x13a] sm:$0xff] }
  0xf8   : > { %v14563_v22 = vpack.c.bf16 %v1364_v21, %v1364_v21  ;;  %1523 = vst.msk [vmem:[#allocation4 + $0xa0] sm:$0xf] %vm750_vm4, %v14562_v20  ;;  %1730 = vst.msk [vmem:[#allocation4 + $0x2c0] sm:$0xf] %vm750_vm4, %v14515_v19  ;;  %v998_v25 = vld [vmem:[#allocation2 + $0x112] sm:$0xff]  ;;  %v17014_v37 = vld [vmem:[%s21349_s1 + $0x1e8] sm:$0xff]   ;;  %v14520_v56 = vpack.c.bf16 %v1001_v53, %v1001_v53 }
  0xf9   : > { %2098 = vst.msk [vmem:[#allocation4 + $0x64] sm:$0xf] %vm750_vm4, %v14562_v20  ;;  %v14517_v28 = vpack.c.bf16 %v998_v25, %v998_v25  ;;  %v16987_v29 = vld [vmem:[#allocation4 + $0x200] ss:$36 sps:$4 sm:$0xff]   ;;  %v16990_v32 = vld [vmem:[#allocation4 + $0x24c] ss:$36 sps:$4 sm:$0xff]   ;;  %15634 = vmatprep.subr.bf16.mxu1 %v17014_v37 }
  0xfa   : > { %4034 = vmatmul.mubr.bf16.gmra.mxu1 %v16980_v13  ;;  %v16983_v26 = vld [vmem:[#allocation4 + $0x31c] ss:$36 sps:$4 sm:$0xff]   ;;  %1524 = vst.msk [vmem:[#allocation4 + $0xc4] sm:$0xf] %vm750_vm4, %v14563_v22  ;;  %2099 = vst.msk [vmem:[#allocation4 + $0x88] sm:$0xf] %vm750_vm4, %v14563_v22 }
  0xfb   : > { %4041 = vmatprep.mubr.bf16.mxu1 %v16985_v18  ;;  %1157 = vst.msk [vmem:[#allocation4 + $0x320] sm:$0xf] %vm750_vm4, %v14516_v27  ;;  %1158 = vst.msk [vmem:[#allocation4 + $0x344] sm:$0xf] %vm750_vm4, %v14517_v28  ;;  %v2430_v35 = vld [vmem:[#allocation4 + $0x318] sm:$0xff]  ;;  %v2401_v38 = vld [vmem:[#allocation4 + $0x248] sm:$0xff] }
  0xfc   : > { %1731 = vst.msk [vmem:[#allocation4 + $0x2e4] sm:$0xf] %vm750_vm4, %v14516_v27  ;;  %1732 = vst.msk [vmem:[#allocation4 + $0x308] sm:$0xf] %vm750_vm4, %v14517_v28  ;;  %3905 = vmatmul.mubr.bf16.gmra.mxu0 %v13290_v23  ;;  %v2435_v36 = vld [vmem:[#allocation4 + $0x33c] sm:$0xff]  ;;  %v17015_v39 = vld [vmem:[%s21349_s1 + $0x1a8] sm:$0xff]  }
  0xfd   : > { %3912 = vmatprep.mubr.bf16.mxu0 %v16983_v26  ;;  %1349 = vst.msk [vmem:[#allocation4 + $0x324] sm:$0xf] %vm750_vm4, %v14548_v33  ;;  %1350 = vst.msk [vmem:[#allocation4 + $0x348] sm:$0xf] %vm750_vm4, %v14549_v34  ;;  %v999_v40 = vld [vmem:[#allocation2 + $0x122] sm:$0xff]  ;;  %v13299_v41 = vcombine.low %v2430_v35, %v2435_v36  ;;  %v2406_v42 = vld [vmem:[#allocation4 + $0x26c] sm:$0xff]  ;;  %15635 = vmatpush3.bf16.msra.mxu1 %v17015_v39 }
  0xfe   : > { %v16992_v43 = vld [vmem:[#allocation4 + $0x14] ss:$36 sps:$4 sm:$0xff]   ;;  %v14518_v44 = vpack.c.bf16 %v999_v40, %v999_v40  ;;  %v1000_v45 = vld [vmem:[#allocation2 + $0x12a] sm:$0xff]  ;;  %v1192_v47 = vld [vmem:[#allocation2 + $0x140] sm:$0xff]  ;;  %v13274_v51 = vcombine.low %v2401_v38, %v2406_v42  ;;  %1161 = vst.msk [vmem:[#allocation4 + $0x3b0] sm:$0xf] %vm750_vm4, %v14520_v56 }
  0xff   : > { %v1191_v46 = vld [vmem:[#allocation2 + $0x138] sm:$0xff]  ;;  %v14519_v48 = vpack.c.bf16 %v1000_v45, %v1000_v45  ;;  %v14551_v50 = vpack.c.bf16 %v1192_v47, %v1192_v47  ;;  %v1002_v54 = vld [vmem:[#allocation2 + $0x142] sm:$0xff]  ;;  %v16994_v55 = vld [vmem:[#allocation4 + $0x10] ss:$36 sps:$4 sm:$0xff]   ;;  %1735 = vst.msk [vmem:[#allocation4 + $0x374] sm:$0xf] %vm750_vm4, %v14520_v56 }
 0x100   : > { %1159 = vst.msk [vmem:[#allocation4 + $0x368] sm:$0xf] %vm750_vm4, %v14518_v44  ;;  %v14550_v49 = vpack.c.bf16 %v1191_v46, %v1191_v46  ;;  %1733 = vst.msk [vmem:[#allocation4 + $0x32c] sm:$0xf] %vm750_vm4, %v14518_v44  ;;  %v16996_v52 = vld [vmem:[#allocation4 + $0x294] ss:$36 sps:$4 sm:$0xff]   ;;  %v14521_v57 = vpack.c.bf16 %v1002_v54, %v1002_v54 }
 0x101   : > { %1160 = vst.msk [vmem:[#allocation4 + $0x38c] sm:$0xf] %vm750_vm4, %v14519_v48  ;;  %1352 = vst.msk [vmem:[#allocation4 + $0x390] sm:$0xf] %vm750_vm4, %v14551_v50  ;;  %v1193_v58 = vld [vmem:[#allocation2 + $0x150] sm:$0xff]  ;;  %v1194_v59 = vld [vmem:[#allocation2 + $0x158] sm:$0xff] }
 0x102   : > { %4042 = vmatmul.mubr.bf16.gmra.mxu1 %v16987_v29  ;;  %1351 = vst.msk [vmem:[#allocation4 + $0x36c] sm:$0xf] %vm750_vm4, %v14550_v49  ;;  %1734 = vst.msk [vmem:[#allocation4 + $0x350] sm:$0xf] %vm750_vm4, %v14519_v48  ;;  %v2411_v60 = vld [vmem:[#allocation4 + $0x290] sm:$0xff]  ;;  %v14552_v0 = vpack.c.bf16 %v1193_v58, %v1193_v58  ;;  %v14553_v1 = vpack.c.bf16 %v1194_v59, %v1194_v59  ;;  %v17027_v3 = vld [vmem:[%s21349_s1 + $0x1e0] sm:$0xff]  }
 0x103   : > { %4049 = vmatprep.mubr.bf16.mxu1 %v16990_v32  ;;  %v2416_v61 = vld [vmem:[#allocation4 + $0x2b4] sm:$0xff]  ;;  %v16998_v63 = vld [vmem:[#allocation4 + $0x5c] ss:$36 sps:$4 sm:$0xff]   ;;  %1162 = vst.msk [vmem:[#allocation4 + $0x3d4] sm:$0xf] %vm750_vm4, %v14521_v57  ;;  %15636 = vmatprep.subr.bf16.mxu1 %v17027_v3  ;;  %v1195_v7 = vld [vmem:[#allocation2 + $0x168] sm:$0xff] }
 0x104   : > { %3913 = vmatmul.mubr.bf16.gmra.mxu0 %v13299_v41  ;;  %v17008_v2 = vld [vmem:[%s21349_s1 + $0x230] sm:$0xff]   ;;  %1736 = vst.msk [vmem:[#allocation4 + $0x398] sm:$0xf] %vm750_vm4, %v14521_v57  ;;  %1353 = vst.msk [vmem:[#allocation4 + $0x3b4] sm:$0xf] %vm750_vm4, %v14552_v0  ;;  %v17028_v4 = vld [vmem:[%s21349_s1 + $0x1a0] sm:$0xff]   ;;  %v14554_v10 = vpack.c.bf16 %v1195_v7, %v1195_v7  ;;  %v13283_v11 = vcombine.low %v2411_v60, %v2416_v61 }
 0x105   : > { %4146 = vmatprep.mubr.bf16.mxu0 %v16992_v43  ;;  %1354 = vst.msk [vmem:[#allocation4 + $0x3d8] sm:$0xf] %vm750_vm4, %v14553_v1  ;;  %v1003_v5 = vld [vmem:[#allocation2 + $0x152] sm:$0xff]  ;;  %v1004_v6 = vld [vmem:[#allocation2 + $0x15a] sm:$0xff]  ;;  %15637 = vmatpush3.bf16.msra.mxu1 %v17028_v4  ;;  %v17021_v14 = vld [vmem:[%s21349_s1 + $0x228] sm:$0xff]  }
 0x106   : > { %v14522_v8 = vpack.c.bf16 %v1003_v5, %v1003_v5  ;;  %v14523_v9 = vpack.c.bf16 %v1004_v6, %v1004_v6  ;;  %v1196_v12 = vld [vmem:[#allocation2 + $0x170] sm:$0xff]  ;;  %v17003_v13 = vld [vmem:[#allocation4 + $0x2dc] ss:$36 sps:$4 sm:$0xff]   ;;  %1355 = vst.msk [vmem:[#allocation4 + $0x3fc] sm:$0xf] %vm750_vm4, %v14554_v10  ;;  %v2436_v34 = vld [vmem:[#allocation4 + $0x344] sm:$0xff] }
 0x107   : > { %v14555_v15 = vpack.c.bf16 %v1196_v12, %v1196_v12  ;;  %v17000_v16 = vld [vmem:[#allocation4 + $0x58] ss:$36 sps:$4 sm:$0xff]   ;;  %v17005_v19 = vld [vmem:[#allocation4 + $0xa4] ss:$36 sps:$4 sm:$0xff]   ;;  %v17037_v22 = vld [vmem:[%s21349_s1 + $0x1d0] sm:$0xff]  }
 0x108   : > { %1163 = vst.msk [vmem:[#allocation4 + $0x3f8] sm:$0xf] %vm750_vm4, %v14522_v8  ;;  %1164 = vst.msk [vmem:[#allocation4 + $0x41c] sm:$0xf] %vm750_vm4, %v14523_v9  ;;  %v2421_v17 = vld [vmem:[#allocation4 + $0x2d8] sm:$0xff]  ;;  %v17035_v20 = vld [vmem:[%s21349_s1 + $0x220] sm:$0xff]  }
 0x109   : > { %1737 = vst.msk [vmem:[#allocation4 + $0x3bc] sm:$0xf] %vm750_vm4, %v14522_v8  ;;  %1738 = vst.msk [vmem:[#allocation4 + $0x3e0] sm:$0xf] %vm750_vm4, %v14523_v9  ;;  %v2426_v18 = vld [vmem:[#allocation4 + $0x2fc] sm:$0xff]  ;;  %v17038_v23 = vld [vmem:[%s21349_s1 + $0x190] sm:$0xff]  }
 0x10a   : > { %4050 = vmatmul.mubr.bf16.gmra.mxu1 %v13274_v51  ;;  %1356 = vst.msk [vmem:[#allocation4 + $0x420] sm:$0xf] %vm750_vm4, %v14555_v15  ;;  %v17036_v21 = vld [vmem:[%s21349_s1 + $0x198] sm:$0xff]   ;;  %v555_v24 = vld [vmem:[%s18157_s26 + $0xf0] sm:$0xff]  ;;  %v13292_v25 = vcombine.low %v2421_v17, %v2426_v18  ;;  %v17009_v26 = vld [vmem:[#allocation4 + $0x324] ss:$36 sps:$4 sm:$0xff]  }
 0x10b   : > { %4057 = vmatprep.mubr.bf16.mxu1 %v16996_v52  ;;  %v556_v27 = vld [vmem:[%s18157_s26 + $0xf8] sm:$0xff]  ;;  %588 = vst.msk [vmem:[#allocation2 + $0x181] sm:$0xff] %vm253_vm0, %v555_v24  ;;  %v1005_v28 = vld [vmem:[#allocation2 + $0x16a] sm:$0xff]  ;;  %v17007_v31 = vld [vmem:[#allocation4 + $0xa0] ss:$36 sps:$4 sm:$0xff]  }
 0x10c   : > { %4147 = vmatmul.mubr.bf16.vlgmr.msra.gmra.mxu0 %v16994_v55  ;;  %589 = vst.msk [vmem:[#allocation2 + $0x189] sm:$0xff] %vm253_vm0, %v556_v27  ;;  %v1006_v29 = vld [vmem:[#allocation2 + $0x172] sm:$0xff]  ;;  %v14524_v30 = vpack.c.bf16 %v1005_v28, %v1005_v28  ;;  %v2431_v33 = vld [vmem:[#allocation4 + $0x320] sm:$0xff]  ;;  %v17044_v36 = vld [vmem:[%s21349_s1 + $0x1c8] sm:$0xff]  }
 0x10d   : > { %16711 = vmatpush3.bf16.msra.mxu0 %v18477_v62  ;;  %4154 = vmatprep.mubr.bf16.mxu0 %v16998_v63  ;;  %v17034_v62 = vld [vmem:[%s21349_s1 + $0x1d8] sm:$0xff]   ;;  %v14525_v32 = vpack.c.bf16 %v1006_v29, %v1006_v29  ;;  %v17011_v35 = vld [vmem:[#allocation4 + $0xec] ss:$36 sps:$4 sm:$0xff]   ;;  %v17046_v38 = vld [vmem:[%s21349_s1 + $0x1c0] sm:$0xff]   ;;  %v13301_v41 = vcombine.low %v2431_v33, %v2436_v34 }
 0x10e   : > { %16712 = vmatprep.subr.bf16.mxu0 %v17008_v2  ;;  %15638 = vmatprep.subr.bf16.mxu1 %v17034_v62  ;;  %1165 = vst.msk [vmem:[#allocation4 + $0x440] sm:$0xf] %vm750_vm4, %v14524_v30  ;;  %1739 = vst.msk [vmem:[#allocation4 + $0x404] sm:$0xf] %vm750_vm4, %v14524_v30  ;;  %v17045_v37 = vld [vmem:[%s21349_s1 + $0x188] sm:$0xff]   ;;  %v17047_v40 = vld [vmem:[%s21349_s1 + $0x180] sm:$0xff]  }
 0x10f   : > { %15639 = vmatpush3.bf16.msra.mxu1 %v17036_v21  ;;  %1166 = vst.msk [vmem:[#allocation4 + $0x464] sm:$0xf] %vm750_vm4, %v14525_v32  ;;  %1740 = vst.msk [vmem:[#allocation4 + $0x428] sm:$0xf] %vm750_vm4, %v14525_v32  ;;  %v17016_v42 = vld [vmem:[#allocation4 + $0x36c] ss:$36 sps:$4 sm:$0xff]  }
 0x110   : > { %15640 = vmatprep.subr.bf16.mxu1 %v17037_v22  ;;  %v1744_v46 = vld [vmem:[#allocation2 + $0x30] sm:$0xff]  ;;  %v1745_v47 = vld [vmem:[#allocation2 + $0x38] sm:$0xff]  ;;  %v17013_v51 = vld [vmem:[#allocation4 + $0xe8] ss:$36 sps:$4 sm:$0xff]  }
 0x111   : > { %16713 = vmatpush3.bf16.msra.mxu0 %v17008_v2  ;;  %v14622_v48 = vpack.c.bf16 %v1744_v46, %v1744_v46  ;;  %v14623_v49 = vpack.c.bf16 %v1745_v47, %v1745_v47  ;;  %v17053_v50 = vld [vmem:[%s21349_s1 + $0x218] sm:$0xff]   ;;  %v1746_v52 = vld [vmem:[#allocation2 + $0x48] sm:$0xff]  ;;  %v1747_v55 = vld [vmem:[#allocation2 + $0x50] sm:$0xff] }
 0x112   : > { %4058 = vmatmul.mubr.bf16.gmra.mxu1 %v13283_v11  ;;  %16714 = vmatprep.subr.bf16.mxu0 %v17021_v14  ;;  %v1197_v39 = vld [vmem:[#allocation2 + $0x180] sm:$0xff]  ;;  %v2441_v53 = vld [vmem:[#allocation4 + $0x368] sm:$0xff]  ;;  %v17018_v54 = vld [vmem:[#allocation4 + $0x134] ss:$36 sps:$4 sm:$0xff]   ;;  %v14624_v56 = vpack.c.bf16 %v1746_v52, %v1746_v52  ;;  %v14625_v58 = vpack.c.bf16 %v1747_v55, %v1747_v55 }
 0x113   : > { %4065 = vmatprep.mubr.bf16.mxu1 %v17003_v13  ;;  %15641 = vmatpush3.bf16.msra.mxu1 %v17038_v23  ;;  %v1198_v43 = vld [vmem:[#allocation2 + $0x188] sm:$0xff]  ;;  %v14556_v44 = vpack.c.bf16 %v1197_v39, %v1197_v39  ;;  %1904 = vst.msk [vmem:[#allocation4 + $0x18] sm:$0xf] %vm750_vm4, %v14622_v48  ;;  %1905 = vst.msk [vmem:[#allocation4 + $0x3c] sm:$0xf] %vm750_vm4, %v14623_v49  ;;  %v1748_v59 = vld [vmem:[#allocation2 + $0x60] sm:$0xff] }
 0x114   : > { %4155 = vmatmul.mubr.bf16.gmra.mxu0 %v17000_v16  ;;  %15642 = vmatprep.subr.bf16.mxu1 %v17044_v36  ;;  %v14557_v45 = vpack.c.bf16 %v1198_v43, %v1198_v43  ;;  %v2446_v57 = vld [vmem:[#allocation4 + $0x38c] sm:$0xff]  ;;  %1906 = vst.msk [vmem:[#allocation4 + $0x60] sm:$0xf] %vm750_vm4, %v14624_v56  ;;  %v14626_v61 = vpack.c.bf16 %v1748_v59, %v1748_v59  ;;  %v1940_v0 = vld [vmem:[#allocation2 + $0x61] sm:$0xff]  ;;  %1907 = vst.msk [vmem:[#allocation4 + $0x84] sm:$0xf] %vm750_vm4, %v14625_v58 }
 0x115   : > { %4162 = vmatprep.mubr.bf16.mxu0 %v17005_v19  ;;  %16715 = vmatpush3.bf16.msra.mxu0 %v17021_v14  ;;  %1357 = vst.msk [vmem:[#allocation4 + $0x444] sm:$0xf] %vm750_vm4, %v14556_v44  ;;  %v1749_v60 = vld [vmem:[#allocation2 + $0x68] sm:$0xff]  ;;  %v14658_v2 = vpack.c.bf16 %v1940_v0, %v1940_v0  ;;  %v17064_v4 = vld [vmem:[%s21349_s1 + $0x210] sm:$0xff]   ;;  %v13310_v6 = vcombine.low %v2441_v53, %v2446_v57  ;;  %v1750_v9 = vld [vmem:[#allocation2 + $0x78] sm:$0xff] }
 0x116   : > { %16716 = vmatprep.subr.bf16.mxu0 %v17035_v20  ;;  %1358 = vst.msk [vmem:[#allocation4 + $0x468] sm:$0xf] %vm750_vm4, %v14557_v45  ;;  %v14627_v63 = vpack.c.bf16 %v1749_v60, %v1749_v60  ;;  %v1941_v1 = vld [vmem:[#allocation2 + $0x69] sm:$0xff]  ;;  %v1381_v5 = vld [vmem:[#allocation2 + $0x121] sm:$0xff]  ;;  %1908 = vst.msk [vmem:[#allocation4 + $0xa8] sm:$0xf] %vm750_vm4, %v14626_v61  ;;  %v14628_v13 = vpack.c.bf16 %v1750_v9, %v1750_v9 }
 0x117   : > { %15643 = vmatpush3.bf16.msra.mxu1 %v17045_v37  ;;  %v14659_v3 = vpack.c.bf16 %v1941_v1, %v1941_v1  ;;  %v1382_v7 = vld [vmem:[#allocation2 + $0x129] sm:$0xff]  ;;  %v14580_v8 = vpack.c.bf16 %v1381_v5, %v1381_v5  ;;  %v1751_v10 = vld [vmem:[#allocation2 + $0x80] sm:$0xff]  ;;  %v17022_v11 = vld [vmem:[#allocation4 + $0x3b4] ss:$36 sps:$4 sm:$0xff]   ;;  %2100 = vst.msk [vmem:[#allocation4 + $0xac] sm:$0xf] %vm750_vm4, %v14658_v2 }
 0x118   : > { %15644 = vmatprep.subr.bf16.mxu1 %v17046_v38  ;;  %1909 = vst.msk [vmem:[#allocation4 + $0xcc] sm:$0xf] %vm750_vm4, %v14627_v63  ;;  %v14581_v12 = vpack.c.bf16 %v1382_v7, %v1382_v7  ;;  %v14629_v14 = vpack.c.bf16 %v1751_v10, %v1751_v10  ;;  %v1942_v15 = vld [vmem:[#allocation2 + $0x79] sm:$0xff]  ;;  %v1943_v16 = vld [vmem:[#allocation2 + $0x81] sm:$0xff]  ;;  %v17020_v62 = vld [vmem:[#allocation4 + $0x130] ss:$36 sps:$4 sm:$0xff]  }
 0x119   : > { %16717 = vmatpush3.bf16.msra.mxu0 %v17035_v20  ;;  %2101 = vst.msk [vmem:[#allocation4 + $0xd0] sm:$0xf] %vm750_vm4, %v14659_v3  ;;  %1541 = vst.msk [vmem:[#allocation4 + $0x328] sm:$0xf] %vm750_vm4, %v14580_v8  ;;  %v14660_v17 = vpack.c.bf16 %v1942_v15, %v1942_v15  ;;  %v14661_v18 = vpack.c.bf16 %v1943_v16, %v1943_v16  ;;  %v1383_v19 = vld [vmem:[#allocation2 + $0x139] sm:$0xff]  ;;  %v2451_v20 = vld [vmem:[#allocation4 + $0x3b0] sm:$0xff] }
 0x11a   : > { %4066 = vmatmul.mubr.bf16.gmra.mxu1 %v13292_v25  ;;  %16718 = vmatprep.subr.bf16.mxu0 %v17053_v50  ;;  %2116 = vst.msk [vmem:[#allocation4 + $0x2ec] sm:$0xf] %vm750_vm4, %v14580_v8  ;;  %v17024_v21 = vld [vmem:[#allocation4 + $0x17c] ss:$36 sps:$4 sm:$0xff]   ;;  %1542 = vst.msk [vmem:[#allocation4 + $0x34c] sm:$0xf] %vm750_vm4, %v14581_v12  ;;  %v14582_v22 = vpack.c.bf16 %v1383_v19, %v1383_v19 }
 0x11b   : > { %4073 = vmatprep.mubr.bf16.mxu1 %v17009_v26  ;;  %15645 = vmatpush3.bf16.msra.mxu1 %v17047_v40  ;;  %1910 = vst.msk [vmem:[#allocation4 + $0xf0] sm:$0xf] %vm750_vm4, %v14628_v13  ;;  %1911 = vst.msk [vmem:[#allocation4 + $0x114] sm:$0xf] %vm750_vm4, %v14629_v14  ;;  %v2456_v23 = vld [vmem:[#allocation4 + $0x3d4] sm:$0xff]  ;;  %v1384_v24 = vld [vmem:[#allocation2 + $0x141] sm:$0xff] }
 0x11c   : > { %4163 = vmatmul.mubr.bf16.gmra.mxu0 %v17007_v31  ;;  %2117 = vst.msk [vmem:[#allocation4 + $0x310] sm:$0xf] %vm750_vm4, %v14581_v12  ;;  %2102 = vst.msk [vmem:[#allocation4 + $0xf4] sm:$0xf] %vm750_vm4, %v14660_v17  ;;  %v1752_v25 = vld [vmem:[#allocation2 + $0x90] sm:$0xff]  ;;  %v14583_v26 = vpack.c.bf16 %v1384_v24, %v1384_v24  ;;  %v1753_v27 = vld [vmem:[#allocation2 + $0x98] sm:$0xff]  ;;  %v13319_v33 = vcombine.low %v2451_v20, %v2456_v23 }
 0x11d   : > { %4170 = vmatprep.mubr.bf16.mxu0 %v17011_v35  ;;  %16719 = vmatpush3.bf16.msra.mxu0 %v17053_v50  ;;  %2103 = vst.msk [vmem:[#allocation4 + $0x118] sm:$0xf] %vm750_vm4, %v14661_v18  ;;  %1543 = vst.msk [vmem:[#allocation4 + $0x370] sm:$0xf] %vm750_vm4, %v14582_v22  ;;  %v14630_v28 = vpack.c.bf16 %v1752_v25, %v1752_v25  ;;  %v1944_v29 = vld [vmem:[#allocation2 + $0x91] sm:$0xff]  ;;  %v14631_v30 = vpack.c.bf16 %v1753_v27, %v1753_v27  ;;  %v1945_v32 = vld [vmem:[#allocation2 + $0x99] sm:$0xff] }
 0x11e   : > { %16720 = vmatprep.subr.bf16.mxu0 %v17064_v4  ;;  %2118 = vst.msk [vmem:[#allocation4 + $0x334] sm:$0xf] %vm750_vm4, %v14582_v22  ;;  %v14662_v31 = vpack.c.bf16 %v1944_v29, %v1944_v29  ;;  %1544 = vst.msk [vmem:[#allocation4 + $0x394] sm:$0xf] %vm750_vm4, %v14583_v26  ;;  %v14663_v34 = vpack.c.bf16 %v1945_v32, %v1945_v32  ;;  %v17029_v35 = vld [vmem:[#allocation4 + $0x3fc] ss:$36 sps:$4 sm:$0xff]  }
 0x11f   : > { %1912 = vst.msk [vmem:[#allocation4 + $0x138] sm:$0xf] %vm750_vm4, %v14630_v28  ;;  %2119 = vst.msk [vmem:[#allocation4 + $0x358] sm:$0xf] %vm750_vm4, %v14583_v26  ;;  %v17075_v36 = vld [vmem:[%s21349_s1 + $0x208] sm:$0xff]   ;;  %v1385_v38 = vld [vmem:[#allocation2 + $0x151] sm:$0xff] }
 0x120   : > { %1913 = vst.msk [vmem:[#allocation4 + $0x15c] sm:$0xf] %vm750_vm4, %v14631_v30  ;;  %2104 = vst.msk [vmem:[#allocation4 + $0x13c] sm:$0xf] %vm750_vm4, %v14662_v31  ;;  %v17026_v37 = vld [vmem:[#allocation4 + $0x178] ss:$36 sps:$4 sm:$0xff]   ;;  %v14584_v40 = vpack.c.bf16 %v1385_v38, %v1385_v38 }
 0x121   : > { %16721 = vmatpush3.bf16.msra.mxu0 %v17064_v4  ;;  %2105 = vst.msk [vmem:[#allocation4 + $0x160] sm:$0xf] %vm750_vm4, %v14663_v34  ;;  %v17031_v39 = vld [vmem:[#allocation4 + $0x1c4] ss:$36 sps:$4 sm:$0xff]   ;;  %v1386_v43 = vld [vmem:[#allocation2 + $0x159] sm:$0xff]  ;;  %v1755_v46 = vld [vmem:[#allocation2 + $0xb0] sm:$0xff] }
 0x122   : > { %4074 = vmatmul.mubr.bf16.gmra.mxu1 %v13301_v41  ;;  %16722 = vmatprep.subr.bf16.mxu0 %v17075_v36  ;;  %v2461_v41 = vld [vmem:[#allocation4 + $0x3f8] sm:$0xff]  ;;  %v14585_v44 = vpack.c.bf16 %v1386_v43, %v1386_v43  ;;  %1545 = vst.msk [vmem:[#allocation4 + $0x3b8] sm:$0xf] %vm750_vm4, %v14584_v40  ;;  %v1754_v45 = vld [vmem:[#allocation2 + $0xa8] sm:$0xff]  ;;  %2120 = vst.msk [vmem:[#allocation4 + $0x37c] sm:$0xf] %vm750_vm4, %v14584_v40  ;;  %v14633_v49 = vpack.c.bf16 %v1755_v46, %v1755_v46 }
 0x123   : > { %4081 = vmatprep.mubr.bf16.mxu1 %v17016_v42  ;;  %v2466_v42 = vld [vmem:[#allocation4 + $0x41c] sm:$0xff]  ;;  %v1946_v47 = vld [vmem:[#allocation2 + $0xa9] sm:$0xff]  ;;  %v14632_v48 = vpack.c.bf16 %v1754_v45, %v1754_v45  ;;  %v1947_v50 = vld [vmem:[#allocation2 + $0xb1] sm:$0xff] }
 0x124   : > { %4171 = vmatmul.mubr.bf16.gmra.mxu0 %v17013_v51  ;;  %v14664_v51 = vpack.c.bf16 %v1946_v47, %v1946_v47  ;;  %1546 = vst.msk [vmem:[#allocation4 + $0x3dc] sm:$0xf] %vm750_vm4, %v14585_v44  ;;  %v14665_v52 = vpack.c.bf16 %v1947_v50, %v1947_v50  ;;  %v1387_v53 = vld [vmem:[#allocation2 + $0x169] sm:$0xff]  ;;  %2121 = vst.msk [vmem:[#allocation4 + $0x3a0] sm:$0xf] %vm750_vm4, %v14585_v44  ;;  %v13328_v55 = vcombine.low %v2461_v41, %v2466_v42  ;;  %v1756_v58 = vld [vmem:[#allocation2 + $0xc0] sm:$0xff] }
 0x125   : > { %4178 = vmatprep.mubr.bf16.mxu0 %v17018_v54  ;;  %16723 = vmatpush3.bf16.msra.mxu0 %v17075_v36  ;;  %v1388_v54 = vld [vmem:[#allocation2 + $0x171] sm:$0xff]  ;;  %1914 = vst.msk [vmem:[#allocation4 + $0x180] sm:$0xf] %vm750_vm4, %v14632_v48  ;;  %1915 = vst.msk [vmem:[#allocation4 + $0x1a4] sm:$0xf] %vm750_vm4, %v14633_v49  ;;  %v14586_v56 = vpack.c.bf16 %v1387_v53, %v1387_v53  ;;  %v1757_v59 = vld [vmem:[#allocation2 + $0xc8] sm:$0xff]  ;;  %v14634_v63 = vpack.c.bf16 %v1756_v58, %v1756_v58 }
 0x126   : > { %2106 = vst.msk [vmem:[#allocation4 + $0x184] sm:$0xf] %vm750_vm4, %v14664_v51  ;;  %v14587_v57 = vpack.c.bf16 %v1388_v54, %v1388_v54  ;;  %v1948_v60 = vld [vmem:[#allocation2 + $0xc1] sm:$0xff]  ;;  %2107 = vst.msk [vmem:[#allocation4 + $0x1a8] sm:$0xf] %vm750_vm4, %v14665_v52  ;;  %v14635_v0 = vpack.c.bf16 %v1757_v59, %v1757_v59  ;;  %v1949_v3 = vld [vmem:[#allocation2 + $0xc9] sm:$0xff] }
 0x127   : > { %v17039_v61 = vld [vmem:[#allocation4 + $0x444] ss:$36 sps:$4 sm:$0xff]   ;;  %v14666_v1 = vpack.c.bf16 %v1948_v60, %v1948_v60  ;;  %1547 = vst.msk [vmem:[#allocation4 + $0x400] sm:$0xf] %vm750_vm4, %v14586_v56  ;;  %2122 = vst.msk [vmem:[#allocation4 + $0x3c4] sm:$0xf] %vm750_vm4, %v14586_v56 }
 0x128   : > { %v17033_v2 = vld [vmem:[#allocation4 + $0x1c0] ss:$36 sps:$4 sm:$0xff]   ;;  %1548 = vst.msk [vmem:[#allocation4 + $0x424] sm:$0xf] %vm750_vm4, %v14587_v57  ;;  %2123 = vst.msk [vmem:[#allocation4 + $0x3e8] sm:$0xf] %vm750_vm4, %v14587_v57 }
 0x129   : > { %v2471_v4 = vld [vmem:[#allocation4 + $0x440] sm:$0xff]  ;;  %v17041_v5 = vld [vmem:[#allocation4 + $0x20c] ss:$36 sps:$4 sm:$0xff]   ;;  %1916 = vst.msk [vmem:[#allocation4 + $0x1c8] sm:$0xf] %vm750_vm4, %v14634_v63  ;;  %v1761_v25 = vld [vmem:[#allocation2 + $0xf8] sm:$0xff] }
 0x12a   : > { %4082 = vmatmul.mubr.bf16.gmra.mxu1 %v13310_v6  ;;  %1917 = vst.msk [vmem:[#allocation4 + $0x1ec] sm:$0xf] %vm750_vm4, %v14635_v0  ;;  %v14667_v6 = vpack.c.bf16 %v1949_v3, %v1949_v3  ;;  %2108 = vst.msk [vmem:[#allocation4 + $0x1cc] sm:$0xf] %vm750_vm4, %v14666_v1  ;;  %v17086_v7 = vld [vmem:[%s21349_s1 + $0x200] sm:$0xff]   ;;  %v1390_v9 = vld [vmem:[#allocation2 + $0x189] sm:$0xff]  ;;  %v14639_v28 = vpack.c.bf16 %v1761_v25, %v1761_v25 }
 0x12b   : > { %4089 = vmatprep.mubr.bf16.mxu1 %v17022_v11  ;;  %v1389_v8 = vld [vmem:[#allocation2 + $0x181] sm:$0xff]  ;;  %v14589_v12 = vpack.c.bf16 %v1390_v9, %v1390_v9  ;;  %v1582_v14 = vld [vmem:[#allocation2 + $0x18a] sm:$0xff]  ;;  %16724 = vmatprep.subr.bf16.mxu0 %v17086_v7  ;;  %v1950_v18 = vld [vmem:[#allocation2 + $0xd9] sm:$0xff] }
 0x12c   : > { %4179 = vmatmul.mubr.bf16.gmra.mxu0 %v17020_v62  ;;  %v2476_v10 = vld [vmem:[#allocation4 + $0x464] sm:$0xff]  ;;  %v14588_v11 = vpack.c.bf16 %v1389_v8, %v1389_v8  ;;  %2109 = vst.msk [vmem:[#allocation4 + $0x1f0] sm:$0xf] %vm750_vm4, %v14667_v6  ;;  %v14621_v16 = vpack.c.bf16 %v1582_v14, %v1582_v14  ;;  %v1758_v62 = vld [vmem:[#allocation2 + $0xd8] sm:$0xff]  ;;  %v14668_v22 = vpack.c.bf16 %v1950_v18, %v1950_v18  ;;  %v1760_v24 = vld [vmem:[#allocation2 + $0xf0] sm:$0xff] }
 0x12d   : > { %4186 = vmatprep.mubr.bf16.mxu0 %v17024_v21  ;;  %v1581_v13 = vld [vmem:[#allocation2 + $0x182] sm:$0xff]  ;;  %16725 = vmatpush3.bf16.msra.mxu0 %v17086_v7  ;;  %1550 = vst.msk [vmem:[#allocation4 + $0x46c] sm:$0xf] %vm750_vm4, %v14589_v12  ;;  %v14636_v19 = vpack.c.bf16 %v1758_v62, %v1758_v62  ;;  %2125 = vst.msk [vmem:[#allocation4 + $0x430] sm:$0xf] %vm750_vm4, %v14589_v12  ;;  %v13337_v26 = vcombine.low %v2471_v4, %v2476_v10  ;;  %v1952_v30 = vld [vmem:[#allocation2 + $0xf1] sm:$0xff] }
 0x12e   : > { %v14620_v15 = vpack.c.bf16 %v1581_v13, %v1581_v13  ;;  %v1759_v17 = vld [vmem:[#allocation2 + $0xe0] sm:$0xff]  ;;  %1549 = vst.msk [vmem:[#allocation4 + $0x448] sm:$0xf] %vm750_vm4, %v14588_v11  ;;  %2124 = vst.msk [vmem:[#allocation4 + $0x40c] sm:$0xf] %vm750_vm4, %v14588_v11  ;;  %v14638_v27 = vpack.c.bf16 %v1760_v24, %v1760_v24  ;;  %v14670_v32 = vpack.c.bf16 %v1952_v30, %v1952_v30  ;;  %v2128_v34 = vld [vmem:[#allocation2 + $0x32] sm:$0xff] }
 0x12f   : > { %v14637_v20 = vpack.c.bf16 %v1759_v17, %v1759_v17  ;;  %v1951_v21 = vld [vmem:[#allocation2 + $0xe1] sm:$0xff]  ;;  %1742 = vst.msk [vmem:[#allocation4 + $0x470] sm:$0xf] %vm750_vm4, %v14621_v16  ;;  %2317 = vst.msk [vmem:[#allocation4 + $0x434] sm:$0xf] %vm750_vm4, %v14621_v16  ;;  %v1953_v31 = vld [vmem:[#allocation2 + $0xf9] sm:$0xff] }
 0x130   : > { %1741 = vst.msk [vmem:[#allocation4 + $0x44c] sm:$0xf] %vm750_vm4, %v14620_v15  ;;  %v14669_v23 = vpack.c.bf16 %v1951_v21, %v1951_v21  ;;  %2316 = vst.msk [vmem:[#allocation4 + $0x410] sm:$0xf] %vm750_vm4, %v14620_v15  ;;  %v17050_v29 = vld [vmem:[#allocation4 + $0x1c] ss:$36 sps:$4 sm:$0xff]  }
 0x131   : > { %1918 = vst.msk [vmem:[#allocation4 + $0x210] sm:$0xf] %vm750_vm4, %v14636_v19  ;;  %1919 = vst.msk [vmem:[#allocation4 + $0x234] sm:$0xf] %vm750_vm4, %v14637_v20  ;;  %v2130_v36 = vld [vmem:[#allocation2 + $0x4a] sm:$0xff]  ;;  %v2131_v42 = vld [vmem:[#allocation2 + $0x52] sm:$0xff] }
 0x132   : > { %4090 = vmatmul.mubr.bf16.gmra.mxu1 %v13319_v33  ;;  %2110 = vst.msk [vmem:[#allocation4 + $0x214] sm:$0xf] %vm750_vm4, %v14668_v22  ;;  %2111 = vst.msk [vmem:[#allocation4 + $0x238] sm:$0xf] %vm750_vm4, %v14669_v23  ;;  %v14671_v33 = vpack.c.bf16 %v1953_v31, %v1953_v31  ;;  %v17048_v38 = vld [vmem:[#allocation4 + $0x254] ss:$36 sps:$4 sm:$0xff]   ;;  %v14688_v41 = vpack.c.bf16 %v2130_v36, %v2130_v36  ;;  %v14689_v45 = vpack.c.bf16 %v2131_v42, %v2131_v42 }
 0x133   : > { %4097 = vmatprep.mubr.bf16.mxu1 %v17029_v35  ;;  %1920 = vst.msk [vmem:[#allocation4 + $0x258] sm:$0xf] %vm750_vm4, %v14638_v27  ;;  %1921 = vst.msk [vmem:[#allocation4 + $0x27c] sm:$0xf] %vm750_vm4, %v14639_v28  ;;  %v2129_v35 = vld [vmem:[#allocation2 + $0x3a] sm:$0xff]  ;;  %v1762_v43 = vld [vmem:[#allocation2 + $0x108] sm:$0xff] }
 0x134   : > { %4187 = vmatmul.mubr.bf16.gmra.mxu0 %v17026_v37  ;;  %v17043_v37 = vld [vmem:[#allocation4 + $0x208] ss:$36 sps:$4 sm:$0xff]   ;;  %v14687_v40 = vpack.c.bf16 %v2129_v35, %v2129_v35  ;;  %2112 = vst.msk [vmem:[#allocation4 + $0x25c] sm:$0xf] %vm750_vm4, %v14670_v32  ;;  %2113 = vst.msk [vmem:[#allocation4 + $0x280] sm:$0xf] %vm750_vm4, %v14671_v33  ;;  %v14640_v46 = vpack.c.bf16 %v1762_v43, %v1762_v43 }
 0x135   : > { %4194 = vmatprep.mubr.bf16.mxu0 %v17031_v39  ;;  %v14686_v39 = vpack.c.bf16 %v2128_v34, %v2128_v34  ;;  %v1763_v44 = vld [vmem:[#allocation2 + $0x110] sm:$0xff]  ;;  %2290 = vst.msk [vmem:[#allocation4 + $0x68] sm:$0xf] %vm750_vm4, %v14688_v41  ;;  %v17052_v52 = vld [vmem:[#allocation4 + $0x18] ss:$36 sps:$4 sm:$0xff]   ;;  %v2132_v56 = vld [vmem:[#allocation2 + $0x62] sm:$0xff] }
 0x136   : > { %2289 = vst.msk [vmem:[#allocation4 + $0x44] sm:$0xf] %vm750_vm4, %v14687_v40  ;;  %v14641_v47 = vpack.c.bf16 %v1763_v44, %v1763_v44  ;;  %v2402_v48 = vld [vmem:[#allocation4 + $0x250] sm:$0xff]  ;;  %v17056_v53 = vld [vmem:[#allocation4 + $0x64] ss:$36 sps:$4 sm:$0xff]   ;;  %v2134_v58 = vld [vmem:[#allocation2 + $0x7a] sm:$0xff]  ;;  %v14690_v59 = vpack.c.bf16 %v2132_v56, %v2132_v56 }
 0x137   : > { %2288 = vst.msk [vmem:[#allocation4 + $0x20] sm:$0xf] %vm750_vm4, %v14686_v39  ;;  %v2407_v49 = vld [vmem:[#allocation4 + $0x274] sm:$0xff]  ;;  %v1954_v50 = vld [vmem:[#allocation2 + $0x109] sm:$0xff]  ;;  %2291 = vst.msk [vmem:[#allocation4 + $0x8c] sm:$0xf] %vm750_vm4, %v14689_v45  ;;  %v14692_v63 = vpack.c.bf16 %v2134_v58, %v2134_v58 }
 0x138   : > { %v1955_v51 = vld [vmem:[#allocation2 + $0x111] sm:$0xff]  ;;  %1922 = vst.msk [vmem:[#allocation4 + $0x2a0] sm:$0xf] %vm750_vm4, %v14640_v46  ;;  %1923 = vst.msk [vmem:[#allocation4 + $0x2c4] sm:$0xf] %vm750_vm4, %v14641_v47  ;;  %v14672_v54 = vpack.c.bf16 %v1954_v50, %v1954_v50  ;;  %v1764_v0 = vld [vmem:[#allocation2 + $0x120] sm:$0xff]  ;;  %v13276_v8 = vcombine.low %v2402_v48, %v2407_v49 }
 0x139   : > { %v2133_v57 = vld [vmem:[#allocation2 + $0x6a] sm:$0xff]  ;;  %v14642_v3 = vpack.c.bf16 %v1764_v0, %v1764_v0  ;;  %v2137_v6 = vld [vmem:[#allocation2 + $0x9a] sm:$0xff]  ;;  %2292 = vst.msk [vmem:[#allocation4 + $0xb0] sm:$0xf] %vm750_vm4, %v14690_v59  ;;  %2294 = vst.msk [vmem:[#allocation4 + $0xf8] sm:$0xf] %vm750_vm4, %v14692_v63 }
 0x13a   : > { %4098 = vmatmul.mubr.bf16.gmra.mxu1 %v13328_v55  ;;  %v14673_v55 = vpack.c.bf16 %v1955_v51, %v1955_v51  ;;  %2114 = vst.msk [vmem:[#allocation4 + $0x2a4] sm:$0xf] %vm750_vm4, %v14672_v54  ;;  %v14691_v60 = vpack.c.bf16 %v2133_v57, %v2133_v57  ;;  %v1765_v1 = vld [vmem:[#allocation2 + $0x128] sm:$0xff]  ;;  %v14695_v10 = vpack.c.bf16 %v2137_v6, %v2137_v6  ;;  %v17054_v12 = vld [vmem:[#allocation4 + $0x29c] ss:$36 sps:$4 sm:$0xff]   ;;  %v2139_v13 = vld [vmem:[#allocation2 + $0xb2] sm:$0xff] }
 0x13b   : > { %4105 = vmatprep.mubr.bf16.mxu1 %v17039_v61  ;;  %v2135_v61 = vld [vmem:[#allocation2 + $0x82] sm:$0xff]  ;;  %v14643_v4 = vpack.c.bf16 %v1765_v1, %v1765_v1  ;;  %v2138_v7 = vld [vmem:[#allocation2 + $0xaa] sm:$0xff]  ;;  %1924 = vst.msk [vmem:[#allocation4 + $0x2e8] sm:$0xf] %vm750_vm4, %v14642_v3  ;;  %v1766_v14 = vld [vmem:[#allocation2 + $0x138] sm:$0xff]  ;;  %v14697_v16 = vpack.c.bf16 %v2139_v13, %v2139_v13 }
 0x13c   : > { %4195 = vmatmul.mubr.bf16.gmra.mxu0 %v17033_v2  ;;  %2115 = vst.msk [vmem:[#allocation4 + $0x2c8] sm:$0xf] %vm750_vm4, %v14673_v55  ;;  %v14693_v2 = vpack.c.bf16 %v2135_v61, %v2135_v61  ;;  %2293 = vst.msk [vmem:[#allocation4 + $0xd4] sm:$0xf] %vm750_vm4, %v14691_v60  ;;  %v14696_v11 = vpack.c.bf16 %v2138_v7, %v2138_v7  ;;  %v17058_v15 = vld [vmem:[#allocation4 + $0x60] ss:$36 sps:$4 sm:$0xff]   ;;  %v14644_v17 = vpack.c.bf16 %v1766_v14, %v1766_v14 }
 0x13d   : > { %4202 = vmatprep.mubr.bf16.mxu0 %v17041_v5  ;;  %v2136_v5 = vld [vmem:[#allocation2 + $0x92] sm:$0xff]  ;;  %1925 = vst.msk [vmem:[#allocation4 + $0x30c] sm:$0xf] %vm750_vm4, %v14643_v4  ;;  %2297 = vst.msk [vmem:[#allocation4 + $0x164] sm:$0xf] %vm750_vm4, %v14695_v10  ;;  %v1767_v62 = vld [vmem:[#allocation2 + $0x140] sm:$0xff] }
 0x13e   : > { %v14694_v9 = vpack.c.bf16 %v2136_v5, %v2136_v5  ;;  %2295 = vst.msk [vmem:[#allocation4 + $0x11c] sm:$0xf] %vm750_vm4, %v14693_v2  ;;  %2298 = vst.msk [vmem:[#allocation4 + $0x188] sm:$0xf] %vm750_vm4, %v14696_v11  ;;  %v14645_v18 = vpack.c.bf16 %v1767_v62, %v1767_v62  ;;  %v2140_v19 = vld [vmem:[#allocation2 + $0xc2] sm:$0xff]  ;;  %v2141_v20 = vld [vmem:[#allocation2 + $0xca] sm:$0xff] }
 0x13f   : > { %v2142_v21 = vld [vmem:[#allocation2 + $0xda] sm:$0xff]  ;;  %v17061_v24 = vld [vmem:[#allocation4 + $0xac] ss:$36 sps:$4 sm:$0xff]   ;;  %2299 = vst.msk [vmem:[#allocation4 + $0x1ac] sm:$0xf] %vm750_vm4, %v14697_v16  ;;  %v14698_v25 = vpack.c.bf16 %v2140_v19, %v2140_v19  ;;  %v2143_v28 = vld [vmem:[#allocation2 + $0xe2] sm:$0xff] }
 0x140   : > { %2296 = vst.msk [vmem:[#allocation4 + $0x140] sm:$0xf] %vm750_vm4, %v14694_v9  ;;  %v2412_v22 = vld [vmem:[#allocation4 + $0x298] sm:$0xff]  ;;  %1926 = vst.msk [vmem:[#allocation4 + $0x330] sm:$0xf] %vm750_vm4, %v14644_v17  ;;  %v14700_v27 = vpack.c.bf16 %v2142_v21, %v2142_v21  ;;  %v14701_v31 = vpack.c.bf16 %v2143_v28, %v2143_v28  ;;  %v2427_v42 = vld [vmem:[#allocation4 + $0x304] sm:$0xff] }
 0x141   : > { %v2417_v23 = vld [vmem:[#allocation4 + $0x2bc] sm:$0xff]  ;;  %1927 = vst.msk [vmem:[#allocation4 + $0x354] sm:$0xf] %vm750_vm4, %v14645_v18  ;;  %2300 = vst.msk [vmem:[#allocation4 + $0x1d0] sm:$0xf] %vm750_vm4, %v14698_v25  ;;  %v2144_v36 = vld [vmem:[#allocation2 + $0xf2] sm:$0xff] }
 0x142   : > { %4106 = vmatmul.mubr.bf16.gmra.mxu1 %v13337_v26  ;;  %v14699_v26 = vpack.c.bf16 %v2141_v20, %v2141_v20  ;;  %v1769_v30 = vld [vmem:[#allocation2 + $0x158] sm:$0xff]  ;;  %2302 = vst.msk [vmem:[#allocation4 + $0x218] sm:$0xf] %vm750_vm4, %v14700_v27  ;;  %v13285_v34 = vcombine.low %v2412_v22, %v2417_v23  ;;  %v17059_v35 = vld [vmem:[#allocation4 + $0x2e4] ss:$36 sps:$4 sm:$0xff]   ;;  %v14702_v40 = vpack.c.bf16 %v2144_v36, %v2144_v36  ;;  %v2437_v59 = vld [vmem:[#allocation4 + $0x34c] sm:$0xff] }
 0x143   : > { %4307 = vmatprep.mubr.bf16.mxu1 %v17050_v29  ;;  %v1768_v29 = vld [vmem:[#allocation2 + $0x150] sm:$0xff]  ;;  %v14647_v33 = vpack.c.bf16 %v1769_v30, %v1769_v30  ;;  %2303 = vst.msk [vmem:[#allocation4 + $0x23c] sm:$0xf] %vm750_vm4, %v14701_v31  ;;  %v17063_v39 = vld [vmem:[#allocation4 + $0xa8] ss:$36 sps:$4 sm:$0xff]   ;;  %v2150_v57 = vld [vmem:[#allocation2 + $0x13a] sm:$0xff] }
 0x144   : > { %4203 = vmatmul.mubr.bf16.gmra.mxu0 %v17043_v37  ;;  %2301 = vst.msk [vmem:[#allocation4 + $0x1f4] sm:$0xf] %vm750_vm4, %v14699_v26  ;;  %v14646_v32 = vpack.c.bf16 %v1768_v29, %v1768_v29  ;;  %v2145_v37 = vld [vmem:[#allocation2 + $0xfa] sm:$0xff]  ;;  %v2146_v44 = vld [vmem:[#allocation2 + $0x10a] sm:$0xff]  ;;  %2304 = vst.msk [vmem:[#allocation4 + $0x260] sm:$0xf] %vm750_vm4, %v14702_v40  ;;  %v14708_v1 = vpack.c.bf16 %v2150_v57, %v2150_v57 }
 0x145   : > { %4210 = vmatprep.mubr.bf16.mxu0 %v17048_v38  ;;  %1929 = vst.msk [vmem:[#allocation4 + $0x39c] sm:$0xf] %vm750_vm4, %v14647_v33  ;;  %v2422_v38 = vld [vmem:[#allocation4 + $0x2e0] sm:$0xff]  ;;  %v14703_v41 = vpack.c.bf16 %v2145_v37, %v2145_v37  ;;  %v17067_v43 = vld [vmem:[#allocation4 + $0xf4] ss:$36 sps:$4 sm:$0xff]   ;;  %v14704_v45 = vpack.c.bf16 %v2146_v44, %v2146_v44  ;;  %v1770_v47 = vld [vmem:[#allocation2 + $0x168] sm:$0xff] }
 0x146   : > { %1928 = vst.msk [vmem:[#allocation4 + $0x378] sm:$0xf] %vm750_vm4, %v14646_v32  ;;  %v2147_v46 = vld [vmem:[#allocation2 + $0x112] sm:$0xff]  ;;  %v13294_v48 = vcombine.low %v2422_v38, %v2427_v42  ;;  %v14648_v50 = vpack.c.bf16 %v1770_v47, %v1770_v47  ;;  %v2148_v55 = vld [vmem:[#allocation2 + $0x122] sm:$0xff]  ;;  %v2149_v56 = vld [vmem:[#allocation2 + $0x12a] sm:$0xff] }
 0x147   : > { %2305 = vst.msk [vmem:[#allocation4 + $0x284] sm:$0xf] %vm750_vm4, %v14703_v41  ;;  %v14705_v49 = vpack.c.bf16 %v2147_v46, %v2147_v46  ;;  %2306 = vst.msk [vmem:[#allocation4 + $0x2a8] sm:$0xf] %vm750_vm4, %v14704_v45  ;;  %v17065_v51 = vld [vmem:[#allocation4 + $0x32c] ss:$36 sps:$4 sm:$0xff]   ;;  %v14706_v61 = vpack.c.bf16 %v2148_v55, %v2148_v55  ;;  %v14707_v63 = vpack.c.bf16 %v2149_v56, %v2149_v56 }
 0x148   : > { %1930 = vst.msk [vmem:[#allocation4 + $0x3c0] sm:$0xf] %vm750_vm4, %v14648_v50  ;;  %v2432_v58 = vld [vmem:[#allocation4 + $0x328] sm:$0xff]  ;;  %v1772_v2 = vld [vmem:[#allocation2 + $0x180] sm:$0xff]  ;;  %v2152_v7 = vld [vmem:[#allocation2 + $0x152] sm:$0xff] }
 0x149   : > { %2307 = vst.msk [vmem:[#allocation4 + $0x2cc] sm:$0xf] %vm750_vm4, %v14705_v49  ;;  %v2151_v0 = vld [vmem:[#allocation2 + $0x142] sm:$0xff]  ;;  %v14650_v5 = vpack.c.bf16 %v1772_v2, %v1772_v2  ;;  %v2154_v9 = vld [vmem:[#allocation2 + $0x16a] sm:$0xff]  ;;  %2308 = vst.msk [vmem:[#allocation4 + $0x2f0] sm:$0xf] %vm750_vm4, %v14706_v61 }
 0x14a   : > { %4308 = vmatmul.mubr.bf16.vlgmr.msra.gmra.mxu1 %v17052_v52  ;;  %v1771_v52 = vld [vmem:[#allocation2 + $0x170] sm:$0xff]  ;;  %v1773_v3 = vld [vmem:[#allocation2 + $0x188] sm:$0xff]  ;;  %v14709_v4 = vpack.c.bf16 %v2151_v0, %v2151_v0  ;;  %v17072_v10 = vld [vmem:[#allocation4 + $0x13c] ss:$36 sps:$4 sm:$0xff]   ;;  %2309 = vst.msk [vmem:[#allocation4 + $0x314] sm:$0xf] %vm750_vm4, %v14707_v63  ;;  %v14712_v14 = vpack.c.bf16 %v2154_v9, %v2154_v9 }
 0x14b   : > { %4315 = vmatprep.mubr.bf16.mxu1 %v17056_v53  ;;  %v17069_v53 = vld [vmem:[#allocation4 + $0xf0] ss:$36 sps:$4 sm:$0xff]   ;;  %v14649_v54 = vpack.c.bf16 %v1771_v52, %v1771_v52  ;;  %v14651_v6 = vpack.c.bf16 %v1773_v3, %v1773_v3  ;;  %2310 = vst.msk [vmem:[#allocation4 + $0x338] sm:$0xf] %vm750_vm4, %v14708_v1  ;;  %1932 = vst.msk [vmem:[#allocation4 + $0x408] sm:$0xf] %vm750_vm4, %v14650_v5 }
 0x14c   : > { %4211 = vmatmul.mubr.bf16.gmra.mxu0 %v13276_v8  ;;  %v2153_v8 = vld [vmem:[#allocation2 + $0x15a] sm:$0xff]  ;;  %2311 = vst.msk [vmem:[#allocation4 + $0x35c] sm:$0xf] %vm750_vm4, %v14709_v4  ;;  %v2155_v16 = vld [vmem:[#allocation2 + $0x172] sm:$0xff]  ;;  %2314 = vst.msk [vmem:[#allocation4 + $0x3c8] sm:$0xf] %vm750_vm4, %v14712_v14 }
 0x14d   : > { %4218 = vmatprep.mubr.bf16.mxu0 %v17054_v12  ;;  %1931 = vst.msk [vmem:[#allocation4 + $0x3e4] sm:$0xf] %vm750_vm4, %v14649_v54  ;;  %v14710_v12 = vpack.c.bf16 %v2152_v7, %v2152_v7  ;;  %v14711_v13 = vpack.c.bf16 %v2153_v8, %v2153_v8  ;;  %1933 = vst.msk [vmem:[#allocation4 + $0x42c] sm:$0xf] %vm750_vm4, %v14651_v6  ;;  %v1774_v62 = vld [vmem:[#allocation2 + $0x198] sm:$0xff]  ;;  %v1775_v17 = vld [vmem:[#allocation2 + $0x1a0] sm:$0xff]  ;;  %v14713_v19 = vpack.c.bf16 %v2155_v16, %v2155_v16 }
 0x14e   : > { %v14652_v20 = vpack.c.bf16 %v1774_v62, %v1774_v62  ;;  %v14653_v21 = vpack.c.bf16 %v1775_v17, %v1775_v17  ;;  %v1966_v22 = vld [vmem:[#allocation2 + $0x199] sm:$0xff]  ;;  %v1967_v23 = vld [vmem:[#allocation2 + $0x1a1] sm:$0xff]  ;;  %v2442_v33 = vld [vmem:[#allocation4 + $0x370] sm:$0xff] }
 0x14f   : > { %2312 = vst.msk [vmem:[#allocation4 + $0x380] sm:$0xf] %vm750_vm4, %v14710_v12  ;;  %2313 = vst.msk [vmem:[#allocation4 + $0x3a4] sm:$0xf] %vm750_vm4, %v14711_v13  ;;  %v14684_v25 = vpack.c.bf16 %v1966_v22, %v1966_v22  ;;  %v14685_v26 = vpack.c.bf16 %v1967_v23, %v1967_v23  ;;  %v17070_v27 = vld [vmem:[#allocation4 + $0x374] ss:$36 sps:$4 sm:$0xff]  }
 0x150   : > { %2315 = vst.msk [vmem:[#allocation4 + $0x3ec] sm:$0xf] %vm750_vm4, %v14713_v19  ;;  %1934 = vst.msk [vmem:[#allocation4 + $0x450] sm:$0xf] %vm750_vm4, %v14652_v20  ;;  %v2158_v31 = vld [vmem:[#allocation2 + $0x19a] sm:$0xff]  ;;  %v2159_v32 = vld [vmem:[#allocation2 + $0x1a2] sm:$0xff] }
 0x151   : > { %1935 = vst.msk [vmem:[#allocation4 + $0x474] sm:$0xf] %vm750_vm4, %v14653_v21  ;;  %2126 = vst.msk [vmem:[#allocation4 + $0x454] sm:$0xf] %vm750_vm4, %v14684_v25  ;;  %v14717_v36 = vpack.c.bf16 %v2159_v32, %v2159_v32  ;;  %v17074_v37 = vld [vmem:[#allocation4 + $0x138] ss:$36 sps:$4 sm:$0xff]  }
 0x152   : > { %4316 = vmatmul.mubr.bf16.gmra.mxu1 %v17058_v15  ;;  %2127 = vst.msk [vmem:[#allocation4 + $0x478] sm:$0xf] %vm750_vm4, %v14685_v26  ;;  %v17078_v40 = vld [vmem:[#allocation4 + $0x184] ss:$36 sps:$4 sm:$0xff]   ;;  %v2452_v54 = vld [vmem:[#allocation4 + $0x3b8] sm:$0xff]  ;;  %v17126_v12 = vld [vmem:[%s21350_s2 + $0x70] sm:$0xff]  }
 0x153   : > { %4323 = vmatprep.mubr.bf16.mxu1 %v17061_v24  ;;  %v13303_v24 = vcombine.low %v2432_v58, %v2437_v59  ;;  %2319 = vst.msk [vmem:[#allocation4 + $0x47c] sm:$0xf] %vm750_vm4, %v14717_v36  ;;  %v6230_v42 = vld [vmem:[#allocation3 + $0x19a] sm:$0xff]  ;;  %v2457_v55 = vld [vmem:[#allocation4 + $0x3dc] sm:$0xff] }
 0x154   : > { %4219 = vmatmul.mubr.bf16.gmra.mxu0 %v13285_v34  ;;  %v2447_v34 = vld [vmem:[#allocation4 + $0x394] sm:$0xff]  ;;  %v15004_v49 = vpack.c.bf16 %v6230_v42, %v6230_v42  ;;  %v17083_v58 = vld [vmem:[#allocation4 + $0x1cc] ss:$36 sps:$4 sm:$0xff]   ;;  %v17081_v4 = vld [vmem:[#allocation4 + $0x404] ss:$36 sps:$4 sm:$0xff]   ;;  %v13321_v5 = vcombine.low %v2452_v54, %v2457_v55 }
 0x155   : > { %4226 = vmatprep.mubr.bf16.mxu0 %v17059_v35  ;;  %v14716_v35 = vpack.c.bf16 %v2158_v31, %v2158_v31  ;;  %v13312_v44 = vcombine.low %v2442_v33, %v2447_v34  ;;  %v17125_v59 = vld [vmem:[%s21350_s2 + $0x38] sm:$0xff]   ;;  %v17085_v8 = vld [vmem:[#allocation4 + $0x1c8] ss:$36 sps:$4 sm:$0xff]   ;;  %v2462_v9 = vld [vmem:[#allocation4 + $0x400] sm:$0xff] }
 0x156   : > { %v17127_v13 = vld [vmem:[%s21350_s2 + $0x30] sm:$0xff]   ;;  %v17092_v26 = vld [vmem:[#allocation4 + $0x25c] ss:$36 sps:$4 sm:$0xff]   ;;  %v17095_v54 = vld [vmem:[#allocation4 + $0x68] ss:$36 sps:$4 sm:$0xff]  }
 0x157   : > { %2318 = vst.msk [vmem:[#allocation4 + $0x458] sm:$0xf] %vm750_vm4, %v14716_v35  ;;  %v17087_v16 = vld [vmem:[#allocation4 + $0x44c] ss:$36 sps:$4 sm:$0xff]   ;;  %v2403_v34 = vld [vmem:[#allocation4 + $0x258] sm:$0xff] }
 0x158   : > { %v17091_v21 = vld [vmem:[#allocation4 + $0x210] ss:$36 sps:$4 sm:$0xff]   ;;  %v2408_v35 = vld [vmem:[#allocation4 + $0x27c] sm:$0xff] }
 0x159   : > { %v2477_v25 = vld [vmem:[#allocation4 + $0x46c] sm:$0xff]  ;;  %v17094_v36 = vld [vmem:[#allocation4 + $0x20] ss:$36 sps:$4 sm:$0xff]  }
 0x15a   : > { %4324 = vmatmul.mubr.bf16.gmra.mxu1 %v17063_v39 }
 0x15b   : > { %4331 = vmatprep.mubr.bf16.mxu1 %v17067_v43  ;;  %v6231_v43 = vld [vmem:[#allocation3 + $0x1a2] sm:$0xff] }
 0x15c   : > { %4227 = vmatmul.mubr.bf16.gmra.mxu0 %v13294_v48  ;;  %v17076_v48 = vld [vmem:[#allocation4 + $0x3bc] ss:$36 sps:$4 sm:$0xff]   ;;  %v15005_v50 = vpack.c.bf16 %v6231_v43, %v6231_v43 }
 0x15d   : > { %4234 = vmatprep.mubr.bf16.mxu0 %v17065_v51  ;;  %v17080_v51 = vld [vmem:[#allocation4 + $0x180] ss:$36 sps:$4 sm:$0xff]  }
 0x15e   : > { %v18721_v61 = vld [vmem:[#allocation4 + $0x458] ss:$36 sps:$4 sm:$0xff]  }
 0x15f   : > { %6390 = vst.msk [vmem:[#allocation4 + $0x458] sm:$0xf] %vm4822_vm5, %v15004_v49  ;;  %6391 = vst.msk [vmem:[#allocation4 + $0x47c] sm:$0xf] %vm4822_vm5, %v15005_v50  ;;  %v17128_v50 = vld [vmem:[%s21350_s2 + $0x68] sm:$0xff]  }
 0x160   : > { %v15310_v60 = vpop.f32.mrf.mxu0 }
 0x162   : > { %v15311_v11 = vpop.f32.mrf.mxu0  ;;  %4332 = vmatmul.mubr.bf16.gmra.mxu1 %v17069_v53  ;;  %v17124_v53 = vld [vmem:[%s21350_s2 + $0x78] sm:$0xff]  }
 0x163   : > { %v18692_v15 = vadd.f32 %v15311_v11, %v15310_v60  ;;  %4339 = vmatprep.mubr.bf16.mxu1 %v17072_v10  ;;  %15766 = vmatprep.subr.bf16.mxu1 %v17124_v53  ;;  %v2467_v10 = vld [vmem:[#allocation4 + $0x424] sm:$0xff]  ;;  %v17089_v11 = vld [vmem:[#allocation4 + $0x214] ss:$36 sps:$4 sm:$0xff]  }
 0x164   : > { %v15313_v18 = vpop.f32.mrf.mxu0  ;;  %4235 = vmatmul.mubr.bf16.gmra.mxu0 %v13303_v24  ;;  %15767 = vmatpush3.bf16.msra.mxu1 %v17125_v59  ;;  %v13330_v17 = vcombine.low %v2462_v9, %v2467_v10  ;;  %v2472_v24 = vld [vmem:[#allocation4 + $0x448] sm:$0xff]  ;;  %v17098_v59 = vld [vmem:[#allocation4 + $0xb0] ss:$36 sps:$4 sm:$0xff]  }
 0x165   : > { %4242 = vmatprep.mubr.bf16.mxu0 %v17070_v27  ;;  %15768 = vmatprep.subr.bf16.mxu1 %v17126_v12 }
 0x166   : > { %v15314_v28 = vpop.f32.mrf.mxu0 }
 0x167   : > { %v18703_v30 = vadd.f32 %v15314_v28, %v15313_v18 }
 0x168   : > { %15769 = vmatpush3.bf16.msra.mxu1 %v17127_v13 }
 0x169   : > { %15770 = vmatprep.subr.bf16.mxu1 %v17128_v50 }
 0x16a   : > { %v15382_v29 = vpop.f32.mrf.mxu1  ;;  %4340 = vmatmul.mubr.bf16.gmra.mxu1 %v17074_v37 }
 0x16b   : > { %4347 = vmatprep.mubr.bf16.mxu1 %v17078_v40 }
 0x16c   : > { %v15383_v38 = vpop.f32.mrf.mxu1  ;;  %4243 = vmatmul.mubr.bf16.gmra.mxu0 %v13312_v44 }
 0x16d   : > { %v18707_v39 = vadd.f32 %v15383_v38, %v15382_v29  ;;  %4250 = vmatprep.mubr.bf16.mxu0 %v17076_v48  ;;  %v13339_v38 = vcombine.low %v2472_v24, %v2477_v25  ;;  %v13278_v48 = vcombine.low %v2403_v34, %v2408_v35  ;;  %v17104_v25 = vld [vmem:[#allocation4 + $0x334] ss:$36 sps:$4 sm:$0xff]  }
 0x16e   : > { %v15385_v41 = vpop.f32.mrf.mxu1  ;;  %v15316_v46 = vpop.f32.mrf.mxu0 }
 0x170   : > { %v15386_v45 = vpop.f32.mrf.mxu1  ;;  %v15317_v52 = vpop.f32.mrf.mxu0 }
 0x171   : > { %v18711_v47 = vadd.f32 %v15386_v45, %v15385_v41  ;;  %v18716_v57 = vadd.f32 %v15317_v52, %v15316_v46  ;;  %v17096_v45 = vld [vmem:[#allocation4 + $0x2a4] ss:$36 sps:$4 sm:$0xff]  }
 0x172   : > { %v15388_v56 = vpop.f32.mrf.mxu1  ;;  %v15319_v60 = vpop.f32.mrf.mxu0  ;;  %4348 = vmatmul.mubr.bf16.gmra.mxu1 %v17080_v51  ;;  %v17129_v51 = vld [vmem:[%s21350_s2 + $0x28] sm:$0xff]  }
 0x173   : > { %4355 = vmatprep.mubr.bf16.mxu1 %v17083_v58  ;;  %v2418_v58 = vld [vmem:[#allocation4 + $0x2c4] sm:$0xff]  ;;  %15771 = vmatpush3.bf16.msra.mxu1 %v17129_v51 }
 0x174   : > { %v15389_v63 = vpop.f32.mrf.mxu1  ;;  %v15320_v1 = vpop.f32.mrf.mxu0  ;;  %4251 = vmatmul.mubr.bf16.gmra.mxu0 %v13321_v5 }
 0x175   : > { %v18725_v0 = vadd.f32 %v15389_v63, %v15388_v56  ;;  %v18727_v3 = vadd.f32 %v15320_v1, %v15319_v60  ;;  %4258 = vmatprep.mubr.bf16.mxu0 %v17081_v4  ;;  %v2413_v56 = vld [vmem:[#allocation4 + $0x2a0] sm:$0xff] }
 0x176   : > { %v15391_v2 = vpop.f32.mrf.mxu1  ;;  %v15322_v14 = vpop.f32.mrf.mxu0 }
 0x178   : > { %v15392_v6 = vpop.f32.mrf.mxu1  ;;  %v15323_v18 = vpop.f32.mrf.mxu0 }
 0x179   : > { %v18729_v7 = vadd.f32 %v15392_v6, %v15391_v2  ;;  %v18737_v19 = vadd.f32 %v15323_v18, %v15322_v14  ;;  %v17100_v2 = vld [vmem:[#allocation4 + $0x2ec] ss:$36 sps:$4 sm:$0xff]   ;;  %v13287_v6 = vcombine.low %v2413_v56, %v2418_v58 }
 0x17a   : > { %v15394_v62 = vpop.f32.mrf.mxu1  ;;  %4356 = vmatmul.mubr.bf16.gmra.mxu1 %v17085_v8  ;;  %v15325_v23 = vpop.f32.mrf.mxu0  ;;  %v2423_v14 = vld [vmem:[#allocation4 + $0x2e8] sm:$0xff] }
 0x17b   : > { %4363 = vmatprep.mubr.bf16.mxu1 %v17089_v11  ;;  %v17099_v11 = vld [vmem:[#allocation4 + $0xf8] ss:$36 sps:$4 sm:$0xff]  }
 0x17c   : > { %v15395_v20 = vpop.f32.mrf.mxu1  ;;  %4259 = vmatmul.mubr.bf16.gmra.mxu0 %v13330_v17  ;;  %v15326_v28 = vpop.f32.mrf.mxu0 }
 0x17d   : > { %v18739_v22 = vadd.f32 %v15395_v20, %v15394_v62  ;;  %4266 = vmatprep.mubr.bf16.mxu0 %v17087_v16  ;;  %v18741_v29 = vadd.f32 %v15326_v28, %v15325_v23  ;;  %v2428_v16 = vld [vmem:[#allocation4 + $0x30c] sm:$0xff]  ;;  %v17102_v62 = vld [vmem:[#allocation4 + $0x140] ss:$36 sps:$4 sm:$0xff]  }
 0x17e   : > { %v15397_v27 = vpop.f32.mrf.mxu1  ;;  %v15328_v33 = vpop.f32.mrf.mxu0  ;;  %v13296_v28 = vcombine.low %v2423_v14, %v2428_v16 }
 0x180   : > { %v15398_v31 = vpop.f32.mrf.mxu1  ;;  %v15329_v40 = vpop.f32.mrf.mxu0 }
 0x181   : > { %v18743_v32 = vadd.f32 %v15398_v31, %v15397_v27  ;;  %v18745_v41 = vadd.f32 %v15329_v40, %v15328_v33  ;;  %v17131_v33 = vld [vmem:[%s21350_s2 + $0x20] sm:$0xff]   ;;  %v2433_v40 = vld [vmem:[#allocation4 + $0x330] sm:$0xff] }
 0x182   : > { %v15400_v37 = vpop.f32.mrf.mxu1  ;;  %4364 = vmatmul.mubr.bf16.gmra.mxu1 %v17091_v21  ;;  %v15331_v44 = vpop.f32.mrf.mxu0 }
 0x183   : > { %4371 = vmatprep.mubr.bf16.mxu1 %v17092_v26 }
 0x184   : > { %v15401_v42 = vpop.f32.mrf.mxu1  ;;  %4267 = vmatmul.mubr.bf16.gmra.mxu0 %v13339_v38  ;;  %v15332_v49 = vpop.f32.mrf.mxu0 }
 0x185   : > { %v18747_v43 = vadd.f32 %v15401_v42, %v15400_v37  ;;  %16726 = vmatprep.mubr.bf16.mxu0 %v17094_v36  ;;  %v18755_v52 = vadd.f32 %v15332_v49, %v15331_v44  ;;  %v17103_v36 = vld [vmem:[#allocation4 + $0x188] ss:$36 sps:$4 sm:$0xff]   ;;  %v2438_v42 = vld [vmem:[#allocation4 + $0x354] sm:$0xff] }
 0x186   : > { %v15403_v46 = vpop.f32.mrf.mxu1  ;;  %v17106_v44 = vld [vmem:[#allocation4 + $0x1d0] ss:$36 sps:$4 sm:$0xff]   ;;  %v13305_v58 = vcombine.low %v2433_v40, %v2438_v42 }
 0x188   : > { %v15404_v53 = vpop.f32.mrf.mxu1  ;;  %v15334_v4 = vpop.f32.mrf.mxu0 }
 0x189   : > { %v18757_v55 = vadd.f32 %v15404_v53, %v15403_v46  ;;  %v17108_v53 = vld [vmem:[#allocation4 + $0x37c] ss:$36 sps:$4 sm:$0xff]  }
 0x18a   : > { %v15422_v60 = vpop.f32.mrf.mxu1  ;;  %4372 = vmatmul.mubr.bf16.gmra.mxu1 %v13278_v48  ;;  %v15335_v9 = vpop.f32.mrf.mxu0 }
 0x18b   : > { %4379 = vmatprep.mubr.bf16.mxu1 %v17096_v45  ;;  %v18762_v12 = vadd.f32 %v15335_v9, %v15334_v4  ;;  %v2443_v4 = vld [vmem:[#allocation4 + $0x378] sm:$0xff] }
 0x18c   : > { %v15423_v63 = vpop.f32.mrf.mxu1  ;;  %16727 = vmatmul.mubr.bf16.vlgmr.msra.gmra.mxu0 %v17095_v54  ;;  %v15337_v17 = vpop.f32.mrf.mxu0 }
 0x18d   : > { %v15424_v1 = vadd.f32 %v15423_v63, %v15422_v60  ;;  %16730 = vmatprep.mubr.bf16.mxu0 %v17098_v59 }
 0x18e   : > { %v15425_v5 = vpop.f32.mrf.mxu1  ;;  %v15338_v21 = vpop.f32.mrf.mxu0 }
 0x18f   : > { %v18760_v8 = vadd.f32 %v15424_v1, %v18692_v15  ;;  %v18767_v23 = vadd.f32 %v15338_v21, %v15337_v17 }
 0x190   : > { %v15426_v10 = vpop.f32.mrf.mxu1  ;;  %v15340_v26 = vpop.f32.mrf.mxu0 }
 0x191   : > { %v15427_v13 = vadd.f32 %v15426_v10, %v15425_v5  ;;  %v2448_v5 = vld [vmem:[#allocation4 + $0x39c] sm:$0xff] }
 0x192   : > { %v15428_v18 = vpop.f32.mrf.mxu1  ;;  %4380 = vmatmul.mubr.bf16.gmra.mxu1 %v13287_v6  ;;  %v15341_v34 = vpop.f32.mrf.mxu0  ;;  %v17110_v6 = vld [vmem:[#allocation4 + $0x260] ss:$36 sps:$4 sm:$0xff]   ;;  %v13314_v21 = vcombine.low %v2443_v4, %v2448_v5 }
 0x193   : > { %v18765_v20 = vadd.f32 %v15427_v13, %v18703_v30  ;;  %4387 = vmatprep.mubr.bf16.mxu1 %v17100_v2  ;;  %v17130_v30 = vld [vmem:[%s21350_s2 + $0x60] sm:$0xff]   ;;  %v18778_v37 = vadd.f32 %v15341_v34, %v15340_v26 }
 0x194   : > { %v15429_v15 = vpop.f32.mrf.mxu1  ;;  %16731 = vmatmul.mubr.bf16.gmra.mxu0 %v17099_v11  ;;  %15772 = vmatprep.subr.bf16.mxu1 %v17130_v30  ;;  %v2458_v34 = vld [vmem:[#allocation4 + $0x3e4] sm:$0xff] }
 0x195   : > { %v15430_v24 = vadd.f32 %v15429_v15, %v15428_v18  ;;  %16734 = vmatprep.mubr.bf16.mxu0 %v17102_v62  ;;  %15773 = vmatpush3.bf16.msra.mxu1 %v17131_v33  ;;  %v17112_v62 = vld [vmem:[#allocation4 + $0x3c4] ss:$36 sps:$4 sm:$0xff]  }
 0x196   : > { %v15431_v27 = vpop.f32.mrf.mxu1  ;;  %v2453_v33 = vld [vmem:[#allocation4 + $0x3c0] sm:$0xff] }
 0x197   : > { %v18770_v31 = vadd.f32 %v15430_v24, %v18716_v57  ;;  %v15343_v57 = vpop.f32.mrf.mxu0  ;;  %v17133_v24 = vld [vmem:[%s21350_s2 + $0x18] sm:$0xff]  }
 0x198   : > { %v15432_v35 = vpop.f32.mrf.mxu1 }
 0x199   : > { %v15433_v38 = vadd.f32 %v15432_v35, %v15431_v27  ;;  %v15344_v48 = vpop.f32.mrf.mxu0  ;;  %v17111_v27 = vld [vmem:[#allocation4 + $0x2a8] ss:$36 sps:$4 sm:$0xff]   ;;  %v17114_v35 = vld [vmem:[#allocation4 + $0x2f0] ss:$36 sps:$4 sm:$0xff]  }
 0x19a   : > { %v15434_v45 = vpop.f32.mrf.mxu1  ;;  %4388 = vmatmul.mubr.bf16.gmra.mxu1 %v13296_v28  ;;  %v18783_v50 = vadd.f32 %v15344_v48, %v15343_v57 }
 0x19b   : > { %v18781_v46 = vadd.f32 %v15433_v38, %v18727_v3  ;;  %4395 = vmatprep.mubr.bf16.mxu1 %v17104_v25  ;;  %v15346_v54 = vpop.f32.mrf.mxu0  ;;  %v17107_v3 = vld [vmem:[#allocation4 + $0x218] ss:$36 sps:$4 sm:$0xff]  }
 0x19c   : > { %v15435_v49 = vpop.f32.mrf.mxu1  ;;  %16735 = vmatmul.mubr.bf16.gmra.mxu0 %v17103_v36 }
 0x19d   : > { %v15436_v51 = vadd.f32 %v15435_v49, %v15434_v45  ;;  %16738 = vmatprep.mubr.bf16.mxu0 %v17106_v44  ;;  %v15347_v60 = vpop.f32.mrf.mxu0  ;;  %v17116_v45 = vld [vmem:[#allocation4 + $0x40c] ss:$36 sps:$4 sm:$0xff]  }
 0x19e   : > { %v15437_v56 = vpop.f32.mrf.mxu1  ;;  %v18788_v1 = vadd.f32 %v15347_v60, %v15346_v54 }
 0x19f   : > { %v18786_v59 = vadd.f32 %v15436_v51, %v18737_v19  ;;  %v15349_v9 = vpop.f32.mrf.mxu0  ;;  %v13323_v51 = vcombine.low %v2453_v33, %v2458_v34  ;;  %v17122_v33 = vld [vmem:[#allocation4 + $0x410] ss:$36 sps:$4 sm:$0xff]  }
 0x1a0   : > { %v15438_v63 = vpop.f32.mrf.mxu1 }
 0x1a1   : > { %v15439_v2 = vadd.f32 %v15438_v63, %v15437_v56  ;;  %v15350_v13 = vpop.f32.mrf.mxu0  ;;  %v2463_v63 = vld [vmem:[#allocation4 + $0x408] sm:$0xff] }
 0x1a2   : > { %v15440_v10 = vpop.f32.mrf.mxu1  ;;  %4396 = vmatmul.mubr.bf16.gmra.mxu1 %v13305_v58  ;;  %v18793_v14 = vadd.f32 %v15350_v13, %v15349_v9  ;;  %v17120_v13 = vld [vmem:[#allocation4 + $0x454] ss:$36 sps:$4 sm:$0xff]  }
 0x1a3   : > { %v18791_v11 = vadd.f32 %v15439_v2, %v18741_v29  ;;  %4403 = vmatprep.mubr.bf16.mxu1 %v17108_v53  ;;  %v15352_v17 = vpop.f32.mrf.mxu0  ;;  %v17132_v29 = vld [vmem:[%s21350_s2 + $0x58] sm:$0xff]   ;;  %v17118_v2 = vld [vmem:[#allocation4 + $0x380] ss:$36 sps:$4 sm:$0xff]  }
 0x1a4   : > { %v15441_v19 = vpop.f32.mrf.mxu1  ;;  %16739 = vmatmul.mubr.bf16.gmra.mxu0 %v17107_v3  ;;  %15774 = vmatprep.subr.bf16.mxu1 %v17132_v29  ;;  %v2468_v3 = vld [vmem:[#allocation4 + $0x42c] sm:$0xff] }
 0x1a5   : > { %v15442_v16 = vadd.f32 %v15441_v19, %v15440_v10  ;;  %16742 = vmatprep.mubr.bf16.mxu0 %v17110_v6  ;;  %v15353_v25 = vpop.f32.mrf.mxu0  ;;  %15775 = vmatpush3.bf16.msra.mxu1 %v17133_v24  ;;  %v17119_v24 = vld [vmem:[#allocation4 + $0x3c8] ss:$36 sps:$4 sm:$0xff]  }
 0x1a6   : > { %v15443_v18 = vpop.f32.mrf.mxu1  ;;  %v18804_v28 = vadd.f32 %v15353_v25, %v15352_v17 }
 0x1a7   : > { %v18796_v15 = vadd.f32 %v15442_v16, %v18745_v41  ;;  %v15355_v41 = vpop.f32.mrf.mxu0 }
 0x1a8   : > { %v15444_v26 = vpop.f32.mrf.mxu1 }
 0x1a9   : > { %v15445_v30 = vadd.f32 %v15444_v26, %v15443_v18  ;;  %v15356_v40 = vpop.f32.mrf.mxu0  ;;  %v17134_v18 = vld [vmem:[%s21350_s2 + $0x50] sm:$0xff]  }
 0x1aa   : > { %v15446_v36 = vpop.f32.mrf.mxu1  ;;  %4404 = vmatmul.mubr.bf16.gmra.mxu1 %v13314_v21  ;;  %v18809_v44 = vadd.f32 %v15356_v40, %v15355_v41  ;;  %15776 = vmatprep.subr.bf16.mxu1 %v17134_v18 }
 0x1ab   : > { %v18807_v38 = vadd.f32 %v15445_v30, %v18755_v52  ;;  %4411 = vmatprep.mubr.bf16.mxu1 %v17112_v62  ;;  %v15358_v48 = vpop.f32.mrf.mxu0  ;;  %v17115_v52 = vld [vmem:[#allocation4 + $0x338] ss:$36 sps:$4 sm:$0xff]   ;;  %v13332_v62 = vcombine.low %v2463_v63, %v2468_v3 }
 0x1ac   : > { %v15447_v42 = vpop.f32.mrf.mxu1  ;;  %16743 = vmatmul.mubr.bf16.gmra.mxu0 %v17111_v27  ;;  %v2473_v27 = vld [vmem:[#allocation4 + $0x450] sm:$0xff] }
 0x1ad   : > { %v15448_v57 = vadd.f32 %v15447_v42, %v15446_v36  ;;  %16746 = vmatprep.mubr.bf16.mxu0 %v17114_v35  ;;  %v15359_v54 = vpop.f32.mrf.mxu0  ;;  %v2478_v30 = vld [vmem:[#allocation4 + $0x474] sm:$0xff] }
 0x1ae   : > { %v15449_v49 = vpop.f32.mrf.mxu1  ;;  %v18814_v58 = vadd.f32 %v15359_v54, %v15358_v48 }
 0x1af   : > { %v18812_v53 = vadd.f32 %v15448_v57, %v18762_v12  ;;  %v18816_v4 = vpop.f32.mrf.mxu0 }
 0x1b0   : > { %v15450_v56 = vpop.f32.mrf.mxu1 }
 0x1b1   : > { %v15451_v60 = vadd.f32 %v15450_v56, %v15449_v49  ;;  %v18821_v12 = vpop.f32.mrf.mxu0 }
 0x1b2   : > { %v15452_v5 = vpop.f32.mrf.mxu1  ;;  %4412 = vmatmul.mubr.bf16.gmra.mxu1 %v13323_v51 }
 0x1b3   : > { %v18819_v6 = vadd.f32 %v15451_v60, %v18767_v23  ;;  %4419 = vmatprep.mubr.bf16.mxu1 %v17116_v45  ;;  %v17135_v23 = vld [vmem:[%s21350_s2 + $0x10] sm:$0xff]   ;;  %v13341_v45 = vcombine.low %v2473_v27, %v2478_v30 }
 0x1b4   : > { %v15453_v9 = vpop.f32.mrf.mxu1  ;;  %v15364_v19 = vpop.f32.mrf.mxu0  ;;  %16747 = vmatmul.mubr.bf16.gmra.mxu0 %v17115_v52  ;;  %15777 = vmatpush3.bf16.msra.mxu1 %v17135_v23  ;;  %v17138_v23 = vld [vmem:[%s21350_s2 + $0xf8] sm:$0xff]  }
 0x1b5   : > { %v15454_v10 = vadd.f32 %v15453_v9, %v15452_v5  ;;  %16750 = vmatprep.mubr.bf16.mxu0 %v17118_v2  ;;  %15878 = vmatprep.subr.bf16.mxu0 %v17138_v23 }
 0x1b6   : > { %v15455_v16 = vpop.f32.mrf.mxu1  ;;  %v15365_v21 = vpop.f32.mrf.mxu0 }
 0x1b7   : > { %v18824_v17 = vadd.f32 %v15454_v10, %v18778_v37  ;;  %v18832_v25 = vadd.f32 %v15365_v21, %v15364_v19  ;;  %v17136_v10 = vld [vmem:[%s21350_s2 + $0x48] sm:$0xff]  }
 0x1b8   : > { %v15456_v29 = vpop.f32.mrf.mxu1  ;;  %v18834_v37 = vpop.f32.mrf.mxu0  ;;  %15778 = vmatprep.subr.bf16.mxu1 %v17136_v10 }
 0x1b9   : > { %v15457_v26 = vadd.f32 %v15456_v29, %v15455_v16 }
 0x1ba   : > { %v15458_v34 = vpop.f32.mrf.mxu1  ;;  %4420 = vmatmul.mubr.bf16.gmra.mxu1 %v13332_v62  ;;  %v18839_v41 = vpop.f32.mrf.mxu0 }
 0x1bb   : > { %v18837_v35 = vadd.f32 %v15457_v26, %v18783_v50  ;;  %4427 = vmatprep.mubr.bf16.mxu1 %v17120_v13 }
 0x1bc   : > { %v15459_v36 = vpop.f32.mrf.mxu1  ;;  %v15370_v42 = vpop.f32.mrf.mxu0  ;;  %16751 = vmatmul.mubr.bf16.gmra.mxu0 %v17119_v24  ;;  %v17139_v24 = vld [vmem:[%s21350_s2 + $0xb8] sm:$0xff]  }
 0x1bd   : > { %v15460_v40 = vadd.f32 %v15459_v36, %v15458_v34  ;;  %16754 = vmatprep.mubr.bf16.mxu0 %v17122_v33  ;;  %15879 = vmatpush3.bf16.msra.mxu0 %v17139_v24  ;;  %v17140_v36 = vld [vmem:[%s21350_s2 + $0xf0] sm:$0xff]  }
 0x1be   : > { %v15461_v57 = vpop.f32.mrf.mxu1  ;;  %v15371_v49 = vpop.f32.mrf.mxu0  ;;  %15880 = vmatprep.subr.bf16.mxu0 %v17140_v36 }
 0x1bf   : > { %v18842_v48 = vadd.f32 %v15460_v40, %v18788_v1  ;;  %v18844_v54 = vadd.f32 %v15371_v49, %v15370_v42  ;;  %v15363_v40 = vadd.f32 %v18821_v12, %v18816_v4  ;;  %v17143_v4 = vld [vmem:[%s21350_s2 + $0xe8] sm:$0xff]  }
 0x1c0   : > { %v15462_v51 = vpop.f32.mrf.mxu1  ;;  %v18846_v56 = vpop.f32.mrf.mxu0 }
 0x1c1   : > { %v15463_v50 = vadd.f32 %v15462_v51, %v15461_v57 }
 0x1c2   : > { %v15464_v52 = vpop.f32.mrf.mxu1  ;;  %4428 = vmatmul.mubr.bf16.gmra.mxu1 %v13341_v45  ;;  %v18851_v63 = vpop.f32.mrf.mxu0  ;;  %v17141_v45 = vld [vmem:[%s21350_s2 + $0xb0] sm:$0xff]  }
 0x1c3   : > { %v18849_v60 = vadd.f32 %v15463_v50, %v18793_v14  ;;  %v17137_v14 = vld [vmem:[%s21350_s2 + $0x8] sm:$0xff]   ;;  %15881 = vmatpush3.bf16.msra.mxu0 %v17141_v45 }
 0x1c4   : > { %v15465_v3 = vpop.f32.mrf.mxu1  ;;  %v15376_v5 = vpop.f32.mrf.mxu0  ;;  %16755 = vmatmul.mubr.bf16.gmra.mxu0 %v18721_v61  ;;  %15779 = vmatpush3.bf16.msra.mxu1 %v17137_v14 }
 0x1c5   : > { %v15466_v2 = vadd.f32 %v15465_v3, %v15464_v52  ;;  %15882 = vmatprep.subr.bf16.mxu0 %v17143_v4 }
 0x1c6   : > { %v15467_v1 = vpop.f32.mrf.mxu1  ;;  %v15377_v13 = vpop.f32.mrf.mxu0 }
 0x1c7   : > { %v18855_v9 = vadd.f32 %v15466_v2, %v18804_v28  ;;  %v18863_v16 = vadd.f32 %v15377_v13, %v15376_v5  ;;  %v17145_v5 = vld [vmem:[%s21350_s2 + $0xa8] sm:$0xff]  }
 0x1c8   : > { %v15468_v19 = vpop.f32.mrf.mxu1  ;;  %v18865_v18 = vpop.f32.mrf.mxu0  ;;  %15883 = vmatpush3.bf16.msra.mxu0 %v17145_v5  ;;  %v17153_v5 = vld [vmem:[%s21350_s2 + $0xd0] sm:$0xff]  }
 0x1c9   : > { %v15469_v62 = vadd.f32 %v15468_v19, %v15467_v1 }
 0x1ca   : > { %v15470_v61 = vpop.f32.mrf.mxu1  ;;  %v18873_v21 = vpop.f32.mrf.mxu0 }
 0x1cb   : > { %v18868_v28 = vadd.f32 %v15469_v62, %v18809_v44  ;;  %v17146_v62 = vld [vmem:[%s21350_s2 + $0xe0] sm:$0xff]  }
 0x1cc   : > { %v15471_v29 = vpop.f32.mrf.mxu1  ;;  %v15534_v27 = vpop.f32.mrf.mxu0  ;;  %15884 = vmatprep.subr.bf16.mxu0 %v17146_v62 }
 0x1cd   : > { %v15472_v26 = vadd.f32 %v15471_v29, %v15470_v61  ;;  %v15369_v61 = vadd.f32 %v18839_v41, %v18834_v37  ;;  %v17144_v37 = vld [vmem:[%s21350_s2] sm:$0xff]  }
 0x1ce   : > { %v15473_v30 = vpop.f32.mrf.mxu1  ;;  %v15535_v44 = vpop.f32.mrf.mxu0 }
 0x1cf   : > { %v18879_v33 = vadd.f32 %v15472_v26, %v18814_v58  ;;  %v15536_v42 = vadd.f32 %v15535_v44, %v15534_v27 }
 0x1d0   : > { %v15474_v34 = vpop.f32.mrf.mxu1  ;;  %v15537_v49 = vpop.f32.mrf.mxu0 }
 0x1d1   : > { %v15475_v57 = vadd.f32 %v15474_v34, %v15473_v30  ;;  %v18890_v58 = vadd.f32 %v15536_v42, %v18760_v8  ;;  %v17148_v34 = vld [vmem:[%s21350_s2 + $0xd8] sm:$0xff]   ;;  %v17152_v42 = vld [vmem:[#allocation4 + $0x4] ss:$36 sps:$4 sm:$0xff]  }
 0x1d2   : > { %v15476_v51 = vpop.f32.mrf.mxu1  ;;  %v15538_v52 = vpop.f32.mrf.mxu0  ;;  %7896 = vmatprep.mubr.bf16.mxu1 %v17152_v42 }
 0x1d3   : > { %v18892_v50 = vadd.f32 %v15475_v57, %v15363_v40  ;;  %v15539_v12 = vadd.f32 %v15538_v52, %v15537_v49  ;;  %v5047_v57 = vld [vmem:[#allocation3 + $0x2] sm:$0xff] }
 0x1d4   : > { %v15477_v3 = vpop.f32.mrf.mxu1  ;;  %v15540_v1 = vpop.f32.mrf.mxu0  ;;  %v18931_v52 = vpack.c.bf16 %v5047_v57, %v5047_v57 }
 0x1d5   : > { %v15478_v2 = vadd.f32 %v15477_v3, %v15476_v51  ;;  %v18901_v8 = vadd.f32 %v15539_v12, %v18765_v20  ;;  %v17147_v20 = vld [vmem:[%s21350_s2 + $0xa0] sm:$0xff]  }
 0x1d6   : > { %v15479_v10 = vpop.f32.mrf.mxu1  ;;  %v15541_v13 = vpop.f32.mrf.mxu0  ;;  %15885 = vmatpush3.bf16.msra.mxu0 %v17147_v20  ;;  %v17150_v51 = vld [vmem:[#allocation4] ss:$36 sps:$4 sm:$0xff]   ;;  %5207 = vst.msk [vmem:[#allocation4 + $0x8] sm:$0xf] %vm4822_vm5, %v18931_v52 }
 0x1d7   : > { %v18904_v14 = vadd.f32 %v15478_v2, %v18832_v25  ;;  %v15542_v23 = vadd.f32 %v15541_v13, %v15540_v1  ;;  %v17142_v25 = vld [vmem:[%s21350_s2 + $0x40] sm:$0xff]   ;;  %15886 = vmatprep.subr.bf16.mxu0 %v17148_v34  ;;  %v15375_v1 = vadd.f32 %v18851_v63, %v18846_v56  ;;  %v17155_v63 = vld [vmem:[%s21350_s2 + $0xc8] sm:$0xff]  }
 0x1d8   : > { %v15480_v19 = vpop.f32.mrf.mxu1  ;;  %v15543_v24 = vpop.f32.mrf.mxu0  ;;  %15780 = vmatprep.subr.bf16.mxu1 %v17142_v25  ;;  %v5048_v13 = vld [vmem:[#allocation3 + $0xa] sm:$0xff]  ;;  %v17157_v25 = vld [vmem:[%s21350_s2 + $0x88] sm:$0xff]  }
 0x1d9   : > { %v15481_v29 = vadd.f32 %v15480_v19, %v15479_v10  ;;  %v18918_v27 = vadd.f32 %v15542_v23, %v18770_v31  ;;  %15781 = vmatpush3.bf16.msra.mxu1 %v17144_v37  ;;  %v17149_v31 = vld [vmem:[%s21350_s2 + $0x98] sm:$0xff]  }
 0x1da   : > { %v15482_v26 = vpop.f32.mrf.mxu1  ;;  %v15544_v41 = vpop.f32.mrf.mxu0  ;;  %15887 = vmatpush3.bf16.msra.mxu0 %v17149_v31  ;;  %v15381_v31 = vadd.f32 %v18873_v21, %v18865_v18 }
 0x1db   : > { %v18920_v30 = vadd.f32 %v15481_v29, %v15369_v61  ;;  %v15545_v36 = vadd.f32 %v15544_v41, %v15543_v24  ;;  %15888 = vmatprep.subr.bf16.mxu0 %v17153_v5  ;;  %v18949_v61 = vpack.c.bf16 %v5048_v13, %v5048_v13  ;;  %v8812_v13 = vld [vmem:[#allocation3 + $0x8] sm:$0xff] }
 0x1dc   : > { %v15483_v44 = vpop.f32.mrf.mxu1  ;;  %v15546_v45 = vpop.f32.mrf.mxu0  ;;  %7897 = vmatmul.mubr.bf16.vlgmr.msra.gmra.mxu1 %v17150_v51 }
 0x1dd   : > { %v15484_v40 = vadd.f32 %v15483_v44, %v15482_v26  ;;  %v18934_v3 = vadd.f32 %v15545_v36, %v18781_v46  ;;  %5208 = vst.msk [vmem:[#allocation4 + $0x2c] sm:$0xf] %vm4822_vm5, %v18949_v61 }
 0x1de   : > { %v15485_v49 = vpop.f32.mrf.mxu1  ;;  %v15547_v12 = vpop.f32.mrf.mxu0 }
 0x1df   : > { %v18937_v4 = vadd.f32 %v15484_v40, %v18844_v54  ;;  %v15548_v46 = vadd.f32 %v15547_v12, %v15546_v45  ;;  %v17154_v54 = vld [vmem:[%s21350_s2 + $0x90] sm:$0xff]   ;;  %v17159_v40 = vld [vmem:[%s21350_s2 + $0xc0] sm:$0xff]  }
 0x1e0   : > { %v15486_v2 = vpop.f32.mrf.mxu1  ;;  %v15549_v19 = vpop.f32.mrf.mxu0  ;;  %15889 = vmatpush3.bf16.msra.mxu0 %v17154_v54  ;;  %v8811_v54 = vld [vmem:[#allocation3] sm:$0xff] }
 0x1e1   : > { %v15487_v10 = vadd.f32 %v15486_v2, %v15485_v49  ;;  %v18952_v23 = vadd.f32 %v15548_v46, %v18786_v59  ;;  %15890 = vmatprep.subr.bf16.mxu0 %v17155_v63  ;;  %v9004_v63 = vld [vmem:[#allocation3 + $0x9] sm:$0xff] }
 0x1e2   : > { %v15488_v62 = vpop.f32.mrf.mxu1  ;;  %v15550_v20 = vpop.f32.mrf.mxu0 }
 0x1e3   : > { %v18954_v29 = vadd.f32 %v15487_v10, %v15375_v1  ;;  %v15551_v24 = vadd.f32 %v15550_v20, %v15549_v19  ;;  %v9003_v19 = vld [vmem:[#allocation3 + $0x1] sm:$0xff]  ;;  %v15006_v20 = vpack.c.bf16 %v8811_v54, %v8811_v54 }
 0x1e4   : > { %v15489_v56 = vpop.f32.mrf.mxu1  ;;  %v15552_v59 = vpop.f32.mrf.mxu0  ;;  %15891 = vmatpush3.bf16.msra.mxu0 %v17157_v25 }
 0x1e5   : > { %v15490_v26 = vadd.f32 %v15489_v56, %v15488_v62  ;;  %v18965_v41 = vadd.f32 %v15551_v24, %v18791_v11  ;;  %v17160_v11 = vld [vmem:[%s21350_s2 + $0x80] sm:$0xff]   ;;  %15892 = vmatprep.subr.bf16.mxu0 %v17159_v40  ;;  %v15007_v56 = vpack.c.bf16 %v8812_v13, %v8812_v13  ;;  %v15038_v24 = vpack.c.bf16 %v9003_v19, %v9003_v19 }
 0x1e6   : > { %v15491_v37 = vpop.f32.mrf.mxu1  ;;  %v15553_v34 = vpop.f32.mrf.mxu0  ;;  %8971 = vst.msk [vmem:[#allocation4] sm:$0xf] %vm4822_vm5, %v15006_v20 }
 0x1e7   : > { %v18968_v44 = vadd.f32 %v15490_v26, %v18863_v16  ;;  %v15554_v42 = vadd.f32 %v15553_v34, %v15552_v59  ;;  %v15039_v59 = vpack.c.bf16 %v9004_v63, %v9004_v63  ;;  %8972 = vst.msk [vmem:[#allocation4 + $0x24] sm:$0xf] %vm4822_vm5, %v15007_v56  ;;  %9163 = vst.msk [vmem:[#allocation4 + $0x4] sm:$0xf] %vm4822_vm5, %v15038_v24 }
 0x1e8   : > { %v15492_v36 = vpop.f32.mrf.mxu1  ;;  %v15555_v45 = vpop.f32.mrf.mxu0  ;;  %15893 = vmatpush3.bf16.msra.mxu0 %v17160_v11 }
 0x1e9   : > { %v15493_v57 = vadd.f32 %v15492_v36, %v15491_v37  ;;  %v18979_v16 = vadd.f32 %v15554_v42, %v18796_v15  ;;  %9164 = vst.msk [vmem:[#allocation4 + $0x28] sm:$0xf] %vm4822_vm5, %v15039_v59 }
 0x1ea   : > { %v15494_v49 = vpop.f32.mrf.mxu1  ;;  %v15556_v12 = vpop.f32.mrf.mxu0 }
 0x1eb   : > { %v18981_v51 = vadd.f32 %v15493_v57, %v15381_v31  ;;  %v15557_v5 = vadd.f32 %v15556_v12, %v15555_v45  ;;  %v17156_v45 = vld [vmem:[%s21350_s2 + $0x178] sm:$0xff]  }
 0x1ec   : > { %v15495_v2 = vpop.f32.mrf.mxu1  ;;  %v15558_v18 = vpop.f32.mrf.mxu0  ;;  %15990 = vmatprep.subr.bf16.mxu1 %v17156_v45 }
 0x1ed   : > { %v15496_v1 = vadd.f32 %v15495_v2, %v15494_v49  ;;  %v18984_v46 = vadd.f32 %v15557_v5, %v18807_v38 }
 0x1ee   : > { %v15497_v21 = vpop.f32.mrf.mxu1  ;;  %v15559_v15 = vpop.f32.mrf.mxu0 }
 0x1ef   : > { %v18987_v10 = vadd.f32 %v15496_v1, %v18707_v39  ;;  %v15560_v26 = vadd.f32 %v15559_v15, %v15558_v18 }
 0x1f0   : > { %v15498_v62 = vpop.f32.mrf.mxu1  ;;  %v15561_v37 = vpop.f32.mrf.mxu0 }
 0x1f1   : > { %v15499_v25 = vadd.f32 %v15498_v62, %v15497_v21  ;;  %v18993_v39 = vadd.f32 %v15560_v26, %v18812_v53  ;;  %v17158_v53 = vld [vmem:[%s21350_s2 + $0x138] sm:$0xff]  }
 0x1f2   : > { %v15500_v34 = vpop.f32.mrf.mxu1  ;;  %v15562_v36 = vpop.f32.mrf.mxu0  ;;  %15991 = vmatpush3.bf16.msra.mxu1 %v17158_v53 }
 0x1f3   : > { %v18996_v38 = vadd.f32 %v15499_v25, %v18711_v47  ;;  %v15563_v31 = vadd.f32 %v15562_v36, %v15561_v37 }
 0x1f4   : > { %v15501_v40 = vpop.f32.mrf.mxu1  ;;  %v15564_v57 = vpop.f32.mrf.mxu0 }
 0x1f5   : > { %v15502_v42 = vadd.f32 %v15501_v40, %v15500_v34  ;;  %v19006_v49 = vadd.f32 %v15563_v31, %v18819_v6 }
 0x1f6   : > { %v15503_v11 = vpop.f32.mrf.mxu1  ;;  %v15565_v12 = vpop.f32.mrf.mxu0 }
 0x1f7   : > { %v19009_v47 = vadd.f32 %v15502_v42, %v18725_v0  ;;  %v15566_v5 = vadd.f32 %v15565_v12, %v15564_v57 }
 0x1f8   : > { %v15504_v2 = vpop.f32.mrf.mxu1  ;;  %v15567_v18 = vpop.f32.mrf.mxu0 }
 0x1f9   : > { %v15505_v1 = vadd.f32 %v15504_v2, %v15503_v11  ;;  %v19012_v54 = vadd.f32 %v15566_v5, %v18824_v17  ;;  %v17175_v11 = vld [vmem:[%s21350_s2 + $0x130] sm:$0xff]  }
 0x1fa   : > { %v15506_v21 = vpop.f32.mrf.mxu1  ;;  %v15568_v19 = vpop.f32.mrf.mxu0 }
 0x1fb   : > { %v19015_v13 = vadd.f32 %v15505_v1, %v18729_v7  ;;  %v15569_v15 = vadd.f32 %v15568_v19, %v15567_v18 }
 0x1fc   : > { %v15507_v6 = vpop.f32.mrf.mxu1  ;;  %v15570_v0 = vpop.f32.mrf.mxu0 }
 0x1fd   : > { %v15508_v62 = vadd.f32 %v15507_v6, %v15506_v21  ;;  %v19018_v56 = vadd.f32 %v15569_v15, %v18837_v35 }
 0x1fe   : > { %v15509_v20 = vpop.f32.mrf.mxu1  ;;  %v15571_v24 = vpop.f32.mrf.mxu0 }
 0x1ff   : > { %v19021_v63 = vadd.f32 %v15508_v62, %v18739_v22  ;;  %v15572_v25 = vadd.f32 %v15571_v24, %v15570_v0  ;;  %v17170_v22 = vld [vmem:[%s21350_s2 + $0x170] sm:$0xff]  }
 0x200   : > { %v15510_v26 = vpop.f32.mrf.mxu1  ;;  %v15573_v59 = vpop.f32.mrf.mxu0  ;;  %15992 = vmatprep.subr.bf16.mxu1 %v17170_v22 }
 0x201   : > { %v15511_v17 = vadd.f32 %v15510_v26, %v15509_v20  ;;  %v19024_v7 = vadd.f32 %v15572_v25, %v18842_v48  ;;  %15993 = vmatpush3.bf16.msra.mxu1 %v17175_v11 }
 0x202   : > { %v15512_v37 = vpop.f32.mrf.mxu1  ;;  %v15574_v36 = vpop.f32.mrf.mxu0 }
 0x203   : > { %v19027_v34 = vadd.f32 %v15511_v17, %v18743_v32  ;;  %v15575_v31 = vadd.f32 %v15574_v36, %v15573_v59 }
 0x204   : > { %v15513_v40 = vpop.f32.mrf.mxu1  ;;  %v15576_v42 = vpop.f32.mrf.mxu0 }
 0x205   : > { %v15514_v35 = vadd.f32 %v15513_v40, %v15512_v37  ;;  %v19036_v48 = vadd.f32 %v15575_v31, %v18849_v60 }
 0x206   : > { %v15515_v57 = vpop.f32.mrf.mxu1  ;;  %v15577_v45 = vpop.f32.mrf.mxu0 }
 0x207   : > { %v19039_v32 = vadd.f32 %v15514_v35, %v18747_v43  ;;  %v15578_v12 = vadd.f32 %v15577_v45, %v15576_v42 }
 0x208   : > { %v15516_v53 = vpop.f32.mrf.mxu1  ;;  %v15579_v5 = vpop.f32.mrf.mxu0 }
 0x209   : > { %21355 = vst [vmem:[#allocation5_spill] sm:$0xff] %v19039_v32  ;;  %v15517_v2 = vadd.f32 %v15516_v53, %v15515_v57  ;;  %v19042_v18 = vadd.f32 %v15578_v12, %v18855_v9 }
 0x20a   : > { %v15646_v1 = vpop.f32.mrf.mxu1  ;;  %v15580_v19 = vpop.f32.mrf.mxu0 }
 0x20b   : > { %v19045_v21 = vadd.f32 %v15517_v2, %v18757_v55  ;;  %v15581_v6 = vadd.f32 %v15580_v19, %v15579_v5 }
 0x20c   : > { %v15647_v60 = vpop.f32.mrf.mxu1  ;;  %v15582_v43 = vpop.f32.mrf.mxu0 }
 0x20d   : > { %21356 = vst [vmem:[#allocation6_spill] sm:$0xff] %v19045_v21  ;;  %v15648_v15 = vadd.f32 %v15647_v60, %v15646_v1  ;;  %v19048_v0 = vadd.f32 %v15581_v6, %v18868_v28  ;;  %v17180_v28 = vld [vmem:[%s21350_s2 + $0x168] sm:$0xff]   ;;  %v17197_v1 = vld [vmem:[%s21350_s2 + $0x120] sm:$0xff]  }
 0x20e   : > { %v15649_v62 = vpop.f32.mrf.mxu1  ;;  %v15583_v24 = vpop.f32.mrf.mxu0  ;;  %15994 = vmatprep.subr.bf16.mxu1 %v17180_v28 }
 0x20f   : > { %v19051_v20 = vadd.f32 %v15648_v15, %v18890_v58  ;;  %v15584_v25 = vadd.f32 %v15583_v24, %v15582_v43  ;;  %v17185_v58 = vld [vmem:[%s21350_s2 + $0x128] sm:$0xff]  }
 0x210   : > { %v15650_v26 = vpop.f32.mrf.mxu1  ;;  %v15585_v17 = vpop.f32.mrf.mxu0  ;;  %15995 = vmatpush3.bf16.msra.mxu1 %v17185_v58  ;;  %v17206_v58 = vld [vmem:[%s21350_s2 + $0x158] sm:$0xff]  }
 0x211   : > { %v15651_v9 = vadd.f32 %v15650_v26, %v15649_v62  ;;  %v19056_v55 = vadd.f32 %v15584_v25, %v18879_v33 }
 0x212   : > { %v19053_v59 = vpop.f32.mrf.mxu1  ;;  %v15586_v36 = vpop.f32.mrf.mxu0 }
 0x213   : > { %v19059_v37 = vadd.f32 %v15651_v9, %v18901_v8  ;;  %v15587_v31 = vadd.f32 %v15586_v36, %v15585_v17 }
 0x214   : > { %v19061_v40 = vpop.f32.mrf.mxu1  ;;  %v15588_v35 = vpop.f32.mrf.mxu0 }
 0x215   : > { %v19072_v33 = vadd.f32 %v15587_v31, %v18892_v50  ;;  %v17192_v50 = vld [vmem:[%s21350_s2 + $0x160] sm:$0xff]  }
 0x216   : > { %v19069_v42 = vpop.f32.mrf.mxu1  ;;  %v15589_v8 = vpop.f32.mrf.mxu0  ;;  %15996 = vmatprep.subr.bf16.mxu1 %v17192_v50 }
 0x217   : > { %v15590_v22 = vadd.f32 %v15589_v8, %v15588_v35  ;;  %15997 = vmatpush3.bf16.msra.mxu1 %v17197_v1 }
 0x218   : > { %v19074_v57 = vpop.f32.mrf.mxu1  ;;  %v15591_v11 = vpop.f32.mrf.mxu0  ;;  %15998 = vmatprep.subr.bf16.mxu1 %v17206_v58 }
 0x219   : > { %v19079_v53 = vadd.f32 %v15590_v22, %v18904_v14 }
 0x21a   : > { %v19076_v45 = vpop.f32.mrf.mxu1  ;;  %v15592_v12 = vpop.f32.mrf.mxu0 }
 0x21b   : > { %v15593_v5 = vadd.f32 %v15592_v12, %v15591_v11 }
 0x21c   : > { %v19081_v2 = vpop.f32.mrf.mxu1  ;;  %v15594_v19 = vpop.f32.mrf.mxu0 }
 0x21d   : > { %v19092_v6 = vadd.f32 %v15593_v5, %v18920_v30 }
 0x21e   : > { %v19089_v60 = vpop.f32.mrf.mxu1  ;;  %v15595_v14 = vpop.f32.mrf.mxu0 }
 0x21f   : > { %v15596_v43 = vadd.f32 %v15595_v14, %v15594_v19 }
 0x220   : > { %v19094_v15 = vpop.f32.mrf.mxu1  ;;  %v15597_v62 = vpop.f32.mrf.mxu0 }
 0x221   : > { %v19099_v26 = vadd.f32 %v15596_v43, %v18937_v4  ;;  %v17211_v4 = vld [vmem:[%s21350_s2 + $0x118] sm:$0xff]  }
 0x222   : > { %v19096_v24 = vpop.f32.mrf.mxu1  ;;  %v15598_v25 = vpop.f32.mrf.mxu0  ;;  %15999 = vmatpush3.bf16.msra.mxu1 %v17211_v4 }
 0x223   : > { %21357 = vst [vmem:[#allocation7_spill] sm:$0xff] %v19099_v26  ;;  %v15599_v17 = vadd.f32 %v15598_v25, %v15597_v62 }
 0x224   : > { %v19101_v9 = vpop.f32.mrf.mxu1  ;;  %v15600_v36 = vpop.f32.mrf.mxu0 }
 0x225   : > { %v19106_v30 = vadd.f32 %v15599_v17, %v18954_v29 }
 0x226   : > { %v19103_v28 = vpop.f32.mrf.mxu1  ;;  %v15601_v31 = vpop.f32.mrf.mxu0 }
 0x227   : > { %21358 = vst [vmem:[#allocation8_spill] sm:$0xff] %v19106_v30  ;;  %v15602_v8 = vadd.f32 %v15601_v31, %v15600_v36 }
 0x228   : > { %v19111_v35 = vpop.f32.mrf.mxu1  ;;  %v15603_v22 = vpop.f32.mrf.mxu0 }
 0x229   : > { %v19119_v29 = vadd.f32 %v15602_v8, %v18968_v44 }
 0x22a   : > { %v19116_v11 = vpop.f32.mrf.mxu1  ;;  %v15604_v12 = vpop.f32.mrf.mxu0 }
 0x22b   : > { %21359 = vst [vmem:[#allocation9_spill] sm:$0xff] %v19119_v29  ;;  %v15605_v50 = vadd.f32 %v15604_v12, %v15603_v22  ;;  %v17220_v12 = vld [vmem:[%s21350_s2 + $0x150] sm:$0xff]  }
 0x22c   : > { %v19121_v5 = vpop.f32.mrf.mxu1  ;;  %v15606_v1 = vpop.f32.mrf.mxu0  ;;  %16000 = vmatprep.subr.bf16.mxu1 %v17220_v12 }
 0x22d   : > { %v19126_v14 = vadd.f32 %v15605_v50, %v18981_v51 }
 0x22e   : > { %v19123_v19 = vpop.f32.mrf.mxu1  ;;  %v15607_v43 = vpop.f32.mrf.mxu0 }
 0x22f   : > { %21360 = vst [vmem:[#allocation10_spill] sm:$0xff] %v19126_v14  ;;  %v15608_v25 = vadd.f32 %v15607_v43, %v15606_v1 }
 0x230   : > { %v19128_v62 = vpop.f32.mrf.mxu1  ;;  %v15609_v17 = vpop.f32.mrf.mxu0 }
 0x231   : > { %v19133_v44 = vadd.f32 %v15608_v25, %v18987_v10  ;;  %v17225_v10 = vld [vmem:[%s21350_s2 + $0x110] sm:$0xff]  }
 0x232   : > { %v19130_v36 = vpop.f32.mrf.mxu1  ;;  %v15610_v58 = vpop.f32.mrf.mxu0  ;;  %16001 = vmatpush3.bf16.msra.mxu1 %v17225_v10 }
 0x233   : > { %21361 = vst [vmem:[#allocation11_spill] sm:$0xff] %v19133_v44  ;;  %v15611_v4 = vadd.f32 %v15610_v58, %v15609_v17 }
 0x234   : > { %v19135_v31 = vpop.f32.mrf.mxu1  ;;  %v15612_v8 = vpop.f32.mrf.mxu0 }
 0x235   : > { %v19140_v51 = vadd.f32 %v15611_v4, %v18996_v38 }
 0x236   : > { %v19137_v22 = vpop.f32.mrf.mxu1  ;;  %v15613_v50 = vpop.f32.mrf.mxu0 }
 0x237   : > { %21362 = vst [vmem:[#allocation12_spill] sm:$0xff] %v19140_v51  ;;  %v15614_v43 = vadd.f32 %v15613_v50, %v15612_v8 }
 0x238   : > { %v19145_v1 = vpop.f32.mrf.mxu1  ;;  %v15615_v25 = vpop.f32.mrf.mxu0 }
 0x239   : > { %v19153_v38 = vadd.f32 %v15614_v43, %v19009_v47 }
 0x23a   : > { %v19150_v17 = vpop.f32.mrf.mxu1  ;;  %v15616_v58 = vpop.f32.mrf.mxu0 }
 0x23b   : > { %21363 = vst [vmem:[#allocation13_spill] sm:$0xff] %v19153_v38  ;;  %v15617_v21 = vadd.f32 %v15616_v58, %v15615_v25 }
 0x23c   : > { %v19155_v4 = vpop.f32.mrf.mxu1  ;;  %v15618_v32 = vpop.f32.mrf.mxu0 }
 0x23d   : > { %v19160_v44 = vadd.f32 %v15617_v21, %v19015_v13 }
 0x23e   : > { %v19157_v51 = vpop.f32.mrf.mxu1  ;;  %v15619_v30 = vpop.f32.mrf.mxu0 }
 0x23f   : > { %21364 = vst [vmem:[#allocation14_spill] sm:$0xff] %v19160_v44  ;;  %v15620_v12 = vadd.f32 %v15619_v30, %v15618_v32  ;;  %v17234_v32 = vld [vmem:[%s21350_s2 + $0x148] sm:$0xff]  }
 0x240   : > { %v19162_v8 = vpop.f32.mrf.mxu1  ;;  %v15621_v50 = vpop.f32.mrf.mxu0  ;;  %16002 = vmatprep.subr.bf16.mxu1 %v17234_v32 }
 0x241   : > { %v19167_v47 = vadd.f32 %v15620_v12, %v19021_v63  ;;  %v17239_v63 = vld [vmem:[%s21350_s2 + $0x108] sm:$0xff]   ;;  %v15654_v12 = vadd.f32 %v19061_v40, %v19053_v59  ;;  %v17242_v59 = vld [vmem:[%s21350_s2 + $0x1f8] sm:$0xff]  }
 0x242   : > { %v19164_v14 = vpop.f32.mrf.mxu1  ;;  %v15622_v10 = vpop.f32.mrf.mxu0  ;;  %16003 = vmatpush3.bf16.msra.mxu1 %v17239_v63  ;;  %v15666_v63 = vadd.f32 %v19101_v9, %v19096_v24  ;;  %16102 = vmatprep.subr.bf16.mxu0 %v17242_v59  ;;  %v15669_v24 = vadd.f32 %v19111_v35, %v19103_v28  ;;  %v17252_v28 = vld [vmem:[%s21350_s2 + $0x140] sm:$0xff]   ;;  %v15678_v59 = vadd.f32 %v19135_v31, %v19130_v36 }
 0x243   : > { %21365 = vst [vmem:[#allocation15_spill] sm:$0xff] %v19167_v47  ;;  %v15623_v25 = vadd.f32 %v15622_v10, %v15621_v50  ;;  %v4318_v47 = vadd.f32 %v15654_v12, %v18918_v27  ;;  %16004 = vmatprep.subr.bf16.mxu1 %v17252_v28 }
 0x244   : > { %v19169_v43 = vpop.f32.mrf.mxu1  ;;  %v19171_v58 = vpop.f32.mrf.mxu0  ;;  %v4334_v9 = vadd.f32 %v15666_v63, %v18979_v16  ;;  %v17258_v16 = vld [vmem:[%s21350_s2 + $0x100] sm:$0xff]  }
 0x245   : > { %21366 = vst [vmem:[#allocation16_spill] sm:$0xff] %v19171_v58  ;;  %v19176_v13 = vadd.f32 %v15623_v25, %v19027_v34 }
 0x246   : > { %v19173_v38 = vpop.f32.mrf.mxu1  ;;  %v19181_v21 = vpop.f32.mrf.mxu0  ;;  %16005 = vmatpush3.bf16.msra.mxu1 %v17258_v16 }
 0x247   : > { %21367 = vst [vmem:[#allocation17_spill] sm:$0xff] %v19176_v13  ;;  %21368 = vst [vmem:[#allocation18_spill] sm:$0xff] %v19181_v21  ;;  %v15657_v13 = vadd.f32 %v19074_v57, %v19069_v42 }
 0x248   : > { %v19183_v30 = vpop.f32.mrf.mxu1  ;;  %v19190_v50 = vpop.f32.mrf.mxu0 }
 0x249   : > { %21369 = vst [vmem:[#allocation19_spill] sm:$0xff] %v19190_v50  ;;  %v4321_v42 = vadd.f32 %v15657_v13, %v18934_v3 }
 0x24a   : > { %v19192_v34 = vpop.f32.mrf.mxu1  ;;  %v19194_v10 = vpop.f32.mrf.mxu0 }
 0x24b   : > { %21370 = vst [vmem:[#allocation20_spill] sm:$0xff] %v19194_v10 }
 0x24c   : > { %v19196_v25 = vpop.f32.mrf.mxu1  ;;  %v16728_v44 = vpop.f32.mrf.mxu0 }
 0x24d   : > { %v4479_v58 = vadd.f32 %v16728_v44, %v4318_v47  ;;  %v15660_v44 = vadd.f32 %v19081_v2, %v19076_v45  ;;  %v15663_v45 = vadd.f32 %v19094_v15, %v19089_v60 }
 0x24e   : > { %v19201_v21 = vpop.f32.mrf.mxu1  ;;  %v4470_v40 = vpop.f32.mrf.mxu0 }
 0x24f   : > { %v4599_v10 = vmax.f32 %v4479_v58, 0.0  ;;  %v4471_v50 = vadd.f32 %v4470_v40, %v19051_v20 }
 0x250   : > { %v19206_v32 = vpop.f32.mrf.mxu1  ;;  %v16729_v27 = vpop.f32.mrf.mxu0 }
 0x251   : > { %4632 = vst.msk [vmem:[#allocation3 + $0x31] sm:$0xff] %vm309_vm2, %v4599_v10  ;;  %v4597_v47 = vmax.f32 %v4471_v50, 0.0  ;;  %v4482_v12 = vadd.f32 %v16729_v27, %v4321_v42  ;;  %v4326_v10 = vadd.f32 %v15660_v44, %v18952_v23  ;;  %v15672_v23 = vadd.f32 %v19121_v5, %v19116_v11 }
 0x252   : > { %v19212_v57 = vpop.f32.mrf.mxu1  ;;  %v4473_v26 = vpop.f32.mrf.mxu0  ;;  %v4329_v27 = vadd.f32 %v15663_v45, %v18965_v41  ;;  %v15675_v11 = vadd.f32 %v19128_v62, %v19123_v19  ;;  %v15681_v5 = vadd.f32 %v19145_v1, %v19137_v22 }
 0x253   : > { %4630 = vst.msk [vmem:[#allocation3 + $0x19] sm:$0xff] %vm309_vm2, %v4597_v47  ;;  %v4600_v3 = vmax.f32 %v4482_v12, 0.0  ;;  %v4474_v20 = vadd.f32 %v4473_v26, %v19059_v37  ;;  %v4337_v26 = vadd.f32 %v15669_v24, %v18984_v46 }
 0x254   : > { %v19217_v29 = vpop.f32.mrf.mxu1  ;;  %v16732_v2 = vpop.f32.mrf.mxu0 }
 0x255   : > { %4633 = vst.msk [vmem:[#allocation3 + $0x39] sm:$0xff] %vm309_vm2, %v4600_v3  ;;  %v4598_v13 = vmax.f32 %v4474_v20, 0.0  ;;  %v4495_v50 = vadd.f32 %v16732_v2, %v4334_v9  ;;  %v4350_v2 = vadd.f32 %v15678_v59, %v19012_v54 }
 0x256   : > { %v19226_v58 = vpop.f32.mrf.mxu1  ;;  %v4486_v35 = vpop.f32.mrf.mxu0 }
 0x257   : > { %4631 = vst.msk [vmem:[#allocation3 + $0x21] sm:$0xff] %vm309_vm2, %v4598_v13  ;;  %v4603_v60 = vmax.f32 %v4495_v50, 0.0  ;;  %v4487_v15 = vadd.f32 %v4486_v35, %v4326_v10  ;;  %v4342_v50 = vadd.f32 %v15672_v23, %v18993_v39 }
 0x258   : > { %v19233_v37 = vpop.f32.mrf.mxu1  ;;  %v4666_v40 = vld [vmem:[#allocation3 + $0x30] sm:$0xff]  ;;  %v16733_v42 = vpop.f32.mrf.mxu0 }
 0x259   : > { %v4859_v63 = vld [vmem:[#allocation3 + $0x31] sm:$0xff]  ;;  %v14722_v47 = vpack.c.bf16 %v4666_v40, %v4666_v40  ;;  %4636 = vst.msk [vmem:[#allocation3 + $0x61] sm:$0xff] %vm309_vm2, %v4603_v60  ;;  %v4601_v46 = vmax.f32 %v4487_v15, 0.0  ;;  %v4498_v24 = vadd.f32 %v16733_v42, %v4337_v26 }
 0x25a   : > { %v19245_v44 = vpop.f32.mrf.mxu1  ;;  %v14754_v12 = vpack.c.bf16 %v4859_v63, %v4859_v63  ;;  %v4664_v36 = vld [vmem:[#allocation3 + $0x18] sm:$0xff]  ;;  %v4489_v3 = vpop.f32.mrf.mxu0  ;;  %v4353_v63 = vadd.f32 %v15681_v5, %v19018_v56 }
 0x25b   : > { %v4857_v31 = vld [vmem:[#allocation3 + $0x19] sm:$0xff]  ;;  %4827 = vst.msk [vmem:[#allocation4 + $0x90] sm:$0xf] %vm4822_vm5, %v14722_v47  ;;  %5401 = vst.msk [vmem:[#allocation4 + $0x54] sm:$0xf] %vm4822_vm5, %v14722_v47  ;;  %v14720_v41 = vpack.c.bf16 %v4664_v36, %v4664_v36  ;;  %v4604_v62 = vmax.f32 %v4498_v24, 0.0  ;;  %v4490_v22 = vadd.f32 %v4489_v3, %v4329_v27  ;;  %v4345_v27 = vadd.f32 %v15675_v11, %v19006_v49 }
 0x25c   : > { %v19252_v20 = vpop.f32.mrf.mxu1  ;;  %5019 = vst.msk [vmem:[#allocation4 + $0x94] sm:$0xf] %vm4822_vm5, %v14754_v12  ;;  %5593 = vst.msk [vmem:[#allocation4 + $0x58] sm:$0xf] %vm4822_vm5, %v14754_v12  ;;  %v14752_v19 = vpack.c.bf16 %v4857_v31, %v4857_v31  ;;  %v4667_v1 = vld [vmem:[#allocation3 + $0x38] sm:$0xff]  ;;  %v16736_v13 = vpop.f32.mrf.mxu0  ;;  %v15684_v24 = vadd.f32 %v19155_v4, %v19150_v17  ;;  %v15690_v11 = vadd.f32 %v19169_v43, %v19164_v14 }
 0x25d   : > { %5976 = vst.msk [vmem:[#allocation4 + $0x18] sm:$0xf] %vm4822_vm5, %v14722_v47  ;;  %6168 = vst.msk [vmem:[#allocation4 + $0x1c] sm:$0xf] %vm4822_vm5, %v14754_v12  ;;  %v4860_v9 = vld [vmem:[#allocation3 + $0x39] sm:$0xff]  ;;  %v14723_v28 = vpack.c.bf16 %v4667_v1, %v4667_v1  ;;  %v4602_v54 = vmax.f32 %v4490_v22, 0.0  ;;  %v4511_v59 = vadd.f32 %v16736_v13, %v4350_v2 }
 0x25e   : > { %4634 = vst.msk [vmem:[#allocation3 + $0x49] sm:$0xff] %vm309_vm2, %v4601_v46  ;;  %v5051_v45 = vld [vmem:[#allocation3 + $0x32] sm:$0xff]  ;;  %v19263_v10 = vpop.f32.mrf.mxu1  ;;  %v14755_v35 = vpack.c.bf16 %v4860_v9, %v4860_v9  ;;  %v5052_v16 = vld [vmem:[#allocation3 + $0x3a] sm:$0xff]  ;;  %4637 = vst.msk [vmem:[#allocation3 + $0x69] sm:$0xff] %vm309_vm2, %v4604_v62  ;;  %v4502_v40 = vpop.f32.mrf.mxu0  ;;  %v15693_v62 = vadd.f32 %v19183_v30, %v19173_v38 }
 0x25f   : > { %4825 = vst.msk [vmem:[#allocation4 + $0x48] sm:$0xf] %vm4822_vm5, %v14720_v41  ;;  %5017 = vst.msk [vmem:[#allocation4 + $0x4c] sm:$0xf] %vm4822_vm5, %v14752_v19  ;;  %v14786_v60 = vpack.c.bf16 %v5051_v45, %v5051_v45  ;;  %v14787_v15 = vpack.c.bf16 %v5052_v16, %v5052_v16  ;;  %v4665_v26 = vld [vmem:[#allocation3 + $0x20] sm:$0xff]  ;;  %v4503_v46 = vadd.f32 %v4502_v40, %v4342_v50  ;;  %v4607_v3 = vmax.f32 %v4511_v59, 0.0 }
 0x260   : > { %5399 = vst.msk [vmem:[#allocation4 + $0xc] sm:$0xf] %vm4822_vm5, %v14720_v41  ;;  %5591 = vst.msk [vmem:[#allocation4 + $0x10] sm:$0xf] %vm4822_vm5, %v14752_v19  ;;  %v4858_v39 = vld [vmem:[#allocation3 + $0x21] sm:$0xff]  ;;  %v19271_v42 = vpop.f32.mrf.mxu1  ;;  %v14721_v56 = vpack.c.bf16 %v4665_v26, %v4665_v26  ;;  %v16737_v41 = vpop.f32.mrf.mxu0  ;;  %v19315_v50 = vadd.f32 %v19162_v8, %v19157_v51 }
 0x261   : > { %v5049_v23 = vld [vmem:[#allocation3 + $0x1a] sm:$0xff]  ;;  %4828 = vst.msk [vmem:[#allocation4 + $0xb4] sm:$0xf] %vm4822_vm5, %v14723_v28  ;;  %5020 = vst.msk [vmem:[#allocation4 + $0xb8] sm:$0xf] %vm4822_vm5, %v14755_v35  ;;  %v14753_v49 = vpack.c.bf16 %v4858_v39, %v4858_v39  ;;  %v5050_v47 = vld [vmem:[#allocation3 + $0x22] sm:$0xff]  ;;  %v4514_v43 = vadd.f32 %v16737_v41, %v4353_v63 }
 0x262   : > { %5211 = vst.msk [vmem:[#allocation4 + $0x98] sm:$0xf] %vm4822_vm5, %v14786_v60  ;;  %5402 = vst.msk [vmem:[#allocation4 + $0x78] sm:$0xf] %vm4822_vm5, %v14723_v28  ;;  %v14784_v12 = vpack.c.bf16 %v5049_v23, %v5049_v23  ;;  %v14785_v5 = vpack.c.bf16 %v5050_v47, %v5050_v47  ;;  %v4670_v36 = vld [vmem:[#allocation3 + $0x60] sm:$0xff]  ;;  %v19291_v19 = vpop.f32.mrf.mxu1  ;;  %v4605_v4 = vmax.f32 %v4503_v46, 0.0  ;;  %v4505_v9 = vpop.f32.mrf.mxu0 }
 0x263   : > { %5594 = vst.msk [vmem:[#allocation4 + $0x7c] sm:$0xf] %vm4822_vm5, %v14755_v35  ;;  %5785 = vst.msk [vmem:[#allocation4 + $0x5c] sm:$0xf] %vm4822_vm5, %v14786_v60  ;;  %v4863_v31 = vld [vmem:[#allocation3 + $0x61] sm:$0xff]  ;;  %v14726_v14 = vpack.c.bf16 %v4670_v36, %v4670_v36  ;;  %v4608_v2 = vmax.f32 %v4514_v43, 0.0  ;;  %v4506_v13 = vadd.f32 %v4505_v9, %v4345_v27  ;;  %v19343_v36 = vadd.f32 %v19196_v25, %v19192_v34 }
 0x264   : > { %5977 = vst.msk [vmem:[#allocation4 + $0x3c] sm:$0xf] %vm4822_vm5, %v14723_v28  ;;  %6169 = vst.msk [vmem:[#allocation4 + $0x40] sm:$0xf] %vm4822_vm5, %v14755_v35  ;;  %v14758_v17 = vpack.c.bf16 %v4863_v31, %v4863_v31  ;;  %v19304_v45 = vpop.f32.mrf.mxu1  ;;  %v15702_v31 = vadd.f32 %v19217_v29, %v19212_v57  ;;  %v19355_v34 = vld [vmem:[%s21350_s2 + $0x1b8] sm:$0xff]  }
 0x265   : > { %6360 = vst.msk [vmem:[#allocation4 + $0x20] sm:$0xf] %vm4822_vm5, %v14786_v60  ;;  %5212 = vst.msk [vmem:[#allocation4 + $0xbc] sm:$0xf] %vm4822_vm5, %v14787_v15  ;;  %v4668_v22 = vld [vmem:[#allocation3 + $0x48] sm:$0xff]  ;;  %v4366_v60 = vadd.f32 %v15690_v11, %v19042_v18 }
 0x266   : > { %4635 = vst.msk [vmem:[#allocation3 + $0x51] sm:$0xff] %vm309_vm2, %v4602_v54  ;;  %v4861_v1 = vld [vmem:[#allocation3 + $0x49] sm:$0xff]  ;;  %4640 = vst.msk [vmem:[#allocation3 + $0x91] sm:$0xff] %vm309_vm2, %v4607_v3  ;;  %v14724_v38 = vpack.c.bf16 %v4668_v22, %v4668_v22  ;;  %v16740_v54 = vpop.f32.mrf.mxu0  ;;  %v19319_v26 = vpop.f32.mrf.mxu1  ;;  %v17163_v9 = vld [vmem:[#allocation4 + $0x8] ss:$36 sps:$4 sm:$0xff]  }
 0x267   : > { %5786 = vst.msk [vmem:[#allocation4 + $0x80] sm:$0xf] %vm4822_vm5, %v14787_v15  ;;  %6361 = vst.msk [vmem:[#allocation4 + $0x44] sm:$0xf] %vm4822_vm5, %v14787_v15  ;;  %v14756_v30 = vpack.c.bf16 %v4861_v1, %v4861_v1  ;;  %v4671_v28 = vld [vmem:[#allocation3 + $0x68] sm:$0xff]  ;;  %v4358_v15 = vadd.f32 %v15684_v24, %v19024_v7  ;;  %v4606_v7 = vmax.f32 %v4506_v13, 0.0  ;;  %v4527_v27 = vadd.f32 %v16740_v54, %v4366_v60 }
 0x268   : > { %4826 = vst.msk [vmem:[#allocation4 + $0x6c] sm:$0xf] %vm4822_vm5, %v14721_v56  ;;  %5018 = vst.msk [vmem:[#allocation4 + $0x70] sm:$0xf] %vm4822_vm5, %v14753_v49  ;;  %v4864_v35 = vld [vmem:[#allocation3 + $0x69] sm:$0xff]  ;;  %v14727_v51 = vpack.c.bf16 %v4671_v28, %v4671_v28  ;;  %v19329_v47 = vpop.f32.mrf.mxu1  ;;  %v4361_v1 = vadd.f32 %v19315_v50, %v19036_v48 }
 0x269   : > { %5209 = vst.msk [vmem:[#allocation4 + $0x50] sm:$0xf] %vm4822_vm5, %v14784_v12  ;;  %5400 = vst.msk [vmem:[#allocation4 + $0x30] sm:$0xf] %vm4822_vm5, %v14721_v56  ;;  %v5055_v16 = vld [vmem:[#allocation3 + $0x62] sm:$0xff]  ;;  %v14759_v8 = vpack.c.bf16 %v4864_v35, %v4864_v35  ;;  %v5056_v18 = vld [vmem:[#allocation3 + $0x6a] sm:$0xff]  ;;  %v4518_v56 = vpop.f32.mrf.mxu0 }
 0x26a   : > { %5592 = vst.msk [vmem:[#allocation4 + $0x34] sm:$0xf] %vm4822_vm5, %v14753_v49  ;;  %5783 = vst.msk [vmem:[#allocation4 + $0x14] sm:$0xf] %vm4822_vm5, %v14784_v12  ;;  %v14790_v39 = vpack.c.bf16 %v5055_v16, %v5055_v16  ;;  %v14791_v23 = vpack.c.bf16 %v5056_v18, %v5056_v18  ;;  %v4369_v49 = vadd.f32 %v15693_v62, %v19048_v0  ;;  %v4611_v41 = vmax.f32 %v4527_v27, 0.0  ;;  %v19350_v43 = vpop.f32.mrf.mxu1  ;;  %v19411_v27 = vld [vmem:[#allocation4 + $0xb4] sm:$0xff] }
 0x26b   : > { %5210 = vst.msk [vmem:[#allocation4 + $0x74] sm:$0xf] %vm4822_vm5, %v14785_v5  ;;  %5784 = vst.msk [vmem:[#allocation4 + $0x38] sm:$0xf] %vm4822_vm5, %v14785_v5  ;;  %v4519_v11 = vadd.f32 %v4518_v56, %v4358_v15  ;;  %v6402_v5 = vld [vmem:[#allocation4 + $0x48] sm:$0xff] }
 0x26c   : > { %4831 = vst.msk [vmem:[#allocation4 + $0x120] sm:$0xf] %vm4822_vm5, %v14726_v14  ;;  %5023 = vst.msk [vmem:[#allocation4 + $0x124] sm:$0xf] %vm4822_vm5, %v14758_v17  ;;  %v17166_v62 = vld [vmem:[#allocation4 + $0x94] ss:$36 sps:$4 sm:$0xff]  }
 0x26d   : > { %5405 = vst.msk [vmem:[#allocation4 + $0xe4] sm:$0xf] %vm4822_vm5, %v14726_v14  ;;  %5597 = vst.msk [vmem:[#allocation4 + $0xe8] sm:$0xf] %vm4822_vm5, %v14758_v17  ;;  %v4669_v59 = vld [vmem:[#allocation3 + $0x50] sm:$0xff]  ;;  %v4609_v57 = vmax.f32 %v4519_v11, 0.0 }
 0x26e   : > { %5980 = vst.msk [vmem:[#allocation4 + $0xa8] sm:$0xf] %vm4822_vm5, %v14726_v14  ;;  %6172 = vst.msk [vmem:[#allocation4 + $0xac] sm:$0xf] %vm4822_vm5, %v14758_v17  ;;  %v4862_v40 = vld [vmem:[#allocation3 + $0x51] sm:$0xff]  ;;  %v14725_v0 = vpack.c.bf16 %v4669_v59, %v4669_v59  ;;  %v16741_v14 = vpop.f32.mrf.mxu0 }
 0x26f   : > { %4638 = vst.msk [vmem:[#allocation3 + $0x79] sm:$0xff] %vm309_vm2, %v4605_v4  ;;  %4641 = vst.msk [vmem:[#allocation3 + $0x99] sm:$0xff] %vm309_vm2, %v4608_v2  ;;  %v5053_v63 = vld [vmem:[#allocation3 + $0x4a] sm:$0xff]  ;;  %v14757_v12 = vpack.c.bf16 %v4862_v40, %v4862_v40  ;;  %v5054_v46 = vld [vmem:[#allocation3 + $0x52] sm:$0xff]  ;;  %v4530_v22 = vadd.f32 %v16741_v14, %v4369_v49 }
 0x270   : > { %4829 = vst.msk [vmem:[#allocation4 + $0xd8] sm:$0xf] %vm4822_vm5, %v14724_v38  ;;  %5021 = vst.msk [vmem:[#allocation4 + $0xdc] sm:$0xf] %vm4822_vm5, %v14756_v30  ;;  %v14788_v24 = vpack.c.bf16 %v5053_v63, %v5053_v63  ;;  %v14789_v3 = vpack.c.bf16 %v5054_v46, %v5054_v46  ;;  %v6407_v17 = vld [vmem:[#allocation4 + $0x6c] sm:$0xff]  ;;  %v4674_v29 = vld [vmem:[#allocation3 + $0x90] sm:$0xff]  ;;  %v4521_v16 = vpop.f32.mrf.mxu0 }
 0x271   : > { %5403 = vst.msk [vmem:[#allocation4 + $0x9c] sm:$0xf] %vm4822_vm5, %v14724_v38  ;;  %5595 = vst.msk [vmem:[#allocation4 + $0xa0] sm:$0xf] %vm4822_vm5, %v14756_v30  ;;  %v17161_v4 = vld [vmem:[#allocation4 + $0x4c] ss:$36 sps:$4 sm:$0xff]   ;;  %v14730_v2 = vpack.c.bf16 %v4674_v29, %v4674_v29  ;;  %v4522_v54 = vadd.f32 %v4521_v16, %v4361_v1  ;;  %v15714_v29 = vadd.f32 %v19304_v45, %v19291_v19 }
 0x272   : > { %5978 = vst.msk [vmem:[#allocation4 + $0x60] sm:$0xf] %vm4822_vm5, %v14724_v38  ;;  %6170 = vst.msk [vmem:[#allocation4 + $0x64] sm:$0xf] %vm4822_vm5, %v14756_v30  ;;  %v4867_v25 = vld [vmem:[#allocation3 + $0x91] sm:$0xff]  ;;  %v13713_v38 = vcombine.low %v6402_v5, %v6407_v17  ;;  %v15705_v30 = vadd.f32 %v19233_v37, %v19226_v58  ;;  %7904 = vmatprep.mubr.bf16.mxu1 %v17161_v4  ;;  %v19378_v58 = vpop.f32.mrf.mxu1  ;;  %v4612_v60 = vmax.f32 %v4530_v22, 0.0 }
 0x273   : > { %4832 = vst.msk [vmem:[#allocation4 + $0x144] sm:$0xf] %vm4822_vm5, %v14727_v51  ;;  %5024 = vst.msk [vmem:[#allocation4 + $0x148] sm:$0xf] %vm4822_vm5, %v14759_v8  ;;  %v14762_v13 = vpack.c.bf16 %v4867_v25, %v4867_v25  ;;  %v17165_v48 = vld [vmem:[#allocation4 + $0xc] ss:$36 sps:$4 sm:$0xff]  }
 0x274   : > { %5215 = vst.msk [vmem:[#allocation4 + $0x128] sm:$0xf] %vm4822_vm5, %v14790_v39  ;;  %5406 = vst.msk [vmem:[#allocation4 + $0x108] sm:$0xf] %vm4822_vm5, %v14727_v51  ;;  %7905 = vmatmul.mubr.bf16.gmra.mxu1 %v13713_v38  ;;  %v17168_v15 = vld [vmem:[#allocation4 + $0x54] ss:$36 sps:$4 sm:$0xff]   ;;  %8057 = vmatprep.mubr.bf16.mxu0 %v17165_v48  ;;  %v4385_v5 = vadd.f32 %v15705_v30, %v19092_v6 }
 0x275   : > { %5598 = vst.msk [vmem:[#allocation4 + $0x10c] sm:$0xf] %vm4822_vm5, %v14759_v8  ;;  %5789 = vst.msk [vmem:[#allocation4 + $0xec] sm:$0xf] %vm4822_vm5, %v14790_v39  ;;  %7912 = vmatprep.mubr.bf16.mxu1 %v17166_v62  ;;  %v4610_v63 = vmax.f32 %v4522_v54, 0.0  ;;  %8058 = vmatmul.mubr.bf16.vlgmr.msra.gmra.mxu0 %v17163_v9  ;;  %v19416_v56 = vld [vmem:[%s21350_s2 + $0x1e8] sm:$0xff]   ;;  %v15708_v62 = vadd.f32 %v19252_v20, %v19245_v44 }
 0x276   : > { %5981 = vst.msk [vmem:[#allocation4 + $0xcc] sm:$0xf] %vm4822_vm5, %v14727_v51  ;;  %6173 = vst.msk [vmem:[#allocation4 + $0xd0] sm:$0xf] %vm4822_vm5, %v14759_v8  ;;  %v4672_v28 = vld [vmem:[#allocation3 + $0x78] sm:$0xff]  ;;  %v17248_v51 = vld [vmem:[%s21350_s2 + $0x1f0] sm:$0xff]   ;;  %8065 = vmatprep.mubr.bf16.mxu0 %v17168_v15  ;;  %16103 = vmatpush3.bf16.msra.mxu0 %v19355_v34 }
 0x277   : > { %6364 = vst.msk [vmem:[#allocation4 + $0xb0] sm:$0xf] %vm4822_vm5, %v14790_v39  ;;  %5216 = vst.msk [vmem:[#allocation4 + $0x14c] sm:$0xf] %vm4822_vm5, %v14791_v23  ;;  %v4865_v35 = vld [vmem:[#allocation3 + $0x79] sm:$0xff]  ;;  %v14728_v37 = vpack.c.bf16 %v4672_v28, %v4672_v28  ;;  %v4382_v39 = vadd.f32 %v15702_v31, %v19079_v53  ;;  %v19434_v17 = vld [vmem:[#allocation4 + $0x74] sm:$0xff]  ;;  %16104 = vmatprep.subr.bf16.mxu0 %v17248_v51 }
 0x278   : > { %4639 = vst.msk [vmem:[#allocation3 + $0x81] sm:$0xff] %vm309_vm2, %v4606_v7  ;;  %4644 = vst.msk [vmem:[#allocation3 + $0xc1] sm:$0xff] %vm309_vm2, %v4611_v41  ;;  %v14760_v50 = vpack.c.bf16 %v4865_v35, %v4865_v35  ;;  %v4868_v8 = vld [vmem:[#allocation3 + $0x99] sm:$0xff]  ;;  %v19397_v7 = vpop.f32.mrf.mxu1 }
 0x279   : > { %5790 = vst.msk [vmem:[#allocation4 + $0x110] sm:$0xf] %vm4822_vm5, %v14791_v23  ;;  %6365 = vst.msk [vmem:[#allocation4 + $0xd4] sm:$0xf] %vm4822_vm5, %v14791_v23  ;;  %v5059_v18 = vld [vmem:[#allocation3 + $0x92] sm:$0xff]  ;;  %v19402_v23 = vld [vmem:[%s21350_s2 + $0x1b0] sm:$0xff]   ;;  %v14763_v53 = vpack.c.bf16 %v4868_v8, %v4868_v8 }
 0x27a   : > { %4830 = vst.msk [vmem:[#allocation4 + $0xfc] sm:$0xf] %vm4822_vm5, %v14725_v0  ;;  %5022 = vst.msk [vmem:[#allocation4 + $0x100] sm:$0xf] %vm4822_vm5, %v14757_v12  ;;  %v5060_v59 = vld [vmem:[#allocation3 + $0x9a] sm:$0xff]  ;;  %v14794_v40 = vpack.c.bf16 %v5059_v18, %v5059_v18  ;;  %16105 = vmatpush3.bf16.msra.mxu0 %v19402_v23 }
 0x27b   : > { %5213 = vst.msk [vmem:[#allocation4 + $0xe0] sm:$0xf] %vm4822_vm5, %v14788_v24  ;;  %5404 = vst.msk [vmem:[#allocation4 + $0xc0] sm:$0xf] %vm4822_vm5, %v14725_v0  ;;  %v14795_v49 = vpack.c.bf16 %v5060_v59, %v5060_v59  ;;  %v19432_v14 = vld [vmem:[#allocation4 + $0x50] sm:$0xff]  ;;  %v19460_v30 = vld [vmem:[%s21350_s2 + $0x1a8] sm:$0xff]   ;;  %16106 = vmatprep.subr.bf16.mxu0 %v19416_v56 }
 0x27c   : > { %5596 = vst.msk [vmem:[#allocation4 + $0xc4] sm:$0xf] %vm4822_vm5, %v14757_v12  ;;  %5787 = vst.msk [vmem:[#allocation4 + $0xa4] sm:$0xf] %vm4822_vm5, %v14788_v24  ;;  %v13715_v48 = vcombine.low %v19432_v14, %v19434_v17 }
 0x27d   : > { %5979 = vst.msk [vmem:[#allocation4 + $0x84] sm:$0xf] %vm4822_vm5, %v14725_v0  ;;  %6171 = vst.msk [vmem:[#allocation4 + $0x88] sm:$0xf] %vm4822_vm5, %v14757_v12 }
 0x27e   : > { %6362 = vst.msk [vmem:[#allocation4 + $0x68] sm:$0xf] %vm4822_vm5, %v14788_v24  ;;  %5214 = vst.msk [vmem:[#allocation4 + $0x104] sm:$0xf] %vm4822_vm5, %v14789_v3  ;;  %8066 = vmatmul.mubr.bf16.gmra.mxu0 %v13715_v48 }
 0x27f   : > { %5788 = vst.msk [vmem:[#allocation4 + $0xc8] sm:$0xf] %vm4822_vm5, %v14789_v3  ;;  %6363 = vst.msk [vmem:[#allocation4 + $0x8c] sm:$0xf] %vm4822_vm5, %v14789_v3  ;;  %v4673_v0 = vld [vmem:[#allocation3 + $0x80] sm:$0xff]  ;;  %16107 = vmatpush3.bf16.msra.mxu0 %v19460_v30  ;;  %v21374_v30 = vld [vmem:[#allocation8_spill] sm:$0xff] }
 0x280   : > { %9355 = vst.msk [vmem:[#allocation4 + $0x8] sm:$0xf] %vm4822_vm5, %v18931_v52  ;;  %9356 = vst.msk [vmem:[#allocation4 + $0x2c] sm:$0xf] %vm4822_vm5, %v18949_v61  ;;  %v19386_v52 = vadd.f32 %v19206_v32, %v19201_v21  ;;  %v4675_v61 = vld [vmem:[#allocation3 + $0x98] sm:$0xff]  ;;  %v16744_v21 = vpop.f32.mrf.mxu0  ;;  %v4374_v32 = vadd.f32 %v19343_v36, %v19056_v55  ;;  %v4866_v12 = vld [vmem:[#allocation3 + $0x81] sm:$0xff]  ;;  %v19419_v36 = vpop.f32.mrf.mxu1  ;;  %v14729_v6 = vpack.c.bf16 %v4673_v0, %v4673_v0 }
 0x281   : > { %4642 = vst.msk [vmem:[#allocation3 + $0xa9] sm:$0xff] %vm309_vm2, %v4609_v57  ;;  %v14731_v55 = vpack.c.bf16 %v4675_v61, %v4675_v61  ;;  %4645 = vst.msk [vmem:[#allocation3 + $0xc9] sm:$0xff] %vm309_vm2, %v4612_v60  ;;  %v5057_v46 = vld [vmem:[#allocation3 + $0x7a] sm:$0xff]  ;;  %v4543_v24 = vadd.f32 %v16744_v21, %v4382_v39  ;;  %v14761_v31 = vpack.c.bf16 %v4866_v12, %v4866_v12  ;;  %v5058_v3 = vld [vmem:[#allocation3 + $0x82] sm:$0xff] }
 0x282   : > { %4835 = vst.msk [vmem:[#allocation4 + $0x1b0] sm:$0xf] %vm4822_vm5, %v14730_v2  ;;  %5027 = vst.msk [vmem:[#allocation4 + $0x1b4] sm:$0xf] %vm4822_vm5, %v14762_v13  ;;  %v4534_v11 = vpop.f32.mrf.mxu0  ;;  %v14792_v41 = vpack.c.bf16 %v5057_v46, %v5057_v46  ;;  %v14793_v34 = vpack.c.bf16 %v5058_v3, %v5058_v3  ;;  %v6412_v57 = vld [vmem:[#allocation4 + $0x90] sm:$0xff]  ;;  %v19443_v1 = vpop.f32.mrf.mxu1  ;;  %v4377_v9 = vadd.f32 %v19386_v52, %v19072_v33  ;;  %v21371_v39 = vld [vmem:[#allocation9_spill] sm:$0xff] }
 0x283   : > { %5409 = vst.msk [vmem:[#allocation4 + $0x174] sm:$0xf] %vm4822_vm5, %v14730_v2  ;;  %5601 = vst.msk [vmem:[#allocation4 + $0x178] sm:$0xf] %vm4822_vm5, %v14762_v13  ;;  %v4535_v4 = vadd.f32 %v4534_v11, %v4374_v32  ;;  %v4615_v25 = vmax.f32 %v4543_v24, 0.0  ;;  %v4678_v44 = vld [vmem:[#allocation3 + $0xc0] sm:$0xff]  ;;  %v13722_v38 = vcombine.low %v6412_v57, %v19411_v27  ;;  %v15717_v33 = vadd.f32 %v19329_v47, %v19319_v26 }
 0x284   : > { %5984 = vst.msk [vmem:[#allocation4 + $0x138] sm:$0xf] %vm4822_vm5, %v14730_v2  ;;  %6176 = vst.msk [vmem:[#allocation4 + $0x13c] sm:$0xf] %vm4822_vm5, %v14762_v13  ;;  %v16745_v22 = vpop.f32.mrf.mxu0  ;;  %v4871_v20 = vld [vmem:[#allocation3 + $0xc1] sm:$0xff]  ;;  %v14734_v2 = vpack.c.bf16 %v4678_v44, %v4678_v44  ;;  %v17260_v26 = vld [vmem:[%s21350_s2 + $0x1e0] sm:$0xff]   ;;  %v19480_v47 = vadd.f32 %v19271_v42, %v19263_v10  ;;  %v4398_v21 = vadd.f32 %v15714_v29, %v21371_v39 }
 0x285   : > { %4833 = vst.msk [vmem:[#allocation4 + $0x168] sm:$0xf] %vm4822_vm5, %v14728_v37  ;;  %5025 = vst.msk [vmem:[#allocation4 + $0x16c] sm:$0xf] %vm4822_vm5, %v14760_v50  ;;  %v4613_v19 = vmax.f32 %v4535_v4, 0.0  ;;  %v4546_v45 = vadd.f32 %v16745_v22, %v4385_v5  ;;  %v14766_v13 = vpack.c.bf16 %v4871_v20, %v4871_v20  ;;  %7913 = vmatmul.mubr.bf16.gmra.mxu1 %v13722_v38  ;;  %v21372_v10 = vld [vmem:[#allocation7_spill] sm:$0xff]  ;;  %16108 = vmatprep.subr.bf16.mxu0 %v17260_v26 }
 0x286   : > { %5407 = vst.msk [vmem:[#allocation4 + $0x12c] sm:$0xf] %vm4822_vm5, %v14728_v37  ;;  %5599 = vst.msk [vmem:[#allocation4 + $0x130] sm:$0xf] %vm4822_vm5, %v14760_v50  ;;  %v4537_v16 = vpop.f32.mrf.mxu0  ;;  %v17173_v52 = vld [vmem:[#allocation4 + $0x9c] ss:$36 sps:$4 sm:$0xff]   ;;  %v4390_v42 = vadd.f32 %v15708_v62, %v21372_v10 }
 0x287   : > { %5982 = vst.msk [vmem:[#allocation4 + $0xf0] sm:$0xf] %vm4822_vm5, %v14728_v37  ;;  %6174 = vst.msk [vmem:[#allocation4 + $0xf4] sm:$0xf] %vm4822_vm5, %v14760_v50  ;;  %v17171_v37 = vld [vmem:[#allocation4 + $0xdc] ss:$36 sps:$4 sm:$0xff]   ;;  %v19470_v50 = vpop.f32.mrf.mxu1  ;;  %v4538_v51 = vadd.f32 %v4537_v16, %v4377_v9  ;;  %8073 = vmatprep.mubr.bf16.mxu0 %v17173_v52 }
 0x288   : > { %4836 = vst.msk [vmem:[#allocation4 + $0x1d4] sm:$0xf] %vm4822_vm5, %v14731_v55  ;;  %5028 = vst.msk [vmem:[#allocation4 + $0x1d8] sm:$0xf] %vm4822_vm5, %v14763_v53  ;;  %v4676_v28 = vld [vmem:[#allocation3 + $0xa8] sm:$0xff]  ;;  %v4616_v15 = vmax.f32 %v4546_v45, 0.0  ;;  %v16748_v32 = vpop.f32.mrf.mxu0  ;;  %7920 = vmatprep.mubr.bf16.mxu1 %v17171_v37  ;;  %v15726_v44 = vadd.f32 %v19470_v50, %v19443_v1 }
 0x289   : > { %5219 = vst.msk [vmem:[#allocation4 + $0x1b8] sm:$0xf] %vm4822_vm5, %v14794_v40  ;;  %5410 = vst.msk [vmem:[#allocation4 + $0x198] sm:$0xf] %vm4822_vm5, %v14731_v55  ;;  %v4869_v35 = vld [vmem:[#allocation3 + $0xa9] sm:$0xff]  ;;  %v14732_v60 = vpack.c.bf16 %v4676_v28, %v4676_v28  ;;  %v19490_v23 = vpop.f32.mrf.mxu1  ;;  %v4614_v27 = vmax.f32 %v4538_v51, 0.0  ;;  %v4559_v5 = vadd.f32 %v16748_v32, %v4398_v21 }
 0x28a   : > { %5602 = vst.msk [vmem:[#allocation4 + $0x19c] sm:$0xf] %vm4822_vm5, %v14763_v53  ;;  %5793 = vst.msk [vmem:[#allocation4 + $0x17c] sm:$0xf] %vm4822_vm5, %v14794_v40  ;;  %v14764_v54 = vpack.c.bf16 %v4869_v35, %v4869_v35  ;;  %v4679_v61 = vld [vmem:[#allocation3 + $0xc8] sm:$0xff]  ;;  %v19554_v28 = vld [vmem:[%s21350_s2 + $0x1d0] sm:$0xff]  }
 0x28b   : > { %5985 = vst.msk [vmem:[#allocation4 + $0x15c] sm:$0xf] %vm4822_vm5, %v14731_v55  ;;  %6177 = vst.msk [vmem:[#allocation4 + $0x160] sm:$0xf] %vm4822_vm5, %v14763_v53  ;;  %v4872_v8 = vld [vmem:[#allocation3 + $0xc9] sm:$0xff]  ;;  %v14735_v53 = vpack.c.bf16 %v4679_v61, %v4679_v61  ;;  %v4619_v57 = vmax.f32 %v4559_v5, 0.0 }
 0x28c   : > { %6368 = vst.msk [vmem:[#allocation4 + $0x140] sm:$0xf] %vm4822_vm5, %v14794_v40  ;;  %5220 = vst.msk [vmem:[#allocation4 + $0x1dc] sm:$0xf] %vm4822_vm5, %v14795_v49  ;;  %v5063_v18 = vld [vmem:[#allocation3 + $0xc2] sm:$0xff]  ;;  %v19495_v55 = vld [vmem:[%s21350_s2 + $0x1a0] sm:$0xff]   ;;  %v14767_v59 = vpack.c.bf16 %v4872_v8, %v4872_v8 }
 0x28d   : > { %4643 = vst.msk [vmem:[#allocation3 + $0xb1] sm:$0xff] %vm309_vm2, %v4610_v63  ;;  %4648 = vst.msk [vmem:[#allocation3 + $0xf1] sm:$0xff] %vm309_vm2, %v4615_v25  ;;  %v5064_v40 = vld [vmem:[#allocation3 + $0xca] sm:$0xff]  ;;  %v14798_v63 = vpack.c.bf16 %v5063_v18, %v5063_v18  ;;  %v15720_v25 = vadd.f32 %v19378_v58, %v19350_v43  ;;  %16109 = vmatpush3.bf16.msra.mxu0 %v19495_v55  ;;  %v17178_v61 = vld [vmem:[#allocation4 + $0xe4] ss:$36 sps:$4 sm:$0xff]  }
 0x28e   : > { %5794 = vst.msk [vmem:[#allocation4 + $0x1a0] sm:$0xf] %vm4822_vm5, %v14795_v49  ;;  %6369 = vst.msk [vmem:[#allocation4 + $0x164] sm:$0xf] %vm4822_vm5, %v14795_v49  ;;  %v19504_v56 = vld [vmem:[#allocation4 + $0xfc] sm:$0xff]  ;;  %v14799_v12 = vpack.c.bf16 %v5064_v40, %v5064_v40  ;;  %v21376_v18 = vld [vmem:[#allocation18_spill] sm:$0xff] }
 0x28f   : > { %4834 = vst.msk [vmem:[#allocation4 + $0x18c] sm:$0xf] %vm4822_vm5, %v14729_v6  ;;  %5026 = vst.msk [vmem:[#allocation4 + $0x190] sm:$0xf] %vm4822_vm5, %v14761_v31  ;;  %v19506_v49 = vld [vmem:[#allocation4 + $0xbc] sm:$0xff]  ;;  %v21378_v40 = vld [vmem:[#allocation11_spill] sm:$0xff] }
 0x290   : > { %5217 = vst.msk [vmem:[#allocation4 + $0x170] sm:$0xf] %vm4822_vm5, %v14792_v41  ;;  %5408 = vst.msk [vmem:[#allocation4 + $0x150] sm:$0xf] %vm4822_vm5, %v14729_v6  ;;  %v19511_v0 = vld [vmem:[%s21350_s2 + $0x1d8] sm:$0xff]  }
 0x291   : > { %5600 = vst.msk [vmem:[#allocation4 + $0x154] sm:$0xf] %vm4822_vm5, %v14761_v31  ;;  %5791 = vst.msk [vmem:[#allocation4 + $0x134] sm:$0xf] %vm4822_vm5, %v14792_v41  ;;  %v6422_v22 = vld [vmem:[#allocation4 + $0xd8] sm:$0xff]  ;;  %16110 = vmatprep.subr.bf16.mxu0 %v19511_v0 }
 0x292   : > { %5983 = vst.msk [vmem:[#allocation4 + $0x114] sm:$0xf] %vm4822_vm5, %v14729_v6  ;;  %6175 = vst.msk [vmem:[#allocation4 + $0x118] sm:$0xf] %vm4822_vm5, %v14761_v31  ;;  %v4550_v6 = vpop.f32.mrf.mxu0  ;;  %v21373_v31 = vld [vmem:[#allocation10_spill] sm:$0xff]  ;;  %v19537_v45 = vld [vmem:[%s21350_s2 + $0x198] sm:$0xff]  }
 0x293   : > { %6366 = vst.msk [vmem:[#allocation4 + $0xf8] sm:$0xf] %vm4822_vm5, %v14792_v41  ;;  %5218 = vst.msk [vmem:[#allocation4 + $0x194] sm:$0xf] %vm4822_vm5, %v14793_v34  ;;  %v4401_v3 = vadd.f32 %v15717_v33, %v21373_v31  ;;  %v15728_v41 = vpop.f32.mrf.mxu1  ;;  %v6413_v1 = vld [vmem:[#allocation4 + $0x98] sm:$0xff]  ;;  %16111 = vmatpush3.bf16.msra.mxu0 %v19537_v45 }
 0x294   : > { %5792 = vst.msk [vmem:[#allocation4 + $0x158] sm:$0xf] %vm4822_vm5, %v14793_v34  ;;  %6367 = vst.msk [vmem:[#allocation4 + $0x11c] sm:$0xf] %vm4822_vm5, %v14793_v34  ;;  %v4677_v46 = vld [vmem:[#allocation3 + $0xb0] sm:$0xff]  ;;  %v4551_v34 = vadd.f32 %v4550_v6, %v4390_v42  ;;  %v16749_v20 = vpop.f32.mrf.mxu0  ;;  %v15729_v37 = vadd.f32 %v15728_v41, %v19490_v23  ;;  %v21375_v8 = vld [vmem:[#allocation16_spill] sm:$0xff]  ;;  %v19579_v42 = vadd.f32 %v19419_v36, %v19397_v7  ;;  %16112 = vmatprep.subr.bf16.mxu0 %v19554_v28 }
 0x295   : > { %4646 = vst.msk [vmem:[#allocation3 + $0xd9] sm:$0xff] %vm309_vm2, %v4613_v19  ;;  %4649 = vst.msk [vmem:[#allocation3 + $0xf9] sm:$0xff] %vm309_vm2, %v4616_v15  ;;  %v4870_v24 = vld [vmem:[#allocation3 + $0xb1] sm:$0xff]  ;;  %v14733_v14 = vpack.c.bf16 %v4677_v46, %v4677_v46  ;;  %v19532_v19 = vpop.f32.mrf.mxu1  ;;  %v4562_v38 = vadd.f32 %v16749_v20, %v4401_v3  ;;  %v19569_v39 = vadd.f32 %v21376_v18, %v21375_v8  ;;  %v21382_v8 = vld [vmem:[#allocation19_spill] sm:$0xff] }
 0x296   : > { %4839 = vst.msk [vmem:[#allocation4 + $0x240] sm:$0xf] %vm4822_vm5, %v14734_v2  ;;  %5031 = vst.msk [vmem:[#allocation4 + $0x244] sm:$0xf] %vm4822_vm5, %v14766_v13  ;;  %v5061_v11 = vld [vmem:[#allocation3 + $0xaa] sm:$0xff]  ;;  %v14765_v17 = vpack.c.bf16 %v4870_v24, %v4870_v24  ;;  %v5062_v4 = vld [vmem:[#allocation3 + $0xb2] sm:$0xff]  ;;  %v4553_v50 = vpop.f32.mrf.mxu0 }
 0x297   : > { %5413 = vst.msk [vmem:[#allocation4 + $0x204] sm:$0xf] %vm4822_vm5, %v14734_v2  ;;  %5605 = vst.msk [vmem:[#allocation4 + $0x208] sm:$0xf] %vm4822_vm5, %v14766_v13  ;;  %v14796_v62 = vpack.c.bf16 %v5061_v11, %v5061_v11  ;;  %v14797_v29 = vpack.c.bf16 %v5062_v4, %v5062_v4  ;;  %v4682_v43 = vld [vmem:[#allocation3 + $0xf0] sm:$0xff]  ;;  %v4617_v9 = vmax.f32 %v4551_v34, 0.0  ;;  %v19562_v15 = vpop.f32.mrf.mxu1 }
 0x298   : > { %5988 = vst.msk [vmem:[#allocation4 + $0x1c8] sm:$0xf] %vm4822_vm5, %v14734_v2  ;;  %6180 = vst.msk [vmem:[#allocation4 + $0x1cc] sm:$0xf] %vm4822_vm5, %v14766_v13  ;;  %v4875_v58 = vld [vmem:[#allocation3 + $0xf1] sm:$0xff]  ;;  %v4393_v2 = vadd.f32 %v19480_v47, %v21374_v30  ;;  %v13731_v13 = vcombine.low %v6422_v22, %v19504_v56  ;;  %v14738_v35 = vpack.c.bf16 %v4682_v43, %v4682_v43  ;;  %v4620_v26 = vmax.f32 %v4562_v38, 0.0 }
 0x299   : > { %4837 = vst.msk [vmem:[#allocation4 + $0x1f8] sm:$0xf] %vm4822_vm5, %v14732_v60  ;;  %5029 = vst.msk [vmem:[#allocation4 + $0x1fc] sm:$0xf] %vm4822_vm5, %v14764_v54  ;;  %v14770_v33 = vpack.c.bf16 %v4875_v58, %v4875_v58  ;;  %v21377_v23 = vld [vmem:[#allocation13_spill] sm:$0xff]  ;;  %v19590_v56 = vld [vmem:[%s21350_s2 + $0x190] sm:$0xff]   ;;  %v15732_v45 = vadd.f32 %v19562_v15, %v19532_v19 }
 0x29a   : > { %5411 = vst.msk [vmem:[#allocation4 + $0x1bc] sm:$0xf] %vm4822_vm5, %v14732_v60  ;;  %5603 = vst.msk [vmem:[#allocation4 + $0x1c0] sm:$0xf] %vm4822_vm5, %v14764_v54  ;;  %v4554_v47 = vadd.f32 %v4553_v50, %v4393_v2  ;;  %7921 = vmatmul.mubr.bf16.gmra.mxu1 %v13731_v13  ;;  %v4414_v55 = vadd.f32 %v15726_v44, %v21377_v23  ;;  %v19599_v46 = vld [vmem:[#allocation4 + $0xe0] sm:$0xff]  ;;  %v21380_v30 = vld [vmem:[#allocation12_spill] sm:$0xff]  ;;  %16113 = vmatpush3.bf16.msra.mxu0 %v19590_v56 }
 0x29b   : > { %5986 = vst.msk [vmem:[#allocation4 + $0x180] sm:$0xf] %vm4822_vm5, %v14732_v60  ;;  %6178 = vst.msk [vmem:[#allocation4 + $0x184] sm:$0xf] %vm4822_vm5, %v14764_v54  ;;  %v13724_v60 = vcombine.low %v6413_v1, %v19506_v49  ;;  %v17176_v54 = vld [vmem:[#allocation4 + $0x124] ss:$36 sps:$4 sm:$0xff]   ;;  %v4409_v2 = vadd.f32 %v19579_v42, %v21380_v30 }
 0x29c   : > { %4840 = vst.msk [vmem:[#allocation4 + $0x264] sm:$0xf] %vm4822_vm5, %v14735_v53  ;;  %5032 = vst.msk [vmem:[#allocation4 + $0x268] sm:$0xf] %vm4822_vm5, %v14767_v59  ;;  %v4680_v16 = vld [vmem:[#allocation3 + $0xd8] sm:$0xff]  ;;  %7928 = vmatprep.mubr.bf16.mxu1 %v17176_v54  ;;  %v6432_v20 = vld [vmem:[#allocation4 + $0x120] sm:$0xff] }
 0x29d   : > { %5223 = vst.msk [vmem:[#allocation4 + $0x248] sm:$0xf] %vm4822_vm5, %v14798_v63  ;;  %5414 = vst.msk [vmem:[#allocation4 + $0x228] sm:$0xf] %vm4822_vm5, %v14735_v53  ;;  %v4873_v48 = vld [vmem:[#allocation3 + $0xd9] sm:$0xff]  ;;  %v14736_v51 = vpack.c.bf16 %v4680_v16, %v4680_v16  ;;  %8074 = vmatmul.mubr.bf16.gmra.mxu0 %v13724_v60  ;;  %v21381_v28 = vld [vmem:[#allocation5_spill] sm:$0xff] }
 0x29e   : > { %5606 = vst.msk [vmem:[#allocation4 + $0x22c] sm:$0xf] %vm4822_vm5, %v14767_v59  ;;  %5797 = vst.msk [vmem:[#allocation4 + $0x20c] sm:$0xf] %vm4822_vm5, %v14798_v63  ;;  %v14768_v52 = vpack.c.bf16 %v4873_v48, %v4873_v48  ;;  %v4683_v21 = vld [vmem:[#allocation3 + $0xf8] sm:$0xff]  ;;  %8081 = vmatprep.mubr.bf16.mxu0 %v17178_v61  ;;  %v21383_v18 = vld [vmem:[#allocation20_spill] sm:$0xff] }
 0x29f   : > { %5989 = vst.msk [vmem:[#allocation4 + $0x1ec] sm:$0xf] %vm4822_vm5, %v14735_v53  ;;  %6181 = vst.msk [vmem:[#allocation4 + $0x1f0] sm:$0xf] %vm4822_vm5, %v14767_v59  ;;  %v4876_v32 = vld [vmem:[#allocation3 + $0xf9] sm:$0xff]  ;;  %v16752_v53 = vpop.f32.mrf.mxu0  ;;  %v14739_v7 = vpack.c.bf16 %v4683_v21, %v4683_v21 }
 0x2a0   : > { %6372 = vst.msk [vmem:[#allocation4 + $0x1d0] sm:$0xf] %vm4822_vm5, %v14798_v63  ;;  %5224 = vst.msk [vmem:[#allocation4 + $0x26c] sm:$0xf] %vm4822_vm5, %v14799_v12  ;;  %v5067_v10 = vld [vmem:[#allocation3 + $0xf2] sm:$0xff]  ;;  %v4406_v63 = vadd.f32 %v15720_v25, %v21378_v40  ;;  %v14771_v36 = vpack.c.bf16 %v4876_v32, %v4876_v32  ;;  %v5068_v49 = vld [vmem:[#allocation3 + $0xfa] sm:$0xff]  ;;  %v4575_v3 = vadd.f32 %v16752_v53, %v4414_v55 }
 0x2a1   : > { %4647 = vst.msk [vmem:[#allocation3 + $0xe1] sm:$0xff] %vm309_vm2, %v4614_v27  ;;  %4652 = vst.msk [vmem:[#allocation3 + $0x121] sm:$0xff] %vm309_vm2, %v4619_v57  ;;  %v19582_v59 = vld [vmem:[#allocation4 + $0x144] sm:$0xff]  ;;  %v19585_v27 = vpop.f32.mrf.mxu1  ;;  %v14802_v0 = vpack.c.bf16 %v5067_v10, %v5067_v10  ;;  %v14803_v11 = vpack.c.bf16 %v5068_v49, %v5068_v49  ;;  %v4566_v41 = vpop.f32.mrf.mxu0  ;;  %v17181_v54 = vld [vmem:[#allocation4 + $0x16c] ss:$36 sps:$4 sm:$0xff]  }
 0x2a2   : > { %5798 = vst.msk [vmem:[#allocation4 + $0x230] sm:$0xf] %vm4822_vm5, %v14799_v12  ;;  %6373 = vst.msk [vmem:[#allocation4 + $0x1f4] sm:$0xf] %vm4822_vm5, %v14799_v12  ;;  %v4618_v12 = vmax.f32 %v4554_v47, 0.0  ;;  %v19601_v24 = vld [vmem:[#allocation4 + $0x104] sm:$0xff]  ;;  %v4567_v57 = vadd.f32 %v4566_v41, %v4406_v63  ;;  %v13740_v13 = vcombine.low %v6432_v20, %v19582_v59 }
 0x2a3   : > { %4838 = vst.msk [vmem:[#allocation4 + $0x21c] sm:$0xf] %vm4822_vm5, %v14733_v14  ;;  %5030 = vst.msk [vmem:[#allocation4 + $0x220] sm:$0xf] %vm4822_vm5, %v14765_v17  ;;  %v19604_v4 = vpop.f32.mrf.mxu1  ;;  %v4623_v44 = vmax.f32 %v4575_v3, 0.0  ;;  %v16753_v43 = vpop.f32.mrf.mxu0  ;;  %v13733_v60 = vcombine.low %v19599_v46, %v19601_v24  ;;  %v21384_v53 = vld [vmem:[#allocation15_spill] sm:$0xff] }
 0x2a4   : > { %5221 = vst.msk [vmem:[#allocation4 + $0x200] sm:$0xf] %vm4822_vm5, %v14796_v62  ;;  %5412 = vst.msk [vmem:[#allocation4 + $0x1e0] sm:$0xf] %vm4822_vm5, %v14733_v14  ;;  %7929 = vmatmul.mubr.bf16.gmra.mxu1 %v13740_v13  ;;  %v17183_v61 = vld [vmem:[#allocation4 + $0x12c] ss:$36 sps:$4 sm:$0xff]   ;;  %v19655_v42 = vadd.f32 %v19604_v4, %v19585_v27  ;;  %v4422_v59 = vadd.f32 %v15732_v45, %v21384_v53 }
 0x2a5   : > { %5604 = vst.msk [vmem:[#allocation4 + $0x1e4] sm:$0xf] %vm4822_vm5, %v14765_v17  ;;  %5795 = vst.msk [vmem:[#allocation4 + $0x1c4] sm:$0xf] %vm4822_vm5, %v14796_v62  ;;  %v15736_v58 = vpop.f32.mrf.mxu1  ;;  %v4569_v50 = vpop.f32.mrf.mxu0  ;;  %7936 = vmatprep.mubr.bf16.mxu1 %v17181_v54  ;;  %8082 = vmatmul.mubr.bf16.gmra.mxu0 %v13733_v60  ;;  %v19665_v49 = vld [vmem:[#allocation4 + $0x18c] sm:$0xff] }
 0x2a6   : > { %5987 = vst.msk [vmem:[#allocation4 + $0x1a4] sm:$0xf] %vm4822_vm5, %v14733_v14  ;;  %6179 = vst.msk [vmem:[#allocation4 + $0x1a8] sm:$0xf] %vm4822_vm5, %v14765_v17  ;;  %v21379_v14 = vld [vmem:[#allocation14_spill] sm:$0xff]  ;;  %v4570_v47 = vadd.f32 %v4569_v50, %v4409_v2  ;;  %8089 = vmatprep.mubr.bf16.mxu0 %v17183_v61 }
 0x2a7   : > { %6370 = vst.msk [vmem:[#allocation4 + $0x188] sm:$0xf] %vm4822_vm5, %v14796_v62  ;;  %5222 = vst.msk [vmem:[#allocation4 + $0x224] sm:$0xf] %vm4822_vm5, %v14797_v29  ;;  %v4417_v17 = vadd.f32 %v15729_v37, %v21379_v14  ;;  %v15737_v15 = vpop.f32.mrf.mxu1  ;;  %v16756_v23 = vpop.f32.mrf.mxu0  ;;  %v17188_v54 = vld [vmem:[#allocation4 + $0x174] ss:$36 sps:$4 sm:$0xff]  }
 0x2a8   : > { %5796 = vst.msk [vmem:[#allocation4 + $0x1e8] sm:$0xf] %vm4822_vm5, %v14797_v29  ;;  %6371 = vst.msk [vmem:[#allocation4 + $0x1ac] sm:$0xf] %vm4822_vm5, %v14797_v29  ;;  %v4681_v5 = vld [vmem:[#allocation3 + $0xe0] sm:$0xff]  ;;  %v15738_v55 = vadd.f32 %v15737_v15, %v15736_v58 }
 0x2a9   : > { %4650 = vst.msk [vmem:[#allocation3 + $0x109] sm:$0xff] %vm309_vm2, %v4617_v9  ;;  %4653 = vst.msk [vmem:[#allocation3 + $0x129] sm:$0xff] %vm309_vm2, %v4620_v26  ;;  %v4874_v6 = vld [vmem:[#allocation3 + $0xe1] sm:$0xff]  ;;  %v14737_v62 = vpack.c.bf16 %v4681_v5, %v4681_v5  ;;  %v4621_v9 = vmax.f32 %v4567_v57, 0.0  ;;  %v4578_v38 = vadd.f32 %v16753_v43, %v4417_v17  ;;  %v15739_v40 = vpop.f32.mrf.mxu1  ;;  %v4582_v5 = vpop.f32.mrf.mxu0  ;;  %v6442_v17 = vld [vmem:[#allocation4 + $0x168] sm:$0xff] }
 0x2aa   : > { %4843 = vst.msk [vmem:[#allocation4 + $0x2d0] sm:$0xf] %vm4822_vm5, %v14738_v35  ;;  %5035 = vst.msk [vmem:[#allocation4 + $0x2d4] sm:$0xf] %vm4822_vm5, %v14770_v33  ;;  %v5065_v31 = vld [vmem:[#allocation3 + $0xda] sm:$0xff]  ;;  %v14769_v34 = vpack.c.bf16 %v4874_v6, %v4874_v6  ;;  %v5066_v29 = vld [vmem:[#allocation3 + $0xe2] sm:$0xff]  ;;  %v4583_v4 = vadd.f32 %v4582_v5, %v4422_v59 }
 0x2ab   : > { %5417 = vst.msk [vmem:[#allocation4 + $0x294] sm:$0xf] %vm4822_vm5, %v14738_v35  ;;  %5609 = vst.msk [vmem:[#allocation4 + $0x298] sm:$0xf] %vm4822_vm5, %v14770_v33  ;;  %v14800_v25 = vpack.c.bf16 %v5065_v31, %v5065_v31  ;;  %v14801_v22 = vpack.c.bf16 %v5066_v29, %v5066_v29  ;;  %v4686_v19 = vld [vmem:[#allocation3 + $0x120] sm:$0xff]  ;;  %v4624_v26 = vmax.f32 %v4578_v38, 0.0  ;;  %v15740_v6 = vpop.f32.mrf.mxu1 }
 0x2ac   : > { %5992 = vst.msk [vmem:[#allocation4 + $0x258] sm:$0xf] %vm4822_vm5, %v14738_v35  ;;  %6184 = vst.msk [vmem:[#allocation4 + $0x25c] sm:$0xf] %vm4822_vm5, %v14770_v33  ;;  %v4879_v1 = vld [vmem:[#allocation3 + $0x121] sm:$0xff]  ;;  %v4269_v35 = vadd.f32 %v19569_v39, %v21381_v28  ;;  %v14742_v33 = vpack.c.bf16 %v4686_v19, %v4686_v19  ;;  %v15629_v39 = vadd.f32 %v21383_v18, %v21382_v8  ;;  %v4625_v58 = vmax.f32 %v4583_v4, 0.0 }
 0x2ad   : > { %4841 = vst.msk [vmem:[#allocation4 + $0x288] sm:$0xf] %vm4822_vm5, %v14736_v51  ;;  %5033 = vst.msk [vmem:[#allocation4 + $0x28c] sm:$0xf] %vm4822_vm5, %v14768_v52  ;;  %v14774_v16 = vpack.c.bf16 %v4879_v1, %v4879_v1  ;;  %v6438_v57 = vld [vmem:[#allocation4 + $0x14c] sm:$0xff]  ;;  %v15741_v20 = vadd.f32 %v15740_v6, %v15739_v40  ;;  %v21386_v19 = vld [vmem:[#allocation17_spill] sm:$0xff] }
 0x2ae   : > { %5415 = vst.msk [vmem:[#allocation4 + $0x24c] sm:$0xf] %vm4822_vm5, %v14736_v51  ;;  %5607 = vst.msk [vmem:[#allocation4 + $0x250] sm:$0xf] %vm4822_vm5, %v14768_v52  ;;  %v4425_v1 = vadd.f32 %v19655_v42, %v21386_v19  ;;  %v17195_v6 = vld [vmem:[#allocation4 + $0x1bc] ss:$36 sps:$4 sm:$0xff]  }
 0x2af   : > { %5990 = vst.msk [vmem:[#allocation4 + $0x210] sm:$0xf] %vm4822_vm5, %v14736_v51  ;;  %6182 = vst.msk [vmem:[#allocation4 + $0x214] sm:$0xf] %vm4822_vm5, %v14768_v52  ;;  %v17200_v19 = vld [vmem:[#allocation4 + $0x244] ss:$36 sps:$4 sm:$0xff]  }
 0x2b0   : > { %4844 = vst.msk [vmem:[#allocation4 + $0x2f4] sm:$0xf] %vm4822_vm5, %v14739_v7  ;;  %5036 = vst.msk [vmem:[#allocation4 + $0x2f8] sm:$0xf] %vm4822_vm5, %v14771_v36  ;;  %v4684_v48 = vld [vmem:[#allocation3 + $0x108] sm:$0xff] }
 0x2b1   : > { %5227 = vst.msk [vmem:[#allocation4 + $0x2d8] sm:$0xf] %vm4822_vm5, %v14802_v0  ;;  %5418 = vst.msk [vmem:[#allocation4 + $0x2b8] sm:$0xf] %vm4822_vm5, %v14739_v7  ;;  %v4877_v37 = vld [vmem:[#allocation3 + $0x109] sm:$0xff]  ;;  %v14740_v51 = vpack.c.bf16 %v4684_v48, %v4684_v48 }
 0x2b2   : > { %5610 = vst.msk [vmem:[#allocation4 + $0x2bc] sm:$0xf] %vm4822_vm5, %v14771_v36  ;;  %5801 = vst.msk [vmem:[#allocation4 + $0x29c] sm:$0xf] %vm4822_vm5, %v14802_v0  ;;  %v14772_v52 = vpack.c.bf16 %v4877_v37, %v4877_v37  ;;  %v4687_v21 = vld [vmem:[#allocation3 + $0x128] sm:$0xff] }
 0x2b3   : > { %5993 = vst.msk [vmem:[#allocation4 + $0x27c] sm:$0xf] %vm4822_vm5, %v14739_v7  ;;  %6185 = vst.msk [vmem:[#allocation4 + $0x280] sm:$0xf] %vm4822_vm5, %v14771_v36  ;;  %v4880_v32 = vld [vmem:[#allocation3 + $0x129] sm:$0xff]  ;;  %v14743_v63 = vpack.c.bf16 %v4687_v21, %v4687_v21  ;;  %v4622_v36 = vmax.f32 %v4570_v47, 0.0 }
 0x2b4   : > { %6376 = vst.msk [vmem:[#allocation4 + $0x260] sm:$0xf] %vm4822_vm5, %v14802_v0  ;;  %5228 = vst.msk [vmem:[#allocation4 + $0x2fc] sm:$0xf] %vm4822_vm5, %v14803_v11  ;;  %v5071_v10 = vld [vmem:[#allocation3 + $0x122] sm:$0xff]  ;;  %v14775_v27 = vpack.c.bf16 %v4880_v32, %v4880_v32  ;;  %v5072_v56 = vld [vmem:[#allocation3 + $0x12a] sm:$0xff] }
 0x2b5   : > { %4651 = vst.msk [vmem:[#allocation3 + $0x111] sm:$0xff] %vm309_vm2, %v4618_v12  ;;  %4656 = vst.msk [vmem:[#allocation3 + $0x151] sm:$0xff] %vm309_vm2, %v4623_v44  ;;  %v14806_v7 = vpack.c.bf16 %v5071_v10, %v5071_v10  ;;  %v14807_v0 = vpack.c.bf16 %v5072_v56, %v5072_v56  ;;  %v16757_v44 = vpop.f32.mrf.mxu0  ;;  %v17191_v56 = vld [vmem:[#allocation4 + $0x170] ss:$36 sps:$4 sm:$0xff]  }
 0x2b6   : > { %5802 = vst.msk [vmem:[#allocation4 + $0x2c0] sm:$0xf] %vm4822_vm5, %v14803_v11  ;;  %6377 = vst.msk [vmem:[#allocation4 + $0x284] sm:$0xf] %vm4822_vm5, %v14803_v11  ;;  %v4430_v11 = vadd.f32 %v15738_v55, %v4269_v35 }
 0x2b7   : > { %4842 = vst.msk [vmem:[#allocation4 + $0x2ac] sm:$0xf] %vm4822_vm5, %v14737_v62  ;;  %5034 = vst.msk [vmem:[#allocation4 + $0x2b0] sm:$0xf] %vm4822_vm5, %v14769_v34 }
 0x2b8   : > { %5225 = vst.msk [vmem:[#allocation4 + $0x290] sm:$0xf] %vm4822_vm5, %v14800_v25  ;;  %5416 = vst.msk [vmem:[#allocation4 + $0x270] sm:$0xf] %vm4822_vm5, %v14737_v62 }
 0x2b9   : > { %5608 = vst.msk [vmem:[#allocation4 + $0x274] sm:$0xf] %vm4822_vm5, %v14769_v34  ;;  %5799 = vst.msk [vmem:[#allocation4 + $0x254] sm:$0xf] %vm4822_vm5, %v14800_v25 }
 0x2ba   : > { %5991 = vst.msk [vmem:[#allocation4 + $0x234] sm:$0xf] %vm4822_vm5, %v14737_v62  ;;  %6183 = vst.msk [vmem:[#allocation4 + $0x238] sm:$0xf] %vm4822_vm5, %v14769_v34  ;;  %v21385_v62 = vld [vmem:[#allocation6_spill] sm:$0xff] }
 0x2bb   : > { %6374 = vst.msk [vmem:[#allocation4 + $0x218] sm:$0xf] %vm4822_vm5, %v14800_v25  ;;  %5226 = vst.msk [vmem:[#allocation4 + $0x2b4] sm:$0xf] %vm4822_vm5, %v14801_v22  ;;  %v4272_v34 = vadd.f32 %v15629_v39, %v21385_v62  ;;  %v6433_v25 = vld [vmem:[#allocation4 + $0x128] sm:$0xff] }
 0x2bc   : > { %5800 = vst.msk [vmem:[#allocation4 + $0x278] sm:$0xf] %vm4822_vm5, %v14801_v22  ;;  %6375 = vst.msk [vmem:[#allocation4 + $0x23c] sm:$0xf] %vm4822_vm5, %v14801_v22  ;;  %v4685_v12 = vld [vmem:[#allocation3 + $0x110] sm:$0xff]  ;;  %v4591_v22 = vadd.f32 %v16756_v23, %v4430_v11  ;;  %v13742_v60 = vcombine.low %v6433_v25, %v6438_v57 }
 0x2bd   : > { %4654 = vst.msk [vmem:[#allocation3 + $0x139] sm:$0xff] %vm309_vm2, %v4621_v9  ;;  %4657 = vst.msk [vmem:[#allocation3 + $0x159] sm:$0xff] %vm309_vm2, %v4624_v26  ;;  %v4878_v46 = vld [vmem:[#allocation3 + $0x111] sm:$0xff]  ;;  %v14741_v31 = vpack.c.bf16 %v4685_v12, %v4685_v12  ;;  %v13749_v9 = vcombine.low %v6442_v17, %v19665_v49  ;;  %v4433_v35 = vadd.f32 %v15741_v20, %v4272_v34 }
 0x2be   : > { %4847 = vst.msk [vmem:[#allocation4 + $0x360] sm:$0xf] %vm4822_vm5, %v14742_v33  ;;  %5039 = vst.msk [vmem:[#allocation4 + $0x364] sm:$0xf] %vm4822_vm5, %v14774_v16  ;;  %v5069_v24 = vld [vmem:[#allocation3 + $0x10a] sm:$0xff]  ;;  %v14773_v3 = vpack.c.bf16 %v4878_v46, %v4878_v46  ;;  %v5070_v41 = vld [vmem:[#allocation3 + $0x112] sm:$0xff]  ;;  %8090 = vmatmul.mubr.bf16.gmra.mxu0 %v13742_v60 }
 0x2bf   : > { %5421 = vst.msk [vmem:[#allocation4 + $0x324] sm:$0xf] %vm4822_vm5, %v14742_v33  ;;  %5613 = vst.msk [vmem:[#allocation4 + $0x328] sm:$0xf] %vm4822_vm5, %v14774_v16  ;;  %v14804_v14 = vpack.c.bf16 %v5069_v24, %v5069_v24  ;;  %v14805_v29 = vpack.c.bf16 %v5070_v41, %v5070_v41  ;;  %v4690_v45 = vld [vmem:[#allocation3 + $0x150] sm:$0xff]  ;;  %v4627_v28 = vmax.f32 %v4591_v22, 0.0  ;;  %7937 = vmatmul.mubr.bf16.gmra.mxu1 %v13749_v9  ;;  %8097 = vmatprep.mubr.bf16.mxu0 %v17188_v54 }
 0x2c0   : > { %5996 = vst.msk [vmem:[#allocation4 + $0x2e8] sm:$0xf] %vm4822_vm5, %v14742_v33  ;;  %6188 = vst.msk [vmem:[#allocation4 + $0x2ec] sm:$0xf] %vm4822_vm5, %v14774_v16  ;;  %v4883_v43 = vld [vmem:[#allocation3 + $0x151] sm:$0xff]  ;;  %v14746_v38 = vpack.c.bf16 %v4690_v45, %v4690_v45  ;;  %v4585_v33 = vpop.f32.mrf.mxu0  ;;  %v4594_v26 = vadd.f32 %v16757_v44, %v4433_v35 }
 0x2c1   : > { %4845 = vst.msk [vmem:[#allocation4 + $0x318] sm:$0xf] %vm4822_vm5, %v14740_v51  ;;  %5037 = vst.msk [vmem:[#allocation4 + $0x31c] sm:$0xf] %vm4822_vm5, %v14772_v52  ;;  %v14778_v30 = vpack.c.bf16 %v4883_v43, %v4883_v43  ;;  %v17186_v16 = vld [vmem:[#allocation4 + $0x1b4] ss:$36 sps:$4 sm:$0xff]   ;;  %v4586_v50 = vadd.f32 %v4585_v33, %v4425_v1 }
 0x2c2   : > { %5419 = vst.msk [vmem:[#allocation4 + $0x2dc] sm:$0xf] %vm4822_vm5, %v14740_v51  ;;  %5611 = vst.msk [vmem:[#allocation4 + $0x2e0] sm:$0xf] %vm4822_vm5, %v14772_v52  ;;  %7944 = vmatprep.mubr.bf16.mxu1 %v17186_v16  ;;  %v4628_v23 = vmax.f32 %v4594_v26, 0.0  ;;  %v17274_v16 = vld [vmem:[%s21350_s2 + $0x1c8] sm:$0xff]  }
 0x2c3   : > { %5994 = vst.msk [vmem:[#allocation4 + $0x2a0] sm:$0xf] %vm4822_vm5, %v14740_v51  ;;  %6186 = vst.msk [vmem:[#allocation4 + $0x2a4] sm:$0xf] %vm4822_vm5, %v14772_v52  ;;  %v4626_v39 = vmax.f32 %v4586_v50, 0.0  ;;  %16114 = vmatprep.subr.bf16.mxu0 %v17274_v16  ;;  %v17282_v54 = vld [vmem:[%s21350_s2 + $0x1c0] sm:$0xff]  }
 0x2c4   : > { %4848 = vst.msk [vmem:[#allocation4 + $0x384] sm:$0xf] %vm4822_vm5, %v14743_v63  ;;  %5040 = vst.msk [vmem:[#allocation4 + $0x388] sm:$0xf] %vm4822_vm5, %v14775_v27  ;;  %v4688_v2 = vld [vmem:[#allocation3 + $0x138] sm:$0xff]  ;;  %v17369_v16 = vld [vmem:[%s21350_s2 + $0x200] sm:$0xff]  }
 0x2c5   : > { %5231 = vst.msk [vmem:[#allocation4 + $0x368] sm:$0xf] %vm4822_vm5, %v14806_v7  ;;  %5422 = vst.msk [vmem:[#allocation4 + $0x348] sm:$0xf] %vm4822_vm5, %v14743_v63  ;;  %v4881_v13 = vld [vmem:[#allocation3 + $0x139] sm:$0xff]  ;;  %v14744_v48 = vpack.c.bf16 %v4688_v2, %v4688_v2 }
 0x2c6   : > { %5614 = vst.msk [vmem:[#allocation4 + $0x34c] sm:$0xf] %vm4822_vm5, %v14775_v27  ;;  %5805 = vst.msk [vmem:[#allocation4 + $0x32c] sm:$0xf] %vm4822_vm5, %v14806_v7  ;;  %v14776_v37 = vpack.c.bf16 %v4881_v13, %v4881_v13  ;;  %v4691_v15 = vld [vmem:[#allocation3 + $0x158] sm:$0xff]  ;;  %8098 = vmatmul.mubr.bf16.gmra.mxu0 %v17191_v56 }
 0x2c7   : > { %5997 = vst.msk [vmem:[#allocation4 + $0x30c] sm:$0xf] %vm4822_vm5, %v14743_v63  ;;  %6189 = vst.msk [vmem:[#allocation4 + $0x310] sm:$0xf] %vm4822_vm5, %v14775_v27  ;;  %v4884_v51 = vld [vmem:[#allocation3 + $0x159] sm:$0xff]  ;;  %v14747_v47 = vpack.c.bf16 %v4691_v15, %v4691_v15  ;;  %8105 = vmatprep.mubr.bf16.mxu0 %v17195_v6  ;;  %v17283_v15 = vld [vmem:[%s21350_s2 + $0x180] sm:$0xff]  }
 0x2c8   : > { %6380 = vst.msk [vmem:[#allocation4 + $0x2f0] sm:$0xf] %vm4822_vm5, %v14806_v7  ;;  %5232 = vst.msk [vmem:[#allocation4 + $0x38c] sm:$0xf] %vm4822_vm5, %v14807_v0  ;;  %v5075_v52 = vld [vmem:[#allocation3 + $0x152] sm:$0xff]  ;;  %v14779_v61 = vpack.c.bf16 %v4884_v51, %v4884_v51  ;;  %v5076_v8 = vld [vmem:[#allocation3 + $0x15a] sm:$0xff] }
 0x2c9   : > { %4655 = vst.msk [vmem:[#allocation3 + $0x141] sm:$0xff] %vm309_vm2, %v4622_v36  ;;  %4658 = vst.msk [vmem:[#allocation3 + $0x169] sm:$0xff] %vm309_vm2, %v4625_v58  ;;  %v14810_v18 = vpack.c.bf16 %v5075_v52, %v5075_v52  ;;  %v14811_v21 = vpack.c.bf16 %v5076_v8, %v5076_v8  ;;  %v17190_v27 = vld [vmem:[#allocation4 + $0x1b0] ss:$36 sps:$4 sm:$0xff]   ;;  %v17193_v7 = vld [vmem:[#allocation4 + $0x1fc] ss:$36 sps:$4 sm:$0xff]  }
 0x2ca   : > { %5806 = vst.msk [vmem:[#allocation4 + $0x350] sm:$0xf] %vm4822_vm5, %v14807_v0  ;;  %6381 = vst.msk [vmem:[#allocation4 + $0x314] sm:$0xf] %vm4822_vm5, %v14807_v0  ;;  %7945 = vmatmul.mubr.bf16.gmra.mxu1 %v17190_v27  ;;  %v17198_v58 = vld [vmem:[#allocation4 + $0x1f8] ss:$36 sps:$4 sm:$0xff]  }
 0x2cb   : > { %4846 = vst.msk [vmem:[#allocation4 + $0x33c] sm:$0xf] %vm4822_vm5, %v14741_v31  ;;  %5038 = vst.msk [vmem:[#allocation4 + $0x340] sm:$0xf] %vm4822_vm5, %v14773_v3  ;;  %7952 = vmatprep.mubr.bf16.mxu1 %v17193_v7  ;;  %v17199_v1 = vld [vmem:[#allocation4 + $0x1b8] ss:$36 sps:$4 sm:$0xff]  }
 0x2cc   : > { %5229 = vst.msk [vmem:[#allocation4 + $0x320] sm:$0xf] %vm4822_vm5, %v14804_v14  ;;  %5420 = vst.msk [vmem:[#allocation4 + $0x300] sm:$0xf] %vm4822_vm5, %v14741_v31  ;;  %v17202_v9 = vld [vmem:[#allocation4 + $0x204] ss:$36 sps:$4 sm:$0xff]  }
 0x2cd   : > { %5612 = vst.msk [vmem:[#allocation4 + $0x304] sm:$0xf] %vm4822_vm5, %v14773_v3  ;;  %5803 = vst.msk [vmem:[#allocation4 + $0x2e4] sm:$0xf] %vm4822_vm5, %v14804_v14  ;;  %v17204_v2 = vld [vmem:[#allocation4 + $0x240] ss:$36 sps:$4 sm:$0xff]  }
 0x2ce   : > { %5995 = vst.msk [vmem:[#allocation4 + $0x2c4] sm:$0xf] %vm4822_vm5, %v14741_v31  ;;  %6187 = vst.msk [vmem:[#allocation4 + $0x2c8] sm:$0xf] %vm4822_vm5, %v14773_v3  ;;  %8106 = vmatmul.mubr.bf16.gmra.mxu0 %v17199_v1  ;;  %v17205_v35 = vld [vmem:[#allocation4 + $0x200] ss:$36 sps:$4 sm:$0xff]  }
 0x2cf   : > { %6378 = vst.msk [vmem:[#allocation4 + $0x2a8] sm:$0xf] %vm4822_vm5, %v14804_v14  ;;  %5230 = vst.msk [vmem:[#allocation4 + $0x344] sm:$0xf] %vm4822_vm5, %v14805_v29  ;;  %8113 = vmatprep.mubr.bf16.mxu0 %v17202_v9  ;;  %v17209_v33 = vld [vmem:[#allocation4 + $0x24c] ss:$36 sps:$4 sm:$0xff]  }
 0x2d0   : > { %5804 = vst.msk [vmem:[#allocation4 + $0x308] sm:$0xf] %vm4822_vm5, %v14805_v29  ;;  %6379 = vst.msk [vmem:[#allocation4 + $0x2cc] sm:$0xf] %vm4822_vm5, %v14805_v29  ;;  %v4689_v32 = vld [vmem:[#allocation3 + $0x140] sm:$0xff]  ;;  %v4692_v36 = vld [vmem:[#allocation3 + $0x168] sm:$0xff] }
 0x2d1   : > { %4851 = vst.msk [vmem:[#allocation4 + $0x3f0] sm:$0xf] %vm4822_vm5, %v14746_v38  ;;  %5043 = vst.msk [vmem:[#allocation4 + $0x3f4] sm:$0xf] %vm4822_vm5, %v14778_v30  ;;  %v4882_v10 = vld [vmem:[#allocation3 + $0x141] sm:$0xff]  ;;  %v14745_v55 = vpack.c.bf16 %v4689_v32, %v4689_v32  ;;  %v4885_v49 = vld [vmem:[#allocation3 + $0x169] sm:$0xff]  ;;  %v14748_v46 = vpack.c.bf16 %v4692_v36, %v4692_v36 }
 0x2d2   : > { %5425 = vst.msk [vmem:[#allocation4 + $0x3b4] sm:$0xf] %vm4822_vm5, %v14746_v38  ;;  %5617 = vst.msk [vmem:[#allocation4 + $0x3b8] sm:$0xf] %vm4822_vm5, %v14778_v30  ;;  %v5073_v42 = vld [vmem:[#allocation3 + $0x13a] sm:$0xff]  ;;  %v14777_v53 = vpack.c.bf16 %v4882_v10, %v4882_v10  ;;  %v5074_v59 = vld [vmem:[#allocation3 + $0x142] sm:$0xff]  ;;  %v14780_v24 = vpack.c.bf16 %v4885_v49, %v4885_v49  ;;  %7953 = vmatmul.mubr.bf16.gmra.mxu1 %v17198_v58 }
 0x2d3   : > { %6000 = vst.msk [vmem:[#allocation4 + $0x378] sm:$0xf] %vm4822_vm5, %v14746_v38  ;;  %6192 = vst.msk [vmem:[#allocation4 + $0x37c] sm:$0xf] %vm4822_vm5, %v14778_v30  ;;  %v14808_v40 = vpack.c.bf16 %v5073_v42, %v5073_v42  ;;  %v14809_v63 = vpack.c.bf16 %v5074_v59, %v5074_v59  ;;  %7960 = vmatprep.mubr.bf16.mxu1 %v17200_v19  ;;  %v15782_v38 = vpop.f32.mrf.mxu1  ;;  %v17212_v50 = vld [vmem:[#allocation4 + $0x288] ss:$36 sps:$4 sm:$0xff]  }
 0x2d4   : > { %4660 = vst.msk [vmem:[#allocation3 + $0x181] sm:$0xff] %vm309_vm2, %v4627_v28  ;;  %4659 = vst.msk [vmem:[#allocation3 + $0x171] sm:$0xff] %vm309_vm2, %v4626_v39  ;;  %v17207_v28 = vld [vmem:[#allocation4 + $0x28c] ss:$36 sps:$4 sm:$0xff]   ;;  %v17214_v60 = vld [vmem:[#allocation4 + $0x2d4] ss:$36 sps:$4 sm:$0xff]  }
 0x2d5   : > { %4849 = vst.msk [vmem:[#allocation4 + $0x3a8] sm:$0xf] %vm4822_vm5, %v14744_v48  ;;  %5041 = vst.msk [vmem:[#allocation4 + $0x3ac] sm:$0xf] %vm4822_vm5, %v14776_v37  ;;  %v15783_v30 = vpop.f32.mrf.mxu1  ;;  %v17213_v51 = vld [vmem:[#allocation4 + $0x248] ss:$36 sps:$4 sm:$0xff]  }
 0x2d6   : > { %5423 = vst.msk [vmem:[#allocation4 + $0x36c] sm:$0xf] %vm4822_vm5, %v14744_v48  ;;  %5615 = vst.msk [vmem:[#allocation4 + $0x370] sm:$0xf] %vm4822_vm5, %v14776_v37  ;;  %v19765_v13 = vadd.f32 %v15783_v30, %v15782_v38  ;;  %8114 = vmatmul.mubr.bf16.gmra.mxu0 %v17205_v35  ;;  %v17216_v52 = vld [vmem:[#allocation4 + $0x294] ss:$36 sps:$4 sm:$0xff]  }
 0x2d7   : > { %5998 = vst.msk [vmem:[#allocation4 + $0x330] sm:$0xf] %vm4822_vm5, %v14744_v48  ;;  %6190 = vst.msk [vmem:[#allocation4 + $0x334] sm:$0xf] %vm4822_vm5, %v14776_v37  ;;  %8121 = vmatprep.mubr.bf16.mxu0 %v17209_v33  ;;  %v19773_v48 = vld [vmem:[%s21350_s2 + $0x238] sm:$0xff]   ;;  %v17278_v37 = vld [vmem:[%s21350_s2 + $0x188] sm:$0xff]  }
 0x2d8   : > { %4852 = vst.msk [vmem:[#allocation4 + $0x414] sm:$0xf] %vm4822_vm5, %v14747_v47  ;;  %5044 = vst.msk [vmem:[#allocation4 + $0x418] sm:$0xf] %vm4822_vm5, %v14779_v61  ;;  %16758 = vmatprep.subr.bf16.mxu1 %v19773_v48  ;;  %16115 = vmatpush3.bf16.msra.mxu0 %v17278_v37  ;;  %v17218_v26 = vld [vmem:[#allocation4 + $0x2d0] ss:$36 sps:$4 sm:$0xff]  }
 0x2d9   : > { %5235 = vst.msk [vmem:[#allocation4 + $0x3f8] sm:$0xf] %vm4822_vm5, %v14810_v18  ;;  %5426 = vst.msk [vmem:[#allocation4 + $0x3d8] sm:$0xf] %vm4822_vm5, %v14747_v47  ;;  %16116 = vmatprep.subr.bf16.mxu0 %v17282_v54  ;;  %v17223_v8 = vld [vmem:[#allocation4 + $0x2dc] ss:$36 sps:$4 sm:$0xff]  }
 0x2da   : > { %5618 = vst.msk [vmem:[#allocation4 + $0x3dc] sm:$0xf] %vm4822_vm5, %v14779_v61  ;;  %5809 = vst.msk [vmem:[#allocation4 + $0x3bc] sm:$0xf] %vm4822_vm5, %v14810_v18  ;;  %7961 = vmatmul.mubr.bf16.gmra.mxu1 %v17204_v2  ;;  %v17228_v39 = vld [vmem:[#allocation4 + $0x364] ss:$36 sps:$4 sm:$0xff]  }
 0x2db   : > { %6001 = vst.msk [vmem:[#allocation4 + $0x39c] sm:$0xf] %vm4822_vm5, %v14747_v47  ;;  %6193 = vst.msk [vmem:[#allocation4 + $0x3a0] sm:$0xf] %vm4822_vm5, %v14779_v61  ;;  %v5269_v0 = vld [vmem:[#allocation3 + $0x180] sm:$0xff]  ;;  %v4693_v31 = vld [vmem:[#allocation3 + $0x170] sm:$0xff]  ;;  %7968 = vmatprep.mubr.bf16.mxu1 %v17207_v28 }
 0x2dc   : > { %6384 = vst.msk [vmem:[#allocation4 + $0x380] sm:$0xf] %vm4822_vm5, %v14810_v18  ;;  %5236 = vst.msk [vmem:[#allocation4 + $0x41c] sm:$0xf] %vm4822_vm5, %v14811_v21  ;;  %v5461_v12 = vld [vmem:[#allocation3 + $0x181] sm:$0xff]  ;;  %v14844_v11 = vpack.c.bf16 %v5269_v0, %v5269_v0  ;;  %v4886_v3 = vld [vmem:[#allocation3 + $0x171] sm:$0xff]  ;;  %v14749_v62 = vpack.c.bf16 %v4693_v31, %v4693_v31  ;;  %16117 = vmatpush3.bf16.msra.mxu0 %v17283_v15 }
 0x2dd   : > { %5810 = vst.msk [vmem:[#allocation4 + $0x3e0] sm:$0xf] %vm4822_vm5, %v14811_v21  ;;  %6385 = vst.msk [vmem:[#allocation4 + $0x3a4] sm:$0xf] %vm4822_vm5, %v14811_v21  ;;  %v14876_v5 = vpack.c.bf16 %v5461_v12, %v5461_v12  ;;  %v5077_v41 = vld [vmem:[#allocation3 + $0x16a] sm:$0xff]  ;;  %v14781_v34 = vpack.c.bf16 %v4886_v3, %v4886_v3  ;;  %v5078_v22 = vld [vmem:[#allocation3 + $0x172] sm:$0xff] }
 0x2de   : > { %4661 = vst.msk [vmem:[#allocation3 + $0x189] sm:$0xff] %vm309_vm2, %v4628_v23  ;;  %v14812_v29 = vpack.c.bf16 %v5077_v41, %v5077_v41  ;;  %v14813_v43 = vpack.c.bf16 %v5078_v22, %v5078_v22  ;;  %8122 = vmatmul.mubr.bf16.gmra.mxu0 %v17213_v51  ;;  %v17221_v47 = vld [vmem:[#allocation4 + $0x31c] ss:$36 sps:$4 sm:$0xff]   ;;  %v17219_v61 = vld [vmem:[#allocation4 + $0x290] ss:$36 sps:$4 sm:$0xff]   ;;  %v17356_v35 = vld [vmem:[%s21350_s2 + $0x208] sm:$0xff]  }
 0x2df   : > { %4850 = vst.msk [vmem:[#allocation4 + $0x3cc] sm:$0xf] %vm4822_vm5, %v14745_v55  ;;  %5042 = vst.msk [vmem:[#allocation4 + $0x3d0] sm:$0xf] %vm4822_vm5, %v14777_v53  ;;  %8129 = vmatprep.mubr.bf16.mxu0 %v17216_v52  ;;  %v17226_v18 = vld [vmem:[#allocation4 + $0x318] ss:$36 sps:$4 sm:$0xff]  }
 0x2e0   : > { %5233 = vst.msk [vmem:[#allocation4 + $0x3b0] sm:$0xf] %vm4822_vm5, %v14808_v40  ;;  %5424 = vst.msk [vmem:[#allocation4 + $0x390] sm:$0xf] %vm4822_vm5, %v14745_v55  ;;  %v17227_v21 = vld [vmem:[#allocation4 + $0x2d8] ss:$36 sps:$4 sm:$0xff]  }
 0x2e1   : > { %5616 = vst.msk [vmem:[#allocation4 + $0x394] sm:$0xf] %vm4822_vm5, %v14777_v53  ;;  %5807 = vst.msk [vmem:[#allocation4 + $0x374] sm:$0xf] %vm4822_vm5, %v14808_v40  ;;  %v17230_v32 = vld [vmem:[#allocation4 + $0x324] ss:$36 sps:$4 sm:$0xff]  }
 0x2e2   : > { %5999 = vst.msk [vmem:[#allocation4 + $0x354] sm:$0xf] %vm4822_vm5, %v14745_v55  ;;  %6191 = vst.msk [vmem:[#allocation4 + $0x358] sm:$0xf] %vm4822_vm5, %v14777_v53  ;;  %7969 = vmatmul.mubr.bf16.gmra.mxu1 %v17212_v50  ;;  %v17232_v10 = vld [vmem:[#allocation4 + $0x360] ss:$36 sps:$4 sm:$0xff]  }
 0x2e3   : > { %6382 = vst.msk [vmem:[#allocation4 + $0x338] sm:$0xf] %vm4822_vm5, %v14808_v40  ;;  %5234 = vst.msk [vmem:[#allocation4 + $0x3d4] sm:$0xf] %vm4822_vm5, %v14809_v63  ;;  %7976 = vmatprep.mubr.bf16.mxu1 %v17214_v60  ;;  %v17233_v23 = vld [vmem:[#allocation4 + $0x320] ss:$36 sps:$4 sm:$0xff]  }
 0x2e4   : > { %5808 = vst.msk [vmem:[#allocation4 + $0x398] sm:$0xf] %vm4822_vm5, %v14809_v63  ;;  %6383 = vst.msk [vmem:[#allocation4 + $0x35c] sm:$0xf] %vm4822_vm5, %v14809_v63  ;;  %v17243_v59 = vld [vmem:[#allocation4 + $0x3f4] ss:$36 sps:$4 sm:$0xff]  }
 0x2e5   : > { %4853 = vst.msk [vmem:[#allocation4 + $0x438] sm:$0xf] %vm4822_vm5, %v14748_v46  ;;  %5045 = vst.msk [vmem:[#allocation4 + $0x43c] sm:$0xf] %vm4822_vm5, %v14780_v24  ;;  %v5270_v14 = vld [vmem:[#allocation3 + $0x188] sm:$0xff]  ;;  %v17291_v6 = vld [vmem:[%s21350_s2 + $0x230] sm:$0xff]  }
 0x2e6   : > { %5427 = vst.msk [vmem:[#allocation4 + $0x3fc] sm:$0xf] %vm4822_vm5, %v14748_v46  ;;  %5619 = vst.msk [vmem:[#allocation4 + $0x400] sm:$0xf] %vm4822_vm5, %v14780_v24  ;;  %v5462_v17 = vld [vmem:[#allocation3 + $0x189] sm:$0xff]  ;;  %v14845_v44 = vpack.c.bf16 %v5270_v14, %v5270_v14  ;;  %8130 = vmatmul.mubr.bf16.gmra.mxu0 %v17219_v61  ;;  %v17304_v14 = vld [vmem:[%s21350_s2 + $0x228] sm:$0xff]  }
 0x2e7   : > { %6002 = vst.msk [vmem:[#allocation4 + $0x3c0] sm:$0xf] %vm4822_vm5, %v14748_v46  ;;  %6194 = vst.msk [vmem:[#allocation4 + $0x3c4] sm:$0xf] %vm4822_vm5, %v14780_v24  ;;  %v5653_v4 = vld [vmem:[#allocation3 + $0x182] sm:$0xff]  ;;  %v14877_v25 = vpack.c.bf16 %v5462_v17, %v5462_v17  ;;  %v5654_v57 = vld [vmem:[#allocation3 + $0x18a] sm:$0xff]  ;;  %8137 = vmatprep.mubr.bf16.mxu0 %v17223_v8 }
 0x2e8   : > { %5429 = vst.msk [vmem:[#allocation4 + $0x444] sm:$0xf] %vm4822_vm5, %v14844_v11  ;;  %5621 = vst.msk [vmem:[#allocation4 + $0x448] sm:$0xf] %vm4822_vm5, %v14876_v5  ;;  %v14908_v20 = vpack.c.bf16 %v5653_v4, %v5653_v4  ;;  %v14909_v45 = vpack.c.bf16 %v5654_v57, %v5654_v57  ;;  %v17235_v42 = vld [vmem:[#allocation4 + $0x3ac] ss:$36 sps:$4 sm:$0xff]  }
 0x2e9   : > { %6004 = vst.msk [vmem:[#allocation4 + $0x408] sm:$0xf] %vm4822_vm5, %v14844_v11  ;;  %6196 = vst.msk [vmem:[#allocation4 + $0x40c] sm:$0xf] %vm4822_vm5, %v14876_v5  ;;  %v17237_v55 = vld [vmem:[#allocation4 + $0x36c] ss:$36 sps:$4 sm:$0xff]  }
 0x2ea   : > { %4854 = vst.msk [vmem:[#allocation4 + $0x45c] sm:$0xf] %vm4822_vm5, %v14749_v62  ;;  %5046 = vst.msk [vmem:[#allocation4 + $0x460] sm:$0xf] %vm4822_vm5, %v14781_v34  ;;  %7977 = vmatmul.mubr.bf16.gmra.mxu1 %v17218_v26  ;;  %v17240_v53 = vld [vmem:[#allocation4 + $0x3a8] ss:$36 sps:$4 sm:$0xff]  }
 0x2eb   : > { %5237 = vst.msk [vmem:[#allocation4 + $0x440] sm:$0xf] %vm4822_vm5, %v14812_v29  ;;  %5428 = vst.msk [vmem:[#allocation4 + $0x420] sm:$0xf] %vm4822_vm5, %v14749_v62  ;;  %7984 = vmatprep.mubr.bf16.mxu1 %v17221_v47  ;;  %v17241_v40 = vld [vmem:[#allocation4 + $0x368] ss:$36 sps:$4 sm:$0xff]  }
 0x2ec   : > { %5620 = vst.msk [vmem:[#allocation4 + $0x424] sm:$0xf] %vm4822_vm5, %v14781_v34  ;;  %5811 = vst.msk [vmem:[#allocation4 + $0x404] sm:$0xf] %vm4822_vm5, %v14812_v29  ;;  %v17245_v63 = vld [vmem:[#allocation4 + $0x3b4] ss:$36 sps:$4 sm:$0xff]  }
 0x2ed   : > { %6003 = vst.msk [vmem:[#allocation4 + $0x3e4] sm:$0xf] %vm4822_vm5, %v14749_v62  ;;  %6195 = vst.msk [vmem:[#allocation4 + $0x3e8] sm:$0xf] %vm4822_vm5, %v14781_v34  ;;  %v17250_v27 = vld [vmem:[#allocation4 + $0x3f0] ss:$36 sps:$4 sm:$0xff]  }
 0x2ee   : > { %6386 = vst.msk [vmem:[#allocation4 + $0x3c8] sm:$0xf] %vm4822_vm5, %v14812_v29  ;;  %5622 = vst.msk [vmem:[#allocation4 + $0x46c] sm:$0xf] %vm4822_vm5, %v14877_v25  ;;  %8138 = vmatmul.mubr.bf16.gmra.mxu0 %v17227_v21  ;;  %v17251_v7 = vld [vmem:[#allocation4 + $0x3b0] ss:$36 sps:$4 sm:$0xff]  }
 0x2ef   : > { %6197 = vst.msk [vmem:[#allocation4 + $0x430] sm:$0xf] %vm4822_vm5, %v14877_v25  ;;  %5430 = vst.msk [vmem:[#allocation4 + $0x468] sm:$0xf] %vm4822_vm5, %v14845_v44  ;;  %8145 = vmatprep.mubr.bf16.mxu0 %v17230_v32  ;;  %v17269_v0 = vld [vmem:[#allocation4 + $0x14] ss:$36 sps:$4 sm:$0xff]  }
 0x2f0   : > { %5813 = vst.msk [vmem:[#allocation4 + $0x44c] sm:$0xf] %vm4822_vm5, %v14908_v20  ;;  %6005 = vst.msk [vmem:[#allocation4 + $0x42c] sm:$0xf] %vm4822_vm5, %v14845_v44  ;;  %v17263_v12 = vld [vmem:[#allocation4 + $0x3f8] ss:$36 sps:$4 sm:$0xff]  }
 0x2f1   : > { %6388 = vst.msk [vmem:[#allocation4 + $0x410] sm:$0xf] %vm4822_vm5, %v14908_v20  ;;  %5814 = vst.msk [vmem:[#allocation4 + $0x470] sm:$0xf] %vm4822_vm5, %v14909_v45  ;;  %v17254_v56 = vld [vmem:[#allocation4 + $0x43c] ss:$36 sps:$4 sm:$0xff]  }
 0x2f2   : > { %5238 = vst.msk [vmem:[#allocation4 + $0x464] sm:$0xf] %vm4822_vm5, %v14813_v43  ;;  %5812 = vst.msk [vmem:[#allocation4 + $0x428] sm:$0xf] %vm4822_vm5, %v14813_v43  ;;  %7985 = vmatmul.mubr.bf16.gmra.mxu1 %v17226_v18  ;;  %v17256_v36 = vld [vmem:[#allocation4 + $0x3fc] ss:$36 sps:$4 sm:$0xff]  }
 0x2f3   : > { %6387 = vst.msk [vmem:[#allocation4 + $0x3ec] sm:$0xf] %vm4822_vm5, %v14813_v43  ;;  %7992 = vmatprep.mubr.bf16.mxu1 %v17228_v39  ;;  %v17262_v49 = vld [vmem:[#allocation4 + $0x438] ss:$36 sps:$4 sm:$0xff]   ;;  %v17267_v5 = vld [vmem:[#allocation4 + $0x10] ss:$36 sps:$4 sm:$0xff]  }
 0x2f4   : > { %v6229_v24 = vld [vmem:[#allocation3 + $0x18a] sm:$0xff]  ;;  %v5846_v17 = vld [vmem:[#allocation3 + $0x198] sm:$0xff]  ;;  %v5847_v4 = vld [vmem:[#allocation3 + $0x1a0] sm:$0xff] }
 0x2f5   : > { %v15003_v11 = vpack.c.bf16 %v6229_v24, %v6229_v24  ;;  %v17276_v31 = vld [vmem:[#allocation4 + $0x5c] ss:$36 sps:$4 sm:$0xff]   ;;  %v6038_v62 = vld [vmem:[#allocation3 + $0x199] sm:$0xff]  ;;  %v14940_v34 = vpack.c.bf16 %v5846_v17, %v5846_v17  ;;  %v14941_v29 = vpack.c.bf16 %v5847_v4, %v5847_v4  ;;  %v6039_v25 = vld [vmem:[#allocation3 + $0x1a1] sm:$0xff] }
 0x2f6   : > { %8146 = vmatmul.mubr.bf16.gmra.mxu0 %v17233_v23  ;;  %v17265_v46 = vld [vmem:[#allocation4 + $0x444] ss:$36 sps:$4 sm:$0xff]   ;;  %v17281_v41 = vld [vmem:[#allocation4 + $0x1c] ss:$36 sps:$4 sm:$0xff]   ;;  %v14972_v57 = vpack.c.bf16 %v6038_v62, %v6038_v62  ;;  %v14973_v22 = vpack.c.bf16 %v6039_v25, %v6039_v25  ;;  %v17343_v9 = vld [vmem:[%s21350_s2 + $0x210] sm:$0xff]  }
 0x2f7   : > { %8153 = vmatprep.mubr.bf16.mxu0 %v17237_v55  ;;  %6389 = vst.msk [vmem:[#allocation4 + $0x434] sm:$0xf] %vm4822_vm5, %v15003_v11  ;;  %v17284_v44 = vld [vmem:[#allocation4 + $0x58] ss:$36 sps:$4 sm:$0xff]   ;;  %v17317_v20 = vld [vmem:[%s21350_s2 + $0x220] sm:$0xff]   ;;  %v10377_v55 = vld [vmem:[#allocation3 + $0x19a] sm:$0xff] }
 0x2f8   : > { %6006 = vst.msk [vmem:[#allocation4 + $0x450] sm:$0xf] %vm4822_vm5, %v14940_v34  ;;  %6007 = vst.msk [vmem:[#allocation4 + $0x474] sm:$0xf] %vm4822_vm5, %v14941_v29  ;;  %v17285_v45 = vld [vmem:[#allocation4 + $0xa4] ss:$36 sps:$4 sm:$0xff]  }
 0x2f9   : > { %v17273_v3 = vld [vmem:[#allocation4 + $0x440] ss:$36 sps:$4 sm:$0xff]   ;;  %6198 = vst.msk [vmem:[#allocation4 + $0x454] sm:$0xf] %vm4822_vm5, %v14972_v57  ;;  %6199 = vst.msk [vmem:[#allocation4 + $0x478] sm:$0xf] %vm4822_vm5, %v14973_v22 }
 0x2fa   : > { %7993 = vmatmul.mubr.bf16.gmra.mxu1 %v17232_v10  ;;  %v17279_v43 = vld [vmem:[#allocation4 + $0x18] ss:$36 sps:$4 sm:$0xff]   ;;  %v17287_v58 = vld [vmem:[#allocation4 + $0x64] ss:$36 sps:$4 sm:$0xff]   ;;  %v17292_v30 = vld [vmem:[#allocation4 + $0xec] ss:$36 sps:$4 sm:$0xff]  }
 0x2fb   : > { %8000 = vmatprep.mubr.bf16.mxu1 %v17235_v42  ;;  %v17330_v19 = vld [vmem:[%s21350_s2 + $0x218] sm:$0xff]   ;;  %v17289_v1 = vld [vmem:[#allocation4 + $0xa0] ss:$36 sps:$4 sm:$0xff]   ;;  %10153 = vst.msk [vmem:[#allocation4 + $0x450] sm:$0xf] %vm4822_vm5, %v14940_v34 }
 0x2fc   : > { %10154 = vst.msk [vmem:[#allocation4 + $0x474] sm:$0xf] %vm4822_vm5, %v14941_v29  ;;  %v17290_v2 = vld [vmem:[#allocation4 + $0x60] ss:$36 sps:$4 sm:$0xff]   ;;  %v17294_v28 = vld [vmem:[#allocation4 + $0xac] ss:$36 sps:$4 sm:$0xff]  }
 0x2fd   : > { %v17296_v33 = vld [vmem:[#allocation4 + $0xe8] ss:$36 sps:$4 sm:$0xff]   ;;  %v17300_v50 = vld [vmem:[#allocation4 + $0xf4] ss:$36 sps:$4 sm:$0xff]   ;;  %v17305_v54 = vld [vmem:[#allocation4 + $0x17c] ss:$36 sps:$4 sm:$0xff]  }
 0x2fe   : > { %8154 = vmatmul.mubr.bf16.gmra.mxu0 %v17241_v40  ;;  %v17297_v37 = vld [vmem:[#allocation4 + $0xa8] ss:$36 sps:$4 sm:$0xff]   ;;  %v17302_v60 = vld [vmem:[#allocation4 + $0x130] ss:$36 sps:$4 sm:$0xff]   ;;  %v17307_v51 = vld [vmem:[#allocation4 + $0x13c] ss:$36 sps:$4 sm:$0xff]  }
 0x2ff   : > { %8161 = vmatprep.mubr.bf16.mxu0 %v17245_v63  ;;  %v17303_v15 = vld [vmem:[#allocation4 + $0xf0] ss:$36 sps:$4 sm:$0xff]   ;;  %v17309_v52 = vld [vmem:[#allocation4 + $0x178] ss:$36 sps:$4 sm:$0xff]   ;;  %v17311_v26 = vld [vmem:[#allocation4 + $0x1c4] ss:$36 sps:$4 sm:$0xff]  }
 0x300   : > { %v19806_v38 = vld [vmem:[#allocation4 + $0x454] ss:$36 sps:$4 sm:$0xff]   ;;  %v17313_v61 = vld [vmem:[#allocation4 + $0x184] ss:$36 sps:$4 sm:$0xff]   ;;  %v17318_v18 = vld [vmem:[#allocation4 + $0x20c] ss:$36 sps:$4 sm:$0xff]  }
 0x301   : > { %10345 = vst.msk [vmem:[#allocation4 + $0x454] sm:$0xf] %vm4822_vm5, %v14972_v57  ;;  %10346 = vst.msk [vmem:[#allocation4 + $0x478] sm:$0xf] %vm4822_vm5, %v14973_v22  ;;  %v17310_v47 = vld [vmem:[#allocation4 + $0x138] ss:$36 sps:$4 sm:$0xff]  }
 0x302   : > { %8001 = vmatmul.mubr.bf16.gmra.mxu1 %v17240_v53  ;;  %v17315_v8 = vld [vmem:[#allocation4 + $0x1c0] ss:$36 sps:$4 sm:$0xff]   ;;  %v17320_v21 = vld [vmem:[#allocation4 + $0x1cc] ss:$36 sps:$4 sm:$0xff]   ;;  %v17324_v10 = vld [vmem:[#allocation4 + $0x254] ss:$36 sps:$4 sm:$0xff]  }
 0x303   : > { %8008 = vmatprep.mubr.bf16.mxu1 %v17243_v59  ;;  %v17316_v39 = vld [vmem:[#allocation4 + $0x180] ss:$36 sps:$4 sm:$0xff]   ;;  %v17322_v32 = vld [vmem:[#allocation4 + $0x208] ss:$36 sps:$4 sm:$0xff]   ;;  %v17326_v23 = vld [vmem:[#allocation4 + $0x214] ss:$36 sps:$4 sm:$0xff]   ;;  %v15292_v59 = vpack.c.bf16 %v10377_v55, %v10377_v55 }
 0x304   : > { %v17323_v42 = vld [vmem:[#allocation4 + $0x1c8] ss:$36 sps:$4 sm:$0xff]   ;;  %v10378_v53 = vld [vmem:[#allocation3 + $0x1a2] sm:$0xff]  ;;  %v17341_v34 = vld [vmem:[#allocation4 + $0x2e0] ss:$36 sps:$4 sm:$0xff]  }
 0x305   : > { %v15293_v40 = vpack.c.bf16 %v10378_v53, %v10378_v53  ;;  %v19818_v63 = vld [vmem:[#allocation4 + $0x458] ss:$36 sps:$4 sm:$0xff]   ;;  %v17344_v57 = vld [vmem:[#allocation4 + $0x32c] ss:$36 sps:$4 sm:$0xff]  }
 0x306   : > { %8162 = vmatmul.mubr.bf16.gmra.mxu0 %v17251_v7  ;;  %10537 = vst.msk [vmem:[#allocation4 + $0x458] sm:$0xf] %vm4822_vm5, %v15292_v59  ;;  %v17329_v7 = vld [vmem:[#allocation4 + $0x210] ss:$36 sps:$4 sm:$0xff]   ;;  %v17336_v11 = vld [vmem:[#allocation4 + $0x258] ss:$36 sps:$4 sm:$0xff]  }
 0x307   : > { %8169 = vmatprep.mubr.bf16.mxu0 %v17256_v36  ;;  %10538 = vst.msk [vmem:[#allocation4 + $0x47c] sm:$0xf] %vm4822_vm5, %v15293_v40  ;;  %v17333_v36 = vld [vmem:[#allocation4 + $0x25c] ss:$36 sps:$4 sm:$0xff]  }
 0x308   : > { %v17394_v55 = vld [vmem:[%s21351_s3 + $0x38] sm:$0xff]  }
 0x309   : > { %v17357_v40 = vld [vmem:[#allocation4 + $0x3bc] ss:$36 sps:$4 sm:$0xff]  }
 0x30a   : > { %8009 = vmatmul.mubr.bf16.gmra.mxu1 %v17250_v27  ;;  %v17328_v27 = vld [vmem:[#allocation4 + $0x250] ss:$36 sps:$4 sm:$0xff]  }
 0x30b   : > { %8016 = vmatprep.mubr.bf16.mxu1 %v17254_v56  ;;  %v17331_v56 = vld [vmem:[#allocation4 + $0x29c] ss:$36 sps:$4 sm:$0xff]  }
 0x30e   : > { %8170 = vmatmul.mubr.bf16.gmra.mxu0 %v17263_v12  ;;  %v17335_v12 = vld [vmem:[#allocation4 + $0x298] ss:$36 sps:$4 sm:$0xff]  }
 0x30f   : > { %8177 = vmatprep.mubr.bf16.mxu0 %v17265_v46  ;;  %v17337_v46 = vld [vmem:[#allocation4 + $0x2e4] ss:$36 sps:$4 sm:$0xff]  }
 0x312   : > { %8017 = vmatmul.mubr.bf16.gmra.mxu1 %v17262_v49  ;;  %v15785_v49 = vpop.f32.mrf.mxu1 }
 0x313   : > { %8218 = vmatprep.mubr.bf16.mxu1 %v17269_v0 }
 0x314   : > { %v15786_v0 = vpop.f32.mrf.mxu1 }
 0x316   : > { %8178 = vmatmul.mubr.bf16.gmra.mxu0 %v17273_v3 }
 0x317   : > { %8379 = vmatprep.mubr.bf16.mxu0 %v17281_v41 }
 0x31a   : > { %8219 = vmatmul.mubr.bf16.vlgmr.msra.gmra.mxu1 %v17267_v5  ;;  %v17339_v5 = vld [vmem:[#allocation4 + $0x2a4] ss:$36 sps:$4 sm:$0xff]  }
 0x31b   : > { %8226 = vmatprep.mubr.bf16.mxu1 %v17276_v31  ;;  %16759 = vmatpush3.bf16.msra.mxu1 %v19773_v48  ;;  %v17298_v48 = vld [vmem:[#allocation4 + $0x134] ss:$36 sps:$4 sm:$0xff]  }
 0x31c   : > { %16760 = vmatprep.subr.bf16.mxu1 %v17291_v6 }
 0x31e   : > { %8380 = vmatmul.mubr.bf16.vlgmr.msra.gmra.mxu0 %v17279_v43 }
 0x31f   : > { %16761 = vmatpush3.bf16.msra.mxu1 %v17291_v6  ;;  %8387 = vmatprep.mubr.bf16.mxu0 %v17287_v58  ;;  %v17346_v58 = vld [vmem:[#allocation4 + $0x2ec] ss:$36 sps:$4 sm:$0xff]  }
 0x320   : > { %16762 = vmatprep.subr.bf16.mxu1 %v17304_v14 }
 0x322   : > { %8227 = vmatmul.mubr.bf16.gmra.mxu1 %v17284_v44 }
 0x323   : > { %8234 = vmatprep.mubr.bf16.mxu1 %v17285_v45  ;;  %16763 = vmatpush3.bf16.msra.mxu1 %v17304_v14  ;;  %v15787_v45 = vadd.f32 %v15786_v0, %v15785_v49  ;;  %v17359_v49 = vld [vmem:[#allocation4 + $0x37c] ss:$36 sps:$4 sm:$0xff]  }
 0x324   : > { %16764 = vmatprep.subr.bf16.mxu1 %v17317_v20 }
 0x326   : > { %8388 = vmatmul.mubr.bf16.gmra.mxu0 %v17290_v2 }
 0x327   : > { %16765 = vmatpush3.bf16.msra.mxu1 %v17317_v20  ;;  %8395 = vmatprep.mubr.bf16.mxu0 %v17294_v28  ;;  %v17342_v20 = vld [vmem:[#allocation4 + $0x2a0] ss:$36 sps:$4 sm:$0xff]  }
 0x328   : > { %16766 = vmatprep.subr.bf16.mxu1 %v17330_v19 }
 0x32a   : > { %8235 = vmatmul.mubr.bf16.gmra.mxu1 %v17289_v1 }
 0x32b   : > { %8242 = vmatprep.mubr.bf16.mxu1 %v17292_v30  ;;  %16767 = vmatpush3.bf16.msra.mxu1 %v17330_v19 }
 0x32c   : > { %16768 = vmatprep.subr.bf16.mxu1 %v17343_v9 }
 0x32e   : > { %8396 = vmatmul.mubr.bf16.gmra.mxu0 %v17297_v37 }
 0x32f   : > { %16769 = vmatpush3.bf16.msra.mxu1 %v17343_v9  ;;  %8403 = vmatprep.mubr.bf16.mxu0 %v17300_v50  ;;  %v17350_v50 = vld [vmem:[#allocation4 + $0x374] ss:$36 sps:$4 sm:$0xff]  }
 0x330   : > { %16770 = vmatprep.subr.bf16.mxu1 %v17356_v35 }
 0x332   : > { %8243 = vmatmul.mubr.bf16.gmra.mxu1 %v17296_v33 }
 0x333   : > { %8250 = vmatprep.mubr.bf16.mxu1 %v17298_v48  ;;  %16771 = vmatpush3.bf16.msra.mxu1 %v17356_v35 }
 0x334   : > { %16772 = vmatprep.subr.bf16.mxu1 %v17369_v16  ;;  %v15788_v24 = vpop.f32.mrf.mxu1 }
 0x335   : > { %v15894_v6 = vpop.f32.mrf.mxu0 }
 0x336   : > { %8404 = vmatmul.mubr.bf16.gmra.mxu0 %v17303_v15  ;;  %v15789_v31 = vpop.f32.mrf.mxu1  ;;  %v17349_v15 = vld [vmem:[#allocation4 + $0x2e8] ss:$36 sps:$4 sm:$0xff]  }
 0x337   : > { %16773 = vmatpush3.bf16.msra.mxu1 %v17369_v16  ;;  %8411 = vmatprep.mubr.bf16.mxu0 %v17307_v51  ;;  %v15790_v3 = vadd.f32 %v15789_v31, %v15788_v24  ;;  %v15895_v41 = vpop.f32.mrf.mxu0  ;;  %v17348_v16 = vld [vmem:[#allocation4 + $0x328] ss:$36 sps:$4 sm:$0xff]  }
 0x338   : > { %v15791_v14 = vpop.f32.mrf.mxu1  ;;  %v15896_v17 = vadd.f32 %v15895_v41, %v15894_v6  ;;  %v17361_v41 = vld [vmem:[#allocation4 + $0x3b8] ss:$36 sps:$4 sm:$0xff]  }
 0x339   : > { %v15897_v4 = vpop.f32.mrf.mxu0 }
 0x33a   : > { %8251 = vmatmul.mubr.bf16.gmra.mxu1 %v17302_v60  ;;  %v15792_v62 = vpop.f32.mrf.mxu1  ;;  %v19823_v29 = vadd.f32 %v15896_v17, %v19765_v13 }
 0x33b   : > { %8258 = vmatprep.mubr.bf16.mxu1 %v17305_v54  ;;  %v15793_v25 = vadd.f32 %v15792_v62, %v15791_v14  ;;  %v15898_v22 = vpop.f32.mrf.mxu0 }
 0x33c   : > { %v15899_v43 = vadd.f32 %v15898_v22, %v15897_v4  ;;  %v17363_v4 = vld [vmem:[#allocation4 + $0x404] ss:$36 sps:$4 sm:$0xff]  }
 0x33d   : > { %v17365_v22 = vld [vmem:[#allocation4 + $0x3c4] ss:$36 sps:$4 sm:$0xff]  }
 0x33e   : > { %8412 = vmatmul.mubr.bf16.gmra.mxu0 %v17310_v47  ;;  %v15900_v19 = vpop.f32.mrf.mxu0  ;;  %v19825_v9 = vadd.f32 %v15899_v43, %v15787_v45 }
 0x33f   : > { %8419 = vmatprep.mubr.bf16.mxu0 %v17313_v61 }
 0x340   : > { %v15901_v2 = vpop.f32.mrf.mxu0 }
 0x341   : > { %v15902_v28 = vadd.f32 %v15901_v2, %v15900_v19 }
 0x342   : > { %8259 = vmatmul.mubr.bf16.gmra.mxu1 %v17309_v52  ;;  %v15903_v35 = vpop.f32.mrf.mxu0  ;;  %v17352_v52 = vld [vmem:[#allocation4 + $0x334] ss:$36 sps:$4 sm:$0xff]  }
 0x343   : > { %8266 = vmatprep.mubr.bf16.mxu1 %v17311_v26  ;;  %v19827_v48 = vadd.f32 %v15902_v28, %v15790_v3  ;;  %v17395_v28 = vld [vmem:[%s21351_s3 + $0x70] sm:$0xff]  }
 0x344   : > { %v15904_v60 = vpop.f32.mrf.mxu0 }
 0x345   : > { %v15794_v44 = vpop.f32.mrf.mxu1  ;;  %v15905_v51 = vadd.f32 %v15904_v60, %v15903_v35  ;;  %v17396_v35 = vld [vmem:[%s21351_s3 + $0x30] sm:$0xff]  }
 0x346   : > { %8420 = vmatmul.mubr.bf16.gmra.mxu0 %v17316_v39 }
 0x347   : > { %8427 = vmatprep.mubr.bf16.mxu0 %v17320_v21  ;;  %v15795_v1 = vpop.f32.mrf.mxu1  ;;  %v19829_v61 = vadd.f32 %v15905_v51, %v15793_v25  ;;  %v17362_v25 = vld [vmem:[#allocation4 + $0x378] ss:$36 sps:$4 sm:$0xff]   ;;  %v17372_v51 = vld [vmem:[#allocation4 + $0x40c] ss:$36 sps:$4 sm:$0xff]  }
 0x348   : > { %v15796_v30 = vadd.f32 %v15795_v1, %v15794_v44 }
 0x349   : > { %v15797_v13 = vpop.f32.mrf.mxu1 }
 0x34a   : > { %8267 = vmatmul.mubr.bf16.gmra.mxu1 %v17315_v8 }
 0x34b   : > { %8274 = vmatprep.mubr.bf16.mxu1 %v17318_v18  ;;  %v15798_v33 = vpop.f32.mrf.mxu1 }
 0x34c   : > { %v15799_v37 = vadd.f32 %v15798_v33, %v15797_v13  ;;  %v17367_v13 = vld [vmem:[#allocation4 + $0x400] ss:$36 sps:$4 sm:$0xff]  }
 0x34e   : > { %8428 = vmatmul.mubr.bf16.gmra.mxu0 %v17323_v42  ;;  %v17354_v42 = vld [vmem:[#allocation4 + $0x370] ss:$36 sps:$4 sm:$0xff]  }
 0x34f   : > { %8435 = vmatprep.mubr.bf16.mxu0 %v17326_v23  ;;  %v17393_v23 = vld [vmem:[%s21351_s3 + $0x78] sm:$0xff]  }
 0x350   : > { %16238 = vmatprep.subr.bf16.mxu0 %v17393_v23 }
 0x351   : > { %16239 = vmatpush3.bf16.msra.mxu0 %v17394_v55 }
 0x352   : > { %8275 = vmatmul.mubr.bf16.gmra.mxu1 %v17322_v32  ;;  %16240 = vmatprep.subr.bf16.mxu0 %v17395_v28 }
 0x353   : > { %8282 = vmatprep.mubr.bf16.mxu1 %v17324_v10 }
 0x355   : > { %16241 = vmatpush3.bf16.msra.mxu0 %v17396_v35 }
 0x356   : > { %8436 = vmatmul.mubr.bf16.gmra.mxu0 %v17329_v7  ;;  %v17355_v7 = vld [vmem:[#allocation4 + $0x330] ss:$36 sps:$4 sm:$0xff]  }
 0x357   : > { %8443 = vmatprep.mubr.bf16.mxu0 %v17333_v36 }
 0x35a   : > { %8283 = vmatmul.mubr.bf16.gmra.mxu1 %v17328_v27  ;;  %v15800_v54 = vpop.f32.mrf.mxu1 }
 0x35b   : > { %8290 = vmatprep.mubr.bf16.mxu1 %v17331_v56 }
 0x35c   : > { %v15801_v47 = vpop.f32.mrf.mxu1 }
 0x35d   : > { %v15906_v26 = vpop.f32.mrf.mxu0  ;;  %v15802_v8 = vadd.f32 %v15801_v47, %v15800_v54  ;;  %v17368_v54 = vld [vmem:[#allocation4 + $0x3c0] ss:$36 sps:$4 sm:$0xff]  }
 0x35e   : > { %8444 = vmatmul.mubr.bf16.gmra.mxu0 %v17336_v11  ;;  %v15803_v39 = vpop.f32.mrf.mxu1 }
 0x35f   : > { %8451 = vmatprep.mubr.bf16.mxu0 %v17339_v5  ;;  %v15907_v18 = vpop.f32.mrf.mxu0 }
 0x360   : > { %v15908_v21 = vadd.f32 %v15907_v18, %v15906_v26  ;;  %v15804_v10 = vpop.f32.mrf.mxu1  ;;  %v6549_v18 = vld [vmem:[#allocation4 + $0x46c] sm:$0xff] }
 0x361   : > { %v15909_v32 = vpop.f32.mrf.mxu0  ;;  %v15805_v59 = vadd.f32 %v15804_v10, %v15803_v39 }
 0x362   : > { %8291 = vmatmul.mubr.bf16.gmra.mxu1 %v17335_v12  ;;  %v19837_v53 = vadd.f32 %v15908_v21, %v15796_v30 }
 0x363   : > { %8298 = vmatprep.mubr.bf16.mxu1 %v17337_v46  ;;  %v15910_v27 = vpop.f32.mrf.mxu0 }
 0x364   : > { %v15806_v56 = vpop.f32.mrf.mxu1  ;;  %v15911_v36 = vadd.f32 %v15910_v27, %v15909_v32  ;;  %v17375_v27 = vld [vmem:[#allocation4 + $0x20] ss:$36 sps:$4 sm:$0xff]  }
 0x365   : > { %v15912_v0 = vpop.f32.mrf.mxu0 }
 0x366   : > { %8452 = vmatmul.mubr.bf16.gmra.mxu0 %v17342_v20  ;;  %v15807_v12 = vpop.f32.mrf.mxu1  ;;  %v19839_v46 = vadd.f32 %v15911_v36, %v15799_v37  ;;  %v17370_v37 = vld [vmem:[#allocation4 + $0x44c] ss:$36 sps:$4 sm:$0xff]  }
 0x367   : > { %8459 = vmatprep.mubr.bf16.mxu0 %v17346_v58  ;;  %v15808_v24 = vadd.f32 %v15807_v12, %v15806_v56  ;;  %v15913_v11 = vpop.f32.mrf.mxu0  ;;  %v17374_v36 = vld [vmem:[#allocation4 + $0x408] ss:$36 sps:$4 sm:$0xff]  }
 0x368   : > { %v15809_v5 = vpop.f32.mrf.mxu1  ;;  %v15914_v6 = vadd.f32 %v15913_v11, %v15912_v0 }
 0x369   : > { %v15915_v31 = vpop.f32.mrf.mxu0 }
 0x36a   : > { %8299 = vmatmul.mubr.bf16.gmra.mxu1 %v17341_v34  ;;  %v15810_v3 = vpop.f32.mrf.mxu1  ;;  %v19841_v14 = vadd.f32 %v15914_v6, %v15802_v8  ;;  %v6544_v8 = vld [vmem:[#allocation4 + $0x448] sm:$0xff]  ;;  %v6550_v6 = vld [vmem:[#allocation4 + $0x474] sm:$0xff] }
 0x36b   : > { %8306 = vmatprep.mubr.bf16.mxu1 %v17344_v57  ;;  %v15811_v17 = vadd.f32 %v15810_v3, %v15809_v5  ;;  %v15916_v62 = vpop.f32.mrf.mxu0  ;;  %v13843_v55 = vcombine.low %v6544_v8, %v6549_v18  ;;  %v6545_v5 = vld [vmem:[#allocation4 + $0x450] sm:$0xff] }
 0x36c   : > { %v15917_v57 = vadd.f32 %v15916_v62, %v15915_v31  ;;  %v13845_v62 = vcombine.low %v6545_v5, %v6550_v6 }
 0x36e   : > { %8460 = vmatmul.mubr.bf16.gmra.mxu0 %v17349_v15  ;;  %v19843_v45 = vadd.f32 %v15917_v57, %v15805_v59  ;;  %v17398_v57 = vld [vmem:[%s21351_s3 + $0x28] sm:$0xff]  }
 0x36f   : > { %8467 = vmatprep.mubr.bf16.mxu0 %v17352_v52 }
 0x372   : > { %8307 = vmatmul.mubr.bf16.gmra.mxu1 %v17348_v16 }
 0x373   : > { %8314 = vmatprep.mubr.bf16.mxu1 %v17350_v50 }
 0x376   : > { %8468 = vmatmul.mubr.bf16.gmra.mxu0 %v17355_v7 }
 0x377   : > { %8475 = vmatprep.mubr.bf16.mxu0 %v17359_v49 }
 0x37a   : > { %8315 = vmatmul.mubr.bf16.gmra.mxu1 %v17354_v42 }
 0x37b   : > { %8322 = vmatprep.mubr.bf16.mxu1 %v17357_v40 }
 0x37e   : > { %v15918_v44 = vpop.f32.mrf.mxu0  ;;  %8476 = vmatmul.mubr.bf16.gmra.mxu0 %v17362_v25  ;;  %v17397_v25 = vld [vmem:[%s21351_s3 + $0x68] sm:$0xff]  }
 0x37f   : > { %v15812_v34 = vpop.f32.mrf.mxu1  ;;  %8483 = vmatprep.mubr.bf16.mxu0 %v17365_v22  ;;  %16242 = vmatprep.subr.bf16.mxu0 %v17397_v25  ;;  %v17384_v25 = vld [vmem:[#allocation4 + $0x218] ss:$36 sps:$4 sm:$0xff]  }
 0x380   : > { %v15919_v58 = vpop.f32.mrf.mxu0  ;;  %16243 = vmatpush3.bf16.msra.mxu0 %v17398_v57 }
 0x381   : > { %v15813_v20 = vpop.f32.mrf.mxu1  ;;  %v15920_v1 = vadd.f32 %v15919_v58, %v15918_v44 }
 0x382   : > { %8323 = vmatmul.mubr.bf16.gmra.mxu1 %v17361_v41  ;;  %v15814_v43 = vadd.f32 %v15813_v20, %v15812_v34  ;;  %v15921_v30 = vpop.f32.mrf.mxu0  ;;  %v17378_v34 = vld [vmem:[#allocation4 + $0x68] ss:$36 sps:$4 sm:$0xff]   ;;  %v17379_v20 = vld [vmem:[#allocation4 + $0xb0] ss:$36 sps:$4 sm:$0xff]  }
 0x383   : > { %8330 = vmatprep.mubr.bf16.mxu1 %v17363_v4  ;;  %v15815_v19 = vpop.f32.mrf.mxu1  ;;  %v19851_v33 = vadd.f32 %v15920_v1, %v15808_v24 }
 0x384   : > { %v15922_v50 = vpop.f32.mrf.mxu0 }
 0x385   : > { %v15816_v2 = vpop.f32.mrf.mxu1  ;;  %v15923_v15 = vadd.f32 %v15922_v50, %v15921_v30  ;;  %v17380_v50 = vld [vmem:[#allocation4 + $0xf8] ss:$36 sps:$4 sm:$0xff]  }
 0x386   : > { %v15817_v16 = vadd.f32 %v15816_v2, %v15815_v19  ;;  %v15924_v52 = vpop.f32.mrf.mxu0  ;;  %8484 = vmatmul.mubr.bf16.gmra.mxu0 %v17368_v54 }
 0x387   : > { %v19853_v47 = vadd.f32 %v15923_v15, %v15811_v17  ;;  %8491 = vmatprep.mubr.bf16.mxu0 %v17372_v51  ;;  %v17381_v15 = vld [vmem:[#allocation4 + $0x140] ss:$36 sps:$4 sm:$0xff]  }
 0x388   : > { %v15925_v21 = vpop.f32.mrf.mxu0 }
 0x389   : > { %v15926_v10 = vadd.f32 %v15925_v21, %v15924_v52 }
 0x38a   : > { %v15818_v60 = vpop.f32.mrf.mxu1  ;;  %8331 = vmatmul.mubr.bf16.gmra.mxu1 %v17367_v13  ;;  %v15927_v42 = vpop.f32.mrf.mxu0 }
 0x38b   : > { %8338 = vmatprep.mubr.bf16.mxu1 %v17370_v37  ;;  %v19855_v59 = vadd.f32 %v15926_v10, %v15814_v43 }
 0x38c   : > { %v15819_v26 = vpop.f32.mrf.mxu1  ;;  %v15928_v56 = vpop.f32.mrf.mxu0 }
 0x38d   : > { %v15820_v39 = vadd.f32 %v15819_v26, %v15818_v60  ;;  %v15929_v49 = vadd.f32 %v15928_v56, %v15927_v42  ;;  %v17400_v56 = vld [vmem:[%s21351_s3 + $0x20] sm:$0xff]  }
 0x38e   : > { %v15821_v32 = vpop.f32.mrf.mxu1  ;;  %v15930_v0 = vpop.f32.mrf.mxu0  ;;  %8492 = vmatmul.mubr.bf16.gmra.mxu0 %v17374_v36 }
 0x38f   : > { %v19857_v24 = vadd.f32 %v15929_v49, %v15817_v16  ;;  %8499 = vmatprep.mubr.bf16.mxu0 %v19806_v38  ;;  %v17383_v49 = vld [vmem:[#allocation4 + $0x1d0] ss:$36 sps:$4 sm:$0xff]  }
 0x390   : > { %v15822_v23 = vpop.f32.mrf.mxu1  ;;  %v15931_v31 = vpop.f32.mrf.mxu0 }
 0x391   : > { %v15823_v40 = vadd.f32 %v15822_v23, %v15821_v32  ;;  %v15932_v41 = vadd.f32 %v15931_v31, %v15930_v0 }
 0x392   : > { %v15824_v7 = vpop.f32.mrf.mxu1  ;;  %8339 = vmatmul.mubr.bf16.gmra.mxu1 %v13843_v55  ;;  %v15933_v17 = vpop.f32.mrf.mxu0 }
 0x393   : > { %16774 = vmatprep.mubr.bf16.mxu1 %v17375_v27  ;;  %v19866_v22 = vadd.f32 %v15932_v41, %v15820_v39  ;;  %v17399_v27 = vld [vmem:[%s21351_s3 + $0x60] sm:$0xff]  }
 0x394   : > { %v15825_v12 = vpop.f32.mrf.mxu1  ;;  %v15934_v38 = vpop.f32.mrf.mxu0  ;;  %16244 = vmatprep.subr.bf16.mxu0 %v17399_v27 }
 0x395   : > { %v15826_v11 = vadd.f32 %v15825_v12, %v15824_v7  ;;  %v15935_v58 = vadd.f32 %v15934_v38, %v15933_v17  ;;  %16245 = vmatpush3.bf16.msra.mxu0 %v17400_v56 }
 0x396   : > { %v15827_v3 = vpop.f32.mrf.mxu1  ;;  %v15936_v19 = vpop.f32.mrf.mxu0  ;;  %8500 = vmatmul.mubr.bf16.gmra.mxu0 %v13845_v62 }
 0x397   : > { %v19868_v30 = vadd.f32 %v15935_v58, %v15823_v40  ;;  %v17382_v40 = vld [vmem:[#allocation4 + $0x188] ss:$36 sps:$4 sm:$0xff]  }
 0x398   : > { %v15828_v4 = vpop.f32.mrf.mxu1  ;;  %v15937_v13 = vpop.f32.mrf.mxu0 }
 0x399   : > { %v15829_v44 = vadd.f32 %v15828_v4, %v15827_v3  ;;  %v15938_v35 = vadd.f32 %v15937_v13, %v15936_v19 }
 0x39a   : > { %v15830_v43 = vpop.f32.mrf.mxu1  ;;  %16775 = vmatmul.mubr.bf16.vlgmr.msra.gmra.mxu1 %v17378_v34  ;;  %v15939_v16 = vpop.f32.mrf.mxu0 }
 0x39b   : > { %16778 = vmatprep.mubr.bf16.mxu1 %v17379_v20  ;;  %v19870_v60 = vadd.f32 %v15938_v35, %v15826_v11  ;;  %v17385_v20 = vld [vmem:[#allocation4 + $0x260] ss:$36 sps:$4 sm:$0xff]  }
 0x39c   : > { %v15831_v1 = vpop.f32.mrf.mxu1  ;;  %v15940_v51 = vpop.f32.mrf.mxu0 }
 0x39d   : > { %v15832_v2 = vadd.f32 %v15831_v1, %v15830_v43  ;;  %v15941_v26 = vadd.f32 %v15940_v51, %v15939_v16  ;;  %v17402_v51 = vld [vmem:[%s21351_s3 + $0x18] sm:$0xff]  }
 0x39e   : > { %v15833_v28 = vpop.f32.mrf.mxu1  ;;  %v15942_v8 = vpop.f32.mrf.mxu0 }
 0x39f   : > { %v19872_v39 = vadd.f32 %v15941_v26, %v15829_v44 }
 0x3a0   : > { %v15834_v37 = vpop.f32.mrf.mxu1  ;;  %v15943_v32 = vpop.f32.mrf.mxu0 }
 0x3a1   : > { %v15835_v54 = vadd.f32 %v15834_v37, %v15833_v28  ;;  %v15944_v42 = vadd.f32 %v15943_v32, %v15942_v8  ;;  %v17387_v8 = vld [vmem:[#allocation4 + $0x2f0] ss:$36 sps:$4 sm:$0xff]  }
 0x3a2   : > { %v15836_v52 = vpop.f32.mrf.mxu1  ;;  %16779 = vmatmul.mubr.bf16.gmra.mxu1 %v17380_v50  ;;  %v15945_v23 = vpop.f32.mrf.mxu0 }
 0x3a3   : > { %16782 = vmatprep.mubr.bf16.mxu1 %v17381_v15  ;;  %v19880_v7 = vadd.f32 %v15944_v42, %v15832_v2  ;;  %v17401_v15 = vld [vmem:[%s21351_s3 + $0x58] sm:$0xff]  }
 0x3a4   : > { %v15837_v18 = vpop.f32.mrf.mxu1  ;;  %v15946_v0 = vpop.f32.mrf.mxu0  ;;  %16246 = vmatprep.subr.bf16.mxu0 %v17401_v15 }
 0x3a5   : > { %v15838_v21 = vadd.f32 %v15837_v18, %v15836_v52  ;;  %v15947_v11 = vadd.f32 %v15946_v0, %v15945_v23  ;;  %16247 = vmatpush3.bf16.msra.mxu0 %v17402_v51  ;;  %v17388_v0 = vld [vmem:[#allocation4 + $0x338] ss:$36 sps:$4 sm:$0xff]  }
 0x3a6   : > { %v15839_v10 = vpop.f32.mrf.mxu1  ;;  %v15948_v5 = vpop.f32.mrf.mxu0 }
 0x3a7   : > { %v19882_v31 = vadd.f32 %v15947_v11, %v15835_v54  ;;  %v17386_v54 = vld [vmem:[#allocation4 + $0x2a8] ss:$36 sps:$4 sm:$0xff]   ;;  %v17389_v11 = vld [vmem:[#allocation4 + $0x380] ss:$36 sps:$4 sm:$0xff]  }
 0x3a8   : > { %v15840_v55 = vpop.f32.mrf.mxu1  ;;  %v15949_v41 = vpop.f32.mrf.mxu0 }
 0x3a9   : > { %v15841_v36 = vadd.f32 %v15840_v55, %v15839_v10  ;;  %v15950_v4 = vadd.f32 %v15949_v41, %v15948_v5 }
 0x3aa   : > { %v15842_v12 = vpop.f32.mrf.mxu1  ;;  %16783 = vmatmul.mubr.bf16.gmra.mxu1 %v17382_v40  ;;  %v15951_v62 = vpop.f32.mrf.mxu0 }
 0x3ab   : > { %16786 = vmatprep.mubr.bf16.mxu1 %v17383_v49  ;;  %v19884_v57 = vadd.f32 %v15950_v4, %v15838_v21 }
 0x3ac   : > { %v15843_v6 = vpop.f32.mrf.mxu1  ;;  %v15952_v38 = vpop.f32.mrf.mxu0 }
 0x3ad   : > { %v15844_v3 = vadd.f32 %v15843_v6, %v15842_v12  ;;  %v15953_v58 = vadd.f32 %v15952_v38, %v15951_v62 }
 0x3ae   : > { %v15845_v17 = vpop.f32.mrf.mxu1  ;;  %v15954_v19 = vpop.f32.mrf.mxu0 }
 0x3af   : > { %v19886_v2 = vadd.f32 %v15953_v58, %v15841_v36  ;;  %v17403_v58 = vld [vmem:[%s21351_s3 + $0x50] sm:$0xff]  }
 0x3b0   : > { %v15846_v34 = vpop.f32.mrf.mxu1  ;;  %v15955_v28 = vpop.f32.mrf.mxu0  ;;  %16248 = vmatprep.subr.bf16.mxu0 %v17403_v58 }
 0x3b1   : > { %v15847_v44 = vadd.f32 %v15846_v34, %v15845_v17  ;;  %v15956_v16 = vadd.f32 %v15955_v28, %v15954_v19  ;;  %v17404_v19 = vld [vmem:[%s21351_s3 + $0x10] sm:$0xff]  }
 0x3b2   : > { %v15848_v43 = vpop.f32.mrf.mxu1  ;;  %16787 = vmatmul.mubr.bf16.gmra.mxu1 %v17384_v25  ;;  %v15957_v37 = vpop.f32.mrf.mxu0  ;;  %16249 = vmatpush3.bf16.msra.mxu0 %v17404_v19 }
 0x3b3   : > { %16790 = vmatprep.mubr.bf16.mxu1 %v17385_v20  ;;  %v19894_v52 = vadd.f32 %v15956_v16, %v15844_v3 }
 0x3b4   : > { %v15849_v1 = vpop.f32.mrf.mxu1  ;;  %v15958_v18 = vpop.f32.mrf.mxu0 }
 0x3b5   : > { %v15850_v13 = vadd.f32 %v15849_v1, %v15848_v43  ;;  %v15959_v32 = vadd.f32 %v15958_v18, %v15957_v37  ;;  %v17390_v43 = vld [vmem:[#allocation4 + $0x3c8] ss:$36 sps:$4 sm:$0xff]  }
 0x3b6   : > { %v15851_v35 = vpop.f32.mrf.mxu1  ;;  %v15960_v10 = vpop.f32.mrf.mxu0 }
 0x3b7   : > { %v19896_v23 = vadd.f32 %v15959_v32, %v15847_v44 }
 0x3b8   : > { %v15852_v50 = vpop.f32.mrf.mxu1  ;;  %v15961_v40 = vpop.f32.mrf.mxu0 }
 0x3b9   : > { %v15853_v26 = vadd.f32 %v15852_v50, %v15851_v35  ;;  %v15962_v56 = vadd.f32 %v15961_v40, %v15960_v10 }
 0x3ba   : > { %v15854_v21 = vpop.f32.mrf.mxu1  ;;  %16791 = vmatmul.mubr.bf16.gmra.mxu1 %v17386_v54  ;;  %v15963_v36 = vpop.f32.mrf.mxu0 }
 0x3bb   : > { %16794 = vmatprep.mubr.bf16.mxu1 %v17387_v8  ;;  %v19898_v12 = vadd.f32 %v15962_v56, %v15850_v13  ;;  %v17391_v13 = vld [vmem:[#allocation4 + $0x410] ss:$36 sps:$4 sm:$0xff]  }
 0x3bc   : > { %v15855_v42 = vpop.f32.mrf.mxu1  ;;  %v15964_v5 = vpop.f32.mrf.mxu0 }
 0x3bd   : > { %v15856_v55 = vadd.f32 %v15855_v42, %v15854_v21  ;;  %v15965_v3 = vadd.f32 %v15964_v5, %v15963_v36 }
 0x3be   : > { %v15857_v27 = vpop.f32.mrf.mxu1  ;;  %v15966_v41 = vpop.f32.mrf.mxu0 }
 0x3bf   : > { %v19900_v4 = vadd.f32 %v15965_v3, %v15853_v26 }
 0x3c0   : > { %v15858_v49 = vpop.f32.mrf.mxu1  ;;  %v15967_v34 = vpop.f32.mrf.mxu0 }
 0x3c1   : > { %v15968_v44 = vadd.f32 %v15967_v34, %v15966_v41  ;;  %v15859_v16 = vadd.f32 %v15858_v49, %v15857_v27 }
 0x3c2   : > { %v15860_v6 = vpop.f32.mrf.mxu1  ;;  %16795 = vmatmul.mubr.bf16.gmra.mxu1 %v17388_v0  ;;  %v15969_v20 = vpop.f32.mrf.mxu0 }
 0x3c3   : > { %16798 = vmatprep.mubr.bf16.mxu1 %v17389_v11  ;;  %v19908_v1 = vadd.f32 %v15968_v44, %v15856_v55 }
 0x3c4   : > { %v15861_v17 = vpop.f32.mrf.mxu1  ;;  %v15970_v28 = vpop.f32.mrf.mxu0 }
 0x3c5   : > { %v15862_v62 = vadd.f32 %v15861_v17, %v15860_v6  ;;  %v15971_v37 = vadd.f32 %v15970_v28, %v15969_v20  ;;  %v17405_v17 = vld [vmem:[%s21351_s3 + $0x48] sm:$0xff]  }
 0x3c6   : > { %v15863_v25 = vpop.f32.mrf.mxu1  ;;  %v15972_v50 = vpop.f32.mrf.mxu0  ;;  %16250 = vmatprep.subr.bf16.mxu0 %v17405_v17 }
 0x3c7   : > { %v19910_v15 = vadd.f32 %v15971_v37, %v15859_v16 }
 0x3c8   : > { %v15864_v38 = vpop.f32.mrf.mxu1  ;;  %v15973_v26 = vpop.f32.mrf.mxu0 }
 0x3c9   : > { %v15974_v18 = vadd.f32 %v15973_v26, %v15972_v50  ;;  %v15865_v40 = vadd.f32 %v15864_v38, %v15863_v25 }
 0x3ca   : > { %v15866_v35 = vpop.f32.mrf.mxu1  ;;  %16799 = vmatmul.mubr.bf16.gmra.mxu1 %v17390_v43  ;;  %v15975_v21 = vpop.f32.mrf.mxu0 }
 0x3cb   : > { %16802 = vmatprep.mubr.bf16.mxu1 %v17391_v13  ;;  %v19912_v10 = vadd.f32 %v15974_v18, %v15862_v62 }
 0x3cc   : > { %v15867_v54 = vpop.f32.mrf.mxu1  ;;  %v15976_v42 = vpop.f32.mrf.mxu0 }
 0x3cd   : > { %v15868_v51 = vadd.f32 %v15867_v54, %v15866_v35  ;;  %v15977_v27 = vadd.f32 %v15976_v42, %v15975_v21 }
 0x3ce   : > { %v15869_v8 = vpop.f32.mrf.mxu1  ;;  %v15978_v56 = vpop.f32.mrf.mxu0 }
 0x3cf   : > { %v19915_v49 = vadd.f32 %v15977_v27, %v15865_v40 }
 0x3d0   : > { %v15870_v32 = vpop.f32.mrf.mxu1  ;;  %v15979_v11 = vpop.f32.mrf.mxu0 }
 0x3d1   : > { %v15980_v6 = vadd.f32 %v15979_v11, %v15978_v56  ;;  %v15871_v44 = vadd.f32 %v15870_v32, %v15869_v8 }
 0x3d2   : > { %v15872_v55 = vpop.f32.mrf.mxu1  ;;  %16803 = vmatmul.mubr.bf16.gmra.mxu1 %v19818_v63  ;;  %v15981_v3 = vpop.f32.mrf.mxu0  ;;  %v17406_v63 = vld [vmem:[%s21351_s3 + $0x8] sm:$0xff]  }
 0x3d3   : > { %v19923_v62 = vadd.f32 %v15980_v6, %v15868_v51  ;;  %16251 = vmatpush3.bf16.msra.mxu0 %v17406_v63 }
 0x3d4   : > { %v15873_v36 = vpop.f32.mrf.mxu1  ;;  %v15982_v34 = vpop.f32.mrf.mxu0 }
 0x3d5   : > { %v15874_v0 = vadd.f32 %v15873_v36, %v15872_v55  ;;  %v15983_v20 = vadd.f32 %v15982_v34, %v15981_v3 }
 0x3d6   : > { %v15875_v5 = vpop.f32.mrf.mxu1  ;;  %v15984_v38 = vpop.f32.mrf.mxu0 }
 0x3d7   : > { %v19925_v58 = vadd.f32 %v15983_v20, %v15871_v44  ;;  %v17409_v20 = vld [vmem:[%s21351_s3 + $0xf0] sm:$0xff]  }
 0x3d8   : > { %v15876_v41 = vpop.f32.mrf.mxu1  ;;  %v15985_v13 = vpop.f32.mrf.mxu0 }
 0x3d9   : > { %v15986_v35 = vadd.f32 %v15985_v13, %v15984_v38  ;;  %v15877_v8 = vadd.f32 %v15876_v41, %v15875_v5  ;;  %v17408_v5 = vld [vmem:[%s21351_s3 + $0xb8] sm:$0xff]   ;;  %v17410_v38 = vld [vmem:[%s21351_s3 + $0xb0] sm:$0xff]  }
 0x3da   : > { %v16006_v25 = vpop.f32.mrf.mxu1  ;;  %v15987_v37 = vpop.f32.mrf.mxu0 }
 0x3db   : > { %v19928_v54 = vadd.f32 %v15986_v35, %v15874_v0  ;;  %v17407_v0 = vld [vmem:[%s21351_s3 + $0xf8] sm:$0xff]   ;;  %v17411_v35 = vld [vmem:[%s21351_s3 + $0x40] sm:$0xff]  }
 0x3dc   : > { %v16007_v43 = vpop.f32.mrf.mxu1  ;;  %v15988_v26 = vpop.f32.mrf.mxu0  ;;  %16350 = vmatprep.subr.bf16.mxu1 %v17407_v0  ;;  %16252 = vmatprep.subr.bf16.mxu0 %v17411_v35  ;;  %v17417_v0 = vld [vmem:[%s21351_s3 + $0xd8] sm:$0xff]  }
 0x3dd   : > { %v16008_v19 = vadd.f32 %v16007_v43, %v16006_v25  ;;  %21387 = vst [vmem:[#allocation9_spill] sm:$0xff] %v19928_v54  ;;  %v15989_v21 = vadd.f32 %v15988_v26, %v15987_v37  ;;  %16351 = vmatpush3.bf16.msra.mxu1 %v17408_v5  ;;  %v17413_v37 = vld [vmem:[%s21351_s3] sm:$0xff]   ;;  %v17418_v5 = vld [vmem:[%s21351_s3 + $0x98] sm:$0xff]  }
 0x3de   : > { %v16009_v28 = vpop.f32.mrf.mxu1  ;;  %v16118_v42 = vpop.f32.mrf.mxu0  ;;  %16352 = vmatprep.subr.bf16.mxu1 %v17409_v20  ;;  %16253 = vmatpush3.bf16.msra.mxu0 %v17413_v37  ;;  %v17422_v20 = vld [vmem:[%s21351_s3 + $0xd0] sm:$0xff]  }
 0x3df   : > { %v8221_v16 = vadd.f32 %v16008_v19, %v19823_v29  ;;  %v19931_v40 = vadd.f32 %v15989_v21, %v15877_v8 }
 0x3e0   : > { %v16010_v50 = vpop.f32.mrf.mxu1  ;;  %v16119_v56 = vpop.f32.mrf.mxu0 }
 0x3e1   : > { %v16011_v51 = vadd.f32 %v16010_v50, %v16009_v28  ;;  %21388 = vst [vmem:[#allocation7_spill] sm:$0xff] %v19931_v40  ;;  %v16120_v11 = vadd.f32 %v16119_v56, %v16118_v42  ;;  %16353 = vmatpush3.bf16.msra.mxu1 %v17410_v38  ;;  %v17416_v42 = vld [vmem:[%s21351_s3 + $0xa0] sm:$0xff]   ;;  %v17423_v38 = vld [vmem:[%s21351_s3 + $0x90] sm:$0xff]  }
 0x3e2   : > { %v16012_v18 = vpop.f32.mrf.mxu1 }
 0x3e3   : > { %v8224_v32 = vadd.f32 %v16011_v51, %v19825_v9  ;;  %v16121_v9 = vpop.f32.mrf.mxu0  ;;  %v19942_v41 = vadd.f32 %v16120_v11, %v8221_v16  ;;  %v17412_v16 = vld [vmem:[%s21351_s3 + $0xe8] sm:$0xff]  }
 0x3e4   : > { %v16013_v55 = vpop.f32.mrf.mxu1  ;;  %16354 = vmatprep.subr.bf16.mxu1 %v17412_v16 }
 0x3e5   : > { %v16014_v27 = vadd.f32 %v16013_v55, %v16012_v18  ;;  %v16122_v17 = vpop.f32.mrf.mxu0 }
 0x3e6   : > { %v16015_v36 = vpop.f32.mrf.mxu1  ;;  %v16123_v34 = vadd.f32 %v16122_v17, %v16121_v9  ;;  %v17419_v17 = vld [vmem:[#allocation4] ss:$36 sps:$4 sm:$0xff]  }
 0x3e7   : > { %v19934_v29 = vadd.f32 %v16014_v27, %v19827_v48  ;;  %v19947_v25 = vpop.f32.mrf.mxu0 }
 0x3e8   : > { %v16016_v6 = vpop.f32.mrf.mxu1  ;;  %v19955_v19 = vadd.f32 %v16123_v34, %v8224_v32  ;;  %v17415_v32 = vld [vmem:[%s21351_s3 + $0xe0] sm:$0xff]  }
 0x3e9   : > { %v16017_v3 = vadd.f32 %v16016_v6, %v16015_v36  ;;  %v19957_v13 = vpop.f32.mrf.mxu0 }
 0x3ea   : > { %v16018_v63 = vpop.f32.mrf.mxu1  ;;  %21389 = vst [vmem:[#allocation10_spill] sm:$0xff] %v19955_v19 }
 0x3eb   : > { %v19945_v48 = vadd.f32 %v16017_v3, %v19829_v61  ;;  %v19971_v50 = vpop.f32.mrf.mxu0 }
 0x3ec   : > { %v16019_v44 = vpop.f32.mrf.mxu1 }
 0x3ed   : > { %v16020_v43 = vadd.f32 %v16019_v44, %v16018_v63  ;;  %v19976_v18 = vpop.f32.mrf.mxu0  ;;  %v17421_v63 = vld [vmem:[#allocation4 + $0x4] ss:$36 sps:$4 sm:$0xff]  }
 0x3ee   : > { %v16021_v28 = vpop.f32.mrf.mxu1  ;;  %12043 = vmatprep.mubr.bf16.mxu0 %v17421_v63 }
 0x3ef   : > { %v19960_v61 = vadd.f32 %v16020_v43, %v19837_v53  ;;  %v17414_v53 = vld [vmem:[%s21351_s3 + $0xa8] sm:$0xff]   ;;  %v19987_v55 = vpop.f32.mrf.mxu0  ;;  %12044 = vmatmul.mubr.bf16.vlgmr.msra.gmra.mxu0 %v17419_v17 }
 0x3f0   : > { %v16022_v51 = vpop.f32.mrf.mxu1  ;;  %16355 = vmatpush3.bf16.msra.mxu1 %v17414_v53  ;;  %v17425_v53 = vld [vmem:[%s21351_s3 + $0x178] sm:$0xff]  }
 0x3f1   : > { %v16023_v26 = vadd.f32 %v16022_v51, %v16021_v28  ;;  %16356 = vmatprep.subr.bf16.mxu1 %v17415_v32  ;;  %v19989_v36 = vpop.f32.mrf.mxu0  ;;  %v17424_v51 = vld [vmem:[%s21351_s3 + $0xc8] sm:$0xff]   ;;  %16462 = vmatprep.subr.bf16.mxu0 %v17425_v53 }
 0x3f2   : > { %v16024_v8 = vpop.f32.mrf.mxu1 }
 0x3f3   : > { %v19979_v21 = vadd.f32 %v16023_v26, %v19839_v46  ;;  %v20000_v9 = vpop.f32.mrf.mxu0  ;;  %v17426_v26 = vld [vmem:[%s21351_s3 + $0x88] sm:$0xff]  }
 0x3f4   : > { %v16025_v27 = vpop.f32.mrf.mxu1  ;;  %16357 = vmatpush3.bf16.msra.mxu1 %v17416_v42 }
 0x3f5   : > { %v16026_v56 = vadd.f32 %v16025_v27, %v16024_v8  ;;  %16358 = vmatprep.subr.bf16.mxu1 %v17417_v0  ;;  %v20002_v34 = vpop.f32.mrf.mxu0  ;;  %v17428_v0 = vld [vmem:[%s21351_s3 + $0xc0] sm:$0xff]  }
 0x3f6   : > { %v16027_v11 = vpop.f32.mrf.mxu1 }
 0x3f7   : > { %v19992_v46 = vadd.f32 %v16026_v56, %v19841_v14  ;;  %v20013_v43 = vpop.f32.mrf.mxu0 }
 0x3f8   : > { %v16028_v6 = vpop.f32.mrf.mxu1  ;;  %16359 = vmatpush3.bf16.msra.mxu1 %v17418_v5  ;;  %v17429_v5 = vld [vmem:[%s21351_s3 + $0x80] sm:$0xff]  }
 0x3f9   : > { %v16029_v3 = vadd.f32 %v16028_v6, %v16027_v11  ;;  %16360 = vmatprep.subr.bf16.mxu1 %v17422_v20  ;;  %v20015_v16 = vpop.f32.mrf.mxu0 }
 0x3fa   : > { %v16030_v14 = vpop.f32.mrf.mxu1 }
 0x3fb   : > { %v20005_v44 = vadd.f32 %v16029_v3, %v19843_v45  ;;  %v20029_v8 = vpop.f32.mrf.mxu0 }
 0x3fc   : > { %v16031_v28 = vpop.f32.mrf.mxu1  ;;  %16361 = vmatpush3.bf16.msra.mxu1 %v17423_v38 }
 0x3fd   : > { %v16032_v35 = vadd.f32 %v16031_v28, %v16030_v14  ;;  %16362 = vmatprep.subr.bf16.mxu1 %v17424_v51  ;;  %v20034_v27 = vpop.f32.mrf.mxu0 }
 0x3fe   : > { %v16033_v45 = vpop.f32.mrf.mxu1 }
 0x3ff   : > { %v20018_v37 = vadd.f32 %v16032_v35, %v19851_v33  ;;  %v17427_v33 = vld [vmem:[%s21351_s3 + $0x138] sm:$0xff]   ;;  %v20045_v6 = vpop.f32.mrf.mxu0 }
 0x400   : > { %v16034_v32 = vpop.f32.mrf.mxu1  ;;  %16463 = vmatpush3.bf16.msra.mxu0 %v17427_v33  ;;  %16363 = vmatpush3.bf16.msra.mxu1 %v17426_v26 }
 0x401   : > { %v16035_v42 = vadd.f32 %v16034_v32, %v16033_v45  ;;  %16364 = vmatprep.subr.bf16.mxu1 %v17428_v0  ;;  %v20047_v63 = vpop.f32.mrf.mxu0  ;;  %v17449_v0 = vld [vmem:[%s21351_s3 + $0x130] sm:$0xff]  }
 0x402   : > { %v16036_v56 = vpop.f32.mrf.mxu1 }
 0x403   : > { %v20037_v11 = vadd.f32 %v16035_v42, %v19853_v47  ;;  %v20052_v20 = vpop.f32.mrf.mxu0 }
 0x404   : > { %v16037_v3 = vpop.f32.mrf.mxu1  ;;  %16365 = vmatpush3.bf16.msra.mxu1 %v17429_v5 }
 0x405   : > { %21390 = vst [vmem:[#allocation8_spill] sm:$0xff] %v20037_v11  ;;  %v16038_v17 = vadd.f32 %v16037_v3, %v16036_v56  ;;  %v20054_v35 = vpop.f32.mrf.mxu0  ;;  %v17442_v56 = vld [vmem:[%s21351_s3 + $0x170] sm:$0xff]  }
 0x406   : > { %v16039_v14 = vpop.f32.mrf.mxu1  ;;  %16464 = vmatprep.subr.bf16.mxu0 %v17442_v56 }
 0x407   : > { %v20050_v47 = vadd.f32 %v16038_v17, %v19855_v59  ;;  %v20059_v53 = vpop.f32.mrf.mxu0  ;;  %16465 = vmatpush3.bf16.msra.mxu0 %v17449_v0 }
 0x408   : > { %v16040_v38 = vpop.f32.mrf.mxu1 }
 0x409   : > { %21391 = vst [vmem:[#allocation16_spill] sm:$0xff] %v20050_v47  ;;  %v16041_v28 = vadd.f32 %v16040_v38, %v16039_v14  ;;  %v20061_v33 = vpop.f32.mrf.mxu0 }
 0x40a   : > { %v16042_v45 = vpop.f32.mrf.mxu1 }
 0x40b   : > { %v20057_v51 = vadd.f32 %v16041_v28, %v19857_v24  ;;  %v20072_v24 = vpop.f32.mrf.mxu0 }
 0x40c   : > { %v16043_v26 = vpop.f32.mrf.mxu1 }
 0x40d   : > { %21392 = vst [vmem:[#allocation18_spill] sm:$0xff] %v20057_v51  ;;  %v16044_v32 = vadd.f32 %v16043_v26, %v16042_v45  ;;  %v20074_v17 = vpop.f32.mrf.mxu0 }
 0x40e   : > { %v16045_v42 = vpop.f32.mrf.mxu1 }
 0x40f   : > { %v20064_v59 = vadd.f32 %v16044_v32, %v19866_v22  ;;  %v20079_v38 = vpop.f32.mrf.mxu0 }
 0x410   : > { %v16046_v5 = vpop.f32.mrf.mxu1 }
 0x411   : > { %21393 = vst [vmem:[#allocation13_spill] sm:$0xff] %v20064_v59  ;;  %v16047_v3 = vadd.f32 %v16046_v5, %v16045_v42  ;;  %v20081_v26 = vpop.f32.mrf.mxu0 }
 0x412   : > { %v16048_v14 = vpop.f32.mrf.mxu1 }
 0x413   : > { %v20077_v22 = vadd.f32 %v16047_v3, %v19868_v30  ;;  %v20086_v54 = vpop.f32.mrf.mxu0 }
 0x414   : > { %v16049_v28 = vpop.f32.mrf.mxu1 }
 0x415   : > { %21394 = vst [vmem:[#allocation11_spill] sm:$0xff] %v20077_v22  ;;  %v16050_v45 = vadd.f32 %v16049_v28, %v16048_v14  ;;  %v20088_v5 = vpop.f32.mrf.mxu0 }
 0x416   : > { %v16051_v32 = vpop.f32.mrf.mxu1 }
 0x417   : > { %v20084_v40 = vadd.f32 %v16050_v45, %v19870_v60  ;;  %v20093_v3 = vpop.f32.mrf.mxu0  ;;  %v17456_v45 = vld [vmem:[%s21351_s3 + $0x168] sm:$0xff]  }
 0x418   : > { %v16052_v42 = vpop.f32.mrf.mxu1  ;;  %16466 = vmatprep.subr.bf16.mxu0 %v17456_v45 }
 0x419   : > { %21395 = vst [vmem:[#allocation14_spill] sm:$0xff] %v20084_v40  ;;  %v16053_v56 = vadd.f32 %v16052_v42, %v16051_v32  ;;  %v20095_v28 = vpop.f32.mrf.mxu0  ;;  %v17463_v32 = vld [vmem:[%s21351_s3 + $0x128] sm:$0xff]  }
 0x41a   : > { %v16054_v0 = vpop.f32.mrf.mxu1  ;;  %16467 = vmatpush3.bf16.msra.mxu0 %v17463_v32 }
 0x41b   : > { %v20091_v30 = vadd.f32 %v16053_v56, %v19872_v39  ;;  %v20106_v39 = vpop.f32.mrf.mxu0 }
 0x41c   : > { %v16055_v22 = vpop.f32.mrf.mxu1 }
 0x41d   : > { %21396 = vst [vmem:[#allocation12_spill] sm:$0xff] %v20091_v30  ;;  %v16056_v14 = vadd.f32 %v16055_v22, %v16054_v0  ;;  %v20108_v22 = vpop.f32.mrf.mxu0 }
 0x41e   : > { %v16057_v19 = vpop.f32.mrf.mxu1 }
 0x41f   : > { %v20098_v60 = vadd.f32 %v16056_v14, %v19880_v7  ;;  %v20113_v14 = vpop.f32.mrf.mxu0 }
 0x420   : > { %v16058_v42 = vpop.f32.mrf.mxu1 }
 0x421   : > { %21397 = vst [vmem:[#allocation5_spill] sm:$0xff] %v20098_v60  ;;  %v16059_v56 = vadd.f32 %v16058_v42, %v16057_v19  ;;  %v20115_v40 = vpop.f32.mrf.mxu0  ;;  %v17470_v19 = vld [vmem:[%s21351_s3 + $0x160] sm:$0xff]  }
 0x422   : > { %v16060_v0 = vpop.f32.mrf.mxu1  ;;  %16468 = vmatprep.subr.bf16.mxu0 %v17470_v19  ;;  %v17484_v19 = vld [vmem:[%s21351_s3 + $0x1f8] sm:$0xff]  }
 0x423   : > { %v20111_v7 = vadd.f32 %v16059_v56, %v19882_v31  ;;  %v20123_v45 = vpop.f32.mrf.mxu0  ;;  %v17477_v31 = vld [vmem:[%s21351_s3 + $0x120] sm:$0xff]   ;;  %16574 = vmatprep.subr.bf16.mxu1 %v17484_v19 }
 0x424   : > { %v16061_v60 = vpop.f32.mrf.mxu1  ;;  %21400 = vst [vmem:[#allocation15_spill] sm:$0xff] %v20123_v45  ;;  %16469 = vmatpush3.bf16.msra.mxu0 %v17477_v31 }
 0x425   : > { %21398 = vst [vmem:[#allocation19_spill] sm:$0xff] %v20111_v7  ;;  %v16062_v30 = vadd.f32 %v16061_v60, %v16060_v0  ;;  %v20128_v60 = vpop.f32.mrf.mxu0 }
 0x426   : > { %v16063_v59 = vpop.f32.mrf.mxu1 }
 0x427   : > { %v20118_v11 = vadd.f32 %v16062_v30, %v19884_v57  ;;  %v20133_v30 = vpop.f32.mrf.mxu0 }
 0x428   : > { %v16064_v32 = vpop.f32.mrf.mxu1 }
 0x429   : > { %21399 = vst [vmem:[#allocation20_spill] sm:$0xff] %v20118_v11  ;;  %v16065_v42 = vadd.f32 %v16064_v32, %v16063_v59  ;;  %v20135_v7 = vpop.f32.mrf.mxu0 }
 0x42a   : > { %v16066_v56 = vpop.f32.mrf.mxu1 }
 0x42b   : > { %v20131_v57 = vadd.f32 %v16065_v42, %v19886_v2  ;;  %v20140_v47 = vpop.f32.mrf.mxu0 }
 0x42c   : > { %v16067_v0 = vpop.f32.mrf.mxu1  ;;  %21403 = vst [vmem:[#allocation21_spill] sm:$0xff] %v20140_v47 }
 0x42d   : > { %21401 = vst [vmem:[#allocation6_spill] sm:$0xff] %v20131_v57  ;;  %v16068_v11 = vadd.f32 %v16067_v0, %v16066_v56  ;;  %v20145_v2 = vpop.f32.mrf.mxu0 }
 0x42e   : > { %v16069_v45 = vpop.f32.mrf.mxu1  ;;  %21404 = vst [vmem:[#allocation22_spill] sm:$0xff] %v20145_v2 }
 0x42f   : > { %v20138_v51 = vadd.f32 %v16068_v11, %v19894_v52  ;;  %v20150_v56 = vpop.f32.mrf.mxu0 }
 0x430   : > { %v16070_v59 = vpop.f32.mrf.mxu1  ;;  %21406 = vst [vmem:[#allocation24_spill] sm:$0xff] %v20150_v56 }
 0x431   : > { %21402 = vst [vmem:[#allocation17_spill] sm:$0xff] %v20138_v51  ;;  %v16071_v32 = vadd.f32 %v16070_v59, %v16069_v45  ;;  %v20152_v11 = vpop.f32.mrf.mxu0  ;;  %v17486_v45 = vld [vmem:[%s21351_s3 + $0x158] sm:$0xff]  }
 0x432   : > { %v16072_v31 = vpop.f32.mrf.mxu1  ;;  %21407 = vst [vmem:[#allocation25_spill] sm:$0xff] %v20152_v11  ;;  %16470 = vmatprep.subr.bf16.mxu0 %v17486_v45 }
 0x433   : > { %v20148_v42 = vadd.f32 %v16071_v32, %v19896_v23  ;;  %v17493_v23 = vld [vmem:[%s21351_s3 + $0x118] sm:$0xff]   ;;  %v20163_v19 = vpop.f32.mrf.mxu0 }
 0x434   : > { %v16073_v0 = vpop.f32.mrf.mxu1  ;;  %21409 = vst [vmem:[#allocation27_spill] sm:$0xff] %v20163_v19  ;;  %16471 = vmatpush3.bf16.msra.mxu0 %v17493_v23 }
 0x435   : > { %21405 = vst [vmem:[#allocation23_spill] sm:$0xff] %v20148_v42  ;;  %v16074_v52 = vadd.f32 %v16073_v0, %v16072_v31 }
 0x436   : > { %v16075_v51 = vpop.f32.mrf.mxu1 }
 0x437   : > { %v20155_v57 = vadd.f32 %v16074_v52, %v19898_v12  ;;  %v20168_v52 = vpop.f32.mrf.mxu0 }
 0x438   : > { %v16076_v59 = vpop.f32.mrf.mxu1 }
 0x439   : > { %21408 = vst [vmem:[#allocation26_spill] sm:$0xff] %v20155_v57  ;;  %v16077_v32 = vadd.f32 %v16076_v59, %v16075_v51  ;;  %v20173_v2 = vpop.f32.mrf.mxu0 }
 0x43a   : > { %v16078_v31 = vpop.f32.mrf.mxu1 }
 0x43b   : > { %v20166_v0 = vadd.f32 %v16077_v32, %v19900_v4  ;;  %v20178_v59 = vpop.f32.mrf.mxu0 }
 0x43c   : > { %v16079_v12 = vpop.f32.mrf.mxu1 }
 0x43d   : > { %21410 = vst [vmem:[#allocation28_spill] sm:$0xff] %v20166_v0  ;;  %v16080_v57 = vadd.f32 %v16079_v12, %v16078_v31 }
 0x43e   : > { %v16081_v42 = vpop.f32.mrf.mxu1 }
 0x43f   : > { %v20171_v11 = vadd.f32 %v16080_v57, %v19908_v1  ;;  %v17502_v1 = vld [vmem:[%s21351_s3 + $0x150] sm:$0xff]  }
 0x440   : > { %v16082_v56 = vpop.f32.mrf.mxu1  ;;  %16472 = vmatprep.subr.bf16.mxu0 %v17502_v1 }
 0x441   : > { %21411 = vst [vmem:[#allocation29_spill] sm:$0xff] %v20171_v11  ;;  %v16083_v47 = vadd.f32 %v16082_v56, %v16081_v42  ;;  %v17509_v42 = vld [vmem:[%s21351_s3 + $0x110] sm:$0xff]   ;;  %v20189_v56 = vpop.f32.mrf.mxu0 }
 0x442   : > { %v16084_v19 = vpop.f32.mrf.mxu1  ;;  %16473 = vmatpush3.bf16.msra.mxu0 %v17509_v42 }
 0x443   : > { %v20176_v51 = vadd.f32 %v16083_v47, %v19910_v15  ;;  %v20194_v31 = vpop.f32.mrf.mxu0 }
 0x444   : > { %v16085_v45 = vpop.f32.mrf.mxu1 }
 0x445   : > { %21412 = vst [vmem:[#allocation30_spill] sm:$0xff] %v20176_v51  ;;  %v16086_v4 = vadd.f32 %v16085_v45, %v16084_v19  ;;  %v20199_v51 = vpop.f32.mrf.mxu0 }
 0x446   : > { %v16087_v23 = vpop.f32.mrf.mxu1 }
 0x447   : > { %v20181_v32 = vadd.f32 %v16086_v4, %v19912_v10 }
 0x448   : > { %v16088_v57 = vpop.f32.mrf.mxu1 }
 0x449   : > { %21413 = vst [vmem:[#allocation31_spill] sm:$0xff] %v20181_v32  ;;  %v16089_v15 = vadd.f32 %v16088_v57, %v16087_v23  ;;  %v20210_v57 = vpop.f32.mrf.mxu0 }
 0x44a   : > { %v16090_v47 = vpop.f32.mrf.mxu1 }
 0x44b   : > { %v20192_v19 = vadd.f32 %v16089_v15, %v19915_v49  ;;  %v16126_v49 = vadd.f32 %v19957_v13, %v19947_v25  ;;  %v16135_v15 = vadd.f32 %v20002_v34, %v20000_v9  ;;  %v17525_v25 = vld [vmem:[%s21351_s3 + $0x108] sm:$0xff]   ;;  %v16138_v13 = vadd.f32 %v20015_v16, %v20013_v43  ;;  %v20238_v9 = vld [vmem:[%s21352_s4] ss:$0 sm:$0xff] }
 0x44c   : > { %v16091_v10 = vpop.f32.mrf.mxu1  ;;  %v16144_v43 = vadd.f32 %v20047_v63, %v20045_v6  ;;  %v20258_v6 = vld [vmem:[%s21353_s5] ss:$0 sm:$0xff] }
 0x44d   : > { %v16092_v12 = vadd.f32 %v16091_v10, %v16090_v47  ;;  %v16150_v47 = vadd.f32 %v20061_v33, %v20059_v53  ;;  %v16153_v10 = vadd.f32 %v20074_v17, %v20072_v24  ;;  %v16159_v33 = vadd.f32 %v20088_v5, %v20086_v54  ;;  %v21414_v54 = vld [vmem:[#allocation16_spill] sm:$0xff] }
 0x44e   : > { %v16093_v45 = vpop.f32.mrf.mxu1  ;;  %v16162_v24 = vadd.f32 %v20095_v28, %v20093_v3  ;;  %v16165_v17 = vadd.f32 %v20108_v22, %v20106_v39  ;;  %v21415_v3 = vld [vmem:[#allocation18_spill] sm:$0xff]  ;;  %v21416_v39 = vld [vmem:[#allocation8_spill] sm:$0xff] }
 0x44f   : > { %v20197_v4 = vadd.f32 %v16092_v12, %v19923_v62  ;;  %v16129_v62 = vadd.f32 %v19976_v18, %v19971_v50  ;;  %v16141_v50 = vadd.f32 %v20034_v27, %v20029_v8  ;;  %v20232_v18 = vpop.f32.mrf.mxu0  ;;  %v20245_v27 = vadd.f32 %v16135_v15, %v19979_v21  ;;  %v21418_v15 = vld [vmem:[#allocation10_spill] sm:$0xff] }
 0x450   : > { %v16094_v32 = vpop.f32.mrf.mxu1  ;;  %v20280_v5 = vadd.f32 %v16150_v47, %v21414_v54  ;;  %v20283_v28 = vadd.f32 %v16153_v10, %v21415_v3  ;;  %v21423_v47 = vld [vmem:[#allocation15_spill] sm:$0xff] }
 0x451   : > { %v16095_v11 = vadd.f32 %v16094_v32, %v16093_v45  ;;  %v16132_v32 = vadd.f32 %v19989_v36, %v19987_v55  ;;  %v8390_v55 = vadd.f32 %v16126_v49, %v19934_v29  ;;  %v8393_v34 = vadd.f32 %v16129_v62, %v19945_v48  ;;  %v20260_v21 = vpop.f32.mrf.mxu0 }
 0x452   : > { %v20201_v0 = vpop.f32.mrf.mxu1  ;;  %v16147_v29 = vadd.f32 %v20054_v35, %v20052_v20  ;;  %v16156_v48 = vadd.f32 %v20081_v26, %v20079_v38  ;;  %v8406_v35 = vadd.f32 %v16138_v13, %v19992_v46  ;;  %v8409_v53 = vadd.f32 %v16141_v50, %v20005_v44  ;;  %v21419_v13 = vld [vmem:[#allocation14_spill] sm:$0xff] }
 0x453   : > { %v20204_v23 = vadd.f32 %v16095_v11, %v19925_v58  ;;  %v17518_v58 = vld [vmem:[%s21351_s3 + $0x148] sm:$0xff]   ;;  %v8398_v8 = vadd.f32 %v16132_v32, %v19960_v61  ;;  %v16168_v38 = vadd.f32 %v20115_v40, %v20113_v14  ;;  %v20277_v44 = vadd.f32 %v16144_v43, %v20018_v37  ;;  %v21417_v40 = vld [vmem:[#allocation13_spill] sm:$0xff]  ;;  %v20291_v49 = vpop.f32.mrf.mxu0 }
 0x454   : > { %v20206_v1 = vpop.f32.mrf.mxu1  ;;  %16474 = vmatprep.subr.bf16.mxu0 %v17518_v58  ;;  %v20286_v22 = vadd.f32 %v16147_v29, %v21416_v39  ;;  %v20289_v14 = vadd.f32 %v16156_v48, %v21417_v40  ;;  %v20297_v50 = vadd.f32 %v16162_v24, %v21419_v13  ;;  %v16171_v10 = vadd.f32 %v20128_v60, %v21423_v47  ;;  %v21424_v24 = vld [vmem:[#allocation21_spill] sm:$0xff] }
 0x455   : > { %16475 = vmatpush3.bf16.msra.mxu0 %v17525_v25  ;;  %v20321_v54 = vpop.f32.mrf.mxu0  ;;  %v21432_v13 = vld [vmem:[#allocation17_spill] sm:$0xff] }
 0x456   : > { %v20214_v42 = vpop.f32.mrf.mxu1 }
 0x458   : > { %v20223_v11 = vpop.f32.mrf.mxu1 }
 0x45a   : > { %v16776_v36 = vpop.f32.mrf.mxu1 }
 0x45b   : > { %v8551_v16 = vadd.f32 %v16776_v36, %v8390_v55  ;;  %v21420_v55 = vld [vmem:[#allocation12_spill] sm:$0xff] }
 0x45c   : > { %v8542_v61 = vpop.f32.mrf.mxu1  ;;  %v20300_v36 = vadd.f32 %v16165_v17, %v21420_v55  ;;  %v21425_v17 = vld [vmem:[#allocation22_spill] sm:$0xff] }
 0x45d   : > { %v8678_v63 = vmul.f32 %v20238_v9, %v8551_v16  ;;  %v8543_v20 = vadd.f32 %v8542_v61, %v19942_v41  ;;  %v21422_v16 = vld [vmem:[#allocation5_spill] sm:$0xff] }
 0x45e   : > { %v16777_v26 = vpop.f32.mrf.mxu1  ;;  %v20306_v29 = vadd.f32 %v16168_v38, %v21422_v16 }
 0x45f   : > { %v8717_v12 = vadd.f32 %v20258_v6, %v8678_v63  ;;  %v8676_v41 = vmul.f32 %v20238_v9, %v8543_v20  ;;  %v8554_v46 = vadd.f32 %v16777_v26, %v8393_v34  ;;  %v21421_v34 = vld [vmem:[#allocation11_spill] sm:$0xff]  ;;  %v16174_v20 = vadd.f32 %v20135_v7, %v20133_v30  ;;  %v21426_v26 = vld [vmem:[#allocation24_spill] sm:$0xff] }
 0x460   : > { %v8545_v45 = vpop.f32.mrf.mxu1  ;;  %v20303_v43 = vadd.f32 %v16159_v33, %v21421_v34  ;;  %v16177_v33 = vadd.f32 %v21425_v17, %v21424_v24  ;;  %v16186_v7 = vadd.f32 %v20178_v59, %v20173_v2  ;;  %v16189_v30 = vadd.f32 %v20194_v31, %v20189_v56  ;;  %v17534_v2 = vld [vmem:[%s21351_s3 + $0x140] sm:$0xff]   ;;  %v20353_v34 = vpop.f32.mrf.mxu0 }
 0x461   : > { %v8749_v62 = vmax.f32 %v8717_v12, 0.0  ;;  %v8715_v32 = vadd.f32 %v20258_v6, %v8676_v41  ;;  %v8679_v37 = vmul.f32 %v20238_v9, %v8554_v46  ;;  %v8546_v58 = vadd.f32 %v8545_v45, %v21418_v15  ;;  %v21427_v12 = vld [vmem:[#allocation25_spill] sm:$0xff]  ;;  %v21428_v45 = vld [vmem:[#allocation27_spill] sm:$0xff]  ;;  %16476 = vmatprep.subr.bf16.mxu0 %v17534_v2 }
 0x462   : > { %v16780_v25 = vpop.f32.mrf.mxu1  ;;  %v16180_v38 = vadd.f32 %v21427_v12, %v21426_v26  ;;  %v16183_v60 = vadd.f32 %v20168_v52, %v21428_v45  ;;  %v21435_v12 = vld [vmem:[#allocation28_spill] sm:$0xff] }
 0x463   : > { %8781 = vst.msk [vmem:[#allocation3 + $0x31] sm:$0xff] %vm309_vm2, %v8749_v62  ;;  %v8747_v48 = vmax.f32 %v8715_v32, 0.0  ;;  %v8718_v61 = vadd.f32 %v20258_v6, %v8679_v37  ;;  %v8677_v63 = vmul.f32 %v20238_v9, %v8546_v58  ;;  %v8567_v41 = vadd.f32 %v16780_v25, %v8406_v35  ;;  %v21429_v58 = vld [vmem:[#allocation19_spill] sm:$0xff] }
 0x464   : > { %v8558_v46 = vpop.f32.mrf.mxu1  ;;  %v16192_v35 = vadd.f32 %v20210_v57, %v20199_v51  ;;  %v21430_v51 = vld [vmem:[#allocation20_spill] sm:$0xff]  ;;  %v21431_v57 = vld [vmem:[#allocation6_spill] sm:$0xff]  ;;  %v20348_v55 = vadd.f32 %v16180_v38, %v21432_v13  ;;  %v20366_v38 = vadd.f32 %v16189_v30, %v21435_v12 }
 0x465   : > { %8779 = vst.msk [vmem:[#allocation3 + $0x19] sm:$0xff] %vm309_vm2, %v8747_v48  ;;  %v8750_v3 = vmax.f32 %v8718_v61, 0.0  ;;  %v8716_v39 = vadd.f32 %v20258_v6, %v8677_v63  ;;  %v8559_v40 = vadd.f32 %v8558_v46, %v8398_v8  ;;  %v8682_v62 = vmul.f32 %v20238_v9, %v8567_v41  ;;  %v21433_v48 = vld [vmem:[#allocation23_spill] sm:$0xff]  ;;  %v21436_v41 = vld [vmem:[#allocation29_spill] sm:$0xff] }
 0x466   : > { %v16781_v52 = vpop.f32.mrf.mxu1  ;;  %v20335_v8 = vadd.f32 %v16171_v10, %v21429_v58  ;;  %v20342_v31 = vadd.f32 %v16174_v20, %v21430_v51  ;;  %v20345_v25 = vadd.f32 %v16177_v33, %v21431_v57  ;;  %v20360_v61 = vadd.f32 %v16183_v60, %v21433_v48  ;;  %v21434_v33 = vld [vmem:[#allocation26_spill] sm:$0xff]  ;;  %v20375_v58 = vpop.f32.mrf.mxu0 }
 0x467   : > { %8782 = vst.msk [vmem:[#allocation3 + $0x39] sm:$0xff] %vm309_vm2, %v8750_v3  ;;  %v8748_v32 = vmax.f32 %v8716_v39, 0.0  ;;  %v8680_v37 = vmul.f32 %v20238_v9, %v8559_v40  ;;  %v8570_v15 = vadd.f32 %v16781_v52, %v8409_v53  ;;  %v8721_v59 = vadd.f32 %v20258_v6, %v8682_v62  ;;  %v17541_v53 = vld [vmem:[%s21351_s3 + $0x100] sm:$0xff]  }
 0x468   : > { %v8561_v56 = vpop.f32.mrf.mxu1  ;;  %v20363_v26 = vadd.f32 %v16186_v7, %v21434_v33  ;;  %v20369_v46 = vadd.f32 %v16192_v35, %v21436_v41  ;;  %16477 = vmatpush3.bf16.msra.mxu0 %v17541_v53  ;;  %v20383_v51 = vadd.f32 %v20260_v21, %v20232_v18 }
 0x469   : > { %8780 = vst.msk [vmem:[#allocation3 + $0x21] sm:$0xff] %vm309_vm2, %v8748_v32  ;;  %v8719_v16 = vadd.f32 %v20258_v6, %v8680_v37  ;;  %v8683_v47 = vmul.f32 %v20238_v9, %v8570_v15  ;;  %v8562_v10 = vadd.f32 %v8561_v56, %v20245_v27  ;;  %v8753_v63 = vmax.f32 %v8721_v59, 0.0 }
 0x46a   : > { %v16784_v20 = vpop.f32.mrf.mxu1  ;;  %v8815_v24 = vld [vmem:[#allocation3 + $0x30] sm:$0xff] }
 0x46b   : > { %v9007_v17 = vld [vmem:[#allocation3 + $0x31] sm:$0xff]  ;;  %v8751_v27 = vmax.f32 %v8719_v16, 0.0  ;;  %v8722_v60 = vadd.f32 %v20258_v6, %v8683_v47  ;;  %v8681_v3 = vmul.f32 %v20238_v9, %v8562_v10  ;;  %v8583_v39 = vadd.f32 %v16784_v20, %v20280_v5  ;;  %8785 = vst.msk [vmem:[#allocation3 + $0x61] sm:$0xff] %vm309_vm2, %v8753_v63 }
 0x46c   : > { %v9581_v45 = vld [vmem:[#allocation3 + $0x31] sm:$0xff]  ;;  %v8574_v7 = vpop.f32.mrf.mxu1  ;;  %v9005_v52 = vld [vmem:[#allocation3 + $0x19] sm:$0xff]  ;;  %v15010_v30 = vpack.c.bf16 %v8815_v24, %v8815_v24  ;;  %v15042_v32 = vpack.c.bf16 %v9007_v17, %v9007_v17 }
 0x46d   : > { %v9963_v40 = vld [vmem:[#allocation3 + $0x30] sm:$0xff]  ;;  %v8813_v62 = vld [vmem:[#allocation3 + $0x18] sm:$0xff]  ;;  %v15136_v35 = vpack.c.bf16 %v9581_v45, %v9581_v45  ;;  %8783 = vst.msk [vmem:[#allocation3 + $0x49] sm:$0xff] %vm309_vm2, %v8751_v27  ;;  %v8754_v2 = vmax.f32 %v8722_v60, 0.0  ;;  %v8720_v59 = vadd.f32 %v20258_v6, %v8681_v3  ;;  %v8686_v5 = vmul.f32 %v20238_v9, %v8583_v39  ;;  %v20399_v3 = vpop.f32.mrf.mxu0 }
 0x46e   : > { %v9579_v37 = vld [vmem:[#allocation3 + $0x19] sm:$0xff]  ;;  %v15198_v15 = vpack.c.bf16 %v9963_v40, %v9963_v40  ;;  %v8575_v56 = vadd.f32 %v8574_v7, %v20277_v44  ;;  %v16785_v57 = vpop.f32.mrf.mxu1  ;;  %v15008_v13 = vpack.c.bf16 %v8813_v62, %v8813_v62  ;;  %v15040_v53 = vpack.c.bf16 %v9005_v52, %v9005_v52  ;;  %8975 = vst.msk [vmem:[#allocation4 + $0x90] sm:$0xf] %vm4822_vm5, %v15010_v30 }
 0x46f   : > { %v8816_v16 = vld [vmem:[#allocation3 + $0x38] sm:$0xff]  ;;  %9167 = vst.msk [vmem:[#allocation4 + $0x94] sm:$0xf] %vm4822_vm5, %v15042_v32  ;;  %9549 = vst.msk [vmem:[#allocation4 + $0x54] sm:$0xf] %vm4822_vm5, %v15010_v30  ;;  %v15134_v48 = vpack.c.bf16 %v9579_v37, %v9579_v37  ;;  %v8752_v18 = vmax.f32 %v8720_v59, 0.0  ;;  %v8725_v21 = vadd.f32 %v20258_v6, %v8686_v5  ;;  %v8586_v63 = vadd.f32 %v16785_v57, %v20283_v28 }
 0x470   : > { %v9008_v47 = vld [vmem:[#allocation3 + $0x39] sm:$0xff]  ;;  %9741 = vst.msk [vmem:[#allocation4 + $0x58] sm:$0xf] %vm4822_vm5, %v15136_v35  ;;  %10123 = vst.msk [vmem:[#allocation4 + $0x18] sm:$0xf] %vm4822_vm5, %v15198_v15  ;;  %v8684_v44 = vmul.f32 %v20238_v9, %v8575_v56  ;;  %v8577_v24 = vpop.f32.mrf.mxu1  ;;  %v9006_v33 = vld [vmem:[#allocation3 + $0x21] sm:$0xff]  ;;  %v15011_v12 = vpack.c.bf16 %v8816_v16, %v8816_v16 }
 0x471   : > { %v9199_v10 = vld [vmem:[#allocation3 + $0x32] sm:$0xff]  ;;  %10315 = vst.msk [vmem:[#allocation4 + $0x1c] sm:$0xf] %vm4822_vm5, %v15136_v35  ;;  %v9200_v20 = vld [vmem:[#allocation3 + $0x3a] sm:$0xff]  ;;  %8973 = vst.msk [vmem:[#allocation4 + $0x48] sm:$0xf] %vm4822_vm5, %v15008_v13  ;;  %v15043_v41 = vpack.c.bf16 %v9008_v47, %v9008_v47  ;;  %v8687_v40 = vmul.f32 %v20238_v9, %v8586_v63  ;;  %v8578_v7 = vadd.f32 %v8577_v24, %v20286_v22  ;;  %v20419_v63 = vpop.f32.mrf.mxu0 }
 0x472   : > { %8786 = vst.msk [vmem:[#allocation3 + $0x69] sm:$0xff] %vm309_vm2, %v8754_v2  ;;  %v8814_v17 = vld [vmem:[#allocation3 + $0x20] sm:$0xff]  ;;  %v15074_v27 = vpack.c.bf16 %v9199_v10, %v9199_v10  ;;  %v15075_v60 = vpack.c.bf16 %v9200_v20, %v9200_v20  ;;  %8784 = vst.msk [vmem:[#allocation3 + $0x51] sm:$0xff] %vm309_vm2, %v8752_v18  ;;  %v8757_v28 = vmax.f32 %v8725_v21, 0.0  ;;  %v8723_v39 = vadd.f32 %v20258_v6, %v8684_v44  ;;  %v16788_v32 = vpop.f32.mrf.mxu1 }
 0x473   : > { %9165 = vst.msk [vmem:[#allocation4 + $0x4c] sm:$0xf] %vm4822_vm5, %v15040_v53  ;;  %9547 = vst.msk [vmem:[#allocation4 + $0xc] sm:$0xf] %vm4822_vm5, %v15008_v13  ;;  %v9197_v45 = vld [vmem:[#allocation3 + $0x1a] sm:$0xff]  ;;  %v9198_v62 = vld [vmem:[#allocation3 + $0x22] sm:$0xff]  ;;  %v15009_v37 = vpack.c.bf16 %v8814_v17, %v8814_v17  ;;  %v15041_v35 = vpack.c.bf16 %v9006_v33, %v9006_v33  ;;  %v8726_v5 = vadd.f32 %v20258_v6, %v8687_v40 }
 0x474   : > { %9739 = vst.msk [vmem:[#allocation4 + $0x10] sm:$0xf] %vm4822_vm5, %v15134_v48  ;;  %v9580_v52 = vld [vmem:[#allocation3 + $0x21] sm:$0xff]  ;;  %8976 = vst.msk [vmem:[#allocation4 + $0xb4] sm:$0xf] %vm4822_vm5, %v15011_v12  ;;  %v15072_v15 = vpack.c.bf16 %v9197_v45, %v9197_v45  ;;  %v15073_v2 = vpack.c.bf16 %v9198_v62, %v9198_v62  ;;  %v9582_v59 = vld [vmem:[#allocation3 + $0x39] sm:$0xff]  ;;  %v8685_v56 = vmul.f32 %v20238_v9, %v8578_v7  ;;  %v8590_v47 = vpop.f32.mrf.mxu1 }
 0x475   : > { %v9771_v30 = vld [vmem:[#allocation3 + $0x1a] sm:$0xff]  ;;  %9168 = vst.msk [vmem:[#allocation4 + $0xb8] sm:$0xf] %vm4822_vm5, %v15043_v41  ;;  %9550 = vst.msk [vmem:[#allocation4 + $0x78] sm:$0xf] %vm4822_vm5, %v15011_v12  ;;  %v8755_v22 = vmax.f32 %v8723_v39, 0.0  ;;  %v8599_v57 = vadd.f32 %v16788_v32, %v20297_v50  ;;  %v15135_v44 = vpack.c.bf16 %v9580_v52, %v9580_v52  ;;  %v8591_v33 = vadd.f32 %v8590_v47, %v20289_v14 }
 0x476   : > { %9359 = vst.msk [vmem:[#allocation4 + $0x98] sm:$0xf] %vm4822_vm5, %v15074_v27  ;;  %9360 = vst.msk [vmem:[#allocation4 + $0xbc] sm:$0xf] %vm4822_vm5, %v15075_v60  ;;  %v8819_v13 = vld [vmem:[#allocation3 + $0x60] sm:$0xff]  ;;  %v8817_v10 = vld [vmem:[#allocation3 + $0x48] sm:$0xff]  ;;  %v15166_v50 = vpack.c.bf16 %v9771_v30, %v9771_v30  ;;  %v8724_v24 = vadd.f32 %v20258_v6, %v8685_v56  ;;  %v16789_v41 = vpop.f32.mrf.mxu1  ;;  %v15137_v14 = vpack.c.bf16 %v9582_v59, %v9582_v59 }
 0x477   : > { %8789 = vst.msk [vmem:[#allocation3 + $0x91] sm:$0xff] %vm309_vm2, %v8757_v28  ;;  %v9011_v53 = vld [vmem:[#allocation3 + $0x61] sm:$0xff]  ;;  %v9009_v48 = vld [vmem:[#allocation3 + $0x49] sm:$0xff]  ;;  %v15014_v18 = vpack.c.bf16 %v8819_v13, %v8819_v13  ;;  %8787 = vst.msk [vmem:[#allocation3 + $0x79] sm:$0xff] %vm309_vm2, %v8755_v22  ;;  %v8758_v20 = vmax.f32 %v8726_v5, 0.0  ;;  %v8690_v17 = vmul.f32 %v20238_v9, %v8599_v57  ;;  %v15012_v45 = vpack.c.bf16 %v8817_v10, %v8817_v10 }
 0x478   : > { %v9772_v16 = vld [vmem:[#allocation3 + $0x22] sm:$0xff]  ;;  %8974 = vst.msk [vmem:[#allocation4 + $0x6c] sm:$0xf] %vm4822_vm5, %v15009_v37  ;;  %9166 = vst.msk [vmem:[#allocation4 + $0x70] sm:$0xf] %vm4822_vm5, %v15041_v35  ;;  %v15046_v21 = vpack.c.bf16 %v9011_v53, %v9011_v53  ;;  %v20425_v12 = vld [vmem:[#allocation3 + $0x32] sm:$0xff]  ;;  %v15044_v27 = vpack.c.bf16 %v9009_v48, %v9009_v48  ;;  %v8688_v52 = vmul.f32 %v20238_v9, %v8591_v33 }
 0x479   : > { %9548 = vst.msk [vmem:[#allocation4 + $0x30] sm:$0xf] %vm4822_vm5, %v15009_v37  ;;  %9357 = vst.msk [vmem:[#allocation4 + $0x50] sm:$0xf] %vm4822_vm5, %v15072_v15  ;;  %v8820_v60 = vld [vmem:[#allocation3 + $0x68] sm:$0xff]  ;;  %v15167_v40 = vpack.c.bf16 %v9772_v16, %v9772_v16  ;;  %v8756_v7 = vmax.f32 %v8724_v24, 0.0  ;;  %v8729_v62 = vadd.f32 %v20258_v6, %v8690_v17  ;;  %v8602_v30 = vadd.f32 %v16789_v41, %v20300_v36  ;;  %v8593_v37 = vpop.f32.mrf.mxu1  ;;  %v20442_v36 = vpop.f32.mrf.mxu0 }
 0x47a   : > { %9358 = vst.msk [vmem:[#allocation4 + $0x74] sm:$0xf] %vm4822_vm5, %v15073_v2  ;;  %8979 = vst.msk [vmem:[#allocation4 + $0x120] sm:$0xf] %vm4822_vm5, %v15014_v18  ;;  %v9012_v28 = vld [vmem:[#allocation3 + $0x69] sm:$0xff]  ;;  %v9010_v15 = vld [vmem:[#allocation3 + $0x51] sm:$0xff]  ;;  %v15015_v2 = vpack.c.bf16 %v8820_v60, %v8820_v60  ;;  %v8727_v13 = vadd.f32 %v20258_v6, %v8688_v52  ;;  %v8594_v16 = vadd.f32 %v8593_v37, %v20303_v43 }
 0x47b   : > { %9171 = vst.msk [vmem:[#allocation4 + $0x124] sm:$0xf] %vm4822_vm5, %v15046_v21  ;;  %9553 = vst.msk [vmem:[#allocation4 + $0xe4] sm:$0xf] %vm4822_vm5, %v15014_v18  ;;  %v9203_v39 = vld [vmem:[#allocation3 + $0x62] sm:$0xff]  ;;  %v9204_v32 = vld [vmem:[#allocation3 + $0x6a] sm:$0xff]  ;;  %v15047_v59 = vpack.c.bf16 %v9012_v28, %v9012_v28  ;;  %v8691_v53 = vmul.f32 %v20238_v9, %v8602_v30  ;;  %v16792_v48 = vpop.f32.mrf.mxu1  ;;  %v15045_v21 = vpack.c.bf16 %v9010_v15, %v9010_v15  ;;  %v20472_v30 = vpop.f32.mrf.mxu0 }
 0x47c   : > { %9740 = vst.msk [vmem:[#allocation4 + $0x34] sm:$0xf] %vm4822_vm5, %v15135_v44  ;;  %9931 = vst.msk [vmem:[#allocation4 + $0x14] sm:$0xf] %vm4822_vm5, %v15166_v50  ;;  %v8818_v35 = vld [vmem:[#allocation3 + $0x50] sm:$0xff]  ;;  %v15078_v5 = vpack.c.bf16 %v9203_v39, %v9203_v39  ;;  %v15079_v56 = vpack.c.bf16 %v9204_v32, %v9204_v32  ;;  %v8761_v57 = vmax.f32 %v8729_v62, 0.0  ;;  %v15168_v17 = vpack.c.bf16 %v20425_v12, %v20425_v12 }
 0x47d   : > { %8790 = vst.msk [vmem:[#allocation3 + $0x99] sm:$0xff] %vm309_vm2, %v8758_v20  ;;  %v9201_v22 = vld [vmem:[#allocation3 + $0x4a] sm:$0xff]  ;;  %8788 = vst.msk [vmem:[#allocation3 + $0x81] sm:$0xff] %vm309_vm2, %v8756_v7  ;;  %v9774_v47 = vld [vmem:[#allocation3 + $0x3a] sm:$0xff]  ;;  %v15013_v18 = vpack.c.bf16 %v8818_v35, %v8818_v35  ;;  %v8759_v33 = vmax.f32 %v8727_v13, 0.0  ;;  %v8730_v41 = vadd.f32 %v20258_v6, %v8691_v53 }
 0x47e   : > { %8977 = vst.msk [vmem:[#allocation4 + $0xd8] sm:$0xf] %vm4822_vm5, %v15012_v45  ;;  %9169 = vst.msk [vmem:[#allocation4 + $0xdc] sm:$0xf] %vm4822_vm5, %v15044_v27  ;;  %v20448_v10 = vld [vmem:[#allocation3 + $0x38] sm:$0xff]  ;;  %v15076_v50 = vpack.c.bf16 %v9201_v22, %v9201_v22  ;;  %v8823_v20 = vld [vmem:[#allocation3 + $0x90] sm:$0xff]  ;;  %v8615_v27 = vadd.f32 %v16792_v48, %v20342_v31  ;;  %v15169_v52 = vpack.c.bf16 %v9774_v47, %v9774_v47 }
 0x47f   : > { %9551 = vst.msk [vmem:[#allocation4 + $0x9c] sm:$0xf] %vm4822_vm5, %v15012_v45  ;;  %9932 = vst.msk [vmem:[#allocation4 + $0x38] sm:$0xf] %vm4822_vm5, %v15167_v40  ;;  %v9202_v44 = vld [vmem:[#allocation3 + $0x52] sm:$0xff]  ;;  %v17485_v24 = vld [vmem:[%s21351_s3 + $0x1b8] sm:$0xff]   ;;  %v8689_v45 = vmul.f32 %v20238_v9, %v8594_v16  ;;  %v8606_v40 = vpop.f32.mrf.mxu1  ;;  %v15018_v62 = vpack.c.bf16 %v8823_v20, %v8823_v20  ;;  %v20500_v48 = vadd.f32 %v20375_v58, %v20353_v34 }
 0x480   : > { %9742 = vst.msk [vmem:[#allocation4 + $0x7c] sm:$0xf] %vm4822_vm5, %v15137_v14  ;;  %10316 = vst.msk [vmem:[#allocation4 + $0x40] sm:$0xf] %vm4822_vm5, %v15137_v14  ;;  %v9015_v43 = vld [vmem:[#allocation3 + $0x91] sm:$0xff]  ;;  %v17500_v39 = vld [vmem:[%s21351_s3 + $0x1f0] sm:$0xff]   ;;  %v15077_v12 = vpack.c.bf16 %v9202_v44, %v9202_v44  ;;  %v8694_v35 = vmul.f32 %v20238_v9, %v8615_v27  ;;  %v8607_v15 = vadd.f32 %v8606_v40, %v20306_v29 }
 0x481   : > { %8980 = vst.msk [vmem:[#allocation4 + $0x144] sm:$0xf] %vm4822_vm5, %v15015_v2  ;;  %9172 = vst.msk [vmem:[#allocation4 + $0x148] sm:$0xf] %vm4822_vm5, %v15047_v59  ;;  %v17430_v60 = vld [vmem:[#allocation4 + $0x48] ss:$36 sps:$4 sm:$0xff]   ;;  %v15050_v31 = vpack.c.bf16 %v9015_v43, %v9015_v43  ;;  %v8728_v37 = vadd.f32 %v20258_v6, %v8689_v45  ;;  %v16198_v59 = vadd.f32 %v20321_v54, %v20291_v49  ;;  %v16793_v22 = vpop.f32.mrf.mxu1  ;;  %v20503_v43 = vpop.f32.mrf.mxu0 }
 0x482   : > { %9554 = vst.msk [vmem:[#allocation4 + $0x108] sm:$0xf] %vm4822_vm5, %v15015_v2  ;;  %9363 = vst.msk [vmem:[#allocation4 + $0x128] sm:$0xf] %vm4822_vm5, %v15078_v5  ;;  %v17432_v28 = vld [vmem:[#allocation4 + $0x4c] ss:$36 sps:$4 sm:$0xff]   ;;  %v15199_v29 = vpack.c.bf16 %v20448_v10, %v20448_v10  ;;  %v8692_v53 = vmul.f32 %v20238_v9, %v8607_v15  ;;  %v8618_v16 = vadd.f32 %v16793_v22, %v20345_v25 }
 0x483   : > { %9364 = vst.msk [vmem:[#allocation4 + $0x14c] sm:$0xf] %vm4822_vm5, %v15079_v56  ;;  %v17433_v14 = vld [vmem:[#allocation4 + $0x8] ss:$36 sps:$4 sm:$0xff]   ;;  %8978 = vst.msk [vmem:[#allocation4 + $0xfc] sm:$0xf] %vm4822_vm5, %v15013_v18  ;;  %12051 = vmatprep.mubr.bf16.mxu0 %v17432_v28 }
 0x484   : > { %8793 = vst.msk [vmem:[#allocation3 + $0xc1] sm:$0xff] %vm309_vm2, %v8761_v57  ;;  %v17435_v7 = vld [vmem:[#allocation4 + $0xc] ss:$36 sps:$4 sm:$0xff]   ;;  %8791 = vst.msk [vmem:[#allocation3 + $0xa9] sm:$0xff] %vm309_vm2, %v8759_v33  ;;  %v8762_v32 = vmax.f32 %v8730_v41, 0.0  ;;  %12052 = vmatmul.mubr.bf16.gmra.mxu0 %v17430_v60  ;;  %v8760_v54 = vmax.f32 %v8728_v37, 0.0  ;;  %v8695_v34 = vmul.f32 %v20238_v9, %v8618_v16 }
 0x485   : > { %9170 = vst.msk [vmem:[#allocation4 + $0x100] sm:$0xf] %vm4822_vm5, %v15045_v21  ;;  %9552 = vst.msk [vmem:[#allocation4 + $0xc0] sm:$0xf] %vm4822_vm5, %v15013_v18  ;;  %v17438_v2 = vld [vmem:[#allocation4 + $0x94] ss:$36 sps:$4 sm:$0xff]   ;;  %12204 = vmatprep.mubr.bf16.mxu1 %v17435_v7  ;;  %v8609_v18 = vpop.f32.mrf.mxu1 }
 0x486   : > { %9361 = vst.msk [vmem:[#allocation4 + $0xe0] sm:$0xf] %vm4822_vm5, %v15076_v50  ;;  %9933 = vst.msk [vmem:[#allocation4 + $0x5c] sm:$0xf] %vm4822_vm5, %v15168_v17  ;;  %v17441_v5 = vld [vmem:[#allocation4 + $0x54] ss:$36 sps:$4 sm:$0xff]   ;;  %12205 = vmatmul.mubr.bf16.vlgmr.msra.gmra.mxu1 %v17433_v14  ;;  %12059 = vmatprep.mubr.bf16.mxu0 %v17438_v2  ;;  %v8731_v17 = vadd.f32 %v20258_v6, %v8692_v53  ;;  %v8610_v58 = vadd.f32 %v8609_v18, %v20335_v8  ;;  %v20535_v2 = vpop.f32.mrf.mxu0 }
 0x487   : > { %9362 = vst.msk [vmem:[#allocation4 + $0x104] sm:$0xf] %vm4822_vm5, %v15077_v12  ;;  %v21437_v56 = vld [vmem:[#allocation30_spill] sm:$0xff]  ;;  %8983 = vst.msk [vmem:[#allocation4 + $0x1b0] sm:$0xf] %vm4822_vm5, %v15018_v62  ;;  %v17501_v49 = vld [vmem:[%s21351_s3 + $0x1b0] sm:$0xff]   ;;  %12212 = vmatprep.mubr.bf16.mxu1 %v17441_v5  ;;  %16575 = vmatpush3.bf16.msra.mxu1 %v17485_v24  ;;  %v16098_v24 = vadd.f32 %v20206_v1, %v20201_v0  ;;  %v16796_v41 = vpop.f32.mrf.mxu1  ;;  %v8734_v14 = vadd.f32 %v20258_v6, %v8695_v34 }
 0x488   : > { %v20483_v57 = vadd.f32 %v20383_v51, %v21437_v56  ;;  %v8821_v13 = vld [vmem:[#allocation3 + $0x78] sm:$0xff]  ;;  %9175 = vst.msk [vmem:[#allocation4 + $0x1b4] sm:$0xf] %vm4822_vm5, %v15050_v31  ;;  %9557 = vst.msk [vmem:[#allocation4 + $0x174] sm:$0xf] %vm4822_vm5, %v15018_v62  ;;  %v8733_v51 = vadd.f32 %v20258_v6, %v8694_v35  ;;  %v8822_v21 = vld [vmem:[#allocation3 + $0x80] sm:$0xff]  ;;  %16576 = vmatprep.subr.bf16.mxu1 %v17500_v39  ;;  %v8693_v0 = vmul.f32 %v20238_v9, %v8610_v58 }
 0x489   : > { %9934 = vst.msk [vmem:[#allocation4 + $0x80] sm:$0xf] %vm4822_vm5, %v15169_v52  ;;  %v9013_v47 = vld [vmem:[#allocation3 + $0x79] sm:$0xff]  ;;  %v15016_v10 = vpack.c.bf16 %v8821_v13, %v8821_v13  ;;  %v9014_v44 = vld [vmem:[#allocation3 + $0x81] sm:$0xff]  ;;  %10124 = vst.msk [vmem:[#allocation4 + $0x3c] sm:$0xf] %vm4822_vm5, %v15199_v29  ;;  %v15017_v45 = vpack.c.bf16 %v8822_v21, %v8822_v21  ;;  %v8631_v1 = vadd.f32 %v16796_v41, %v20363_v26  ;;  %v8622_v31 = vpop.f32.mrf.mxu1 }
 0x48a   : > { %8794 = vst.msk [vmem:[#allocation3 + $0xc9] sm:$0xff] %vm309_vm2, %v8762_v32  ;;  %v15048_v50 = vpack.c.bf16 %v9013_v47, %v9013_v47  ;;  %v8824_v20 = vld [vmem:[#allocation3 + $0x98] sm:$0xff]  ;;  %8792 = vst.msk [vmem:[#allocation3 + $0xb1] sm:$0xff] %vm309_vm2, %v8760_v54  ;;  %v8765_v25 = vmax.f32 %v8733_v51, 0.0  ;;  %v15049_v27 = vpack.c.bf16 %v9014_v44, %v9014_v44  ;;  %v9206_v39 = vld [vmem:[#allocation3 + $0x82] sm:$0xff]  ;;  %v8763_v40 = vmax.f32 %v8731_v17, 0.0 }
 0x48b   : > { %v17516_v33 = vld [vmem:[%s21351_s3 + $0x1e8] sm:$0xff]   ;;  %8981 = vst.msk [vmem:[#allocation4 + $0x168] sm:$0xf] %vm4822_vm5, %v15016_v10  ;;  %9555 = vst.msk [vmem:[#allocation4 + $0x12c] sm:$0xf] %vm4822_vm5, %v15016_v10  ;;  %v15019_v60 = vpack.c.bf16 %v8824_v20, %v8824_v20  ;;  %v21438_v52 = vld [vmem:[#allocation31_spill] sm:$0xff]  ;;  %v15081_v35 = vpack.c.bf16 %v9206_v39, %v9206_v39  ;;  %16577 = vmatpush3.bf16.msra.mxu1 %v17501_v49  ;;  %v8732_v22 = vadd.f32 %v20258_v6, %v8693_v0  ;;  %v16797_v53 = vpop.f32.mrf.mxu1 }
 0x48c   : > { %9173 = vst.msk [vmem:[#allocation4 + $0x16c] sm:$0xf] %vm4822_vm5, %v15048_v50  ;;  %v9016_v28 = vld [vmem:[#allocation3 + $0x99] sm:$0xff]  ;;  %v20525_v32 = vadd.f32 %v16198_v59, %v21438_v52  ;;  %8982 = vst.msk [vmem:[#allocation4 + $0x18c] sm:$0xf] %vm4822_vm5, %v15017_v45  ;;  %v17532_v15 = vld [vmem:[%s21351_s3 + $0x1e0] sm:$0xff]   ;;  %v8698_v5 = vmul.f32 %v20238_v9, %v8631_v1  ;;  %v8623_v56 = vadd.f32 %v8622_v31, %v20348_v55  ;;  %16578 = vmatprep.subr.bf16.mxu1 %v17516_v33  ;;  %v20569_v33 = vpop.f32.mrf.mxu0 }
 0x48d   : > { %v9205_v8 = vld [vmem:[#allocation3 + $0x7a] sm:$0xff]  ;;  %8797 = vst.msk [vmem:[#allocation3 + $0xf1] sm:$0xff] %vm309_vm2, %v8765_v25  ;;  %v15051_v37 = vpack.c.bf16 %v9016_v28, %v9016_v28  ;;  %8795 = vst.msk [vmem:[#allocation3 + $0xd9] sm:$0xff] %vm309_vm2, %v8763_v40  ;;  %v8766_v59 = vmax.f32 %v8734_v14, 0.0  ;;  %v17445_v13 = vld [vmem:[#allocation4 + $0xdc] ss:$36 sps:$4 sm:$0xff]   ;;  %v20546_v49 = vadd.f32 %v20419_v63, %v20399_v3  ;;  %v20550_v51 = vadd.f32 %v20223_v11, %v20214_v42  ;;  %v8625_v10 = vpop.f32.mrf.mxu1 }
 0x48e   : > { %v17517_v7 = vld [vmem:[%s21351_s3 + $0x1a8] sm:$0xff]   ;;  %v17436_v12 = vld [vmem:[#allocation4 + $0x90] ss:$36 sps:$4 sm:$0xff]   ;;  %9174 = vst.msk [vmem:[#allocation4 + $0x190] sm:$0xf] %vm4822_vm5, %v15049_v27  ;;  %v15080_v26 = vpack.c.bf16 %v9205_v8, %v9205_v8  ;;  %v21439_v29 = vld [vmem:[#allocation9_spill] sm:$0xff]  ;;  %v20554_v47 = vadd.f32 %v20500_v48, %v20192_v19  ;;  %v8737_v42 = vadd.f32 %v20258_v6, %v8698_v5  ;;  %v8696_v11 = vmul.f32 %v20238_v9, %v8623_v56 }
 0x48f   : > { %v17439_v62 = vld [vmem:[#allocation4 + $0x50] ss:$36 sps:$4 sm:$0xff]   ;;  %9556 = vst.msk [vmem:[#allocation4 + $0x150] sm:$0xf] %vm4822_vm5, %v15017_v45  ;;  %8984 = vst.msk [vmem:[#allocation4 + $0x1d4] sm:$0xf] %vm4822_vm5, %v15019_v60  ;;  %v20542_v54 = vadd.f32 %v16098_v24, %v21439_v29  ;;  %12060 = vmatmul.mubr.bf16.gmra.mxu0 %v17436_v12  ;;  %v8634_v63 = vadd.f32 %v16797_v53, %v20366_v38  ;;  %v8626_v27 = vadd.f32 %v8625_v10, %v20360_v61  ;;  %v16800_v28 = vpop.f32.mrf.mxu1 }
 0x490   : > { %9558 = vst.msk [vmem:[#allocation4 + $0x198] sm:$0xf] %vm4822_vm5, %v15019_v60  ;;  %v17448_v16 = vld [vmem:[#allocation4 + $0x9c] ss:$36 sps:$4 sm:$0xff]   ;;  %9176 = vst.msk [vmem:[#allocation4 + $0x1d8] sm:$0xf] %vm4822_vm5, %v15051_v37  ;;  %12213 = vmatmul.mubr.bf16.gmra.mxu1 %v17439_v62  ;;  %12067 = vmatprep.mubr.bf16.mxu0 %v17445_v13  ;;  %v8735_v41 = vadd.f32 %v20258_v6, %v8696_v11  ;;  %v8647_v31 = vadd.f32 %v16800_v28, %v20525_v32 }
 0x491   : > { %9365 = vst.msk [vmem:[#allocation4 + $0x170] sm:$0xf] %vm4822_vm5, %v15080_v26  ;;  %9366 = vst.msk [vmem:[#allocation4 + $0x194] sm:$0xf] %vm4822_vm5, %v15081_v35  ;;  %v8825_v55 = vld [vmem:[#allocation3 + $0xa8] sm:$0xff]  ;;  %v8764_v3 = vmax.f32 %v8732_v22, 0.0  ;;  %12220 = vmatprep.mubr.bf16.mxu1 %v17448_v16  ;;  %v8699_v45 = vmul.f32 %v20238_v9, %v8634_v63  ;;  %16579 = vmatpush3.bf16.msra.mxu1 %v17517_v7  ;;  %v8697_v62 = vmul.f32 %v20238_v9, %v8626_v27  ;;  %v8638_v35 = vpop.f32.mrf.mxu1 }
 0x492   : > { %8798 = vst.msk [vmem:[#allocation3 + $0xf9] sm:$0xff] %vm309_vm2, %v8766_v59  ;;  %v9017_v19 = vld [vmem:[#allocation3 + $0xa9] sm:$0xff]  ;;  %v9207_v48 = vld [vmem:[#allocation3 + $0x92] sm:$0xff]  ;;  %v9208_v18 = vld [vmem:[#allocation3 + $0x9a] sm:$0xff]  ;;  %v15020_v50 = vpack.c.bf16 %v8825_v55, %v8825_v55  ;;  %v8769_v24 = vmax.f32 %v8737_v42, 0.0  ;;  %16580 = vmatprep.subr.bf16.mxu1 %v17532_v15  ;;  %v8767_v7 = vmax.f32 %v8735_v41, 0.0  ;;  %v16210_v37 = vadd.f32 %v20535_v2, %v20503_v43  ;;  %v16212_v2 = vpop.f32.mrf.mxu0 }
 0x493   : > { %v17533_v21 = vld [vmem:[%s21351_s3 + $0x1a0] sm:$0xff]   ;;  %v15052_v25 = vpack.c.bf16 %v9017_v19, %v9017_v19  ;;  %v15082_v17 = vpack.c.bf16 %v9207_v48, %v9207_v48  ;;  %v15083_v34 = vpack.c.bf16 %v9208_v18, %v9208_v18  ;;  %v8827_v58 = vld [vmem:[#allocation3 + $0xc0] sm:$0xff]  ;;  %v17542_v38 = vld [vmem:[%s21351_s3 + $0x1d8] sm:$0xff]   ;;  %8796 = vst.msk [vmem:[#allocation3 + $0xe1] sm:$0xff] %vm309_vm2, %v8764_v3  ;;  %v8738_v12 = vadd.f32 %v20258_v6, %v8699_v45  ;;  %v16801_v42 = vpop.f32.mrf.mxu1 }
 0x494   : > { %v8826_v44 = vld [vmem:[#allocation3 + $0xb0] sm:$0xff]  ;;  %v8828_v60 = vld [vmem:[#allocation3 + $0xc8] sm:$0xff]  ;;  %8985 = vst.msk [vmem:[#allocation4 + $0x1f8] sm:$0xf] %vm4822_vm5, %v15020_v50  ;;  %9559 = vst.msk [vmem:[#allocation4 + $0x1bc] sm:$0xf] %vm4822_vm5, %v15020_v50  ;;  %v15022_v40 = vpack.c.bf16 %v8827_v58, %v8827_v58  ;;  %v8736_v56 = vadd.f32 %v20258_v6, %v8697_v62  ;;  %v8702_v13 = vmul.f32 %v20238_v9, %v8647_v31 }
 0x495   : > { %v9018_v20 = vld [vmem:[#allocation3 + $0xb1] sm:$0xff]  ;;  %v15021_v8 = vpack.c.bf16 %v8826_v44, %v8826_v44  ;;  %9177 = vst.msk [vmem:[#allocation4 + $0x1fc] sm:$0xf] %vm4822_vm5, %v15052_v25  ;;  %9367 = vst.msk [vmem:[#allocation4 + $0x1b8] sm:$0xf] %vm4822_vm5, %v15082_v17  ;;  %v15023_v14 = vpack.c.bf16 %v8828_v60, %v8828_v60  ;;  %v9019_v0 = vld [vmem:[#allocation3 + $0xc1] sm:$0xff]  ;;  %v8639_v29 = vadd.f32 %v8638_v35, %v20369_v46  ;;  %16581 = vmatpush3.bf16.msra.mxu1 %v17533_v21  ;;  %v8641_v18 = vpop.f32.mrf.mxu1 }
 0x496   : > { %v15053_v39 = vpack.c.bf16 %v9018_v20, %v9018_v20  ;;  %9368 = vst.msk [vmem:[#allocation4 + $0x1dc] sm:$0xf] %vm4822_vm5, %v15083_v34  ;;  %v9020_v1 = vld [vmem:[#allocation3 + $0xc9] sm:$0xff]  ;;  %8987 = vst.msk [vmem:[#allocation4 + $0x240] sm:$0xf] %vm4822_vm5, %v15022_v40  ;;  %v15054_v32 = vpack.c.bf16 %v9019_v0, %v9019_v0  ;;  %v17550_v43 = vld [vmem:[%s21351_s3 + $0x1d0] sm:$0xff]   ;;  %v20607_v3 = vadd.f32 %v20472_v30, %v20442_v36  ;;  %16582 = vmatprep.subr.bf16.mxu1 %v17542_v38 }
 0x497   : > { %v9209_v61 = vld [vmem:[#allocation3 + $0xaa] sm:$0xff]  ;;  %8801 = vst.msk [vmem:[#allocation3 + $0x121] sm:$0xff] %vm309_vm2, %v8769_v24  ;;  %v15055_v15 = vpack.c.bf16 %v9020_v1, %v9020_v1  ;;  %8799 = vst.msk [vmem:[#allocation3 + $0x109] sm:$0xff] %vm309_vm2, %v8767_v7  ;;  %v8770_v22 = vmax.f32 %v8738_v12, 0.0  ;;  %v17452_v53 = vld [vmem:[#allocation4 + $0x124] ss:$36 sps:$4 sm:$0xff]   ;;  %v20611_v63 = vadd.f32 %v20546_v49, %v20197_v4  ;;  %v8741_v36 = vadd.f32 %v20258_v6, %v8702_v13 }
 0x498   : > { %v17549_v52 = vld [vmem:[%s21351_s3 + $0x198] sm:$0xff]   ;;  %8986 = vst.msk [vmem:[#allocation4 + $0x21c] sm:$0xf] %vm4822_vm5, %v15021_v8  ;;  %9178 = vst.msk [vmem:[#allocation4 + $0x220] sm:$0xf] %vm4822_vm5, %v15053_v39  ;;  %v15084_v59 = vpack.c.bf16 %v9209_v61, %v9209_v61  ;;  %v21440_v16 = vld [vmem:[#allocation7_spill] sm:$0xff]  ;;  %v8700_v30 = vmul.f32 %v20238_v9, %v8639_v29  ;;  %v16213_v48 = vadd.f32 %v16212_v2, %v20569_v33  ;;  %v16804_v33 = vpop.f32.mrf.mxu1 }
 0x499   : > { %v17443_v26 = vld [vmem:[#allocation4 + $0xd8] ss:$36 sps:$4 sm:$0xff]   ;;  %9560 = vst.msk [vmem:[#allocation4 + $0x1e0] sm:$0xf] %vm4822_vm5, %v15021_v8  ;;  %8988 = vst.msk [vmem:[#allocation4 + $0x264] sm:$0xf] %vm4822_vm5, %v15023_v14  ;;  %v8344_v55 = vadd.f32 %v20550_v51, %v21440_v16  ;;  %v8650_v51 = vadd.f32 %v16801_v42, %v20554_v47  ;;  %v8502_v21 = vadd.f32 %v16210_v37, %v20542_v54  ;;  %16583 = vmatpush3.bf16.msra.mxu1 %v17549_v52 }
 0x49a   : > { %9561 = vst.msk [vmem:[#allocation4 + $0x204] sm:$0xf] %vm4822_vm5, %v15022_v40  ;;  %9562 = vst.msk [vmem:[#allocation4 + $0x228] sm:$0xf] %vm4822_vm5, %v15023_v14  ;;  %v17446_v5 = vld [vmem:[#allocation4 + $0x98] ss:$36 sps:$4 sm:$0xff]   ;;  %12068 = vmatmul.mubr.bf16.gmra.mxu0 %v17443_v26  ;;  %v8739_v17 = vadd.f32 %v20258_v6, %v8700_v30  ;;  %v8642_v58 = vadd.f32 %v8641_v18, %v20483_v57  ;;  %16584 = vmatprep.subr.bf16.mxu1 %v17550_v43  ;;  %v8654_v1 = vpop.f32.mrf.mxu1 }
 0x49b   : > { %v17455_v11 = vld [vmem:[#allocation4 + $0xe4] ss:$36 sps:$4 sm:$0xff]   ;;  %9179 = vst.msk [vmem:[#allocation4 + $0x244] sm:$0xf] %vm4822_vm5, %v15054_v32  ;;  %9180 = vst.msk [vmem:[#allocation4 + $0x268] sm:$0xf] %vm4822_vm5, %v15055_v15  ;;  %12221 = vmatmul.mubr.bf16.gmra.mxu1 %v17446_v5  ;;  %12075 = vmatprep.mubr.bf16.mxu0 %v17452_v53  ;;  %v8703_v34 = vmul.f32 %v20238_v9, %v8650_v51  ;;  %v8663_v40 = vadd.f32 %v16804_v33, %v8502_v21 }
 0x49c   : > { %9369 = vst.msk [vmem:[#allocation4 + $0x200] sm:$0xf] %vm4822_vm5, %v15084_v59  ;;  %v8768_v46 = vmax.f32 %v8736_v56, 0.0  ;;  %v9210_v4 = vld [vmem:[#allocation3 + $0xb2] sm:$0xff]  ;;  %v17551_v19 = vld [vmem:[%s21351_s3 + $0x190] sm:$0xff]   ;;  %12228 = vmatprep.mubr.bf16.mxu1 %v17455_v11  ;;  %v8773_v47 = vmax.f32 %v8741_v36, 0.0  ;;  %v8505_v61 = vadd.f32 %v16213_v48, %v8344_v55  ;;  %v8655_v26 = vadd.f32 %v8654_v1, %v20611_v63  ;;  %v16805_v32 = vpop.f32.mrf.mxu1 }
 0x49d   : > { %8802 = vst.msk [vmem:[#allocation3 + $0x129] sm:$0xff] %vm309_vm2, %v8770_v22  ;;  %v8829_v49 = vld [vmem:[#allocation3 + $0xd8] sm:$0xff]  ;;  %v15085_v10 = vpack.c.bf16 %v9210_v4, %v9210_v4  ;;  %v8830_v44 = vld [vmem:[#allocation3 + $0xe0] sm:$0xff]  ;;  %v9212_v45 = vld [vmem:[#allocation3 + $0xca] sm:$0xff]  ;;  %v8771_v9 = vmax.f32 %v8739_v17, 0.0  ;;  %v8742_v57 = vadd.f32 %v20258_v6, %v8703_v34  ;;  %16585 = vmatpush3.bf16.msra.mxu1 %v17551_v19  ;;  %v8497_v59 = vadd.f32 %v20607_v3, %v20204_v23 }
 0x49e   : > { %v15024_v50 = vpack.c.bf16 %v8829_v49, %v8829_v49  ;;  %v9021_v20 = vld [vmem:[#allocation3 + $0xd9] sm:$0xff]  ;;  %v9022_v25 = vld [vmem:[#allocation3 + $0xe1] sm:$0xff]  ;;  %8800 = vst.msk [vmem:[#allocation3 + $0x111] sm:$0xff] %vm309_vm2, %v8768_v46  ;;  %v15025_v54 = vpack.c.bf16 %v8830_v44, %v8830_v44  ;;  %v8831_v60 = vld [vmem:[#allocation3 + $0xf0] sm:$0xff]  ;;  %v15087_v7 = vpack.c.bf16 %v9212_v45, %v9212_v45  ;;  %v8666_v56 = vadd.f32 %v16805_v32, %v8505_v61  ;;  %v8657_v53 = vpop.f32.mrf.mxu1 }
 0x49f   : > { %v9211_v38 = vld [vmem:[#allocation3 + $0xc2] sm:$0xff]  ;;  %9370 = vst.msk [vmem:[#allocation4 + $0x224] sm:$0xf] %vm4822_vm5, %v15085_v10  ;;  %v15056_v24 = vpack.c.bf16 %v9021_v20, %v9021_v20  ;;  %v15057_v41 = vpack.c.bf16 %v9022_v25, %v9022_v25  ;;  %v8832_v28 = vld [vmem:[#allocation3 + $0xf8] sm:$0xff]  ;;  %v20637_v8 = vld [vmem:[%s21352_s4] ss:$0 sm:$0xff]  ;;  %v15026_v6 = vpack.c.bf16 %v8831_v60, %v8831_v60  ;;  %v8658_v4 = vadd.f32 %v8657_v53, %v8497_v59 }
 0x4a0   : > { %8989 = vst.msk [vmem:[#allocation4 + $0x288] sm:$0xf] %vm4822_vm5, %v15024_v50  ;;  %v15086_v27 = vpack.c.bf16 %v9211_v38, %v9211_v38  ;;  %9563 = vst.msk [vmem:[#allocation4 + $0x24c] sm:$0xf] %vm4822_vm5, %v15024_v50  ;;  %v8701_v39 = vmul.f32 %v20637_v8, %v8642_v58  ;;  %v17450_v14 = vld [vmem:[#allocation4 + $0x120] ss:$36 sps:$4 sm:$0xff]   ;;  %v15027_v12 = vpack.c.bf16 %v8832_v28, %v8832_v28 }
 0x4a1   : > { %8805 = vst.msk [vmem:[#allocation3 + $0x151] sm:$0xff] %vm309_vm2, %v8773_v47  ;;  %v17453_v0 = vld [vmem:[#allocation4 + $0xe0] ss:$36 sps:$4 sm:$0xff]   ;;  %8803 = vst.msk [vmem:[#allocation3 + $0x139] sm:$0xff] %vm309_vm2, %v8771_v9  ;;  %v8774_v62 = vmax.f32 %v8742_v57, 0.0  ;;  %v8706_v37 = vmul.f32 %v20637_v8, %v8663_v40  ;;  %v8704_v5 = vmul.f32 %v20637_v8, %v8655_v26  ;;  %v9024_v23 = vld [vmem:[#allocation3 + $0xf9] sm:$0xff]  ;;  %v8707_v51 = vmul.f32 %v20637_v8, %v8666_v56 }
 0x4a2   : > { %8990 = vst.msk [vmem:[#allocation4 + $0x2ac] sm:$0xf] %vm4822_vm5, %v15025_v54  ;;  %9181 = vst.msk [vmem:[#allocation4 + $0x28c] sm:$0xf] %vm4822_vm5, %v15056_v24  ;;  %v20649_v31 = vld [vmem:[%s21353_s5] ss:$0 sm:$0xff]  ;;  %12076 = vmatmul.mubr.bf16.gmra.mxu0 %v17450_v14  ;;  %v15059_v55 = vpack.c.bf16 %v9024_v23, %v9024_v23  ;;  %v8705_v25 = vmul.f32 %v20637_v8, %v8658_v4 }
 0x4a3   : > { %9182 = vst.msk [vmem:[#allocation4 + $0x2b0] sm:$0xf] %vm4822_vm5, %v15057_v41  ;;  %9371 = vst.msk [vmem:[#allocation4 + $0x248] sm:$0xf] %vm4822_vm5, %v15086_v27  ;;  %v8740_v52 = vadd.f32 %v20649_v31, %v8701_v39  ;;  %v17459_v35 = vld [vmem:[#allocation4 + $0x16c] ss:$36 sps:$4 sm:$0xff]   ;;  %v8745_v22 = vadd.f32 %v20649_v31, %v8706_v37  ;;  %12229 = vmatmul.mubr.bf16.gmra.mxu1 %v17453_v0  ;;  %v8743_v30 = vadd.f32 %v20649_v31, %v8704_v5 }
 0x4a4   : > { %9564 = vst.msk [vmem:[#allocation4 + $0x270] sm:$0xf] %vm4822_vm5, %v15025_v54  ;;  %v17462_v15 = vld [vmem:[#allocation4 + $0x12c] ss:$36 sps:$4 sm:$0xff]   ;;  %9372 = vst.msk [vmem:[#allocation4 + $0x26c] sm:$0xf] %vm4822_vm5, %v15087_v7  ;;  %12083 = vmatprep.mubr.bf16.mxu0 %v17459_v35  ;;  %v8746_v50 = vadd.f32 %v20649_v31, %v8707_v51  ;;  %v8744_v54 = vadd.f32 %v20649_v31, %v8705_v25 }
 0x4a5   : > { %8991 = vst.msk [vmem:[#allocation4 + $0x2d0] sm:$0xf] %vm4822_vm5, %v15026_v6  ;;  %8992 = vst.msk [vmem:[#allocation4 + $0x2f4] sm:$0xf] %vm4822_vm5, %v15027_v12  ;;  %v9023_v43 = vld [vmem:[#allocation3 + $0xf1] sm:$0xff]  ;;  %v8772_v2 = vmax.f32 %v8740_v52, 0.0  ;;  %12236 = vmatprep.mubr.bf16.mxu1 %v17462_v15 }
 0x4a6   : > { %9565 = vst.msk [vmem:[#allocation4 + $0x294] sm:$0xf] %vm4822_vm5, %v15026_v6  ;;  %9566 = vst.msk [vmem:[#allocation4 + $0x2b8] sm:$0xf] %vm4822_vm5, %v15027_v12  ;;  %v9213_v13 = vld [vmem:[#allocation3 + $0xda] sm:$0xff]  ;;  %v9214_v29 = vld [vmem:[#allocation3 + $0xe2] sm:$0xff]  ;;  %v15058_v16 = vpack.c.bf16 %v9023_v43, %v9023_v43 }
 0x4a7   : > { %8806 = vst.msk [vmem:[#allocation3 + $0x159] sm:$0xff] %vm309_vm2, %v8774_v62  ;;  %v15088_v3 = vpack.c.bf16 %v9213_v13, %v9213_v13  ;;  %v15089_v42 = vpack.c.bf16 %v9214_v29, %v9214_v29  ;;  %v8833_v11 = vld [vmem:[#allocation3 + $0x108] sm:$0xff]  ;;  %v8834_v63 = vld [vmem:[#allocation3 + $0x110] sm:$0xff]  ;;  %8804 = vst.msk [vmem:[#allocation3 + $0x141] sm:$0xff] %vm309_vm2, %v8772_v2  ;;  %v8777_v36 = vmax.f32 %v8745_v22, 0.0  ;;  %v8775_v44 = vmax.f32 %v8743_v30, 0.0 }
 0x4a8   : > { %v9025_v46 = vld [vmem:[#allocation3 + $0x109] sm:$0xff]  ;;  %9183 = vst.msk [vmem:[#allocation4 + $0x2d4] sm:$0xf] %vm4822_vm5, %v15058_v16  ;;  %9184 = vst.msk [vmem:[#allocation4 + $0x2f8] sm:$0xf] %vm4822_vm5, %v15059_v55  ;;  %v15028_v49 = vpack.c.bf16 %v8833_v11, %v8833_v11  ;;  %v15029_v19 = vpack.c.bf16 %v8834_v63, %v8834_v63  ;;  %v9026_v48 = vld [vmem:[#allocation3 + $0x111] sm:$0xff] }
 0x4a9   : > { %9373 = vst.msk [vmem:[#allocation4 + $0x290] sm:$0xf] %vm4822_vm5, %v15088_v3  ;;  %9374 = vst.msk [vmem:[#allocation4 + $0x2b4] sm:$0xf] %vm4822_vm5, %v15089_v42  ;;  %v15060_v18 = vpack.c.bf16 %v9025_v46, %v9025_v46  ;;  %v9215_v21 = vld [vmem:[#allocation3 + $0xf2] sm:$0xff]  ;;  %v9216_v10 = vld [vmem:[#allocation3 + $0xfa] sm:$0xff]  ;;  %v15061_v47 = vpack.c.bf16 %v9026_v48, %v9026_v48 }
 0x4aa   : > { %8809 = vst.msk [vmem:[#allocation3 + $0x181] sm:$0xff] %vm309_vm2, %v8777_v36  ;;  %v17457_v20 = vld [vmem:[#allocation4 + $0x168] ss:$36 sps:$4 sm:$0xff]   ;;  %v15090_v34 = vpack.c.bf16 %v9215_v21, %v9215_v21  ;;  %v15091_v58 = vpack.c.bf16 %v9216_v10, %v9216_v10  ;;  %v8835_v38 = vld [vmem:[#allocation3 + $0x120] sm:$0xff]  ;;  %8807 = vst.msk [vmem:[#allocation3 + $0x169] sm:$0xff] %vm309_vm2, %v8775_v44  ;;  %v8778_v33 = vmax.f32 %v8746_v50, 0.0 }
 0x4ab   : > { %v17460_v17 = vld [vmem:[#allocation4 + $0x128] ss:$36 sps:$4 sm:$0xff]   ;;  %8993 = vst.msk [vmem:[#allocation4 + $0x318] sm:$0xf] %vm4822_vm5, %v15028_v49  ;;  %8994 = vst.msk [vmem:[#allocation4 + $0x33c] sm:$0xf] %vm4822_vm5, %v15029_v19  ;;  %v15030_v45 = vpack.c.bf16 %v8835_v38, %v8835_v38  ;;  %12084 = vmatmul.mubr.bf16.gmra.mxu0 %v17457_v20 }
 0x4ac   : > { %9185 = vst.msk [vmem:[#allocation4 + $0x31c] sm:$0xf] %vm4822_vm5, %v15060_v18  ;;  %9567 = vst.msk [vmem:[#allocation4 + $0x2dc] sm:$0xf] %vm4822_vm5, %v15028_v49  ;;  %v17466_v24 = vld [vmem:[#allocation4 + $0x1b4] ss:$36 sps:$4 sm:$0xff]   ;;  %12237 = vmatmul.mubr.bf16.gmra.mxu1 %v17460_v17 }
 0x4ad   : > { %9568 = vst.msk [vmem:[#allocation4 + $0x300] sm:$0xf] %vm4822_vm5, %v15029_v19  ;;  %v17469_v41 = vld [vmem:[#allocation4 + $0x174] ss:$36 sps:$4 sm:$0xff]   ;;  %9186 = vst.msk [vmem:[#allocation4 + $0x340] sm:$0xf] %vm4822_vm5, %v15061_v47  ;;  %12091 = vmatprep.mubr.bf16.mxu0 %v17466_v24 }
 0x4ae   : > { %9375 = vst.msk [vmem:[#allocation4 + $0x2d8] sm:$0xf] %vm4822_vm5, %v15090_v34  ;;  %9376 = vst.msk [vmem:[#allocation4 + $0x2fc] sm:$0xf] %vm4822_vm5, %v15091_v58  ;;  %v8836_v27 = vld [vmem:[#allocation3 + $0x128] sm:$0xff]  ;;  %v8776_v9 = vmax.f32 %v8744_v54, 0.0  ;;  %12244 = vmatprep.mubr.bf16.mxu1 %v17469_v41 }
 0x4af   : > { %v9027_v60 = vld [vmem:[#allocation3 + $0x121] sm:$0xff]  ;;  %v9028_v28 = vld [vmem:[#allocation3 + $0x129] sm:$0xff]  ;;  %8810 = vst.msk [vmem:[#allocation3 + $0x189] sm:$0xff] %vm309_vm2, %v8778_v33  ;;  %v15031_v57 = vpack.c.bf16 %v8836_v27, %v8836_v27  ;;  %v9218_v14 = vld [vmem:[#allocation3 + $0x112] sm:$0xff] }
 0x4b0   : > { %8995 = vst.msk [vmem:[#allocation4 + $0x360] sm:$0xf] %vm4822_vm5, %v15030_v45  ;;  %v15062_v8 = vpack.c.bf16 %v9027_v60, %v9027_v60  ;;  %v15063_v39 = vpack.c.bf16 %v9028_v28, %v9028_v28  ;;  %v9217_v40 = vld [vmem:[#allocation3 + $0x10a] sm:$0xff]  ;;  %9569 = vst.msk [vmem:[#allocation4 + $0x324] sm:$0xf] %vm4822_vm5, %v15030_v45  ;;  %v8837_v0 = vld [vmem:[#allocation3 + $0x138] sm:$0xff]  ;;  %v15093_v61 = vpack.c.bf16 %v9218_v14, %v9218_v14 }
 0x4b1   : > { %v15092_v1 = vpack.c.bf16 %v9217_v40, %v9217_v40  ;;  %v8838_v7 = vld [vmem:[#allocation3 + $0x140] sm:$0xff]  ;;  %v15032_v6 = vpack.c.bf16 %v8837_v0, %v8837_v0  ;;  %8808 = vst.msk [vmem:[#allocation3 + $0x171] sm:$0xff] %vm309_vm2, %v8776_v9  ;;  %v17473_v32 = vld [vmem:[#allocation4 + $0x1fc] ss:$36 sps:$4 sm:$0xff]   ;;  %v8840_v56 = vld [vmem:[#allocation3 + $0x158] sm:$0xff]  ;;  %v16254_v0 = vpop.f32.mrf.mxu0 }
 0x4b2   : > { %v9029_v12 = vld [vmem:[#allocation3 + $0x139] sm:$0xff]  ;;  %v9030_v62 = vld [vmem:[#allocation3 + $0x141] sm:$0xff]  ;;  %8996 = vst.msk [vmem:[#allocation4 + $0x384] sm:$0xf] %vm4822_vm5, %v15031_v57  ;;  %9187 = vst.msk [vmem:[#allocation4 + $0x364] sm:$0xf] %vm4822_vm5, %v15062_v8  ;;  %v15033_v31 = vpack.c.bf16 %v8838_v7, %v8838_v7  ;;  %v15035_v29 = vpack.c.bf16 %v8840_v56, %v8840_v56 }
 0x4b3   : > { %9188 = vst.msk [vmem:[#allocation4 + $0x388] sm:$0xf] %vm4822_vm5, %v15063_v39  ;;  %9570 = vst.msk [vmem:[#allocation4 + $0x348] sm:$0xf] %vm4822_vm5, %v15031_v57  ;;  %v15064_v52 = vpack.c.bf16 %v9029_v12, %v9029_v12  ;;  %v15065_v37 = vpack.c.bf16 %v9030_v62, %v9030_v62  ;;  %v17464_v26 = vld [vmem:[#allocation4 + $0x1b0] ss:$36 sps:$4 sm:$0xff]  }
 0x4b4   : > { %9377 = vst.msk [vmem:[#allocation4 + $0x320] sm:$0xf] %vm4822_vm5, %v15092_v1  ;;  %9378 = vst.msk [vmem:[#allocation4 + $0x344] sm:$0xf] %vm4822_vm5, %v15093_v61  ;;  %v17467_v35 = vld [vmem:[#allocation4 + $0x170] ss:$36 sps:$4 sm:$0xff]   ;;  %12092 = vmatmul.mubr.bf16.gmra.mxu0 %v17464_v26 }
 0x4b5   : > { %8997 = vst.msk [vmem:[#allocation4 + $0x3a8] sm:$0xf] %vm4822_vm5, %v15032_v6  ;;  %9571 = vst.msk [vmem:[#allocation4 + $0x36c] sm:$0xf] %vm4822_vm5, %v15032_v6  ;;  %v17476_v15 = vld [vmem:[#allocation4 + $0x1bc] ss:$36 sps:$4 sm:$0xff]   ;;  %12245 = vmatmul.mubr.bf16.gmra.mxu1 %v17467_v35  ;;  %12099 = vmatprep.mubr.bf16.mxu0 %v17473_v32 }
 0x4b6   : > { %8998 = vst.msk [vmem:[#allocation4 + $0x3cc] sm:$0xf] %vm4822_vm5, %v15033_v31  ;;  %9189 = vst.msk [vmem:[#allocation4 + $0x3ac] sm:$0xf] %vm4822_vm5, %v15064_v52  ;;  %v9219_v59 = vld [vmem:[#allocation3 + $0x122] sm:$0xff]  ;;  %v9220_v43 = vld [vmem:[#allocation3 + $0x12a] sm:$0xff]  ;;  %12252 = vmatprep.mubr.bf16.mxu1 %v17476_v15 }
 0x4b7   : > { %9190 = vst.msk [vmem:[#allocation4 + $0x3d0] sm:$0xf] %vm4822_vm5, %v15065_v37  ;;  %9572 = vst.msk [vmem:[#allocation4 + $0x390] sm:$0xf] %vm4822_vm5, %v15033_v31  ;;  %v15094_v2 = vpack.c.bf16 %v9219_v59, %v9219_v59  ;;  %v15095_v22 = vpack.c.bf16 %v9220_v43, %v9220_v43  ;;  %v8839_v5 = vld [vmem:[#allocation3 + $0x150] sm:$0xff]  ;;  %v9032_v11 = vld [vmem:[#allocation3 + $0x159] sm:$0xff] }
 0x4b8   : > { %v9031_v23 = vld [vmem:[#allocation3 + $0x151] sm:$0xff]  ;;  %v15034_v13 = vpack.c.bf16 %v8839_v5, %v8839_v5  ;;  %v17471_v16 = vld [vmem:[#allocation4 + $0x1f8] ss:$36 sps:$4 sm:$0xff]   ;;  %9000 = vst.msk [vmem:[#allocation4 + $0x414] sm:$0xf] %vm4822_vm5, %v15035_v29  ;;  %v9221_v63 = vld [vmem:[#allocation3 + $0x13a] sm:$0xff]  ;;  %v15067_v36 = vpack.c.bf16 %v9032_v11, %v9032_v11  ;;  %v16255_v5 = vpop.f32.mrf.mxu0 }
 0x4b9   : > { %v15066_v53 = vpack.c.bf16 %v9031_v23, %v9031_v23  ;;  %9379 = vst.msk [vmem:[#allocation4 + $0x368] sm:$0xf] %vm4822_vm5, %v15094_v2  ;;  %9380 = vst.msk [vmem:[#allocation4 + $0x38c] sm:$0xf] %vm4822_vm5, %v15095_v22  ;;  %v17474_v55 = vld [vmem:[#allocation4 + $0x1b8] ss:$36 sps:$4 sm:$0xff]   ;;  %v15096_v30 = vpack.c.bf16 %v9221_v63, %v9221_v63 }
 0x4ba   : > { %8999 = vst.msk [vmem:[#allocation4 + $0x3f0] sm:$0xf] %vm4822_vm5, %v15034_v13  ;;  %9573 = vst.msk [vmem:[#allocation4 + $0x3b4] sm:$0xf] %vm4822_vm5, %v15034_v13  ;;  %v17480_v3 = vld [vmem:[#allocation4 + $0x244] ss:$36 sps:$4 sm:$0xff]  }
 0x4bb   : > { %9191 = vst.msk [vmem:[#allocation4 + $0x3f4] sm:$0xf] %vm4822_vm5, %v15066_v53  ;;  %9574 = vst.msk [vmem:[#allocation4 + $0x3d8] sm:$0xf] %vm4822_vm5, %v15035_v29  ;;  %v17483_v42 = vld [vmem:[#allocation4 + $0x204] ss:$36 sps:$4 sm:$0xff]  }
 0x4bc   : > { %v9222_v46 = vld [vmem:[#allocation3 + $0x142] sm:$0xff]  ;;  %v8842_v49 = vld [vmem:[#allocation3 + $0x170] sm:$0xff]  ;;  %12100 = vmatmul.mubr.bf16.gmra.mxu0 %v17471_v16  ;;  %v9224_v50 = vld [vmem:[#allocation3 + $0x15a] sm:$0xff]  ;;  %9192 = vst.msk [vmem:[#allocation4 + $0x418] sm:$0xf] %vm4822_vm5, %v15067_v36  ;;  %v20745_v16 = vadd.f32 %v16255_v5, %v16254_v0 }
 0x4bd   : > { %v15097_v51 = vpack.c.bf16 %v9222_v46, %v9222_v46  ;;  %v8841_v4 = vld [vmem:[#allocation3 + $0x168] sm:$0xff]  ;;  %v15037_v18 = vpack.c.bf16 %v8842_v49, %v8842_v49  ;;  %v9034_v21 = vld [vmem:[#allocation3 + $0x171] sm:$0xff]  ;;  %12253 = vmatmul.mubr.bf16.gmra.mxu1 %v17474_v55  ;;  %12107 = vmatprep.mubr.bf16.mxu0 %v17480_v3  ;;  %9381 = vst.msk [vmem:[#allocation4 + $0x3b0] sm:$0xf] %vm4822_vm5, %v15096_v30  ;;  %v9417_v58 = vld [vmem:[#allocation3 + $0x180] sm:$0xff] }
 0x4be   : > { %v9033_v19 = vld [vmem:[#allocation3 + $0x169] sm:$0xff]  ;;  %v15036_v48 = vpack.c.bf16 %v8841_v4, %v8841_v4  ;;  %v9223_v44 = vld [vmem:[#allocation3 + $0x152] sm:$0xff]  ;;  %v15069_v20 = vpack.c.bf16 %v9034_v21, %v9034_v21  ;;  %v15099_v47 = vpack.c.bf16 %v9224_v50, %v9224_v50  ;;  %12260 = vmatprep.mubr.bf16.mxu1 %v17483_v42  ;;  %v15132_v54 = vpack.c.bf16 %v9417_v58, %v9417_v58  ;;  %v17489_v9 = vld [vmem:[#allocation4 + $0x28c] ss:$36 sps:$4 sm:$0xff]  }
 0x4bf   : > { %v15068_v10 = vpack.c.bf16 %v9033_v19, %v9033_v19  ;;  %9382 = vst.msk [vmem:[#allocation4 + $0x3d4] sm:$0xf] %vm4822_vm5, %v15097_v51  ;;  %v15098_v25 = vpack.c.bf16 %v9223_v44, %v9223_v44  ;;  %v9225_v17 = vld [vmem:[#allocation3 + $0x16a] sm:$0xff]  ;;  %v9226_v34 = vld [vmem:[#allocation3 + $0x172] sm:$0xff]  ;;  %9002 = vst.msk [vmem:[#allocation4 + $0x45c] sm:$0xf] %vm4822_vm5, %v15037_v18 }
 0x4c0   : > { %9001 = vst.msk [vmem:[#allocation4 + $0x438] sm:$0xf] %vm4822_vm5, %v15036_v48  ;;  %9575 = vst.msk [vmem:[#allocation4 + $0x3fc] sm:$0xf] %vm4822_vm5, %v15036_v48  ;;  %v15100_v38 = vpack.c.bf16 %v9225_v17, %v9225_v17  ;;  %v15101_v33 = vpack.c.bf16 %v9226_v34, %v9226_v34  ;;  %v9418_v24 = vld [vmem:[#allocation3 + $0x188] sm:$0xff]  ;;  %v17552_v27 = vld [vmem:[%s21351_s3 + $0x1c8] sm:$0xff]  }
 0x4c1   : > { %9193 = vst.msk [vmem:[#allocation4 + $0x43c] sm:$0xf] %vm4822_vm5, %v15068_v10  ;;  %9576 = vst.msk [vmem:[#allocation4 + $0x420] sm:$0xf] %vm4822_vm5, %v15037_v18  ;;  %v15133_v41 = vpack.c.bf16 %v9418_v24, %v9418_v24  ;;  %v17478_v45 = vld [vmem:[#allocation4 + $0x240] ss:$36 sps:$4 sm:$0xff]   ;;  %16586 = vmatprep.subr.bf16.mxu1 %v17552_v27 }
 0x4c2   : > { %9194 = vst.msk [vmem:[#allocation4 + $0x460] sm:$0xf] %vm4822_vm5, %v15069_v20  ;;  %9383 = vst.msk [vmem:[#allocation4 + $0x3f8] sm:$0xf] %vm4822_vm5, %v15098_v25  ;;  %v20727_v60 = vld [vmem:[%s21351_s3 + $0x238] sm:$0xff]   ;;  %v17557_v57 = vld [vmem:[%s21351_s3 + $0x188] sm:$0xff]  }
 0x4c3   : > { %9384 = vst.msk [vmem:[#allocation4 + $0x41c] sm:$0xf] %vm4822_vm5, %v15099_v47  ;;  %9385 = vst.msk [vmem:[#allocation4 + $0x440] sm:$0xf] %vm4822_vm5, %v15100_v38  ;;  %v17481_v28 = vld [vmem:[#allocation4 + $0x200] ss:$36 sps:$4 sm:$0xff]   ;;  %16806 = vmatprep.subr.bf16.mxu0 %v20727_v60  ;;  %16587 = vmatpush3.bf16.msra.mxu1 %v17557_v57 }
 0x4c4   : > { %9386 = vst.msk [vmem:[#allocation4 + $0x464] sm:$0xf] %vm4822_vm5, %v15101_v33  ;;  %9577 = vst.msk [vmem:[#allocation4 + $0x444] sm:$0xf] %vm4822_vm5, %v15132_v54  ;;  %12108 = vmatmul.mubr.bf16.gmra.mxu0 %v17478_v45  ;;  %v17492_v8 = vld [vmem:[#allocation4 + $0x24c] ss:$36 sps:$4 sm:$0xff]  }
 0x4c5   : > { %9578 = vst.msk [vmem:[#allocation4 + $0x468] sm:$0xf] %vm4822_vm5, %v15133_v41  ;;  %12261 = vmatmul.mubr.bf16.gmra.mxu1 %v17481_v28  ;;  %12115 = vmatprep.mubr.bf16.mxu0 %v17489_v9  ;;  %v17487_v39 = vld [vmem:[#allocation4 + $0x288] ss:$36 sps:$4 sm:$0xff]   ;;  %v17496_v14 = vld [vmem:[#allocation4 + $0x2d4] ss:$36 sps:$4 sm:$0xff]  }
 0x4c6   : > { %12268 = vmatprep.mubr.bf16.mxu1 %v17492_v8  ;;  %v17490_v40 = vld [vmem:[#allocation4 + $0x248] ss:$36 sps:$4 sm:$0xff]   ;;  %v17499_v1 = vld [vmem:[#allocation4 + $0x294] ss:$36 sps:$4 sm:$0xff]   ;;  %v17561_v61 = vld [vmem:[%s21351_s3 + $0x1c0] sm:$0xff]  }
 0x4c7   : > { %v17562_v7 = vld [vmem:[%s21351_s3 + $0x180] sm:$0xff]   ;;  %v9965_v35 = vld [vmem:[#allocation3 + $0x48] sm:$0xff]  ;;  %16588 = vmatprep.subr.bf16.mxu1 %v17561_v61  ;;  %v9967_v53 = vld [vmem:[#allocation3 + $0x60] sm:$0xff] }
 0x4c8   : > { %v9583_v6 = vld [vmem:[#allocation3 + $0x49] sm:$0xff]  ;;  %v9584_v12 = vld [vmem:[#allocation3 + $0x51] sm:$0xff]  ;;  %v15200_v59 = vpack.c.bf16 %v9965_v35, %v9965_v35  ;;  %v9585_v2 = vld [vmem:[#allocation3 + $0x61] sm:$0xff]  ;;  %16589 = vmatpush3.bf16.msra.mxu1 %v17562_v7  ;;  %v15202_v63 = vpack.c.bf16 %v9967_v53, %v9967_v53 }
 0x4c9   : > { %v9775_v62 = vld [vmem:[#allocation3 + $0x4a] sm:$0xff]  ;;  %v15138_v31 = vpack.c.bf16 %v9583_v6, %v9583_v6  ;;  %v15139_v52 = vpack.c.bf16 %v9584_v12, %v9584_v12  ;;  %v9776_v37 = vld [vmem:[#allocation3 + $0x52] sm:$0xff]  ;;  %v15140_v56 = vpack.c.bf16 %v9585_v2, %v9585_v2  ;;  %v9777_v13 = vld [vmem:[#allocation3 + $0x62] sm:$0xff] }
 0x4ca   : > { %v15170_v26 = vpack.c.bf16 %v9775_v62, %v9775_v62  ;;  %v9966_v32 = vld [vmem:[#allocation3 + $0x50] sm:$0xff]  ;;  %v15171_v15 = vpack.c.bf16 %v9776_v37, %v9776_v37  ;;  %v17494_v55 = vld [vmem:[#allocation4 + $0x2d0] ss:$36 sps:$4 sm:$0xff]   ;;  %10125 = vst.msk [vmem:[#allocation4 + $0x60] sm:$0xf] %vm4822_vm5, %v15200_v59  ;;  %v15172_v3 = vpack.c.bf16 %v9777_v13, %v9777_v13  ;;  %v9968_v11 = vld [vmem:[#allocation3 + $0x68] sm:$0xff] }
 0x4cb   : > { %v15201_v43 = vpack.c.bf16 %v9966_v32, %v9966_v32  ;;  %v9586_v22 = vld [vmem:[#allocation3 + $0x69] sm:$0xff]  ;;  %9743 = vst.msk [vmem:[#allocation4 + $0xa0] sm:$0xf] %vm4822_vm5, %v15138_v31  ;;  %9744 = vst.msk [vmem:[#allocation4 + $0xc4] sm:$0xf] %vm4822_vm5, %v15139_v52  ;;  %v9587_v46 = vld [vmem:[#allocation3 + $0x79] sm:$0xff]  ;;  %v15203_v4 = vpack.c.bf16 %v9968_v11, %v9968_v11 }
 0x4cc   : > { %12116 = vmatmul.mubr.bf16.gmra.mxu0 %v17487_v39  ;;  %9935 = vst.msk [vmem:[#allocation4 + $0xa4] sm:$0xf] %vm4822_vm5, %v15170_v26  ;;  %10317 = vst.msk [vmem:[#allocation4 + $0x64] sm:$0xf] %vm4822_vm5, %v15138_v31  ;;  %v15141_v23 = vpack.c.bf16 %v9586_v22, %v9586_v22  ;;  %v9778_v29 = vld [vmem:[#allocation3 + $0x6a] sm:$0xff]  ;;  %v9588_v36 = vld [vmem:[#allocation3 + $0x81] sm:$0xff]  ;;  %v15142_v49 = vpack.c.bf16 %v9587_v46, %v9587_v46 }
 0x4cd   : > { %12269 = vmatmul.mubr.bf16.gmra.mxu1 %v17490_v40  ;;  %12123 = vmatprep.mubr.bf16.mxu0 %v17496_v14  ;;  %10318 = vst.msk [vmem:[#allocation4 + $0x88] sm:$0xf] %vm4822_vm5, %v15139_v52  ;;  %9936 = vst.msk [vmem:[#allocation4 + $0xc8] sm:$0xf] %vm4822_vm5, %v15171_v15  ;;  %v15173_v42 = vpack.c.bf16 %v9778_v29, %v9778_v29  ;;  %v17497_v30 = vld [vmem:[#allocation4 + $0x290] ss:$36 sps:$4 sm:$0xff]   ;;  %v15143_v19 = vpack.c.bf16 %v9588_v36, %v9588_v36 }
 0x4ce   : > { %12276 = vmatprep.mubr.bf16.mxu1 %v17499_v1  ;;  %10126 = vst.msk [vmem:[#allocation4 + $0x84] sm:$0xf] %vm4822_vm5, %v15201_v43  ;;  %v17505_v51 = vld [vmem:[#allocation4 + $0x31c] ss:$36 sps:$4 sm:$0xff]   ;;  %9745 = vst.msk [vmem:[#allocation4 + $0xe8] sm:$0xf] %vm4822_vm5, %v15140_v56 }
 0x4cf   : > { %9746 = vst.msk [vmem:[#allocation4 + $0x10c] sm:$0xf] %vm4822_vm5, %v15141_v23  ;;  %10319 = vst.msk [vmem:[#allocation4 + $0xac] sm:$0xf] %vm4822_vm5, %v15140_v56  ;;  %v9779_v48 = vld [vmem:[#allocation3 + $0x7a] sm:$0xff]  ;;  %v9780_v18 = vld [vmem:[#allocation3 + $0x82] sm:$0xff] }
 0x4d0   : > { %10320 = vst.msk [vmem:[#allocation4 + $0xd0] sm:$0xf] %vm4822_vm5, %v15141_v23  ;;  %v9969_v21 = vld [vmem:[#allocation3 + $0x78] sm:$0xff]  ;;  %v17508_v10 = vld [vmem:[#allocation4 + $0x2dc] ss:$36 sps:$4 sm:$0xff]   ;;  %v15174_v44 = vpack.c.bf16 %v9779_v48, %v9779_v48  ;;  %v15175_v50 = vpack.c.bf16 %v9780_v18, %v9780_v18  ;;  %v9970_v20 = vld [vmem:[#allocation3 + $0x80] sm:$0xff] }
 0x4d1   : > { %9937 = vst.msk [vmem:[#allocation4 + $0xec] sm:$0xf] %vm4822_vm5, %v15172_v3  ;;  %9938 = vst.msk [vmem:[#allocation4 + $0x110] sm:$0xf] %vm4822_vm5, %v15173_v42  ;;  %v15204_v25 = vpack.c.bf16 %v9969_v21, %v9969_v21  ;;  %v9589_v47 = vld [vmem:[#allocation3 + $0x91] sm:$0xff]  ;;  %v15205_v17 = vpack.c.bf16 %v9970_v20, %v9970_v20  ;;  %v9590_v34 = vld [vmem:[#allocation3 + $0x99] sm:$0xff] }
 0x4d2   : > { %10127 = vst.msk [vmem:[#allocation4 + $0xa8] sm:$0xf] %vm4822_vm5, %v15202_v63  ;;  %10128 = vst.msk [vmem:[#allocation4 + $0xcc] sm:$0xf] %vm4822_vm5, %v15203_v4  ;;  %v15144_v58 = vpack.c.bf16 %v9589_v47, %v9589_v47  ;;  %v9781_v38 = vld [vmem:[#allocation3 + $0x92] sm:$0xff]  ;;  %v9782_v33 = vld [vmem:[#allocation3 + $0x9a] sm:$0xff]  ;;  %v15145_v54 = vpack.c.bf16 %v9590_v34, %v9590_v34 }
 0x4d3   : > { %9747 = vst.msk [vmem:[#allocation4 + $0x130] sm:$0xf] %vm4822_vm5, %v15142_v49  ;;  %9748 = vst.msk [vmem:[#allocation4 + $0x154] sm:$0xf] %vm4822_vm5, %v15143_v19  ;;  %v15176_v24 = vpack.c.bf16 %v9781_v38, %v9781_v38  ;;  %v15177_v41 = vpack.c.bf16 %v9782_v33, %v9782_v33  ;;  %v9971_v45 = vld [vmem:[#allocation3 + $0x90] sm:$0xff]  ;;  %v9972_v27 = vld [vmem:[#allocation3 + $0x98] sm:$0xff] }
 0x4d4   : > { %10321 = vst.msk [vmem:[#allocation4 + $0xf4] sm:$0xf] %vm4822_vm5, %v15142_v49  ;;  %10322 = vst.msk [vmem:[#allocation4 + $0x118] sm:$0xf] %vm4822_vm5, %v15143_v19  ;;  %12124 = vmatmul.mubr.bf16.gmra.mxu0 %v17494_v55  ;;  %v9591_v28 = vld [vmem:[#allocation3 + $0xa9] sm:$0xff]  ;;  %v15206_v9 = vpack.c.bf16 %v9971_v45, %v9971_v45  ;;  %v15207_v57 = vpack.c.bf16 %v9972_v27, %v9972_v27  ;;  %v9592_v8 = vld [vmem:[#allocation3 + $0xb1] sm:$0xff] }
 0x4d5   : > { %9939 = vst.msk [vmem:[#allocation4 + $0x134] sm:$0xf] %vm4822_vm5, %v15174_v44  ;;  %9940 = vst.msk [vmem:[#allocation4 + $0x158] sm:$0xf] %vm4822_vm5, %v15175_v50  ;;  %12277 = vmatmul.mubr.bf16.gmra.mxu1 %v17497_v30  ;;  %12131 = vmatprep.mubr.bf16.mxu0 %v17505_v51  ;;  %v15146_v39 = vpack.c.bf16 %v9591_v28, %v9591_v28  ;;  %v9783_v40 = vld [vmem:[#allocation3 + $0xaa] sm:$0xff]  ;;  %v9784_v14 = vld [vmem:[#allocation3 + $0xb2] sm:$0xff]  ;;  %v15147_v0 = vpack.c.bf16 %v9592_v8, %v9592_v8 }
 0x4d6   : > { %10129 = vst.msk [vmem:[#allocation4 + $0xf0] sm:$0xf] %vm4822_vm5, %v15204_v25  ;;  %10130 = vst.msk [vmem:[#allocation4 + $0x114] sm:$0xf] %vm4822_vm5, %v15205_v17  ;;  %12284 = vmatprep.mubr.bf16.mxu1 %v17508_v10  ;;  %v15178_v1 = vpack.c.bf16 %v9783_v40, %v9783_v40  ;;  %v15179_v61 = vpack.c.bf16 %v9784_v14, %v9784_v14  ;;  %v9973_v7 = vld [vmem:[#allocation3 + $0xa8] sm:$0xff]  ;;  %v9974_v6 = vld [vmem:[#allocation3 + $0xb0] sm:$0xff] }
 0x4d7   : > { %9749 = vst.msk [vmem:[#allocation4 + $0x178] sm:$0xf] %vm4822_vm5, %v15144_v58  ;;  %10323 = vst.msk [vmem:[#allocation4 + $0x13c] sm:$0xf] %vm4822_vm5, %v15144_v58  ;;  %v15208_v12 = vpack.c.bf16 %v9973_v7, %v9973_v7  ;;  %v15209_v62 = vpack.c.bf16 %v9974_v6, %v9974_v6  ;;  %v17503_v31 = vld [vmem:[#allocation4 + $0x318] ss:$36 sps:$4 sm:$0xff]  }
 0x4d8   : > { %9750 = vst.msk [vmem:[#allocation4 + $0x19c] sm:$0xf] %vm4822_vm5, %v15145_v54  ;;  %9941 = vst.msk [vmem:[#allocation4 + $0x17c] sm:$0xf] %vm4822_vm5, %v15176_v24  ;;  %v17506_v52 = vld [vmem:[#allocation4 + $0x2d8] ss:$36 sps:$4 sm:$0xff]  }
 0x4d9   : > { %9942 = vst.msk [vmem:[#allocation4 + $0x1a0] sm:$0xf] %vm4822_vm5, %v15177_v41  ;;  %10324 = vst.msk [vmem:[#allocation4 + $0x160] sm:$0xf] %vm4822_vm5, %v15145_v54  ;;  %v17512_v37 = vld [vmem:[#allocation4 + $0x364] ss:$36 sps:$4 sm:$0xff]  }
 0x4da   : > { %10131 = vst.msk [vmem:[#allocation4 + $0x138] sm:$0xf] %vm4822_vm5, %v15206_v9  ;;  %10132 = vst.msk [vmem:[#allocation4 + $0x15c] sm:$0xf] %vm4822_vm5, %v15207_v57  ;;  %v17515_v26 = vld [vmem:[#allocation4 + $0x324] ss:$36 sps:$4 sm:$0xff]  }
 0x4db   : > { %9751 = vst.msk [vmem:[#allocation4 + $0x1c0] sm:$0xf] %vm4822_vm5, %v15146_v39  ;;  %10325 = vst.msk [vmem:[#allocation4 + $0x184] sm:$0xf] %vm4822_vm5, %v15146_v39  ;;  %v17510_v35 = vld [vmem:[#allocation4 + $0x360] ss:$36 sps:$4 sm:$0xff]  }
 0x4dc   : > { %9752 = vst.msk [vmem:[#allocation4 + $0x1e4] sm:$0xf] %vm4822_vm5, %v15147_v0  ;;  %9943 = vst.msk [vmem:[#allocation4 + $0x1c4] sm:$0xf] %vm4822_vm5, %v15178_v1  ;;  %12132 = vmatmul.mubr.bf16.gmra.mxu0 %v17503_v31  ;;  %v17513_v32 = vld [vmem:[#allocation4 + $0x320] ss:$36 sps:$4 sm:$0xff]  }
 0x4dd   : > { %9944 = vst.msk [vmem:[#allocation4 + $0x1e8] sm:$0xf] %vm4822_vm5, %v15179_v61  ;;  %10326 = vst.msk [vmem:[#allocation4 + $0x1a8] sm:$0xf] %vm4822_vm5, %v15147_v0  ;;  %12285 = vmatmul.mubr.bf16.gmra.mxu1 %v17506_v52  ;;  %12139 = vmatprep.mubr.bf16.mxu0 %v17512_v37  ;;  %v17521_v15 = vld [vmem:[#allocation4 + $0x3ac] ss:$36 sps:$4 sm:$0xff]  }
 0x4de   : > { %10133 = vst.msk [vmem:[#allocation4 + $0x180] sm:$0xf] %vm4822_vm5, %v15208_v12  ;;  %10134 = vst.msk [vmem:[#allocation4 + $0x1a4] sm:$0xf] %vm4822_vm5, %v15209_v62  ;;  %12292 = vmatprep.mubr.bf16.mxu1 %v17515_v26  ;;  %v17524_v59 = vld [vmem:[#allocation4 + $0x36c] ss:$36 sps:$4 sm:$0xff]  }
 0x4df   : > { %v9593_v43 = vld [vmem:[#allocation3 + $0xc1] sm:$0xff]  ;;  %v9594_v2 = vld [vmem:[#allocation3 + $0xc9] sm:$0xff]  ;;  %v9595_v42 = vld [vmem:[#allocation3 + $0xd9] sm:$0xff] }
 0x4e0   : > { %v15148_v22 = vpack.c.bf16 %v9593_v43, %v9593_v43  ;;  %v15149_v5 = vpack.c.bf16 %v9594_v2, %v9594_v2  ;;  %v9785_v56 = vld [vmem:[#allocation3 + $0xc2] sm:$0xff]  ;;  %v9786_v23 = vld [vmem:[#allocation3 + $0xca] sm:$0xff]  ;;  %v15150_v46 = vpack.c.bf16 %v9595_v42, %v9595_v42  ;;  %v9787_v30 = vld [vmem:[#allocation3 + $0xda] sm:$0xff] }
 0x4e1   : > { %v9975_v13 = vld [vmem:[#allocation3 + $0xc0] sm:$0xff]  ;;  %v15180_v29 = vpack.c.bf16 %v9785_v56, %v9785_v56  ;;  %v15181_v53 = vpack.c.bf16 %v9786_v23, %v9786_v23  ;;  %v9976_v55 = vld [vmem:[#allocation3 + $0xc8] sm:$0xff]  ;;  %v9977_v4 = vld [vmem:[#allocation3 + $0xd8] sm:$0xff]  ;;  %v15182_v19 = vpack.c.bf16 %v9787_v30, %v9787_v30 }
 0x4e2   : > { %v15210_v3 = vpack.c.bf16 %v9975_v13, %v9975_v13  ;;  %v9596_v11 = vld [vmem:[#allocation3 + $0xe1] sm:$0xff]  ;;  %9753 = vst.msk [vmem:[#allocation4 + $0x208] sm:$0xf] %vm4822_vm5, %v15148_v22  ;;  %9754 = vst.msk [vmem:[#allocation4 + $0x22c] sm:$0xf] %vm4822_vm5, %v15149_v5  ;;  %v15211_v63 = vpack.c.bf16 %v9976_v55, %v9976_v55  ;;  %v15212_v21 = vpack.c.bf16 %v9977_v4, %v9977_v4  ;;  %v9597_v10 = vld [vmem:[#allocation3 + $0xf1] sm:$0xff] }
 0x4e3   : > { %10327 = vst.msk [vmem:[#allocation4 + $0x1cc] sm:$0xf] %vm4822_vm5, %v15148_v22  ;;  %10328 = vst.msk [vmem:[#allocation4 + $0x1f0] sm:$0xf] %vm4822_vm5, %v15149_v5  ;;  %v15151_v36 = vpack.c.bf16 %v9596_v11, %v9596_v11  ;;  %v9788_v51 = vld [vmem:[#allocation3 + $0xe2] sm:$0xff]  ;;  %v9598_v25 = vld [vmem:[#allocation3 + $0xf9] sm:$0xff]  ;;  %v15152_v47 = vpack.c.bf16 %v9597_v10, %v9597_v10 }
 0x4e4   : > { %12140 = vmatmul.mubr.bf16.gmra.mxu0 %v17510_v35  ;;  %v17519_v49 = vld [vmem:[#allocation4 + $0x3a8] ss:$36 sps:$4 sm:$0xff]   ;;  %9945 = vst.msk [vmem:[#allocation4 + $0x20c] sm:$0xf] %vm4822_vm5, %v15180_v29  ;;  %9946 = vst.msk [vmem:[#allocation4 + $0x230] sm:$0xf] %vm4822_vm5, %v15181_v53  ;;  %v15183_v48 = vpack.c.bf16 %v9788_v51, %v9788_v51  ;;  %v15153_v58 = vpack.c.bf16 %v9598_v25, %v9598_v25 }
 0x4e5   : > { %12293 = vmatmul.mubr.bf16.gmra.mxu1 %v17513_v32  ;;  %12147 = vmatprep.mubr.bf16.mxu0 %v17521_v15  ;;  %10135 = vst.msk [vmem:[#allocation4 + $0x1c8] sm:$0xf] %vm4822_vm5, %v15210_v3  ;;  %v9978_v18 = vld [vmem:[#allocation3 + $0xe0] sm:$0xff]  ;;  %v17522_v44 = vld [vmem:[#allocation4 + $0x368] ss:$36 sps:$4 sm:$0xff]   ;;  %v9979_v54 = vld [vmem:[#allocation3 + $0xf0] sm:$0xff] }
 0x4e6   : > { %12300 = vmatprep.mubr.bf16.mxu1 %v17524_v59  ;;  %v17528_v50 = vld [vmem:[#allocation4 + $0x3f4] ss:$36 sps:$4 sm:$0xff]   ;;  %10136 = vst.msk [vmem:[#allocation4 + $0x1ec] sm:$0xf] %vm4822_vm5, %v15211_v63  ;;  %9755 = vst.msk [vmem:[#allocation4 + $0x250] sm:$0xf] %vm4822_vm5, %v15150_v46  ;;  %v15213_v20 = vpack.c.bf16 %v9978_v18, %v9978_v18  ;;  %v15214_v45 = vpack.c.bf16 %v9979_v54, %v9979_v54 }
 0x4e7   : > { %9756 = vst.msk [vmem:[#allocation4 + $0x274] sm:$0xf] %vm4822_vm5, %v15151_v36  ;;  %10329 = vst.msk [vmem:[#allocation4 + $0x214] sm:$0xf] %vm4822_vm5, %v15150_v46  ;;  %v9789_v17 = vld [vmem:[#allocation3 + $0xf2] sm:$0xff]  ;;  %v9790_v34 = vld [vmem:[#allocation3 + $0xfa] sm:$0xff] }
 0x4e8   : > { %10330 = vst.msk [vmem:[#allocation4 + $0x238] sm:$0xf] %vm4822_vm5, %v15151_v36  ;;  %9947 = vst.msk [vmem:[#allocation4 + $0x254] sm:$0xf] %vm4822_vm5, %v15182_v19  ;;  %v15184_v38 = vpack.c.bf16 %v9789_v17, %v9789_v17  ;;  %v15185_v33 = vpack.c.bf16 %v9790_v34, %v9790_v34  ;;  %v9980_v24 = vld [vmem:[#allocation3 + $0xf8] sm:$0xff]  ;;  %v9599_v41 = vld [vmem:[#allocation3 + $0x109] sm:$0xff] }
 0x4e9   : > { %9948 = vst.msk [vmem:[#allocation4 + $0x278] sm:$0xf] %vm4822_vm5, %v15183_v48  ;;  %10137 = vst.msk [vmem:[#allocation4 + $0x210] sm:$0xf] %vm4822_vm5, %v15212_v21  ;;  %v15215_v27 = vpack.c.bf16 %v9980_v24, %v9980_v24  ;;  %v9600_v28 = vld [vmem:[#allocation3 + $0x111] sm:$0xff]  ;;  %v15154_v9 = vpack.c.bf16 %v9599_v41, %v9599_v41  ;;  %v9981_v1 = vld [vmem:[#allocation3 + $0x108] sm:$0xff] }
 0x4ea   : > { %10138 = vst.msk [vmem:[#allocation4 + $0x234] sm:$0xf] %vm4822_vm5, %v15213_v20  ;;  %9757 = vst.msk [vmem:[#allocation4 + $0x298] sm:$0xf] %vm4822_vm5, %v15152_v47  ;;  %v9791_v57 = vld [vmem:[#allocation3 + $0x10a] sm:$0xff]  ;;  %v9792_v8 = vld [vmem:[#allocation3 + $0x112] sm:$0xff]  ;;  %v15155_v40 = vpack.c.bf16 %v9600_v28, %v9600_v28  ;;  %v15216_v7 = vpack.c.bf16 %v9981_v1, %v9981_v1 }
 0x4eb   : > { %10331 = vst.msk [vmem:[#allocation4 + $0x25c] sm:$0xf] %vm4822_vm5, %v15152_v47  ;;  %v17531_v39 = vld [vmem:[#allocation4 + $0x3b4] ss:$36 sps:$4 sm:$0xff]   ;;  %9758 = vst.msk [vmem:[#allocation4 + $0x2bc] sm:$0xf] %vm4822_vm5, %v15153_v58  ;;  %v15186_v14 = vpack.c.bf16 %v9791_v57, %v9791_v57  ;;  %v15187_v0 = vpack.c.bf16 %v9792_v8, %v9792_v8 }
 0x4ec   : > { %12148 = vmatmul.mubr.bf16.gmra.mxu0 %v17519_v49  ;;  %9949 = vst.msk [vmem:[#allocation4 + $0x29c] sm:$0xf] %vm4822_vm5, %v15184_v38  ;;  %9950 = vst.msk [vmem:[#allocation4 + $0x2c0] sm:$0xf] %vm4822_vm5, %v15185_v33  ;;  %v9982_v61 = vld [vmem:[#allocation3 + $0x110] sm:$0xff]  ;;  %v9601_v12 = vld [vmem:[#allocation3 + $0x121] sm:$0xff] }
 0x4ed   : > { %10332 = vst.msk [vmem:[#allocation4 + $0x280] sm:$0xf] %vm4822_vm5, %v15153_v58  ;;  %10523 = vst.msk [vmem:[#allocation4 + $0x260] sm:$0xf] %vm4822_vm5, %v15184_v38  ;;  %12301 = vmatmul.mubr.bf16.gmra.mxu1 %v17522_v44  ;;  %12155 = vmatprep.mubr.bf16.mxu0 %v17528_v50  ;;  %v15217_v6 = vpack.c.bf16 %v9982_v61, %v9982_v61  ;;  %v9602_v62 = vld [vmem:[#allocation3 + $0x129] sm:$0xff]  ;;  %v15156_v52 = vpack.c.bf16 %v9601_v12, %v9601_v12  ;;  %v9983_v32 = vld [vmem:[#allocation3 + $0x120] sm:$0xff] }
 0x4ee   : > { %10524 = vst.msk [vmem:[#allocation4 + $0x284] sm:$0xf] %vm4822_vm5, %v15185_v33  ;;  %10139 = vst.msk [vmem:[#allocation4 + $0x258] sm:$0xf] %vm4822_vm5, %v15214_v45  ;;  %v9793_v31 = vld [vmem:[#allocation3 + $0x122] sm:$0xff]  ;;  %12308 = vmatprep.mubr.bf16.mxu1 %v17531_v39  ;;  %v15157_v37 = vpack.c.bf16 %v9602_v62, %v9602_v62  ;;  %v9794_v26 = vld [vmem:[#allocation3 + $0x12a] sm:$0xff]  ;;  %v15218_v43 = vpack.c.bf16 %v9983_v32, %v9983_v32 }
 0x4ef   : > { %10140 = vst.msk [vmem:[#allocation4 + $0x27c] sm:$0xf] %vm4822_vm5, %v15215_v27  ;;  %9759 = vst.msk [vmem:[#allocation4 + $0x2e0] sm:$0xf] %vm4822_vm5, %v15154_v9  ;;  %v15188_v35 = vpack.c.bf16 %v9793_v31, %v9793_v31  ;;  %v9984_v15 = vld [vmem:[#allocation3 + $0x128] sm:$0xff]  ;;  %v15189_v59 = vpack.c.bf16 %v9794_v26, %v9794_v26  ;;  %v9603_v3 = vld [vmem:[#allocation3 + $0x139] sm:$0xff] }
 0x4f0   : > { %10333 = vst.msk [vmem:[#allocation4 + $0x2a4] sm:$0xf] %vm4822_vm5, %v15154_v9  ;;  %9760 = vst.msk [vmem:[#allocation4 + $0x304] sm:$0xf] %vm4822_vm5, %v15155_v40  ;;  %v15219_v2 = vpack.c.bf16 %v9984_v15, %v9984_v15  ;;  %v17526_v22 = vld [vmem:[#allocation4 + $0x3f0] ss:$36 sps:$4 sm:$0xff]   ;;  %v15158_v11 = vpack.c.bf16 %v9603_v3, %v9603_v3 }
 0x4f1   : > { %9951 = vst.msk [vmem:[#allocation4 + $0x2e4] sm:$0xf] %vm4822_vm5, %v15186_v14  ;;  %9952 = vst.msk [vmem:[#allocation4 + $0x308] sm:$0xf] %vm4822_vm5, %v15187_v0  ;;  %v17529_v5 = vld [vmem:[#allocation4 + $0x3b0] ss:$36 sps:$4 sm:$0xff]  }
 0x4f2   : > { %10334 = vst.msk [vmem:[#allocation4 + $0x2c8] sm:$0xf] %vm4822_vm5, %v15155_v40  ;;  %10525 = vst.msk [vmem:[#allocation4 + $0x2a8] sm:$0xf] %vm4822_vm5, %v15186_v14  ;;  %v17537_v56 = vld [vmem:[#allocation4 + $0x43c] ss:$36 sps:$4 sm:$0xff]  }
 0x4f3   : > { %10526 = vst.msk [vmem:[#allocation4 + $0x2cc] sm:$0xf] %vm4822_vm5, %v15187_v0  ;;  %10141 = vst.msk [vmem:[#allocation4 + $0x2a0] sm:$0xf] %vm4822_vm5, %v15216_v7  ;;  %v17540_v23 = vld [vmem:[#allocation4 + $0x3fc] ss:$36 sps:$4 sm:$0xff]  }
 0x4f4   : > { %10142 = vst.msk [vmem:[#allocation4 + $0x2c4] sm:$0xf] %vm4822_vm5, %v15217_v6  ;;  %9761 = vst.msk [vmem:[#allocation4 + $0x328] sm:$0xf] %vm4822_vm5, %v15156_v52  ;;  %12156 = vmatmul.mubr.bf16.gmra.mxu0 %v17526_v22  ;;  %v17535_v13 = vld [vmem:[#allocation4 + $0x438] ss:$36 sps:$4 sm:$0xff]  }
 0x4f5   : > { %9762 = vst.msk [vmem:[#allocation4 + $0x34c] sm:$0xf] %vm4822_vm5, %v15157_v37  ;;  %9953 = vst.msk [vmem:[#allocation4 + $0x32c] sm:$0xf] %vm4822_vm5, %v15188_v35  ;;  %12309 = vmatmul.mubr.bf16.gmra.mxu1 %v17529_v5  ;;  %12163 = vmatprep.mubr.bf16.mxu0 %v17537_v56  ;;  %v17548_v29 = vld [vmem:[#allocation4 + $0x14] ss:$36 sps:$4 sm:$0xff]  }
 0x4f6   : > { %10335 = vst.msk [vmem:[#allocation4 + $0x2ec] sm:$0xf] %vm4822_vm5, %v15156_v52  ;;  %10336 = vst.msk [vmem:[#allocation4 + $0x310] sm:$0xf] %vm4822_vm5, %v15157_v37  ;;  %12316 = vmatprep.mubr.bf16.mxu1 %v17540_v23  ;;  %v17538_v53 = vld [vmem:[#allocation4 + $0x3f8] ss:$36 sps:$4 sm:$0xff]  }
 0x4f7   : > { %10527 = vst.msk [vmem:[#allocation4 + $0x2f0] sm:$0xf] %vm4822_vm5, %v15188_v35  ;;  %9954 = vst.msk [vmem:[#allocation4 + $0x350] sm:$0xf] %vm4822_vm5, %v15189_v59  ;;  %v17545_v55 = vld [vmem:[#allocation4 + $0x444] ss:$36 sps:$4 sm:$0xff]  }
 0x4f8   : > { %10143 = vst.msk [vmem:[#allocation4 + $0x2e8] sm:$0xf] %vm4822_vm5, %v15218_v43  ;;  %10144 = vst.msk [vmem:[#allocation4 + $0x30c] sm:$0xf] %vm4822_vm5, %v15219_v2  ;;  %v9604_v42 = vld [vmem:[#allocation3 + $0x141] sm:$0xff]  ;;  %v9985_v30 = vld [vmem:[#allocation3 + $0x138] sm:$0xff] }
 0x4f9   : > { %10528 = vst.msk [vmem:[#allocation4 + $0x314] sm:$0xf] %vm4822_vm5, %v15189_v59  ;;  %v15159_v63 = vpack.c.bf16 %v9604_v42, %v9604_v42  ;;  %v9795_v46 = vld [vmem:[#allocation3 + $0x13a] sm:$0xff]  ;;  %v9796_v36 = vld [vmem:[#allocation3 + $0x142] sm:$0xff]  ;;  %v15220_v19 = vpack.c.bf16 %v9985_v30, %v9985_v30  ;;  %v9605_v48 = vld [vmem:[#allocation3 + $0x151] sm:$0xff] }
 0x4fa   : > { %v15190_v51 = vpack.c.bf16 %v9795_v46, %v9795_v46  ;;  %v15191_v4 = vpack.c.bf16 %v9796_v36, %v9796_v36  ;;  %v9986_v49 = vld [vmem:[#allocation3 + $0x140] sm:$0xff]  ;;  %9763 = vst.msk [vmem:[#allocation4 + $0x370] sm:$0xf] %vm4822_vm5, %v15158_v11  ;;  %10337 = vst.msk [vmem:[#allocation4 + $0x334] sm:$0xf] %vm4822_vm5, %v15158_v11  ;;  %v15160_v10 = vpack.c.bf16 %v9605_v48, %v9605_v48  ;;  %v9797_v44 = vld [vmem:[#allocation3 + $0x152] sm:$0xff] }
 0x4fb   : > { %9764 = vst.msk [vmem:[#allocation4 + $0x394] sm:$0xf] %vm4822_vm5, %v15159_v63  ;;  %v15221_v18 = vpack.c.bf16 %v9986_v49, %v9986_v49  ;;  %10338 = vst.msk [vmem:[#allocation4 + $0x358] sm:$0xf] %vm4822_vm5, %v15159_v63  ;;  %v9606_v21 = vld [vmem:[#allocation3 + $0x159] sm:$0xff]  ;;  %v15192_v47 = vpack.c.bf16 %v9797_v44, %v9797_v44  ;;  %v9987_v34 = vld [vmem:[#allocation3 + $0x150] sm:$0xff] }
 0x4fc   : > { %12164 = vmatmul.mubr.bf16.gmra.mxu0 %v17535_v13  ;;  %v9798_v50 = vld [vmem:[#allocation3 + $0x15a] sm:$0xff]  ;;  %9955 = vst.msk [vmem:[#allocation4 + $0x374] sm:$0xf] %vm4822_vm5, %v15190_v51  ;;  %9956 = vst.msk [vmem:[#allocation4 + $0x398] sm:$0xf] %vm4822_vm5, %v15191_v4  ;;  %v15161_v25 = vpack.c.bf16 %v9606_v21, %v9606_v21  ;;  %v9607_v38 = vld [vmem:[#allocation3 + $0x169] sm:$0xff]  ;;  %v15222_v24 = vpack.c.bf16 %v9987_v34, %v9987_v34 }
 0x4fd   : > { %12317 = vmatmul.mubr.bf16.gmra.mxu1 %v17538_v53  ;;  %12365 = vmatprep.mubr.bf16.mxu0 %v17548_v29  ;;  %v17546_v20 = vld [vmem:[#allocation4 + $0x10] ss:$36 sps:$4 sm:$0xff]   ;;  %10145 = vst.msk [vmem:[#allocation4 + $0x330] sm:$0xf] %vm4822_vm5, %v15220_v19  ;;  %v15193_v17 = vpack.c.bf16 %v9798_v50, %v9798_v50  ;;  %v9988_v58 = vld [vmem:[#allocation3 + $0x158] sm:$0xff]  ;;  %v15162_v27 = vpack.c.bf16 %v9607_v38, %v9607_v38  ;;  %v9799_v28 = vld [vmem:[#allocation3 + $0x16a] sm:$0xff] }
 0x4fe   : > { %12324 = vmatprep.mubr.bf16.mxu1 %v17545_v55  ;;  %10529 = vst.msk [vmem:[#allocation4 + $0x338] sm:$0xf] %vm4822_vm5, %v15190_v51  ;;  %10530 = vst.msk [vmem:[#allocation4 + $0x35c] sm:$0xf] %vm4822_vm5, %v15191_v4  ;;  %v17543_v33 = vld [vmem:[#allocation4 + $0x440] ss:$36 sps:$4 sm:$0xff]   ;;  %v15223_v41 = vpack.c.bf16 %v9988_v58, %v9988_v58  ;;  %v15194_v40 = vpack.c.bf16 %v9799_v28, %v9799_v28 }
 0x4ff   : > { %v17556_v54 = vld [vmem:[#allocation4 + $0x5c] ss:$36 sps:$4 sm:$0xff]   ;;  %10146 = vst.msk [vmem:[#allocation4 + $0x354] sm:$0xf] %vm4822_vm5, %v15221_v18  ;;  %9765 = vst.msk [vmem:[#allocation4 + $0x3b8] sm:$0xf] %vm4822_vm5, %v15160_v10 }
 0x500   : > { %10339 = vst.msk [vmem:[#allocation4 + $0x37c] sm:$0xf] %vm4822_vm5, %v15160_v10  ;;  %v9608_v45 = vld [vmem:[#allocation3 + $0x171] sm:$0xff]  ;;  %v20843_v8 = vld [vmem:[%s21351_s3 + $0x230] sm:$0xff]   ;;  %9766 = vst.msk [vmem:[#allocation4 + $0x3dc] sm:$0xf] %vm4822_vm5, %v15161_v25 }
 0x501   : > { %v9800_v9 = vld [vmem:[#allocation3 + $0x172] sm:$0xff]  ;;  %9957 = vst.msk [vmem:[#allocation4 + $0x3bc] sm:$0xf] %vm4822_vm5, %v15192_v47  ;;  %9958 = vst.msk [vmem:[#allocation4 + $0x3e0] sm:$0xf] %vm4822_vm5, %v15193_v17  ;;  %v15163_v39 = vpack.c.bf16 %v9608_v45, %v9608_v45  ;;  %v9989_v0 = vld [vmem:[#allocation3 + $0x168] sm:$0xff] }
 0x502   : > { %v17560_v57 = vld [vmem:[#allocation4 + $0x1c] ss:$36 sps:$4 sm:$0xff]   ;;  %10340 = vst.msk [vmem:[#allocation4 + $0x3a0] sm:$0xf] %vm4822_vm5, %v15161_v25  ;;  %v15195_v14 = vpack.c.bf16 %v9800_v9, %v9800_v9  ;;  %10531 = vst.msk [vmem:[#allocation4 + $0x380] sm:$0xf] %vm4822_vm5, %v15192_v47  ;;  %v15224_v61 = vpack.c.bf16 %v9989_v0, %v9989_v0 }
 0x503   : > { %v9990_v1 = vld [vmem:[#allocation3 + $0x170] sm:$0xff]  ;;  %10532 = vst.msk [vmem:[#allocation4 + $0x3a4] sm:$0xf] %vm4822_vm5, %v15193_v17  ;;  %10147 = vst.msk [vmem:[#allocation4 + $0x378] sm:$0xf] %vm4822_vm5, %v15222_v24  ;;  %v9609_v6 = vld [vmem:[#allocation3 + $0x181] sm:$0xff] }
 0x504   : > { %10148 = vst.msk [vmem:[#allocation4 + $0x39c] sm:$0xf] %vm4822_vm5, %v15223_v41  ;;  %9767 = vst.msk [vmem:[#allocation4 + $0x400] sm:$0xf] %vm4822_vm5, %v15162_v27  ;;  %v15225_v7 = vpack.c.bf16 %v9990_v1, %v9990_v1  ;;  %v9610_v12 = vld [vmem:[#allocation3 + $0x189] sm:$0xff]  ;;  %12366 = vmatmul.mubr.bf16.vlgmr.msra.gmra.mxu0 %v17546_v20  ;;  %v15164_v31 = vpack.c.bf16 %v9609_v6, %v9609_v6  ;;  %v9991_v35 = vld [vmem:[#allocation3 + $0x180] sm:$0xff] }
 0x505   : > { %10341 = vst.msk [vmem:[#allocation4 + $0x3c4] sm:$0xf] %vm4822_vm5, %v15162_v27  ;;  %v9801_v62 = vld [vmem:[#allocation3 + $0x182] sm:$0xff]  ;;  %9768 = vst.msk [vmem:[#allocation4 + $0x424] sm:$0xf] %vm4822_vm5, %v15163_v39  ;;  %v15165_v52 = vpack.c.bf16 %v9610_v12, %v9610_v12  ;;  %v9802_v37 = vld [vmem:[#allocation3 + $0x18a] sm:$0xff]  ;;  %12325 = vmatmul.mubr.bf16.gmra.mxu1 %v17543_v33  ;;  %12373 = vmatprep.mubr.bf16.mxu0 %v17556_v54  ;;  %v15226_v59 = vpack.c.bf16 %v9991_v35, %v9991_v35 }
 0x506   : > { %9959 = vst.msk [vmem:[#allocation4 + $0x404] sm:$0xf] %vm4822_vm5, %v15194_v40  ;;  %9960 = vst.msk [vmem:[#allocation4 + $0x428] sm:$0xf] %vm4822_vm5, %v15195_v14  ;;  %v15196_v26 = vpack.c.bf16 %v9801_v62, %v9801_v62  ;;  %v9992_v32 = vld [vmem:[#allocation3 + $0x188] sm:$0xff]  ;;  %v15197_v15 = vpack.c.bf16 %v9802_v37, %v9802_v37  ;;  %v10347_v2 = vld [vmem:[#allocation3 + $0x32] sm:$0xff]  ;;  %12526 = vmatprep.mubr.bf16.mxu1 %v17560_v57  ;;  %16807 = vmatpush3.bf16.msra.mxu0 %v20727_v60 }
 0x507   : > { %10342 = vst.msk [vmem:[#allocation4 + $0x3e8] sm:$0xf] %vm4822_vm5, %v15163_v39  ;;  %10533 = vst.msk [vmem:[#allocation4 + $0x3c8] sm:$0xf] %vm4822_vm5, %v15194_v40  ;;  %v15227_v43 = vpack.c.bf16 %v9992_v32, %v9992_v32  ;;  %v10348_v22 = vld [vmem:[#allocation3 + $0x3a] sm:$0xff]  ;;  %v10349_v5 = vld [vmem:[#allocation3 + $0x4a] sm:$0xff]  ;;  %v15262_v56 = vpack.c.bf16 %v10347_v2, %v10347_v2  ;;  %16808 = vmatprep.subr.bf16.mxu0 %v20843_v8 }
 0x508   : > { %10534 = vst.msk [vmem:[#allocation4 + $0x3ec] sm:$0xf] %vm4822_vm5, %v15195_v14  ;;  %10149 = vst.msk [vmem:[#allocation4 + $0x3c0] sm:$0xf] %vm4822_vm5, %v15224_v61  ;;  %v15263_v23 = vpack.c.bf16 %v10348_v22, %v10348_v22  ;;  %v10350_v13 = vld [vmem:[#allocation3 + $0x52] sm:$0xff]  ;;  %v15264_v29 = vpack.c.bf16 %v10349_v5, %v10349_v5  ;;  %v17608_v46 = vld [vmem:[%s21351_s3 + $0x218] sm:$0xff]  }
 0x509   : > { %10150 = vst.msk [vmem:[#allocation4 + $0x3e4] sm:$0xf] %vm4822_vm5, %v15225_v7  ;;  %9769 = vst.msk [vmem:[#allocation4 + $0x448] sm:$0xf] %vm4822_vm5, %v15164_v31  ;;  %v17582_v60 = vld [vmem:[%s21351_s3 + $0x228] sm:$0xff]   ;;  %v15265_v53 = vpack.c.bf16 %v10350_v13, %v10350_v13  ;;  %v17595_v11 = vld [vmem:[%s21351_s3 + $0x220] sm:$0xff]  }
 0x50a   : > { %9770 = vst.msk [vmem:[#allocation4 + $0x46c] sm:$0xf] %vm4822_vm5, %v15165_v52  ;;  %9961 = vst.msk [vmem:[#allocation4 + $0x44c] sm:$0xf] %vm4822_vm5, %v15196_v26  ;;  %v17554_v55 = vld [vmem:[#allocation4 + $0x58] ss:$36 sps:$4 sm:$0xff]   ;;  %16809 = vmatpush3.bf16.msra.mxu0 %v20843_v8 }
 0x50b   : > { %10343 = vst.msk [vmem:[#allocation4 + $0x40c] sm:$0xf] %vm4822_vm5, %v15164_v31  ;;  %10344 = vst.msk [vmem:[#allocation4 + $0x430] sm:$0xf] %vm4822_vm5, %v15165_v52  ;;  %v17558_v3 = vld [vmem:[#allocation4 + $0x18] ss:$36 sps:$4 sm:$0xff]   ;;  %16810 = vmatprep.subr.bf16.mxu0 %v17582_v60 }
 0x50c   : > { %10535 = vst.msk [vmem:[#allocation4 + $0x410] sm:$0xf] %vm4822_vm5, %v15196_v26  ;;  %9962 = vst.msk [vmem:[#allocation4 + $0x470] sm:$0xf] %vm4822_vm5, %v15197_v15  ;;  %v17565_v42 = vld [vmem:[#allocation4 + $0xa4] ss:$36 sps:$4 sm:$0xff]   ;;  %12374 = vmatmul.mubr.bf16.gmra.mxu0 %v17554_v55 }
 0x50d   : > { %10151 = vst.msk [vmem:[#allocation4 + $0x408] sm:$0xf] %vm4822_vm5, %v15226_v59  ;;  %10152 = vst.msk [vmem:[#allocation4 + $0x42c] sm:$0xf] %vm4822_vm5, %v15227_v43  ;;  %v17568_v63 = vld [vmem:[#allocation4 + $0x64] ss:$36 sps:$4 sm:$0xff]   ;;  %12527 = vmatmul.mubr.bf16.vlgmr.msra.gmra.mxu1 %v17558_v3  ;;  %12381 = vmatprep.mubr.bf16.mxu0 %v17565_v42 }
 0x50e   : > { %10536 = vst.msk [vmem:[#allocation4 + $0x434] sm:$0xf] %vm4822_vm5, %v15197_v15  ;;  %10507 = vst.msk [vmem:[#allocation4 + $0x20] sm:$0xf] %vm4822_vm5, %v15262_v56  ;;  %12534 = vmatprep.mubr.bf16.mxu1 %v17568_v63  ;;  %16811 = vmatpush3.bf16.msra.mxu0 %v17582_v60  ;;  %v17563_v36 = vld [vmem:[#allocation4 + $0xa0] ss:$36 sps:$4 sm:$0xff]   ;;  %v16257_v60 = vpop.f32.mrf.mxu0 }
 0x50f   : > { %10508 = vst.msk [vmem:[#allocation4 + $0x44] sm:$0xf] %vm4822_vm5, %v15263_v23  ;;  %10509 = vst.msk [vmem:[#allocation4 + $0x68] sm:$0xf] %vm4822_vm5, %v15264_v29  ;;  %16812 = vmatprep.subr.bf16.mxu0 %v17595_v11  ;;  %v17566_v30 = vld [vmem:[#allocation4 + $0x60] ss:$36 sps:$4 sm:$0xff]  }
 0x510   : > { %10510 = vst.msk [vmem:[#allocation4 + $0x8c] sm:$0xf] %vm4822_vm5, %v15265_v53  ;;  %v17572_v51 = vld [vmem:[#allocation4 + $0xec] ss:$36 sps:$4 sm:$0xff]   ;;  %v10352_v48 = vld [vmem:[#allocation3 + $0x6a] sm:$0xff]  ;;  %v10355_v47 = vld [vmem:[#allocation3 + $0x92] sm:$0xff]  ;;  %v16258_v53 = vpop.f32.mrf.mxu0 }
 0x511   : > { %v17575_v4 = vld [vmem:[#allocation4 + $0xac] ss:$36 sps:$4 sm:$0xff]   ;;  %v15267_v50 = vpack.c.bf16 %v10352_v48, %v10352_v48  ;;  %v10357_v34 = vld [vmem:[#allocation3 + $0xaa] sm:$0xff]  ;;  %v15270_v58 = vpack.c.bf16 %v10355_v47, %v10355_v47  ;;  %v10358_v33 = vld [vmem:[#allocation3 + $0xb2] sm:$0xff] }
 0x512   : > { %16813 = vmatpush3.bf16.msra.mxu0 %v17595_v11  ;;  %v17621_v49 = vld [vmem:[%s21351_s3 + $0x210] sm:$0xff]   ;;  %v17634_v44 = vld [vmem:[%s21351_s3 + $0x208] sm:$0xff]   ;;  %v15272_v54 = vpack.c.bf16 %v10357_v34, %v10357_v34  ;;  %v10360_v41 = vld [vmem:[#allocation3 + $0xca] sm:$0xff]  ;;  %v15273_v45 = vpack.c.bf16 %v10358_v33, %v10358_v33 }
 0x513   : > { %16814 = vmatprep.subr.bf16.mxu0 %v17608_v46  ;;  %v10351_v19 = vld [vmem:[#allocation3 + $0x62] sm:$0xff]  ;;  %v10353_v21 = vld [vmem:[#allocation3 + $0x7a] sm:$0xff]  ;;  %10512 = vst.msk [vmem:[#allocation4 + $0xd4] sm:$0xf] %vm4822_vm5, %v15267_v50  ;;  %v15275_v28 = vpack.c.bf16 %v10360_v41, %v10360_v41  ;;  %10515 = vst.msk [vmem:[#allocation4 + $0x140] sm:$0xf] %vm4822_vm5, %v15270_v58 }
 0x514   : > { %12382 = vmatmul.mubr.bf16.gmra.mxu0 %v17563_v36  ;;  %v15266_v18 = vpack.c.bf16 %v10351_v19, %v10351_v19  ;;  %v10354_v10 = vld [vmem:[#allocation3 + $0x82] sm:$0xff]  ;;  %v15268_v20 = vpack.c.bf16 %v10353_v21, %v10353_v21  ;;  %v10356_v17 = vld [vmem:[#allocation3 + $0x9a] sm:$0xff]  ;;  %10517 = vst.msk [vmem:[#allocation4 + $0x188] sm:$0xf] %vm4822_vm5, %v15272_v54  ;;  %10518 = vst.msk [vmem:[#allocation4 + $0x1ac] sm:$0xf] %vm4822_vm5, %v15273_v45 }
 0x515   : > { %12535 = vmatmul.mubr.bf16.gmra.mxu1 %v17566_v30  ;;  %12389 = vmatprep.mubr.bf16.mxu0 %v17572_v51  ;;  %v15269_v25 = vpack.c.bf16 %v10354_v10, %v10354_v10  ;;  %v15271_v38 = vpack.c.bf16 %v10356_v17, %v10356_v17  ;;  %v10359_v24 = vld [vmem:[#allocation3 + $0xc2] sm:$0xff]  ;;  %v10361_v9 = vld [vmem:[#allocation3 + $0xda] sm:$0xff]  ;;  %10520 = vst.msk [vmem:[#allocation4 + $0x1f4] sm:$0xf] %vm4822_vm5, %v15275_v28  ;;  %v17647_v1 = vld [vmem:[%s21351_s3 + $0x200] sm:$0xff]  }
 0x516   : > { %12542 = vmatprep.mubr.bf16.mxu1 %v17575_v4  ;;  %16815 = vmatpush3.bf16.msra.mxu0 %v17608_v46  ;;  %10511 = vst.msk [vmem:[#allocation4 + $0xb0] sm:$0xf] %vm4822_vm5, %v15266_v18  ;;  %10513 = vst.msk [vmem:[#allocation4 + $0xf8] sm:$0xf] %vm4822_vm5, %v15268_v20  ;;  %v15274_v27 = vpack.c.bf16 %v10359_v24, %v10359_v24  ;;  %v10362_v57 = vld [vmem:[#allocation3 + $0xe2] sm:$0xff]  ;;  %v15276_v39 = vpack.c.bf16 %v10361_v9, %v10361_v9 }
 0x517   : > { %16816 = vmatprep.subr.bf16.mxu0 %v17621_v49  ;;  %10514 = vst.msk [vmem:[#allocation4 + $0x11c] sm:$0xf] %vm4822_vm5, %v15269_v25  ;;  %v17570_v8 = vld [vmem:[#allocation4 + $0xe8] ss:$36 sps:$4 sm:$0xff]   ;;  %10516 = vst.msk [vmem:[#allocation4 + $0x164] sm:$0xf] %vm4822_vm5, %v15271_v38  ;;  %v15277_v40 = vpack.c.bf16 %v10362_v57, %v10362_v57  ;;  %v16259_v25 = vadd.f32 %v16258_v53, %v16257_v60 }
 0x518   : > { %v17573_v14 = vld [vmem:[#allocation4 + $0xa8] ss:$36 sps:$4 sm:$0xff]   ;;  %10519 = vst.msk [vmem:[#allocation4 + $0x1d0] sm:$0xf] %vm4822_vm5, %v15274_v27  ;;  %v17578_v0 = vld [vmem:[#allocation4 + $0x134] ss:$36 sps:$4 sm:$0xff]  }
 0x519   : > { %10521 = vst.msk [vmem:[#allocation4 + $0x218] sm:$0xf] %vm4822_vm5, %v15276_v39  ;;  %10522 = vst.msk [vmem:[#allocation4 + $0x23c] sm:$0xf] %vm4822_vm5, %v15277_v40  ;;  %v17581_v61 = vld [vmem:[#allocation4 + $0xf4] ss:$36 sps:$4 sm:$0xff]  }
 0x51a   : > { %16817 = vmatpush3.bf16.msra.mxu0 %v17621_v49  ;;  %v17576_v7 = vld [vmem:[#allocation4 + $0x130] ss:$36 sps:$4 sm:$0xff]   ;;  %v17585_v12 = vld [vmem:[#allocation4 + $0x17c] ss:$36 sps:$4 sm:$0xff]   ;;  %v17591_v37 = vld [vmem:[#allocation4 + $0x1c4] ss:$36 sps:$4 sm:$0xff]  }
 0x51b   : > { %16818 = vmatprep.subr.bf16.mxu0 %v17634_v44  ;;  %v17579_v6 = vld [vmem:[#allocation4 + $0xf0] ss:$36 sps:$4 sm:$0xff]   ;;  %v17588_v62 = vld [vmem:[#allocation4 + $0x13c] ss:$36 sps:$4 sm:$0xff]   ;;  %v17594_v26 = vld [vmem:[#allocation4 + $0x184] ss:$36 sps:$4 sm:$0xff]  }
 0x51c   : > { %12390 = vmatmul.mubr.bf16.gmra.mxu0 %v17570_v8  ;;  %v17583_v31 = vld [vmem:[#allocation4 + $0x178] ss:$36 sps:$4 sm:$0xff]   ;;  %v17589_v35 = vld [vmem:[#allocation4 + $0x1c0] ss:$36 sps:$4 sm:$0xff]   ;;  %v17598_v15 = vld [vmem:[#allocation4 + $0x20c] ss:$36 sps:$4 sm:$0xff]  }
 0x51d   : > { %12543 = vmatmul.mubr.bf16.gmra.mxu1 %v17573_v14  ;;  %12397 = vmatprep.mubr.bf16.mxu0 %v17578_v0  ;;  %v17586_v52 = vld [vmem:[#allocation4 + $0x138] ss:$36 sps:$4 sm:$0xff]   ;;  %v17592_v32 = vld [vmem:[#allocation4 + $0x180] ss:$36 sps:$4 sm:$0xff]   ;;  %v17601_v59 = vld [vmem:[#allocation4 + $0x1cc] ss:$36 sps:$4 sm:$0xff]  }
 0x51e   : > { %12550 = vmatprep.mubr.bf16.mxu1 %v17581_v61  ;;  %16819 = vmatpush3.bf16.msra.mxu0 %v17634_v44  ;;  %v17596_v43 = vld [vmem:[#allocation4 + $0x208] ss:$36 sps:$4 sm:$0xff]   ;;  %v17604_v22 = vld [vmem:[#allocation4 + $0x254] ss:$36 sps:$4 sm:$0xff]   ;;  %v17611_v13 = vld [vmem:[#allocation4 + $0x29c] ss:$36 sps:$4 sm:$0xff]  }
 0x51f   : > { %16820 = vmatprep.subr.bf16.mxu0 %v17647_v1  ;;  %v17599_v2 = vld [vmem:[#allocation4 + $0x1c8] ss:$36 sps:$4 sm:$0xff]   ;;  %v17607_v5 = vld [vmem:[#allocation4 + $0x214] ss:$36 sps:$4 sm:$0xff]   ;;  %v17614_v29 = vld [vmem:[#allocation4 + $0x25c] ss:$36 sps:$4 sm:$0xff]  }
 0x520   : > { %v17602_v56 = vld [vmem:[#allocation4 + $0x250] ss:$36 sps:$4 sm:$0xff]   ;;  %v17609_v55 = vld [vmem:[#allocation4 + $0x298] ss:$36 sps:$4 sm:$0xff]   ;;  %v17617_v42 = vld [vmem:[#allocation4 + $0x2e4] ss:$36 sps:$4 sm:$0xff]  }
 0x521   : > { %v17605_v23 = vld [vmem:[#allocation4 + $0x210] ss:$36 sps:$4 sm:$0xff]   ;;  %v17612_v3 = vld [vmem:[#allocation4 + $0x258] ss:$36 sps:$4 sm:$0xff]   ;;  %v17620_v63 = vld [vmem:[#allocation4 + $0x2a4] ss:$36 sps:$4 sm:$0xff]  }
 0x522   : > { %16821 = vmatpush3.bf16.msra.mxu0 %v17647_v1  ;;  %v17615_v48 = vld [vmem:[#allocation4 + $0x2e0] ss:$36 sps:$4 sm:$0xff]   ;;  %v17624_v20 = vld [vmem:[#allocation4 + $0x32c] ss:$36 sps:$4 sm:$0xff]   ;;  %v17630_v40 = vld [vmem:[#allocation4 + $0x374] ss:$36 sps:$4 sm:$0xff]  }
 0x523   : > { %v17618_v10 = vld [vmem:[#allocation4 + $0x2a0] ss:$36 sps:$4 sm:$0xff]   ;;  %v17627_v34 = vld [vmem:[#allocation4 + $0x2ec] ss:$36 sps:$4 sm:$0xff]   ;;  %v17633_v1 = vld [vmem:[#allocation4 + $0x334] ss:$36 sps:$4 sm:$0xff]  }
 0x524   : > { %12398 = vmatmul.mubr.bf16.gmra.mxu0 %v17576_v7  ;;  %v17622_v27 = vld [vmem:[#allocation4 + $0x328] ss:$36 sps:$4 sm:$0xff]  }
 0x525   : > { %12551 = vmatmul.mubr.bf16.gmra.mxu1 %v17579_v6  ;;  %12405 = vmatprep.mubr.bf16.mxu0 %v17585_v12  ;;  %v17625_v57 = vld [vmem:[#allocation4 + $0x2e8] ss:$36 sps:$4 sm:$0xff]  }
 0x526   : > { %12558 = vmatprep.mubr.bf16.mxu1 %v17588_v62 }
 0x52c   : > { %12406 = vmatmul.mubr.bf16.gmra.mxu0 %v17583_v31 }
 0x52d   : > { %12559 = vmatmul.mubr.bf16.gmra.mxu1 %v17586_v52  ;;  %12413 = vmatprep.mubr.bf16.mxu0 %v17591_v37 }
 0x52e   : > { %12566 = vmatprep.mubr.bf16.mxu1 %v17594_v26  ;;  %v17628_v26 = vld [vmem:[#allocation4 + $0x370] ss:$36 sps:$4 sm:$0xff]  }
 0x534   : > { %12414 = vmatmul.mubr.bf16.gmra.mxu0 %v17589_v35 }
 0x535   : > { %12567 = vmatmul.mubr.bf16.gmra.mxu1 %v17592_v32  ;;  %12421 = vmatprep.mubr.bf16.mxu0 %v17598_v15  ;;  %v17631_v15 = vld [vmem:[#allocation4 + $0x330] ss:$36 sps:$4 sm:$0xff]  }
 0x536   : > { %12574 = vmatprep.mubr.bf16.mxu1 %v17601_v59 }
 0x53c   : > { %12422 = vmatmul.mubr.bf16.gmra.mxu0 %v17596_v43 }
 0x53d   : > { %12575 = vmatmul.mubr.bf16.gmra.mxu1 %v17599_v2  ;;  %12429 = vmatprep.mubr.bf16.mxu0 %v17604_v22  ;;  %v17637_v2 = vld [vmem:[#allocation4 + $0x3bc] ss:$36 sps:$4 sm:$0xff]  }
 0x53e   : > { %12582 = vmatprep.mubr.bf16.mxu1 %v17607_v5 }
 0x544   : > { %12430 = vmatmul.mubr.bf16.gmra.mxu0 %v17602_v56  ;;  %v16260_v11 = vpop.f32.mrf.mxu0  ;;  %v17640_v56 = vld [vmem:[#allocation4 + $0x37c] ss:$36 sps:$4 sm:$0xff]  }
 0x545   : > { %12583 = vmatmul.mubr.bf16.gmra.mxu1 %v17605_v23  ;;  %12437 = vmatprep.mubr.bf16.mxu0 %v17611_v13 }
 0x546   : > { %12590 = vmatprep.mubr.bf16.mxu1 %v17614_v29  ;;  %v16366_v46 = vpop.f32.mrf.mxu1  ;;  %v16261_v36 = vpop.f32.mrf.mxu0 }
 0x547   : > { %v16262_v30 = vadd.f32 %v16261_v36, %v16260_v11  ;;  %v17635_v11 = vld [vmem:[#allocation4 + $0x3b8] ss:$36 sps:$4 sm:$0xff]  }
 0x548   : > { %v16367_v51 = vpop.f32.mrf.mxu1  ;;  %v16263_v49 = vpop.f32.mrf.mxu0  ;;  %v17638_v36 = vld [vmem:[#allocation4 + $0x378] ss:$36 sps:$4 sm:$0xff]  }
 0x549   : > { %v16368_v4 = vadd.f32 %v16367_v51, %v16366_v46 }
 0x54a   : > { %v16369_v19 = vpop.f32.mrf.mxu1  ;;  %v16264_v21 = vpop.f32.mrf.mxu0 }
 0x54b   : > { %v20911_v18 = vadd.f32 %v16368_v4, %v20745_v16  ;;  %v16265_v44 = vadd.f32 %v16264_v21, %v16263_v49  ;;  %v17643_v4 = vld [vmem:[#allocation4 + $0x404] ss:$36 sps:$4 sm:$0xff]  }
 0x54c   : > { %12438 = vmatmul.mubr.bf16.gmra.mxu0 %v17609_v55  ;;  %v16370_v50 = vpop.f32.mrf.mxu1 }
 0x54d   : > { %12591 = vmatmul.mubr.bf16.gmra.mxu1 %v17612_v3  ;;  %12445 = vmatprep.mubr.bf16.mxu0 %v17617_v42  ;;  %v16371_v47 = vadd.f32 %v16370_v50, %v16369_v19 }
 0x54e   : > { %12598 = vmatprep.mubr.bf16.mxu1 %v17620_v63 }
 0x54f   : > { %v16266_v17 = vpop.f32.mrf.mxu0  ;;  %v20913_v38 = vadd.f32 %v16371_v47, %v16259_v25 }
 0x550   : > { %v16372_v58 = vpop.f32.mrf.mxu1 }
 0x551   : > { %v16267_v33 = vpop.f32.mrf.mxu0 }
 0x552   : > { %v16268_v54 = vadd.f32 %v16267_v33, %v16266_v17  ;;  %v16373_v16 = vpop.f32.mrf.mxu1 }
 0x553   : > { %v16374_v24 = vadd.f32 %v16373_v16, %v16372_v58  ;;  %v16269_v41 = vpop.f32.mrf.mxu0 }
 0x554   : > { %12446 = vmatmul.mubr.bf16.gmra.mxu0 %v17615_v48  ;;  %v16375_v45 = vpop.f32.mrf.mxu1  ;;  %v17646_v48 = vld [vmem:[#allocation4 + $0x3c4] ss:$36 sps:$4 sm:$0xff]  }
 0x555   : > { %12599 = vmatmul.mubr.bf16.gmra.mxu1 %v17618_v10  ;;  %12453 = vmatprep.mubr.bf16.mxu0 %v17624_v20  ;;  %v20915_v28 = vadd.f32 %v16374_v24, %v16262_v30  ;;  %v16270_v9 = vpop.f32.mrf.mxu0 }
 0x556   : > { %12606 = vmatprep.mubr.bf16.mxu1 %v17627_v34  ;;  %v16271_v8 = vadd.f32 %v16270_v9, %v16269_v41  ;;  %v16376_v39 = vpop.f32.mrf.mxu1  ;;  %v17641_v34 = vld [vmem:[#allocation4 + $0x400] ss:$36 sps:$4 sm:$0xff]   ;;  %v17650_v41 = vld [vmem:[#allocation4 + $0x44c] ss:$36 sps:$4 sm:$0xff]  }
 0x557   : > { %v16377_v14 = vadd.f32 %v16376_v39, %v16375_v45  ;;  %v17653_v9 = vld [vmem:[#allocation4 + $0x40c] ss:$36 sps:$4 sm:$0xff]  }
 0x559   : > { %v20917_v7 = vadd.f32 %v16377_v14, %v16265_v44 }
 0x55a   : > { %v16272_v0 = vpop.f32.mrf.mxu0 }
 0x55b   : > { %v16378_v61 = vpop.f32.mrf.mxu1 }
 0x55c   : > { %12454 = vmatmul.mubr.bf16.gmra.mxu0 %v17622_v27  ;;  %v16273_v6 = vpop.f32.mrf.mxu0 }
 0x55d   : > { %12607 = vmatmul.mubr.bf16.gmra.mxu1 %v17625_v57  ;;  %12461 = vmatprep.mubr.bf16.mxu0 %v17630_v40  ;;  %v16274_v12 = vadd.f32 %v16273_v6, %v16272_v0  ;;  %v16379_v62 = vpop.f32.mrf.mxu1  ;;  %v17648_v6 = vld [vmem:[#allocation4 + $0x448] ss:$36 sps:$4 sm:$0xff]  }
 0x55e   : > { %12614 = vmatprep.mubr.bf16.mxu1 %v17633_v1  ;;  %v16380_v31 = vadd.f32 %v16379_v62, %v16378_v61  ;;  %v16275_v52 = vpop.f32.mrf.mxu0 }
 0x55f   : > { %v16381_v37 = vpop.f32.mrf.mxu1 }
 0x560   : > { %v20919_v35 = vadd.f32 %v16380_v31, %v16268_v54  ;;  %v16276_v32 = vpop.f32.mrf.mxu0  ;;  %v17644_v54 = vld [vmem:[#allocation4 + $0x3c0] ss:$36 sps:$4 sm:$0xff]   ;;  %v17657_v31 = vld [vmem:[#allocation4 + $0x454] ss:$36 sps:$4 sm:$0xff]  }
 0x561   : > { %v16277_v59 = vadd.f32 %v16276_v32, %v16275_v52  ;;  %v16382_v43 = vpop.f32.mrf.mxu1  ;;  %v17651_v52 = vld [vmem:[#allocation4 + $0x408] ss:$36 sps:$4 sm:$0xff]   ;;  %v17654_v32 = vld [vmem:[#allocation4 + $0x20] ss:$36 sps:$4 sm:$0xff]  }
 0x562   : > { %v16383_v22 = vadd.f32 %v16382_v43, %v16381_v37  ;;  %v16278_v5 = vpop.f32.mrf.mxu0 }
 0x563   : > { %v16384_v23 = vpop.f32.mrf.mxu1 }
 0x564   : > { %12462 = vmatmul.mubr.bf16.gmra.mxu0 %v17628_v26  ;;  %v20921_v13 = vadd.f32 %v16383_v22, %v16271_v8  ;;  %v16279_v29 = vpop.f32.mrf.mxu0 }
 0x565   : > { %12615 = vmatmul.mubr.bf16.gmra.mxu1 %v17631_v15  ;;  %12469 = vmatprep.mubr.bf16.mxu0 %v17637_v2  ;;  %v16280_v60 = vadd.f32 %v16279_v29, %v16278_v5  ;;  %v16385_v53 = vpop.f32.mrf.mxu1 }
 0x566   : > { %12622 = vmatprep.mubr.bf16.mxu1 %v17640_v56  ;;  %v16386_v55 = vadd.f32 %v16385_v53, %v16384_v23  ;;  %v16281_v3 = vpop.f32.mrf.mxu0  ;;  %v17655_v53 = vld [vmem:[#allocation4 + $0x450] ss:$36 sps:$4 sm:$0xff]  }
 0x567   : > { %v16387_v42 = vpop.f32.mrf.mxu1 }
 0x568   : > { %v20923_v63 = vadd.f32 %v16386_v55, %v16274_v12  ;;  %v16282_v46 = vpop.f32.mrf.mxu0 }
 0x569   : > { %v16283_v30 = vadd.f32 %v16282_v46, %v16281_v3  ;;  %v16388_v51 = vpop.f32.mrf.mxu1 }
 0x56a   : > { %v16389_v49 = vadd.f32 %v16388_v51, %v16387_v42  ;;  %v17658_v42 = vld [vmem:[#allocation4 + $0x68] ss:$36 sps:$4 sm:$0xff]  }
 0x56b   : > { %v16284_v19 = vpop.f32.mrf.mxu0 }
 0x56c   : > { %12470 = vmatmul.mubr.bf16.gmra.mxu0 %v17635_v11  ;;  %v16390_v21 = vpop.f32.mrf.mxu1  ;;  %v20925_v10 = vadd.f32 %v16389_v49, %v16277_v59 }
 0x56d   : > { %12623 = vmatmul.mubr.bf16.gmra.mxu1 %v17638_v36  ;;  %12477 = vmatprep.mubr.bf16.mxu0 %v17643_v4  ;;  %v16285_v44 = vpop.f32.mrf.mxu0  ;;  %v17659_v36 = vld [vmem:[#allocation4 + $0xb0] ss:$36 sps:$4 sm:$0xff]  }
 0x56e   : > { %12630 = vmatprep.mubr.bf16.mxu1 %v17646_v48  ;;  %v16286_v50 = vadd.f32 %v16285_v44, %v16284_v19  ;;  %v16391_v20 = vpop.f32.mrf.mxu1 }
 0x56f   : > { %v16392_v25 = vadd.f32 %v16391_v20, %v16390_v21  ;;  %v16287_v47 = vpop.f32.mrf.mxu0 }
 0x570   : > { %v16393_v17 = vpop.f32.mrf.mxu1 }
 0x571   : > { %v20927_v58 = vadd.f32 %v16392_v25, %v16280_v60  ;;  %v16288_v33 = vpop.f32.mrf.mxu0 }
 0x572   : > { %v16289_v16 = vadd.f32 %v16288_v33, %v16287_v47  ;;  %v16394_v24 = vpop.f32.mrf.mxu1 }
 0x573   : > { %v16395_v45 = vadd.f32 %v16394_v24, %v16393_v17  ;;  %v17660_v17 = vld [vmem:[#allocation4 + $0xf8] ss:$36 sps:$4 sm:$0xff]  }
 0x574   : > { %v16290_v27 = vpop.f32.mrf.mxu0  ;;  %12478 = vmatmul.mubr.bf16.gmra.mxu0 %v17641_v34 }
 0x575   : > { %v16396_v57 = vpop.f32.mrf.mxu1  ;;  %12631 = vmatmul.mubr.bf16.gmra.mxu1 %v17644_v54  ;;  %12485 = vmatprep.mubr.bf16.mxu0 %v17650_v41  ;;  %v20929_v8 = vadd.f32 %v16395_v45, %v16283_v30  ;;  %v17661_v54 = vld [vmem:[#allocation4 + $0x140] ss:$36 sps:$4 sm:$0xff]  }
 0x576   : > { %12638 = vmatprep.mubr.bf16.mxu1 %v17653_v9  ;;  %v16291_v39 = vpop.f32.mrf.mxu0 }
 0x577   : > { %v16292_v40 = vadd.f32 %v16291_v39, %v16290_v27  ;;  %v16397_v14 = vpop.f32.mrf.mxu1 }
 0x578   : > { %v16398_v0 = vadd.f32 %v16397_v14, %v16396_v57  ;;  %v16293_v1 = vpop.f32.mrf.mxu0 }
 0x579   : > { %v16399_v61 = vpop.f32.mrf.mxu1 }
 0x57a   : > { %v20931_v12 = vadd.f32 %v16398_v0, %v16286_v50  ;;  %v16294_v62 = vpop.f32.mrf.mxu0 }
 0x57b   : > { %v16295_v37 = vadd.f32 %v16294_v62, %v16293_v1  ;;  %v16400_v26 = vpop.f32.mrf.mxu1 }
 0x57c   : > { %v16401_v15 = vadd.f32 %v16400_v26, %v16399_v61  ;;  %v16296_v59 = vpop.f32.mrf.mxu0  ;;  %12486 = vmatmul.mubr.bf16.gmra.mxu0 %v17648_v6  ;;  %v17662_v61 = vld [vmem:[#allocation4 + $0x188] ss:$36 sps:$4 sm:$0xff]  }
 0x57d   : > { %v16402_v43 = vpop.f32.mrf.mxu1  ;;  %12639 = vmatmul.mubr.bf16.gmra.mxu1 %v17651_v52  ;;  %16822 = vmatprep.mubr.bf16.mxu0 %v17654_v32 }
 0x57e   : > { %v20933_v2 = vadd.f32 %v16401_v15, %v16289_v16  ;;  %v16297_v22 = vpop.f32.mrf.mxu0  ;;  %12646 = vmatprep.mubr.bf16.mxu1 %v17657_v31  ;;  %v17663_v31 = vld [vmem:[#allocation4 + $0x1d0] ss:$36 sps:$4 sm:$0xff]  }
 0x57f   : > { %v16298_v5 = vadd.f32 %v16297_v22, %v16296_v59  ;;  %v16403_v56 = vpop.f32.mrf.mxu1 }
 0x580   : > { %v16404_v23 = vadd.f32 %v16403_v56, %v16402_v43  ;;  %v16299_v29 = vpop.f32.mrf.mxu0 }
 0x581   : > { %v16405_v60 = vpop.f32.mrf.mxu1 }
 0x582   : > { %v20935_v55 = vadd.f32 %v16404_v23, %v16292_v40  ;;  %v16300_v3 = vpop.f32.mrf.mxu0 }
 0x583   : > { %v16301_v11 = vadd.f32 %v16300_v3, %v16299_v29  ;;  %v16406_v46 = vpop.f32.mrf.mxu1 }
 0x584   : > { %v16407_v30 = vadd.f32 %v16406_v46, %v16405_v60  ;;  %v16302_v51 = vpop.f32.mrf.mxu0  ;;  %16823 = vmatmul.mubr.bf16.vlgmr.msra.gmra.mxu0 %v17658_v42  ;;  %v17664_v60 = vld [vmem:[#allocation4 + $0x218] ss:$36 sps:$4 sm:$0xff]   ;;  %v17665_v42 = vld [vmem:[#allocation4 + $0x260] ss:$36 sps:$4 sm:$0xff]  }
 0x585   : > { %v16408_v4 = vpop.f32.mrf.mxu1  ;;  %12647 = vmatmul.mubr.bf16.gmra.mxu1 %v17655_v53  ;;  %16826 = vmatprep.mubr.bf16.mxu0 %v17659_v36 }
 0x586   : > { %v20937_v49 = vadd.f32 %v16407_v30, %v16295_v37  ;;  %v16303_v19 = vpop.f32.mrf.mxu0 }
 0x587   : > { %v16304_v48 = vadd.f32 %v16303_v19, %v16302_v51  ;;  %v16409_v21 = vpop.f32.mrf.mxu1 }
 0x588   : > { %v16410_v44 = vadd.f32 %v16409_v21, %v16408_v4  ;;  %v16305_v50 = vpop.f32.mrf.mxu0 }
 0x589   : > { %v16411_v20 = vpop.f32.mrf.mxu1 }
 0x58a   : > { %v20939_v25 = vadd.f32 %v16410_v44, %v16298_v5  ;;  %v16306_v47 = vpop.f32.mrf.mxu0 }
 0x58b   : > { %v16307_v34 = vadd.f32 %v16306_v47, %v16305_v50  ;;  %v16412_v33 = vpop.f32.mrf.mxu1  ;;  %v17666_v47 = vld [vmem:[#allocation4 + $0x2a8] ss:$36 sps:$4 sm:$0xff]  }
 0x58c   : > { %v16413_v16 = vadd.f32 %v16412_v33, %v16411_v20  ;;  %v16308_v24 = vpop.f32.mrf.mxu0  ;;  %16827 = vmatmul.mubr.bf16.gmra.mxu0 %v17660_v17  ;;  %v17667_v33 = vld [vmem:[#allocation4 + $0x2f0] ss:$36 sps:$4 sm:$0xff]  }
 0x58d   : > { %v16414_v41 = vpop.f32.mrf.mxu1  ;;  %16830 = vmatprep.mubr.bf16.mxu0 %v17661_v54 }
 0x58e   : > { %v20941_v45 = vadd.f32 %v16413_v16, %v16301_v11  ;;  %v16309_v27 = vpop.f32.mrf.mxu0 }
 0x58f   : > { %v16310_v9 = vadd.f32 %v16309_v27, %v16308_v24  ;;  %v16415_v57 = vpop.f32.mrf.mxu1 }
 0x590   : > { %v16416_v39 = vadd.f32 %v16415_v57, %v16414_v41  ;;  %v16311_v40 = vpop.f32.mrf.mxu0 }
 0x591   : > { %v16417_v14 = vpop.f32.mrf.mxu1 }
 0x592   : > { %v20943_v0 = vadd.f32 %v16416_v39, %v16304_v48  ;;  %v16312_v1 = vpop.f32.mrf.mxu0 }
 0x593   : > { %v16313_v6 = vadd.f32 %v16312_v1, %v16311_v40  ;;  %v16418_v62 = vpop.f32.mrf.mxu1 }
 0x594   : > { %v16419_v52 = vadd.f32 %v16418_v62, %v16417_v14  ;;  %v16314_v37 = vpop.f32.mrf.mxu0  ;;  %16831 = vmatmul.mubr.bf16.gmra.mxu0 %v17662_v61 }
 0x595   : > { %v16420_v26 = vpop.f32.mrf.mxu1  ;;  %16834 = vmatprep.mubr.bf16.mxu0 %v17663_v31 }
 0x596   : > { %v20945_v32 = vadd.f32 %v16419_v52, %v16307_v34  ;;  %v16315_v15 = vpop.f32.mrf.mxu0  ;;  %v17669_v52 = vld [vmem:[#allocation4 + $0x380] ss:$36 sps:$4 sm:$0xff]  }
 0x597   : > { %v16316_v59 = vadd.f32 %v16315_v15, %v16314_v37  ;;  %v16421_v43 = vpop.f32.mrf.mxu1 }
 0x598   : > { %v16422_v22 = vadd.f32 %v16421_v43, %v16420_v26  ;;  %v16317_v5 = vpop.f32.mrf.mxu0 }
 0x599   : > { %v16423_v56 = vpop.f32.mrf.mxu1 }
 0x59a   : > { %v20947_v23 = vadd.f32 %v16422_v22, %v16310_v9  ;;  %v16318_v29 = vpop.f32.mrf.mxu0 }
 0x59b   : > { %v16319_v53 = vadd.f32 %v16318_v29, %v16317_v5  ;;  %v16424_v3 = vpop.f32.mrf.mxu1 }
 0x59c   : > { %v16425_v11 = vadd.f32 %v16424_v3, %v16423_v56  ;;  %v16320_v46 = vpop.f32.mrf.mxu0  ;;  %16835 = vmatmul.mubr.bf16.gmra.mxu0 %v17664_v60 }
 0x59d   : > { %v16426_v36 = vpop.f32.mrf.mxu1  ;;  %16838 = vmatprep.mubr.bf16.mxu0 %v17665_v42  ;;  %v17670_v42 = vld [vmem:[#allocation4 + $0x3c8] ss:$36 sps:$4 sm:$0xff]  }
 0x59e   : > { %v20949_v30 = vadd.f32 %v16425_v11, %v16313_v6  ;;  %v16321_v51 = vpop.f32.mrf.mxu0  ;;  %v17668_v6 = vld [vmem:[#allocation4 + $0x338] ss:$36 sps:$4 sm:$0xff]  }
 0x59f   : > { %v16322_v4 = vadd.f32 %v16321_v51, %v16320_v46  ;;  %v16427_v19 = vpop.f32.mrf.mxu1 }
 0x5a0   : > { %v16428_v48 = vadd.f32 %v16427_v19, %v16426_v36  ;;  %v16323_v21 = vpop.f32.mrf.mxu0  ;;  %v17671_v36 = vld [vmem:[#allocation4 + $0x410] ss:$36 sps:$4 sm:$0xff]  }
 0x5a1   : > { %v16429_v44 = vpop.f32.mrf.mxu1 }
 0x5a2   : > { %v20951_v50 = vadd.f32 %v16428_v48, %v16316_v59  ;;  %v16324_v20 = vpop.f32.mrf.mxu0 }
 0x5a3   : > { %v16325_v17 = vadd.f32 %v16324_v20, %v16323_v21  ;;  %v16430_v34 = vpop.f32.mrf.mxu1 }
 0x5a4   : > { %v16431_v54 = vadd.f32 %v16430_v34, %v16429_v44  ;;  %v16326_v16 = vpop.f32.mrf.mxu0  ;;  %16839 = vmatmul.mubr.bf16.gmra.mxu0 %v17666_v47  ;;  %v17672_v34 = vld [vmem:[#allocation4 + $0x458] ss:$36 sps:$4 sm:$0xff]  }
 0x5a5   : > { %v16432_v24 = vpop.f32.mrf.mxu1  ;;  %16842 = vmatprep.mubr.bf16.mxu0 %v17667_v33 }
 0x5a6   : > { %v20953_v41 = vadd.f32 %v16431_v54, %v16319_v53  ;;  %v16327_v27 = vpop.f32.mrf.mxu0 }
 0x5a7   : > { %v16328_v9 = vadd.f32 %v16327_v27, %v16326_v16  ;;  %v16433_v57 = vpop.f32.mrf.mxu1 }
 0x5a8   : > { %v16434_v39 = vadd.f32 %v16433_v57, %v16432_v24  ;;  %v16329_v40 = vpop.f32.mrf.mxu0 }
 0x5a9   : > { %v16435_v14 = vpop.f32.mrf.mxu1 }
 0x5aa   : > { %v20955_v1 = vadd.f32 %v16434_v39, %v16322_v4  ;;  %v16330_v61 = vpop.f32.mrf.mxu0 }
 0x5ab   : > { %v16331_v62 = vadd.f32 %v16330_v61, %v16329_v40  ;;  %v16436_v31 = vpop.f32.mrf.mxu1 }
 0x5ac   : > { %v16437_v37 = vadd.f32 %v16436_v31, %v16435_v14  ;;  %v16332_v26 = vpop.f32.mrf.mxu0  ;;  %16843 = vmatmul.mubr.bf16.gmra.mxu0 %v17668_v6 }
 0x5ad   : > { %v16438_v15 = vpop.f32.mrf.mxu1  ;;  %16846 = vmatprep.mubr.bf16.mxu0 %v17669_v52 }
 0x5ae   : > { %v20957_v59 = vadd.f32 %v16437_v37, %v16325_v17  ;;  %v16333_v43 = vpop.f32.mrf.mxu0 }
 0x5af   : > { %v16334_v22 = vadd.f32 %v16333_v43, %v16332_v26  ;;  %v16439_v5 = vpop.f32.mrf.mxu1 }
 0x5b0   : > { %v16440_v56 = vadd.f32 %v16439_v5, %v16438_v15  ;;  %v16335_v29 = vpop.f32.mrf.mxu0 }
 0x5b1   : > { %v16441_v60 = vpop.f32.mrf.mxu1 }
 0x5b2   : > { %v20959_v53 = vadd.f32 %v16440_v56, %v16328_v9  ;;  %v16336_v3 = vpop.f32.mrf.mxu0 }
 0x5b3   : > { %v16337_v11 = vadd.f32 %v16336_v3, %v16335_v29  ;;  %v16442_v46 = vpop.f32.mrf.mxu1 }
 0x5b4   : > { %v16443_v51 = vadd.f32 %v16442_v46, %v16441_v60  ;;  %v16338_v4 = vpop.f32.mrf.mxu0  ;;  %16847 = vmatmul.mubr.bf16.gmra.mxu0 %v17670_v42 }
 0x5b5   : > { %v16444_v19 = vpop.f32.mrf.mxu1  ;;  %16850 = vmatprep.mubr.bf16.mxu0 %v17671_v36 }
 0x5b6   : > { %v20961_v48 = vadd.f32 %v16443_v51, %v16331_v62  ;;  %v16339_v21 = vpop.f32.mrf.mxu0 }
 0x5b7   : > { %v16340_v44 = vadd.f32 %v16339_v21, %v16338_v4  ;;  %v16445_v20 = vpop.f32.mrf.mxu1 }
 0x5b8   : > { %v16446_v47 = vadd.f32 %v16445_v20, %v16444_v19  ;;  %v16341_v17 = vpop.f32.mrf.mxu0 }
 0x5b9   : > { %v16447_v33 = vpop.f32.mrf.mxu1 }
 0x5ba   : > { %v20963_v54 = vadd.f32 %v16446_v47, %v16334_v22  ;;  %v16342_v16 = vpop.f32.mrf.mxu0 }
 0x5bb   : > { %v16343_v24 = vadd.f32 %v16342_v16, %v16341_v17  ;;  %v16448_v27 = vpop.f32.mrf.mxu1 }
 0x5bc   : > { %v16449_v9 = vadd.f32 %v16448_v27, %v16447_v33  ;;  %v16344_v57 = vpop.f32.mrf.mxu0  ;;  %16851 = vmatmul.mubr.bf16.gmra.mxu0 %v17672_v34 }
 0x5bd   : > { %v16450_v39 = vpop.f32.mrf.mxu1 }
 0x5be   : > { %v20965_v40 = vadd.f32 %v16449_v9, %v16337_v11  ;;  %v16345_v14 = vpop.f32.mrf.mxu0 }
 0x5bf   : > { %v16346_v61 = vadd.f32 %v16345_v14, %v16344_v57  ;;  %v16451_v6 = vpop.f32.mrf.mxu1 }
 0x5c0   : > { %v16452_v62 = vadd.f32 %v16451_v6, %v16450_v39  ;;  %v16347_v31 = vpop.f32.mrf.mxu0 }
 0x5c1   : > { %v16453_v52 = vpop.f32.mrf.mxu1 }
 0x5c2   : > { %v20967_v37 = vadd.f32 %v16452_v62, %v16340_v44  ;;  %v16348_v26 = vpop.f32.mrf.mxu0 }
 0x5c3   : > { %v16349_v15 = vadd.f32 %v16348_v26, %v16347_v31  ;;  %v16454_v43 = vpop.f32.mrf.mxu1 }
 0x5c4   : > { %v16455_v22 = vadd.f32 %v16454_v43, %v16453_v52  ;;  %v16478_v5 = vpop.f32.mrf.mxu0 }
 0x5c5   : > { %v16456_v56 = vpop.f32.mrf.mxu1 }
 0x5c6   : > { %v20969_v29 = vadd.f32 %v16455_v22, %v16343_v24  ;;  %v16479_v60 = vpop.f32.mrf.mxu0 }
 0x5c7   : > { %v16457_v3 = vpop.f32.mrf.mxu1  ;;  %v16480_v42 = vadd.f32 %v16479_v60, %v16478_v5 }
 0x5c8   : > { %v16458_v11 = vadd.f32 %v16457_v3, %v16456_v56  ;;  %v16481_v46 = vpop.f32.mrf.mxu0 }
 0x5c9   : > { %v12368_v36 = vadd.f32 %v16480_v42, %v20911_v18  ;;  %v16459_v51 = vpop.f32.mrf.mxu1 }
 0x5ca   : > { %v20972_v4 = vadd.f32 %v16458_v11, %v16346_v61  ;;  %v16482_v19 = vpop.f32.mrf.mxu0 }
 0x5cb   : > { %v16460_v21 = vpop.f32.mrf.mxu1  ;;  %v16483_v44 = vadd.f32 %v16482_v19, %v16481_v46 }
 0x5cc   : > { %21441 = vst [vmem:[#allocation16_spill] sm:$0xff] %v20972_v4  ;;  %v16461_v20 = vadd.f32 %v16460_v21, %v16459_v51  ;;  %v16484_v47 = vpop.f32.mrf.mxu0 }
 0x5cd   : > { %v12371_v17 = vadd.f32 %v16483_v44, %v20913_v38  ;;  %v16590_v34 = vpop.f32.mrf.mxu1 }
 0x5ce   : > { %v20975_v33 = vadd.f32 %v16461_v20, %v16349_v15  ;;  %v16485_v16 = vpop.f32.mrf.mxu0 }
 0x5cf   : > { %v16486_v24 = vadd.f32 %v16485_v16, %v16484_v47  ;;  %v16591_v27 = vpop.f32.mrf.mxu1 }
 0x5d0   : > { %21442 = vst [vmem:[#allocation18_spill] sm:$0xff] %v20975_v33  ;;  %v16592_v9 = vadd.f32 %v16591_v27, %v16590_v34  ;;  %v16487_v57 = vpop.f32.mrf.mxu0 }
 0x5d1   : > { %v20978_v18 = vadd.f32 %v16486_v24, %v20915_v28  ;;  %v16593_v39 = vpop.f32.mrf.mxu1 }
 0x5d2   : > { %v16488_v14 = vpop.f32.mrf.mxu0  ;;  %v20980_v61 = vadd.f32 %v16592_v9, %v12368_v36 }
 0x5d3   : > { %v16489_v6 = vadd.f32 %v16488_v14, %v16487_v57  ;;  %v16594_v62 = vpop.f32.mrf.mxu1 }
 0x5d4   : > { %v16595_v31 = vadd.f32 %v16594_v62, %v16593_v39  ;;  %v16490_v52 = vpop.f32.mrf.mxu0 }
 0x5d5   : > { %v20983_v38 = vadd.f32 %v16489_v6, %v20917_v7  ;;  %v20985_v26 = vpop.f32.mrf.mxu1 }
 0x5d6   : > { %v16491_v15 = vpop.f32.mrf.mxu0  ;;  %v20987_v43 = vadd.f32 %v16595_v31, %v12371_v17 }
 0x5d7   : > { %v16492_v22 = vadd.f32 %v16491_v15, %v16490_v52  ;;  %v20989_v5 = vpop.f32.mrf.mxu1 }
 0x5d8   : > { %v16493_v28 = vpop.f32.mrf.mxu0 }
 0x5d9   : > { %v20992_v56 = vadd.f32 %v16492_v22, %v20919_v35  ;;  %v20994_v60 = vpop.f32.mrf.mxu1 }
 0x5da   : > { %v16494_v3 = vpop.f32.mrf.mxu0 }
 0x5db   : > { %v16495_v42 = vadd.f32 %v16494_v3, %v16493_v28  ;;  %v20996_v11 = vpop.f32.mrf.mxu1 }
 0x5dc   : > { %v16496_v7 = vpop.f32.mrf.mxu0 }
 0x5dd   : > { %v20999_v46 = vadd.f32 %v16495_v42, %v20921_v13  ;;  %v21001_v36 = vpop.f32.mrf.mxu1 }
 0x5de   : > { %v16497_v51 = vpop.f32.mrf.mxu0 }
 0x5df   : > { %v16498_v19 = vadd.f32 %v16497_v51, %v16496_v7  ;;  %v21003_v21 = vpop.f32.mrf.mxu1 }
 0x5e0   : > { %v16499_v44 = vpop.f32.mrf.mxu0 }
 0x5e1   : > { %v21006_v35 = vadd.f32 %v16498_v19, %v20923_v63  ;;  %v21008_v20 = vpop.f32.mrf.mxu1 }
 0x5e2   : > { %v16500_v47 = vpop.f32.mrf.mxu0 }
 0x5e3   : > { %v16501_v17 = vadd.f32 %v16500_v47, %v16499_v44  ;;  %v21010_v34 = vpop.f32.mrf.mxu1 }
 0x5e4   : > { %v16502_v16 = vpop.f32.mrf.mxu0 }
 0x5e5   : > { %v21013_v13 = vadd.f32 %v16501_v17, %v20925_v10  ;;  %v21015_v24 = vpop.f32.mrf.mxu1 }
 0x5e6   : > { %v16503_v27 = vpop.f32.mrf.mxu0 }
 0x5e7   : > { %v16504_v9 = vadd.f32 %v16503_v27, %v16502_v16  ;;  %v21017_v57 = vpop.f32.mrf.mxu1 }
 0x5e8   : > { %v16505_v39 = vpop.f32.mrf.mxu0 }
 0x5e9   : > { %v21020_v63 = vadd.f32 %v16504_v9, %v20927_v58  ;;  %v21022_v14 = vpop.f32.mrf.mxu1 }
 0x5ea   : > { %v16506_v6 = vpop.f32.mrf.mxu0 }
 0x5eb   : > { %v16507_v62 = vadd.f32 %v16506_v6, %v16505_v39  ;;  %v21024_v31 = vpop.f32.mrf.mxu1 }
 0x5ec   : > { %v16508_v52 = vpop.f32.mrf.mxu0 }
 0x5ed   : > { %v21027_v10 = vadd.f32 %v16507_v62, %v20929_v8  ;;  %v21029_v15 = vpop.f32.mrf.mxu1 }
 0x5ee   : > { %v16509_v22 = vpop.f32.mrf.mxu0 }
 0x5ef   : > { %v16510_v28 = vadd.f32 %v16509_v22, %v16508_v52  ;;  %v21031_v3 = vpop.f32.mrf.mxu1 }
 0x5f0   : > { %v16511_v42 = vpop.f32.mrf.mxu0 }
 0x5f1   : > { %v21034_v58 = vadd.f32 %v16510_v28, %v20931_v12  ;;  %v21036_v7 = vpop.f32.mrf.mxu1 }
 0x5f2   : > { %v16512_v51 = vpop.f32.mrf.mxu0 }
 0x5f3   : > { %v16513_v19 = vadd.f32 %v16512_v51, %v16511_v42  ;;  %v21038_v44 = vpop.f32.mrf.mxu1 }
 0x5f4   : > { %v16514_v47 = vpop.f32.mrf.mxu0 }
 0x5f5   : > { %v21041_v8 = vadd.f32 %v16513_v19, %v20933_v2  ;;  %v21043_v17 = vpop.f32.mrf.mxu1 }
 0x5f6   : > { %v16515_v16 = vpop.f32.mrf.mxu0 }
 0x5f7   : > { %v16516_v27 = vadd.f32 %v16515_v16, %v16514_v47  ;;  %v21045_v9 = vpop.f32.mrf.mxu1 }
 0x5f8   : > { %v16517_v39 = vpop.f32.mrf.mxu0 }
 0x5f9   : > { %v21048_v12 = vadd.f32 %v16516_v27, %v20935_v55  ;;  %v21050_v6 = vpop.f32.mrf.mxu1 }
 0x5fa   : > { %v16518_v62 = vpop.f32.mrf.mxu0 }
 0x5fb   : > { %21443 = vst [vmem:[#allocation8_spill] sm:$0xff] %v21048_v12  ;;  %v16519_v52 = vadd.f32 %v16518_v62, %v16517_v39  ;;  %v21052_v22 = vpop.f32.mrf.mxu1 }
 0x5fc   : > { %v16520_v28 = vpop.f32.mrf.mxu0 }
 0x5fd   : > { %v21055_v2 = vadd.f32 %v16519_v52, %v20937_v49  ;;  %v21057_v42 = vpop.f32.mrf.mxu1 }
 0x5fe   : > { %v16521_v51 = vpop.f32.mrf.mxu0 }
 0x5ff   : > { %21444 = vst [vmem:[#allocation13_spill] sm:$0xff] %v21055_v2  ;;  %v16522_v19 = vadd.f32 %v16521_v51, %v16520_v28  ;;  %v21059_v47 = vpop.f32.mrf.mxu1 }
 0x600   : > { %v16523_v16 = vpop.f32.mrf.mxu0 }
 0x601   : > { %v21062_v55 = vadd.f32 %v16522_v19, %v20939_v25  ;;  %v21064_v27 = vpop.f32.mrf.mxu1 }
 0x602   : > { %21446 = vst [vmem:[#allocation14_spill] sm:$0xff] %v21064_v27  ;;  %v16524_v33 = vpop.f32.mrf.mxu0 }
 0x603   : > { %21445 = vst [vmem:[#allocation10_spill] sm:$0xff] %v21062_v55  ;;  %v16525_v39 = vadd.f32 %v16524_v33, %v16523_v16  ;;  %v21066_v62 = vpop.f32.mrf.mxu1 }
 0x604   : > { %21447 = vst [vmem:[#allocation12_spill] sm:$0xff] %v21066_v62  ;;  %v16526_v4 = vpop.f32.mrf.mxu0 }
 0x605   : > { %v21069_v49 = vadd.f32 %v16525_v39, %v20941_v45  ;;  %v21071_v52 = vpop.f32.mrf.mxu1 }
 0x606   : > { %v16527_v2 = vpop.f32.mrf.mxu0 }
 0x607   : > { %21448 = vst [vmem:[#allocation11_spill] sm:$0xff] %v21069_v49  ;;  %v16528_v28 = vadd.f32 %v16527_v2, %v16526_v4  ;;  %v21073_v51 = vpop.f32.mrf.mxu1 }
 0x608   : > { %v16529_v12 = vpop.f32.mrf.mxu0 }
 0x609   : > { %v21076_v25 = vadd.f32 %v16528_v28, %v20943_v0  ;;  %v21078_v19 = vpop.f32.mrf.mxu1 }
 0x60a   : > { %v16530_v27 = vpop.f32.mrf.mxu0 }
 0x60b   : > { %21449 = vst [vmem:[#allocation5_spill] sm:$0xff] %v21076_v25  ;;  %v16531_v33 = vadd.f32 %v16530_v27, %v16529_v12  ;;  %v21080_v16 = vpop.f32.mrf.mxu1 }
 0x60c   : > { %21450 = vst [vmem:[#allocation15_spill] sm:$0xff] %v21080_v16  ;;  %v16532_v62 = vpop.f32.mrf.mxu0 }
 0x60d   : > { %v21083_v45 = vadd.f32 %v16531_v33, %v20945_v32  ;;  %v21085_v39 = vpop.f32.mrf.mxu1 }
 0x60e   : > { %v16533_v49 = vpop.f32.mrf.mxu0 }
 0x60f   : > { %21451 = vst [vmem:[#allocation21_spill] sm:$0xff] %v21083_v45  ;;  %v16534_v4 = vadd.f32 %v16533_v49, %v16532_v62  ;;  %v21087_v2 = vpop.f32.mrf.mxu1 }
 0x610   : > { %21452 = vst [vmem:[#allocation22_spill] sm:$0xff] %v21087_v2  ;;  %v16535_v55 = vpop.f32.mrf.mxu0 }
 0x611   : > { %v21090_v0 = vadd.f32 %v16534_v4, %v20947_v23  ;;  %v21092_v28 = vpop.f32.mrf.mxu1 }
 0x612   : > { %21454 = vst [vmem:[#allocation25_spill] sm:$0xff] %v21092_v28  ;;  %v16536_v25 = vpop.f32.mrf.mxu0 }
 0x613   : > { %21453 = vst [vmem:[#allocation24_spill] sm:$0xff] %v21090_v0  ;;  %v16537_v12 = vadd.f32 %v16536_v25, %v16535_v55  ;;  %v21094_v27 = vpop.f32.mrf.mxu1 }
 0x614   : > { %21455 = vst [vmem:[#allocation27_spill] sm:$0xff] %v21094_v27  ;;  %v16538_v16 = vpop.f32.mrf.mxu0 }
 0x615   : > { %v21097_v32 = vadd.f32 %v16537_v12, %v20949_v30  ;;  %v21099_v33 = vpop.f32.mrf.mxu1 }
 0x616   : > { %v16539_v45 = vpop.f32.mrf.mxu0 }
 0x617   : > { %21456 = vst [vmem:[#allocation19_spill] sm:$0xff] %v21097_v32  ;;  %v16540_v62 = vadd.f32 %v16539_v45, %v16538_v16  ;;  %v21101_v49 = vpop.f32.mrf.mxu1 }
 0x618   : > { %v16541_v2 = vpop.f32.mrf.mxu0 }
 0x619   : > { %v21104_v23 = vadd.f32 %v16540_v62, %v20951_v50  ;;  %v21106_v4 = vpop.f32.mrf.mxu1 }
 0x61a   : > { %21458 = vst [vmem:[#allocation6_spill] sm:$0xff] %v21106_v4  ;;  %v16542_v28 = vpop.f32.mrf.mxu0 }
 0x61b   : > { %21457 = vst [vmem:[#allocation20_spill] sm:$0xff] %v21104_v23  ;;  %v16543_v55 = vadd.f32 %v16542_v28, %v16541_v2  ;;  %v21108_v25 = vpop.f32.mrf.mxu1 }
 0x61c   : > { %v16544_v27 = vpop.f32.mrf.mxu0 }
 0x61d   : > { %v21111_v30 = vadd.f32 %v16543_v55, %v20953_v41  ;;  %v21113_v12 = vpop.f32.mrf.mxu1 }
 0x61e   : > { %21460 = vst [vmem:[#allocation23_spill] sm:$0xff] %v21113_v12  ;;  %v16545_v32 = vpop.f32.mrf.mxu0 }
 0x61f   : > { %21459 = vst [vmem:[#allocation17_spill] sm:$0xff] %v21111_v30  ;;  %v16546_v16 = vadd.f32 %v16545_v32, %v16544_v27  ;;  %v21115_v45 = vpop.f32.mrf.mxu1 }
 0x620   : > { %21461 = vst [vmem:[#allocation26_spill] sm:$0xff] %v21115_v45  ;;  %v16547_v0 = vpop.f32.mrf.mxu0 }
 0x621   : > { %v21118_v50 = vadd.f32 %v16546_v16, %v20955_v1  ;;  %v21120_v4 = vpop.f32.mrf.mxu1 }
 0x622   : > { %v16548_v62 = vpop.f32.mrf.mxu0  ;;  %21462 = vst [vmem:[#allocation28_spill] sm:$0xff] %v21120_v4 }
 0x623   : > { %v16549_v23 = vadd.f32 %v16548_v62, %v16547_v0  ;;  %v21125_v30 = vpop.f32.mrf.mxu1 }
 0x624   : > { %v16550_v2 = vpop.f32.mrf.mxu0 }
 0x625   : > { %v21123_v28 = vadd.f32 %v16549_v23, %v20957_v59  ;;  %v21130_v1 = vpop.f32.mrf.mxu1 }
 0x626   : > { %v16551_v41 = vpop.f32.mrf.mxu0 }
 0x627   : > { %21463 = vst [vmem:[#allocation29_spill] sm:$0xff] %v21123_v28  ;;  %v16552_v55 = vadd.f32 %v16551_v41, %v16550_v2  ;;  %v21135_v59 = vpop.f32.mrf.mxu1 }
 0x628   : > { %v16553_v12 = vpop.f32.mrf.mxu0 }
 0x629   : > { %v21128_v27 = vadd.f32 %v16552_v55, %v20959_v53  ;;  %v21140_v53 = vpop.f32.mrf.mxu1 }
 0x62a   : > { %v16554_v32 = vpop.f32.mrf.mxu0 }
 0x62b   : > { %21464 = vst [vmem:[#allocation30_spill] sm:$0xff] %v21128_v27  ;;  %v16555_v45 = vadd.f32 %v16554_v32, %v16553_v12 }
 0x62c   : > { %v16556_v16 = vpop.f32.mrf.mxu0 }
 0x62d   : > { %v21133_v0 = vadd.f32 %v16555_v45, %v20961_v48  ;;  %v21145_v48 = vpop.f32.mrf.mxu1 }
 0x62e   : > { %v16557_v62 = vpop.f32.mrf.mxu0 }
 0x62f   : > { %v16558_v4 = vadd.f32 %v16557_v62, %v16556_v16 }
 0x630   : > { %v16559_v23 = vpop.f32.mrf.mxu0 }
 0x631   : > { %v21138_v2 = vadd.f32 %v16558_v4, %v20963_v54  ;;  %v21150_v4 = vpop.f32.mrf.mxu1 }
 0x632   : > { %v16560_v41 = vpop.f32.mrf.mxu0 }
 0x633   : > { %v16561_v28 = vadd.f32 %v16560_v41, %v16559_v23 }
 0x634   : > { %v16562_v55 = vpop.f32.mrf.mxu0 }
 0x635   : > { %v21143_v12 = vadd.f32 %v16561_v28, %v20965_v40  ;;  %v16598_v28 = vadd.f32 %v20989_v5, %v20985_v26 }
 0x636   : > { %v16563_v32 = vpop.f32.mrf.mxu0 }
 0x637   : > { %v16564_v27 = vadd.f32 %v16563_v32, %v16562_v55  ;;  %v21161_v55 = vpop.f32.mrf.mxu1 }
 0x638   : > { %v16565_v45 = vpop.f32.mrf.mxu0 }
 0x639   : > { %v21148_v16 = vadd.f32 %v16564_v27, %v20967_v37  ;;  %v16601_v27 = vadd.f32 %v20996_v11, %v20994_v60 }
 0x63a   : > { %v16566_v62 = vpop.f32.mrf.mxu0 }
 0x63b   : > { %v16567_v54 = vadd.f32 %v16566_v62, %v16565_v45  ;;  %v12537_v45 = vadd.f32 %v16598_v28, %v20978_v18  ;;  %v21170_v62 = vpop.f32.mrf.mxu1  ;;  %v12540_v60 = vadd.f32 %v16601_v27, %v20983_v38 }
 0x63c   : > { %v21152_v23 = vpop.f32.mrf.mxu0 }
 0x63d   : > { %v21155_v41 = vadd.f32 %v16567_v54, %v20969_v29  ;;  %v16610_v54 = vadd.f32 %v21017_v57, %v21015_v24  ;;  %v21185_v11 = vpop.f32.mrf.mxu1  ;;  %v16613_v24 = vadd.f32 %v21024_v31, %v21022_v14  ;;  %v16622_v31 = vadd.f32 %v21045_v9, %v21043_v17 }
 0x63e   : > { %v21157_v40 = vpop.f32.mrf.mxu0  ;;  %v16625_v17 = vadd.f32 %v21052_v22, %v21050_v6  ;;  %v16634_v6 = vadd.f32 %v21073_v51, %v21071_v52  ;;  %v21466_v52 = vld [vmem:[#allocation15_spill] sm:$0xff] }
 0x63f   : > { %21465 = vst [vmem:[#allocation31_spill] sm:$0xff] %v21155_v41  ;;  %v16604_v41 = vadd.f32 %v21003_v21, %v21001_v36  ;;  %v12553_v38 = vadd.f32 %v16610_v54, %v21006_v35  ;;  %v21197_v57 = vpop.f32.mrf.mxu1  ;;  %v16607_v36 = vadd.f32 %v21010_v34, %v21008_v20  ;;  %v12556_v35 = vadd.f32 %v16613_v24, %v21013_v13 }
 0x640   : > { %v21163_v32 = vpop.f32.mrf.mxu0  ;;  %v16616_v20 = vadd.f32 %v21031_v3, %v21029_v15  ;;  %v12569_v13 = vadd.f32 %v16622_v31, %v21034_v58  ;;  %v16619_v15 = vadd.f32 %v21038_v44, %v21036_v7  ;;  %v12572_v58 = vadd.f32 %v16625_v17, %v21041_v8  ;;  %v21467_v8 = vld [vmem:[#allocation10_spill] sm:$0xff] }
 0x641   : > { %v12548_v34 = vadd.f32 %v16607_v36, %v20999_v46  ;;  %v16628_v7 = vadd.f32 %v21059_v47, %v21057_v42  ;;  %v16637_v51 = vadd.f32 %v21466_v52, %v21078_v19  ;;  %v21468_v42 = vld [vmem:[#allocation14_spill] sm:$0xff]  ;;  %v21469_v47 = vld [vmem:[#allocation12_spill] sm:$0xff]  ;;  %v16646_v19 = vadd.f32 %v21101_v49, %v21099_v33  ;;  %v21479_v52 = vld [vmem:[#allocation19_spill] sm:$0xff] }
 0x642   : > { %v21165_v37 = vpop.f32.mrf.mxu0  ;;  %v12561_v3 = vadd.f32 %v16616_v20, %v21020_v63  ;;  %v12564_v44 = vadd.f32 %v16619_v15, %v21027_v10  ;;  %v21474_v33 = vld [vmem:[#allocation6_spill] sm:$0xff] }
 0x643   : > { %v16649_v49 = vadd.f32 %v21108_v25, %v21474_v33  ;;  %v16658_v25 = vadd.f32 %v21135_v59, %v21130_v1  ;;  %v16661_v1 = vadd.f32 %v21145_v48, %v21140_v53  ;;  %v21486_v33 = vld [vmem:[#allocation17_spill] sm:$0xff] }
 0x644   : > { %v16824_v29 = vpop.f32.mrf.mxu0 }
 0x645   : > { %v12698_v26 = vadd.f32 %v16824_v29, %v12537_v45 }
 0x646   : > { %v12689_v5 = vpop.f32.mrf.mxu0 }
 0x647   : > { %12818 = vst.msk [vmem:[%s21177_s8 + $0x10] sm:$0xff] %vm253_vm0, %v12698_v26  ;;  %v12690_v18 = vadd.f32 %v12689_v5, %v20980_v61  ;;  %v12545_v26 = vadd.f32 %v16604_v41, %v20992_v56  ;;  %v21209_v5 = vpop.f32.mrf.mxu1 }
 0x648   : > { %v16825_v28 = vpop.f32.mrf.mxu0  ;;  %v16670_v53 = vadd.f32 %v21209_v5, %v21197_v57 }
 0x649   : > { %12816 = vst.msk [vmem:[%s21177_s8] sm:$0xff] %vm253_vm0, %v12690_v18  ;;  %v12701_v45 = vadd.f32 %v16825_v28, %v12540_v60  ;;  %v21221_v18 = vpop.f32.mrf.mxu1 }
 0x64a   : > { %v12692_v29 = vpop.f32.mrf.mxu0 }
 0x64b   : > { %12819 = vst.msk [vmem:[%s21177_s8 + $0x18] sm:$0xff] %vm253_vm0, %v12701_v45  ;;  %v12693_v61 = vadd.f32 %v12692_v29, %v20987_v43  ;;  %v21233_v45 = vpop.f32.mrf.mxu1 }
 0x64c   : > { %v16828_v27 = vpop.f32.mrf.mxu0  ;;  %v16673_v57 = vadd.f32 %v21233_v45, %v21221_v18 }
 0x64d   : > { %12817 = vst.msk [vmem:[%s21177_s8 + $0x8] sm:$0xff] %vm253_vm0, %v12693_v61  ;;  %v12714_v21 = vadd.f32 %v16828_v27, %v12553_v38  ;;  %v12585_v38 = vadd.f32 %v16634_v6, %v21467_v8  ;;  %v21245_v27 = vpop.f32.mrf.mxu1 }
 0x64e   : > { %v12705_v14 = vpop.f32.mrf.mxu0 }
 0x64f   : > { %12822 = vst.msk [vmem:[%s21177_s8 + $0x30] sm:$0xff] %vm253_vm0, %v12714_v21  ;;  %v12706_v43 = vadd.f32 %v12705_v14, %v12545_v26  ;;  %v16631_v21 = vadd.f32 %v21469_v47, %v21468_v42  ;;  %v21470_v26 = vld [vmem:[#allocation8_spill] sm:$0xff]  ;;  %v21257_v20 = vpop.f32.mrf.mxu1 }
 0x650   : > { %v16829_v54 = vpop.f32.mrf.mxu0  ;;  %v12577_v14 = vadd.f32 %v16628_v7, %v21470_v26  ;;  %v21478_v7 = vld [vmem:[#allocation5_spill] sm:$0xff] }
 0x651   : > { %12820 = vst.msk [vmem:[%s21177_s8 + $0x20] sm:$0xff] %vm253_vm0, %v12706_v43  ;;  %v12717_v56 = vadd.f32 %v16829_v54, %v12556_v35  ;;  %v21471_v35 = vld [vmem:[#allocation11_spill] sm:$0xff] }
 0x652   : > { %v12708_v41 = vpop.f32.mrf.mxu0  ;;  %v12588_v54 = vadd.f32 %v16637_v51, %v21471_v35  ;;  %v12604_v51 = vadd.f32 %v16649_v49, %v21479_v52 }
 0x653   : > { %12823 = vst.msk [vmem:[%s21177_s8 + $0x38] sm:$0xff] %vm253_vm0, %v12717_v56  ;;  %v12709_v9 = vadd.f32 %v12708_v41, %v12548_v34  ;;  %v21472_v34 = vld [vmem:[#allocation22_spill] sm:$0xff] }
 0x654   : > { %v16832_v60 = vpop.f32.mrf.mxu0  ;;  %v16640_v41 = vadd.f32 %v21472_v34, %v21085_v39  ;;  %v21476_v39 = vld [vmem:[#allocation25_spill] sm:$0xff] }
 0x655   : > { %12821 = vst.msk [vmem:[%s21177_s8 + $0x28] sm:$0xff] %vm253_vm0, %v12709_v9  ;;  %v12730_v46 = vadd.f32 %v16832_v60, %v12569_v13  ;;  %v21473_v9 = vld [vmem:[#allocation13_spill] sm:$0xff] }
 0x656   : > { %v12721_v28 = vpop.f32.mrf.mxu0  ;;  %v12580_v13 = vadd.f32 %v16631_v21, %v21473_v9  ;;  %v21482_v21 = vld [vmem:[#allocation21_spill] sm:$0xff] }
 0x657   : > { %12826 = vst.msk [vmem:[%s21177_s8 + $0x50] sm:$0xff] %vm253_vm0, %v12730_v46  ;;  %v12722_v22 = vadd.f32 %v12721_v28, %v12561_v3  ;;  %v21475_v46 = vld [vmem:[#allocation24_spill] sm:$0xff]  ;;  %v21269_v28 = vpop.f32.mrf.mxu1 }
 0x658   : > { %v16833_v29 = vpop.f32.mrf.mxu0  ;;  %v12601_v3 = vadd.f32 %v16646_v19, %v21475_v46  ;;  %v12633_v46 = vadd.f32 %v16670_v53, %v21138_v2 }
 0x659   : > { %12824 = vst.msk [vmem:[%s21177_s8 + $0x40] sm:$0xff] %vm253_vm0, %v12722_v22  ;;  %v12733_v63 = vadd.f32 %v16833_v29, %v12572_v58  ;;  %v21477_v22 = vld [vmem:[#allocation27_spill] sm:$0xff] }
 0x65a   : > { %v12724_v24 = vpop.f32.mrf.mxu0  ;;  %v16643_v58 = vadd.f32 %v21477_v22, %v21476_v39  ;;  %v21487_v22 = vld [vmem:[#allocation30_spill] sm:$0xff] }
 0x65b   : > { %12827 = vst.msk [vmem:[%s21177_s8 + $0x58] sm:$0xff] %vm253_vm0, %v12733_v63  ;;  %v12725_v61 = vadd.f32 %v12724_v24, %v12564_v44  ;;  %v12593_v63 = vadd.f32 %v16640_v41, %v21478_v7 }
 0x65c   : > { %v16836_v36 = vpop.f32.mrf.mxu0 }
 0x65d   : > { %12825 = vst.msk [vmem:[%s21177_s8 + $0x48] sm:$0xff] %vm253_vm0, %v12725_v61  ;;  %v12746_v10 = vadd.f32 %v16836_v36, %v12585_v38  ;;  %v16678_v61 = vpop.f32.mrf.mxu1  ;;  %v21480_v38 = vld [vmem:[#allocation23_spill] sm:$0xff]  ;;  %v21481_v36 = vld [vmem:[#allocation26_spill] sm:$0xff] }
 0x65e   : > { %v12737_v31 = vpop.f32.mrf.mxu0  ;;  %v16652_v42 = vadd.f32 %v21481_v36, %v21480_v38 }
 0x65f   : > { %12830 = vst.msk [vmem:[%s21177_s8 + $0x70] sm:$0xff] %vm253_vm0, %v12746_v10  ;;  %v12738_v43 = vadd.f32 %v12737_v31, %v12577_v14  ;;  %v12596_v10 = vadd.f32 %v16643_v58, %v21482_v21  ;;  %v12617_v14 = vadd.f32 %v16658_v25, %v21118_v50  ;;  %v16680_v31 = vpop.f32.mrf.mxu1 }
 0x660   : > { %v16837_v56 = vpop.f32.mrf.mxu0 }
 0x661   : > { %12828 = vst.msk [vmem:[%s21177_s8 + $0x60] sm:$0xff] %vm253_vm0, %v12738_v43  ;;  %v12749_v17 = vadd.f32 %v16837_v56, %v12588_v54  ;;  %v21483_v43 = vld [vmem:[#allocation28_spill] sm:$0xff]  ;;  %v16681_v9 = vpop.f32.mrf.mxu1 }
 0x662   : > { %v12740_v60 = vpop.f32.mrf.mxu0  ;;  %v16655_v35 = vadd.f32 %v21125_v30, %v21483_v43  ;;  %v21484_v56 = vld [vmem:[#allocation20_spill] sm:$0xff]  ;;  %v16664_v30 = vadd.f32 %v21161_v55, %v21150_v4  ;;  %v16570_v55 = vadd.f32 %v21157_v40, %v21152_v23  ;;  %v16682_v45 = vadd.f32 %v16681_v9, %v16680_v31 }
 0x663   : > { %12831 = vst.msk [vmem:[%s21177_s8 + $0x78] sm:$0xff] %vm253_vm0, %v12749_v17  ;;  %v12741_v15 = vadd.f32 %v12740_v60, %v12580_v13  ;;  %v12609_v34 = vadd.f32 %v16652_v42, %v21484_v56  ;;  %v21485_v17 = vld [vmem:[#allocation29_spill] sm:$0xff]  ;;  %v16676_v40 = vadd.f32 %v21257_v20, %v21245_v27  ;;  %v16679_v27 = vadd.f32 %v16678_v61, %v21269_v28 }
 0x664   : > { %v16840_v6 = vpop.f32.mrf.mxu0  ;;  %v12620_v50 = vadd.f32 %v16661_v1, %v21485_v17  ;;  %v12612_v49 = vadd.f32 %v16655_v35, %v21486_v33  ;;  %v12625_v58 = vadd.f32 %v16664_v30, %v21487_v22 }
 0x665   : > { %12829 = vst.msk [vmem:[%s21177_s8 + $0x68] sm:$0xff] %vm253_vm0, %v12741_v15  ;;  %v12762_v29 = vadd.f32 %v16840_v6, %v12601_v3  ;;  %v16667_v3 = vadd.f32 %v21185_v11, %v21170_v62  ;;  %v16683_v6 = vpop.f32.mrf.mxu1 }
 0x666   : > { %v12753_v44 = vpop.f32.mrf.mxu0 }
 0x667   : > { %12834 = vst.msk [vmem:[%s21177_s8 + $0x90] sm:$0xff] %vm253_vm0, %v12762_v29  ;;  %v12754_v24 = vadd.f32 %v12753_v44, %v12593_v63  ;;  %v12636_v29 = vadd.f32 %v16673_v57, %v21143_v12  ;;  %v16684_v62 = vpop.f32.mrf.mxu1  ;;  %v12628_v7 = vadd.f32 %v16667_v3, %v21133_v0  ;;  %v21488_v63 = vld [vmem:[#allocation16_spill] sm:$0xff]  ;;  %v16573_v44 = vadd.f32 %v21165_v37, %v21163_v32 }
 0x668   : > { %v16841_v8 = vpop.f32.mrf.mxu0  ;;  %v12488_v23 = vadd.f32 %v16570_v55, %v21488_v63  ;;  %v16685_v12 = vadd.f32 %v16684_v62, %v16683_v6  ;;  %v12641_v37 = vadd.f32 %v16676_v40, %v21148_v16 }
 0x669   : > { %12832 = vst.msk [vmem:[%s21177_s8 + $0x80] sm:$0xff] %vm253_vm0, %v12754_v24  ;;  %v12765_v47 = vadd.f32 %v16841_v8, %v12604_v51  ;;  %v21489_v8 = vld [vmem:[#allocation18_spill] sm:$0xff] }
 0x66a   : > { %v12756_v26 = vpop.f32.mrf.mxu0  ;;  %v12649_v51 = vadd.f32 %v16682_v45, %v12488_v23  ;;  %v12491_v38 = vadd.f32 %v16573_v44, %v21489_v8 }
 0x66b   : > { %12835 = vst.msk [vmem:[%s21177_s8 + $0x98] sm:$0xff] %vm253_vm0, %v12765_v47  ;;  %v12757_v59 = vadd.f32 %v12756_v26, %v12596_v10  ;;  %v21490_v10 = vld [vmem:[#allocation31_spill] sm:$0xff] }
 0x66c   : > { %v16844_v19 = vpop.f32.mrf.mxu0  ;;  %v12652_v42 = vadd.f32 %v16685_v12, %v12491_v38  ;;  %v12644_v26 = vadd.f32 %v16679_v27, %v21490_v10 }
 0x66d   : > { %12833 = vst.msk [vmem:[%s21177_s8 + $0x88] sm:$0xff] %vm253_vm0, %v12757_v59  ;;  %v12778_v54 = vadd.f32 %v16844_v19, %v12617_v14 }
 0x66e   : > { %v12769_v41 = vpop.f32.mrf.mxu0 }
 0x66f   : > { %12838 = vst.msk [vmem:[%s21177_s8 + $0xb0] sm:$0xff] %vm253_vm0, %v12778_v54  ;;  %v12770_v48 = vadd.f32 %v12769_v41, %v12609_v34 }
 0x670   : > { %v16845_v13 = vpop.f32.mrf.mxu0 }
 0x671   : > { %12836 = vst.msk [vmem:[%s21177_s8 + $0xa0] sm:$0xff] %vm253_vm0, %v12770_v48  ;;  %v12781_v60 = vadd.f32 %v16845_v13, %v12620_v50 }
 0x672   : > { %v12772_v15 = vpop.f32.mrf.mxu0 }
 0x673   : > { %12839 = vst.msk [vmem:[%s21177_s8 + $0xb8] sm:$0xff] %vm253_vm0, %v12781_v60  ;;  %v12773_v5 = vadd.f32 %v12772_v15, %v12612_v49 }
 0x674   : > { %v16848_v4 = vpop.f32.mrf.mxu0 }
 0x675   : > { %12837 = vst.msk [vmem:[%s21177_s8 + $0xa8] sm:$0xff] %vm253_vm0, %v12773_v5  ;;  %v12794_v39 = vadd.f32 %v16848_v4, %v12633_v46 }
 0x676   : > { %v12785_v18 = vpop.f32.mrf.mxu0 }
 0x677   : > { %12842 = vst.msk [vmem:[%s21177_s8 + $0xd0] sm:$0xff] %vm253_vm0, %v12794_v39  ;;  %v12786_v2 = vadd.f32 %v12785_v18, %v12625_v58 }
 0x678   : > { %v16849_v11 = vpop.f32.mrf.mxu0 }
 0x679   : > { %12840 = vst.msk [vmem:[%s21177_s8 + $0xc0] sm:$0xff] %vm253_vm0, %v12786_v2  ;;  %v12797_v25 = vadd.f32 %v16849_v11, %v12636_v29 }
 0x67a   : > { %v12788_v24 = vpop.f32.mrf.mxu0 }
 0x67b   : > { %12843 = vst.msk [vmem:[%s21177_s8 + $0xd8] sm:$0xff] %vm253_vm0, %v12797_v25  ;;  %v12789_v52 = vadd.f32 %v12788_v24, %v12628_v7 }
 0x67c   : > { %v16852_v0 = vpop.f32.mrf.mxu0 }
 0x67d   : > { %12841 = vst.msk [vmem:[%s21177_s8 + $0xc8] sm:$0xff] %vm253_vm0, %v12789_v52  ;;  %v12810_v32 = vadd.f32 %v16852_v0, %v12649_v51 }
 0x67e   : > { %v12801_v20 = vpop.f32.mrf.mxu0 }
 0x67f   : > { %12846 = vst.msk [vmem:[%s21177_s8 + $0xf0] sm:$0xff] %vm253_vm0, %v12810_v32  ;;  %v12802_v36 = vadd.f32 %v12801_v20, %v12641_v37 }
 0x680   : > { %v16853_v47 = vpop.f32.mrf.mxu0 }
 0x681   : > { %12844 = vst.msk [vmem:[%s21177_s8 + $0xe0] sm:$0xff] %vm253_vm0, %v12802_v36  ;;  %v12813_v21 = vadd.f32 %v16853_v47, %v12652_v42 }
 0x682   : > { %v12804_v1 = vpop.f32.mrf.mxu0 }
 0x683   : > { %12847 = vst.msk [vmem:[%s21177_s8 + $0xf8] sm:$0xff] %vm253_vm0, %v12813_v21  ;;  %v12805_v28 = vadd.f32 %v12804_v1, %v12644_v26 }
 0x685   : > { %12845 = vst.msk [vmem:[%s21177_s8 + $0xe8] sm:$0xff] %vm253_vm0, %v12805_v28 }
 0x686 PF: > { %s16_s21 = sadd.s32 1, %s17681_s21  }
 0x687   : > { %p13_p4 = scmp.ge.s32.totalorder %s16_s21, 4  }
 0x689   :  { %15 = sbr.rel (!%p13_p4) target bundleno = 1 (0x1), region = 78 }

</bundles_post_ra>
